<compile_context>
chip_gen: v7x
topology: tpu7x:2x2x1
jax: 0.10.0
libtpu: 0.0.40
codegen_flags: <defaults>
</compile_context>

<pallas_src>
import functools

import jax
import jax.numpy as jnp
from jax.experimental import pallas as pl
from jax.experimental.pallas import tpu as pltpu


def _convblock_fused_kernel(*refs, H, W, layer_dims, groups, eps):
    """One batch element: niters x (3x3 conv (pad=1) + GroupNorm + ReLU).

    refs layout (positional, as passed by pallas_call):
      refs[0]                       : x_ref   (1, H, W, Cin0)   input sample
      refs[1 + 4*l .. 4 + 4*l]      : w_ref   (9*Cin_l, Cout_l) im2col weights
                                      b_ref   (1, Cout_l)       conv bias
                                      g_ref   (1, Cout_l)       GN gamma
                                      bt_ref  (1, Cout_l)       GN beta
      refs[1 + 4*n_layers]          : o_ref   (1, H*W, Cout_last)
      refs[2 + 4*n_layers]          : xp_ref  (H+2, W+2, Cmax)  VMEM scratch
                                      (zero-padded activation buffer)
    """
    n_layers = len(layer_dims)
    x_ref = refs[0]
    o_ref = refs[1 + 4 * n_layers]
    xp_ref = refs[2 + 4 * n_layers]

    # Zero the padded scratch once per sample: the border ring stays zero for
    # every layer (interior writes never touch it) and implements padding=1.
    xp_ref[...] = jnp.zeros_like(xp_ref)
    cin0 = layer_dims[0][0]
    xp_ref[1:H + 1, 1:W + 1, :cin0] = x_ref[0]

    for l in range(n_layers):
        cin, cout = layer_dims[l]
        w_ref, b_ref, g_ref, bt_ref = refs[1 + 4 * l: 1 + 4 * (l + 1)]
        grp = groups[l]
        cpg = cout // grp

        # ---- 3x3 conv as a single im2col MXU matmul (K = 9*cin) ----------
        taps = [xp_ref[ky:ky + H, kx:kx + W, :cin].reshape(H * W, cin)
                for ky in range(3) for kx in range(3)]
        patches = jnp.concatenate(taps, axis=-1)              # (H*W, 9*cin)
        acc = jnp.dot(patches, w_ref[...],
                      preferred_element_type=jnp.float32)     # (H*W, cout)
        acc = acc + b_ref[...]                                # bias broadcast

        # ---- GroupNorm (per-sample, per-group), single pass --------------
        # One sum and one sum-of-squares over the spatial axis (channel lanes
        # kept), then a tiny per-group fold on the (1, cout) stats; applied as
        # a fused per-channel scale/shift.
        s1 = jnp.sum(acc, axis=0, keepdims=True)              # (1, cout)
        s2 = jnp.sum(acc * acc, axis=0, keepdims=True)        # (1, cout)
        cnt = float(H * W * cpg)
        mean_parts, rstd_parts = [], []
        for g in range(grp):
            m = jnp.sum(s1[:, g * cpg:(g + 1) * cpg]) / cnt
            v = jnp.sum(s2[:, g * cpg:(g + 1) * cpg]) / cnt - m * m
            r = jax.lax.rsqrt(v + eps)
            mean_parts.append(jnp.full((1, cpg), m, jnp.float32))
            rstd_parts.append(jnp.full((1, cpg), r, jnp.float32))
        mean_c = jnp.concatenate(mean_parts, axis=-1)         # (1, cout)
        rstd_c = jnp.concatenate(rstd_parts, axis=-1)         # (1, cout)

        scale = g_ref[...] * rstd_c                           # (1, cout)
        shift = bt_ref[...] - mean_c * scale
        y = jnp.maximum(acc * scale + shift, 0.0)             # affine + ReLU

        if l + 1 < n_layers:
            # Next layer's input: write back into the padded VMEM scratch
            # interior (stays on-chip; the zero ring is untouched).
            xp_ref[1:H + 1, 1:W + 1, :cout] = y.reshape(H, W, cout)
        else:
            o_ref[0] = y                                      # (H*W, cout)


def convblock_forward(x_nchw, params, *, eps=1e-5):
    """x_nchw: (N, Cin, H, W).  params: list of per-layer dicts.  -> NCHW."""
    x = jnp.transpose(x_nchw, (0, 2, 3, 1))                   # NCHW -> NHWC
    N, H, W, _ = x.shape
    layer_dims = tuple((p["w"].shape[2], p["w"].shape[3]) for p in params)
    groups = tuple(p["groups"] for p in params)
    cmax = max(max(ci, co) for ci, co in layer_dims)
    cout_last = layer_dims[-1][1]

    kernel = functools.partial(_convblock_fused_kernel, H=H, W=W,
                               layer_dims=layer_dims, groups=groups, eps=eps)

    in_specs = [pl.BlockSpec((1, H, W, layer_dims[0][0]),
                             lambda n: (n, 0, 0, 0))]
    args = [x]
    for p, (ci, co) in zip(params, layer_dims):
        # Pre-reshape weights to im2col layout (9*Cin, Cout); HWIO flattening
        # matches the (ky, kx, cin) order of the in-kernel tap concatenation.
        args += [p["w"].reshape(9 * ci, co),
                 p["b"].reshape(1, co),
                 p["gamma"].reshape(1, co),
                 p["beta"].reshape(1, co)]
        in_specs += [
            pl.BlockSpec((9 * ci, co), lambda n: (0, 0)),
            pl.BlockSpec((1, co), lambda n: (0, 0)),
            pl.BlockSpec((1, co), lambda n: (0, 0)),
            pl.BlockSpec((1, co), lambda n: (0, 0)),
        ]

    out = pl.pallas_call(
        kernel,
        out_shape=jax.ShapeDtypeStruct((N, H * W, cout_last), jnp.float32),
        grid_spec=pltpu.PrefetchScalarGridSpec(
            num_scalar_prefetch=0,
            grid=(N,),                                  # one sample per step
            in_specs=in_specs,
            out_specs=pl.BlockSpec((1, H * W, cout_last), lambda n: (n, 0, 0)),
            scratch_shapes=[pltpu.VMEM((H + 2, W + 2, cmax), jnp.float32)],
        ),
        compiler_params=pltpu.CompilerParams(
            dimension_semantics=("parallel",)),
    )(*args)

    out = out.reshape(N, H, W, cout_last)
    return jnp.transpose(out, (0, 3, 1, 2))                   # NHWC -> NCHW


# ----------------------------------------------------------------------------
# ConvBlock parameters (args: niters=3, in_ch=4, mid_ch=8, out_ch=8,
# conv_kernel=3, conv_stride=1, conv_paddings=1, normalization_type='group',
# group_size=4  ->  GroupNorm(num_groups=channels // 4)).
# ----------------------------------------------------------------------------
def init_convblock_params(key, in_ch, mid_ch, out_ch, niters, group_size):
    chans = [(in_ch, mid_ch)] + [(mid_ch, mid_ch)] * (niters - 2) + [(mid_ch, out_ch)]
    params = []
    for (ci, co) in chans:
        key, k_w, k_b, k_g, k_bt = jax.random.split(key, 5)
        w = jax.random.normal(k_w, (3, 3, ci, co), jnp.float32) * (1.0 / (3 * 3 * ci)) ** 0.5
        b = jax.random.normal(k_b, (co,), jnp.float32) * 0.05
        gamma = 1.0 + 0.1 * jax.random.normal(k_g, (co,), jnp.float32)
        beta = 0.1 * jax.random.normal(k_bt, (co,), jnp.float32)
        groups = int(max(1, co // group_size))                # integer division
        params.append(dict(w=w, b=b, gamma=gamma, beta=beta, groups=groups))
    return params


# Pure-JAX reference (correctness check only).
def _ref_layer(x_nchw, w, b, gamma, beta, groups, eps=1e-5):
    w_oihw = jnp.transpose(w, (3, 2, 0, 1))
    y = jax.lax.conv_general_dilated(
        x_nchw, w_oihw, (1, 1), ((1, 1), (1, 1)),
        dimension_numbers=('NCHW', 'OIHW', 'NCHW'))
    y = y + b[None, :, None, None]
    N, C, H, W = y.shape
    yg = y.reshape(N, groups, C // groups, H, W)
    mean = jnp.mean(yg, axis=(2, 3, 4), keepdims=True)
    var = jnp.mean((yg - mean) ** 2, axis=(2, 3, 4), keepdims=True)
    yn = ((yg - mean) * jax.lax.rsqrt(var + eps)).reshape(N, C, H, W)
    out = yn * gamma[None, :, None, None] + beta[None, :, None, None]
    return jnp.maximum(out, 0.0)


def _ref_forward(x_nchw, params):
    x = x_nchw
    for p in params:
        x = _ref_layer(x, p["w"], p["b"], p["gamma"], p["beta"], p["groups"])
    return x


if __name__ == "__main__":
    key = jax.random.PRNGKey(0)
    k_x, k_p = jax.random.split(key)

    # Small shapes implied by the module: batch=2, in_ch=4, mid_ch=8, out_ch=8,
    # spatial 16x16, niters=3, group_size=4.
    N, IN_CH, MID_CH, OUT_CH, HW, NITERS, GROUP_SIZE = 2, 4, 8, 8, 16, 3, 4

    x = jax.random.normal(k_x, (N, IN_CH, HW, HW), jnp.float32)   # NCHW input
    params = init_convblock_params(k_p, IN_CH, MID_CH, OUT_CH, NITERS, GROUP_SIZE)

    out = convblock_forward(x, params)
    out = jax.block_until_ready(out)

    ref = _ref_forward(x, params)
    assert out.shape == (N, OUT_CH, HW, HW)
    assert jnp.allclose(out, ref, atol=2e-4, rtol=2e-4), "mismatch vs reference"

    print("KERNEL_OK")
</pallas_src>

<mosaic_0001>
module attributes {stable_mosaic.version = 11 : i64} {
  func.func @_convblock_fused_kernel(%arg0: i32, %arg1: memref<1x16x16x4xf32, #tpu.memory_space<vmem>>, %arg2: memref<36x8xf32, #tpu.memory_space<vmem>>, %arg3: memref<1x8xf32, #tpu.memory_space<vmem>>, %arg4: memref<1x8xf32, #tpu.memory_space<vmem>>, %arg5: memref<1x8xf32, #tpu.memory_space<vmem>>, %arg6: memref<72x8xf32, #tpu.memory_space<vmem>>, %arg7: memref<1x8xf32, #tpu.memory_space<vmem>>, %arg8: memref<1x8xf32, #tpu.memory_space<vmem>>, %arg9: memref<1x8xf32, #tpu.memory_space<vmem>>, %arg10: memref<72x8xf32, #tpu.memory_space<vmem>>, %arg11: memref<1x8xf32, #tpu.memory_space<vmem>>, %arg12: memref<1x8xf32, #tpu.memory_space<vmem>>, %arg13: memref<1x8xf32, #tpu.memory_space<vmem>>, %arg14: memref<1x256x8xf32, #tpu.memory_space<vmem>>, %arg15: memref<18x18x8xf32, #tpu.memory_space<vmem>>) attributes {dimension_semantics = [#tpu.dimension_semantics<parallel>], iteration_bounds = array<i64: 2>, scalar_prefetch = 0 : i64, scratch_operands = 1 : i64, tpu.core_type = #tpu.core_type<tc>, window_params = [{transform_indices = @transform_0, window_bounds = array<i64: 1, 16, 16, 4>}, {pipeline_mode = #tpu.pipeline_mode<synchronous>, transform_indices = @transform_1, window_bounds = array<i64: 36, 8>}, {pipeline_mode = #tpu.pipeline_mode<synchronous>, transform_indices = @transform_2, window_bounds = array<i64: 1, 8>}, {pipeline_mode = #tpu.pipeline_mode<synchronous>, transform_indices = @transform_3, window_bounds = array<i64: 1, 8>}, {pipeline_mode = #tpu.pipeline_mode<synchronous>, transform_indices = @transform_4, window_bounds = array<i64: 1, 8>}, {pipeline_mode = #tpu.pipeline_mode<synchronous>, transform_indices = @transform_5, window_bounds = array<i64: 72, 8>}, {pipeline_mode = #tpu.pipeline_mode<synchronous>, transform_indices = @transform_6, window_bounds = array<i64: 1, 8>}, {pipeline_mode = #tpu.pipeline_mode<synchronous>, transform_indices = @transform_7, window_bounds = array<i64: 1, 8>}, {pipeline_mode = #tpu.pipeline_mode<synchronous>, transform_indices = @transform_8, window_bounds = array<i64: 1, 8>}, {pipeline_mode = #tpu.pipeline_mode<synchronous>, transform_indices = @transform_9, window_bounds = array<i64: 72, 8>}, {pipeline_mode = #tpu.pipeline_mode<synchronous>, transform_indices = @transform_10, window_bounds = array<i64: 1, 8>}, {pipeline_mode = #tpu.pipeline_mode<synchronous>, transform_indices = @transform_11, window_bounds = array<i64: 1, 8>}, {pipeline_mode = #tpu.pipeline_mode<synchronous>, transform_indices = @transform_12, window_bounds = array<i64: 1, 8>}, {transform_indices = @transform_13, window_bounds = array<i64: 1, 256, 8>}]} {
    %cst = arith.constant 0.000000e+00 : f32
    %0 = vector.broadcast %cst : f32 to vector<18x18x8xf32>
    %c0 = arith.constant 0 : index
    %c0_0 = arith.constant 0 : index
    %c0_1 = arith.constant 0 : index
    %1 = vector.load %arg15[%c0, %c0_0, %c0_1] : memref<18x18x8xf32, #tpu.memory_space<vmem>>, vector<18x18x8xf32>
    tpu.vector_store %arg15[%c0, %c0_0, %c0_1], %0 {strides = array<i32>} : memref<18x18x8xf32, #tpu.memory_space<vmem>>, vector<18x18x8xf32>,
    %c0_2 = arith.constant 0 : index
    %c0_3 = arith.constant 0 : index
    %c0_4 = arith.constant 0 : index
    %c0_5 = arith.constant 0 : index
    %2 = vector.load %arg1[%c0_2, %c0_3, %c0_4, %c0_5] : memref<1x16x16x4xf32, #tpu.memory_space<vmem>>, vector<1x16x16x4xf32>
    %3 = vector.shape_cast %2 : vector<1x16x16x4xf32> to vector<16x16x4xf32>
    %c1 = arith.constant 1 : index
    %c1_6 = arith.constant 1 : index
    %c0_7 = arith.constant 0 : index
    %4 = vector.load %arg15[%c1, %c1_6, %c0_7] : memref<18x18x8xf32, #tpu.memory_space<vmem>>, vector<16x16x4xf32>
    tpu.vector_store %arg15[%c1, %c1_6, %c0_7], %3 {strides = array<i32>} : memref<18x18x8xf32, #tpu.memory_space<vmem>>, vector<16x16x4xf32>,
    %c0_8 = arith.constant 0 : index
    %c0_9 = arith.constant 0 : index
    %c0_10 = arith.constant 0 : index
    %5 = vector.load %arg15[%c0_8, %c0_9, %c0_10] : memref<18x18x8xf32, #tpu.memory_space<vmem>>, vector<16x16x4xf32>
    %6 = vector.shape_cast %5 : vector<16x16x4xf32> to vector<256x4xf32>
    %c0_11 = arith.constant 0 : index
    %c1_12 = arith.constant 1 : index
    %c0_13 = arith.constant 0 : index
    %7 = vector.load %arg15[%c0_11, %c1_12, %c0_13] : memref<18x18x8xf32, #tpu.memory_space<vmem>>, vector<16x16x4xf32>
    %8 = vector.shape_cast %7 : vector<16x16x4xf32> to vector<256x4xf32>
    %c0_14 = arith.constant 0 : index
    %c2 = arith.constant 2 : index
    %c0_15 = arith.constant 0 : index
    %9 = vector.load %arg15[%c0_14, %c2, %c0_15] : memref<18x18x8xf32, #tpu.memory_space<vmem>>, vector<16x16x4xf32>
    %10 = vector.shape_cast %9 : vector<16x16x4xf32> to vector<256x4xf32>
    %c1_16 = arith.constant 1 : index
    %c0_17 = arith.constant 0 : index
    %c0_18 = arith.constant 0 : index
    %11 = vector.load %arg15[%c1_16, %c0_17, %c0_18] : memref<18x18x8xf32, #tpu.memory_space<vmem>>, vector<16x16x4xf32>
    %12 = vector.shape_cast %11 : vector<16x16x4xf32> to vector<256x4xf32>
    %c1_19 = arith.constant 1 : index
    %c1_20 = arith.constant 1 : index
    %c0_21 = arith.constant 0 : index
    %13 = vector.load %arg15[%c1_19, %c1_20, %c0_21] : memref<18x18x8xf32, #tpu.memory_space<vmem>>, vector<16x16x4xf32>
    %14 = vector.shape_cast %13 : vector<16x16x4xf32> to vector<256x4xf32>
    %c1_22 = arith.constant 1 : index
    %c2_23 = arith.constant 2 : index
    %c0_24 = arith.constant 0 : index
    %15 = vector.load %arg15[%c1_22, %c2_23, %c0_24] : memref<18x18x8xf32, #tpu.memory_space<vmem>>, vector<16x16x4xf32>
    %16 = vector.shape_cast %15 : vector<16x16x4xf32> to vector<256x4xf32>
    %c2_25 = arith.constant 2 : index
    %c0_26 = arith.constant 0 : index
    %c0_27 = arith.constant 0 : index
    %17 = vector.load %arg15[%c2_25, %c0_26, %c0_27] : memref<18x18x8xf32, #tpu.memory_space<vmem>>, vector<16x16x4xf32>
    %18 = vector.shape_cast %17 : vector<16x16x4xf32> to vector<256x4xf32>
    %c2_28 = arith.constant 2 : index
    %c1_29 = arith.constant 1 : index
    %c0_30 = arith.constant 0 : index
    %19 = vector.load %arg15[%c2_28, %c1_29, %c0_30] : memref<18x18x8xf32, #tpu.memory_space<vmem>>, vector<16x16x4xf32>
    %20 = vector.shape_cast %19 : vector<16x16x4xf32> to vector<256x4xf32>
    %c2_31 = arith.constant 2 : index
    %c2_32 = arith.constant 2 : index
    %c0_33 = arith.constant 0 : index
    %21 = vector.load %arg15[%c2_31, %c2_32, %c0_33] : memref<18x18x8xf32, #tpu.memory_space<vmem>>, vector<16x16x4xf32>
    %22 = vector.shape_cast %21 : vector<16x16x4xf32> to vector<256x4xf32>
    %23 = tpu.concatenate %6, %8, %10, %12, %14, %16, %18, %20, %22 in 1 : vector<256x4xf32>, vector<256x4xf32>, vector<256x4xf32>, vector<256x4xf32>, vector<256x4xf32>, vector<256x4xf32>, vector<256x4xf32>, vector<256x4xf32>, vector<256x4xf32> -> vector<256x36xf32>
    %c0_34 = arith.constant 0 : index
    %c0_35 = arith.constant 0 : index
    %24 = vector.load %arg2[%c0_34, %c0_35] : memref<36x8xf32, #tpu.memory_space<vmem>>, vector<36x8xf32>
    %cst_36 = arith.constant dense<0.000000e+00> : vector<256x8xf32>
    %25 = tpu.matmul %23, %24, %cst_36 {dimension_numbers = #tpu.dot_dimension_numbers<[1], [0], [0], [1], [0, 0, 1, 1], [], []>} : vector<256x36xf32>, vector<36x8xf32>, vector<256x8xf32> -> vector<256x8xf32>
    %c0_37 = arith.constant 0 : index
    %c0_38 = arith.constant 0 : index
    %26 = vector.load %arg3[%c0_37, %c0_38] : memref<1x8xf32, #tpu.memory_space<vmem>>, vector<1x8xf32>
    %27 = vector.broadcast %26 : vector<1x8xf32> to vector<256x8xf32>
    %28 = arith.addf %25, %27 : vector<256x8xf32>
    %cst_39 = arith.constant dense<0.000000e+00> : vector<8xf32>
    %29 = vector.multi_reduction <add>, %28, %cst_39 [0] : vector<256x8xf32> to vector<8xf32>
    %30 = vector.shape_cast %29 : vector<8xf32> to vector<1x8xf32>
    %31 = arith.mulf %28, %28 : vector<256x8xf32>
    %cst_40 = arith.constant dense<0.000000e+00> : vector<8xf32>
    %32 = vector.multi_reduction <add>, %31, %cst_40 [0] : vector<256x8xf32> to vector<8xf32>
    %33 = vector.shape_cast %32 : vector<8xf32> to vector<1x8xf32>
    %34 = vector.extract_strided_slice %30 {offsets = [0, 0], sizes = [1, 4], strides = [1, 1]} : vector<1x8xf32> to vector<1x4xf32>
    %35 = vector.shape_cast %34 : vector<1x4xf32> to vector<1x1x4xf32>
    %cst_41 = arith.constant dense<0.000000e+00> : vector<1xf32>
    %36 = vector.multi_reduction <add>, %35, %cst_41 [1, 2] : vector<1x1x4xf32> to vector<1xf32>
    %37 = vector.shape_cast %36 : vector<1xf32> to vector<1x1x1xf32>
    %38 = vector.extract %37[0, 0, 0] : f32 from vector<1x1x1xf32>
    %cst_42 = arith.constant 1.024000e+03 : f32
    %39 = arith.divf %38, %cst_42 : f32
    %40 = vector.extract_strided_slice %33 {offsets = [0, 0], sizes = [1, 4], strides = [1, 1]} : vector<1x8xf32> to vector<1x4xf32>
    %41 = vector.shape_cast %40 : vector<1x4xf32> to vector<1x1x4xf32>
    %cst_43 = arith.constant dense<0.000000e+00> : vector<1xf32>
    %42 = vector.multi_reduction <add>, %41, %cst_43 [1, 2] : vector<1x1x4xf32> to vector<1xf32>
    %43 = vector.shape_cast %42 : vector<1xf32> to vector<1x1x1xf32>
    %44 = vector.extract %43[0, 0, 0] : f32 from vector<1x1x1xf32>
    %cst_44 = arith.constant 1.024000e+03 : f32
    %45 = arith.divf %44, %cst_44 : f32
    %46 = arith.mulf %39, %39 : f32
    %47 = arith.subf %45, %46 : f32
    %cst_45 = arith.constant 9.99999974E-6 : f32
    %48 = arith.addf %47, %cst_45 : f32
    %49 = math.rsqrt %48 : f32
    %50 = vector.broadcast %39 : f32 to vector<1x4xf32>
    %51 = vector.broadcast %49 : f32 to vector<1x4xf32>
    %52 = vector.extract_strided_slice %30 {offsets = [0, 4], sizes = [1, 4], strides = [1, 1]} : vector<1x8xf32> to vector<1x4xf32>
    %53 = vector.shape_cast %52 : vector<1x4xf32> to vector<1x1x4xf32>
    %cst_46 = arith.constant dense<0.000000e+00> : vector<1xf32>
    %54 = vector.multi_reduction <add>, %53, %cst_46 [1, 2] : vector<1x1x4xf32> to vector<1xf32>
    %55 = vector.shape_cast %54 : vector<1xf32> to vector<1x1x1xf32>
    %56 = vector.extract %55[0, 0, 0] : f32 from vector<1x1x1xf32>
    %cst_47 = arith.constant 1.024000e+03 : f32
    %57 = arith.divf %56, %cst_47 : f32
    %58 = vector.extract_strided_slice %33 {offsets = [0, 4], sizes = [1, 4], strides = [1, 1]} : vector<1x8xf32> to vector<1x4xf32>
    %59 = vector.shape_cast %58 : vector<1x4xf32> to vector<1x1x4xf32>
    %cst_48 = arith.constant dense<0.000000e+00> : vector<1xf32>
    %60 = vector.multi_reduction <add>, %59, %cst_48 [1, 2] : vector<1x1x4xf32> to vector<1xf32>
    %61 = vector.shape_cast %60 : vector<1xf32> to vector<1x1x1xf32>
    %62 = vector.extract %61[0, 0, 0] : f32 from vector<1x1x1xf32>
    %cst_49 = arith.constant 1.024000e+03 : f32
    %63 = arith.divf %62, %cst_49 : f32
    %64 = arith.mulf %57, %57 : f32
    %65 = arith.subf %63, %64 : f32
    %cst_50 = arith.constant 9.99999974E-6 : f32
    %66 = arith.addf %65, %cst_50 : f32
    %67 = math.rsqrt %66 : f32
    %68 = vector.broadcast %57 : f32 to vector<1x4xf32>
    %69 = vector.broadcast %67 : f32 to vector<1x4xf32>
    %70 = tpu.concatenate %50, %68 in 1 : vector<1x4xf32>, vector<1x4xf32> -> vector<1x8xf32>
    %71 = tpu.concatenate %51, %69 in 1 : vector<1x4xf32>, vector<1x4xf32> -> vector<1x8xf32>
    %c0_51 = arith.constant 0 : index
    %c0_52 = arith.constant 0 : index
    %72 = vector.load %arg4[%c0_51, %c0_52] : memref<1x8xf32, #tpu.memory_space<vmem>>, vector<1x8xf32>
    %73 = arith.mulf %72, %71 : vector<1x8xf32>
    %c0_53 = arith.constant 0 : index
    %c0_54 = arith.constant 0 : index
    %74 = vector.load %arg5[%c0_53, %c0_54] : memref<1x8xf32, #tpu.memory_space<vmem>>, vector<1x8xf32>
    %75 = arith.mulf %70, %73 : vector<1x8xf32>
    %76 = arith.subf %74, %75 : vector<1x8xf32>
    %77 = vector.broadcast %73 : vector<1x8xf32> to vector<256x8xf32>
    %78 = arith.mulf %28, %77 : vector<256x8xf32>
    %79 = vector.broadcast %76 : vector<1x8xf32> to vector<256x8xf32>
    %80 = arith.addf %78, %79 : vector<256x8xf32>
    %cst_55 = arith.constant 0.000000e+00 : f32
    %81 = vector.broadcast %cst_55 : f32 to vector<256x8xf32>
    %82 = arith.maximumf %80, %81 : vector<256x8xf32>
    %83 = vector.shape_cast %82 : vector<256x8xf32> to vector<16x16x8xf32>
    %c1_56 = arith.constant 1 : index
    %c1_57 = arith.constant 1 : index
    %c0_58 = arith.constant 0 : index
    %84 = vector.load %arg15[%c1_56, %c1_57, %c0_58] : memref<18x18x8xf32, #tpu.memory_space<vmem>>, vector<16x16x8xf32>
    tpu.vector_store %arg15[%c1_56, %c1_57, %c0_58], %83 {strides = array<i32>} : memref<18x18x8xf32, #tpu.memory_space<vmem>>, vector<16x16x8xf32>,
    %c0_59 = arith.constant 0 : index
    %c0_60 = arith.constant 0 : index
    %c0_61 = arith.constant 0 : index
    %85 = vector.load %arg15[%c0_59, %c0_60, %c0_61] : memref<18x18x8xf32, #tpu.memory_space<vmem>>, vector<16x16x8xf32>
    %86 = vector.shape_cast %85 : vector<16x16x8xf32> to vector<256x8xf32>
    %c0_62 = arith.constant 0 : index
    %c1_63 = arith.constant 1 : index
    %c0_64 = arith.constant 0 : index
    %87 = vector.load %arg15[%c0_62, %c1_63, %c0_64] : memref<18x18x8xf32, #tpu.memory_space<vmem>>, vector<16x16x8xf32>
    %88 = vector.shape_cast %87 : vector<16x16x8xf32> to vector<256x8xf32>
    %c0_65 = arith.constant 0 : index
    %c2_66 = arith.constant 2 : index
    %c0_67 = arith.constant 0 : index
    %89 = vector.load %arg15[%c0_65, %c2_66, %c0_67] : memref<18x18x8xf32, #tpu.memory_space<vmem>>, vector<16x16x8xf32>
    %90 = vector.shape_cast %89 : vector<16x16x8xf32> to vector<256x8xf32>
    %c1_68 = arith.constant 1 : index
    %c0_69 = arith.constant 0 : index
    %c0_70 = arith.constant 0 : index
    %91 = vector.load %arg15[%c1_68, %c0_69, %c0_70] : memref<18x18x8xf32, #tpu.memory_space<vmem>>, vector<16x16x8xf32>
    %92 = vector.shape_cast %91 : vector<16x16x8xf32> to vector<256x8xf32>
    %c1_71 = arith.constant 1 : index
    %c1_72 = arith.constant 1 : index
    %c0_73 = arith.constant 0 : index
    %93 = vector.load %arg15[%c1_71, %c1_72, %c0_73] : memref<18x18x8xf32, #tpu.memory_space<vmem>>, vector<16x16x8xf32>
    %94 = vector.shape_cast %93 : vector<16x16x8xf32> to vector<256x8xf32>
    %c1_74 = arith.constant 1 : index
    %c2_75 = arith.constant 2 : index
    %c0_76 = arith.constant 0 : index
    %95 = vector.load %arg15[%c1_74, %c2_75, %c0_76] : memref<18x18x8xf32, #tpu.memory_space<vmem>>, vector<16x16x8xf32>
    %96 = vector.shape_cast %95 : vector<16x16x8xf32> to vector<256x8xf32>
    %c2_77 = arith.constant 2 : index
    %c0_78 = arith.constant 0 : index
    %c0_79 = arith.constant 0 : index
    %97 = vector.load %arg15[%c2_77, %c0_78, %c0_79] : memref<18x18x8xf32, #tpu.memory_space<vmem>>, vector<16x16x8xf32>
    %98 = vector.shape_cast %97 : vector<16x16x8xf32> to vector<256x8xf32>
    %c2_80 = arith.constant 2 : index
    %c1_81 = arith.constant 1 : index
    %c0_82 = arith.constant 0 : index
    %99 = vector.load %arg15[%c2_80, %c1_81, %c0_82] : memref<18x18x8xf32, #tpu.memory_space<vmem>>, vector<16x16x8xf32>
    %100 = vector.shape_cast %99 : vector<16x16x8xf32> to vector<256x8xf32>
    %c2_83 = arith.constant 2 : index
    %c2_84 = arith.constant 2 : index
    %c0_85 = arith.constant 0 : index
    %101 = vector.load %arg15[%c2_83, %c2_84, %c0_85] : memref<18x18x8xf32, #tpu.memory_space<vmem>>, vector<16x16x8xf32>
    %102 = vector.shape_cast %101 : vector<16x16x8xf32> to vector<256x8xf32>
    %103 = tpu.concatenate %86, %88, %90, %92, %94, %96, %98, %100, %102 in 1 : vector<256x8xf32>, vector<256x8xf32>, vector<256x8xf32>, vector<256x8xf32>, vector<256x8xf32>, vector<256x8xf32>, vector<256x8xf32>, vector<256x8xf32>, vector<256x8xf32> -> vector<256x72xf32>
    %c0_86 = arith.constant 0 : index
    %c0_87 = arith.constant 0 : index
    %104 = vector.load %arg6[%c0_86, %c0_87] : memref<72x8xf32, #tpu.memory_space<vmem>>, vector<72x8xf32>
    %cst_88 = arith.constant dense<0.000000e+00> : vector<256x8xf32>
    %105 = tpu.matmul %103, %104, %cst_88 {dimension_numbers = #tpu.dot_dimension_numbers<[1], [0], [0], [1], [0, 0, 1, 1], [], []>} : vector<256x72xf32>, vector<72x8xf32>, vector<256x8xf32> -> vector<256x8xf32>
    %c0_89 = arith.constant 0 : index
    %c0_90 = arith.constant 0 : index
    %106 = vector.load %arg7[%c0_89, %c0_90] : memref<1x8xf32, #tpu.memory_space<vmem>>, vector<1x8xf32>
    %107 = vector.broadcast %106 : vector<1x8xf32> to vector<256x8xf32>
    %108 = arith.addf %105, %107 : vector<256x8xf32>
    %cst_91 = arith.constant dense<0.000000e+00> : vector<8xf32>
    %109 = vector.multi_reduction <add>, %108, %cst_91 [0] : vector<256x8xf32> to vector<8xf32>
    %110 = vector.shape_cast %109 : vector<8xf32> to vector<1x8xf32>
    %111 = arith.mulf %108, %108 : vector<256x8xf32>
    %cst_92 = arith.constant dense<0.000000e+00> : vector<8xf32>
    %112 = vector.multi_reduction <add>, %111, %cst_92 [0] : vector<256x8xf32> to vector<8xf32>
    %113 = vector.shape_cast %112 : vector<8xf32> to vector<1x8xf32>
    %114 = vector.extract_strided_slice %110 {offsets = [0, 0], sizes = [1, 4], strides = [1, 1]} : vector<1x8xf32> to vector<1x4xf32>
    %115 = vector.shape_cast %114 : vector<1x4xf32> to vector<1x1x4xf32>
    %cst_93 = arith.constant dense<0.000000e+00> : vector<1xf32>
    %116 = vector.multi_reduction <add>, %115, %cst_93 [1, 2] : vector<1x1x4xf32> to vector<1xf32>
    %117 = vector.shape_cast %116 : vector<1xf32> to vector<1x1x1xf32>
    %118 = vector.extract %117[0, 0, 0] : f32 from vector<1x1x1xf32>
    %cst_94 = arith.constant 1.024000e+03 : f32
    %119 = arith.divf %118, %cst_94 : f32
    %120 = vector.extract_strided_slice %113 {offsets = [0, 0], sizes = [1, 4], strides = [1, 1]} : vector<1x8xf32> to vector<1x4xf32>
    %121 = vector.shape_cast %120 : vector<1x4xf32> to vector<1x1x4xf32>
    %cst_95 = arith.constant dense<0.000000e+00> : vector<1xf32>
    %122 = vector.multi_reduction <add>, %121, %cst_95 [1, 2] : vector<1x1x4xf32> to vector<1xf32>
    %123 = vector.shape_cast %122 : vector<1xf32> to vector<1x1x1xf32>
    %124 = vector.extract %123[0, 0, 0] : f32 from vector<1x1x1xf32>
    %cst_96 = arith.constant 1.024000e+03 : f32
    %125 = arith.divf %124, %cst_96 : f32
    %126 = arith.mulf %119, %119 : f32
    %127 = arith.subf %125, %126 : f32
    %cst_97 = arith.constant 9.99999974E-6 : f32
    %128 = arith.addf %127, %cst_97 : f32
    %129 = math.rsqrt %128 : f32
    %130 = vector.broadcast %119 : f32 to vector<1x4xf32>
    %131 = vector.broadcast %129 : f32 to vector<1x4xf32>
    %132 = vector.extract_strided_slice %110 {offsets = [0, 4], sizes = [1, 4], strides = [1, 1]} : vector<1x8xf32> to vector<1x4xf32>
    %133 = vector.shape_cast %132 : vector<1x4xf32> to vector<1x1x4xf32>
    %cst_98 = arith.constant dense<0.000000e+00> : vector<1xf32>
    %134 = vector.multi_reduction <add>, %133, %cst_98 [1, 2] : vector<1x1x4xf32> to vector<1xf32>
    %135 = vector.shape_cast %134 : vector<1xf32> to vector<1x1x1xf32>
    %136 = vector.extract %135[0, 0, 0] : f32 from vector<1x1x1xf32>
    %cst_99 = arith.constant 1.024000e+03 : f32
    %137 = arith.divf %136, %cst_99 : f32
    %138 = vector.extract_strided_slice %113 {offsets = [0, 4], sizes = [1, 4], strides = [1, 1]} : vector<1x8xf32> to vector<1x4xf32>
    %139 = vector.shape_cast %138 : vector<1x4xf32> to vector<1x1x4xf32>
    %cst_100 = arith.constant dense<0.000000e+00> : vector<1xf32>
    %140 = vector.multi_reduction <add>, %139, %cst_100 [1, 2] : vector<1x1x4xf32> to vector<1xf32>
    %141 = vector.shape_cast %140 : vector<1xf32> to vector<1x1x1xf32>
    %142 = vector.extract %141[0, 0, 0] : f32 from vector<1x1x1xf32>
    %cst_101 = arith.constant 1.024000e+03 : f32
    %143 = arith.divf %142, %cst_101 : f32
    %144 = arith.mulf %137, %137 : f32
    %145 = arith.subf %143, %144 : f32
    %cst_102 = arith.constant 9.99999974E-6 : f32
    %146 = arith.addf %145, %cst_102 : f32
    %147 = math.rsqrt %146 : f32
    %148 = vector.broadcast %137 : f32 to vector<1x4xf32>
    %149 = vector.broadcast %147 : f32 to vector<1x4xf32>
    %150 = tpu.concatenate %130, %148 in 1 : vector<1x4xf32>, vector<1x4xf32> -> vector<1x8xf32>
    %151 = tpu.concatenate %131, %149 in 1 : vector<1x4xf32>, vector<1x4xf32> -> vector<1x8xf32>
    %c0_103 = arith.constant 0 : index
    %c0_104 = arith.constant 0 : index
    %152 = vector.load %arg8[%c0_103, %c0_104] : memref<1x8xf32, #tpu.memory_space<vmem>>, vector<1x8xf32>
    %153 = arith.mulf %152, %151 : vector<1x8xf32>
    %c0_105 = arith.constant 0 : index
    %c0_106 = arith.constant 0 : index
    %154 = vector.load %arg9[%c0_105, %c0_106] : memref<1x8xf32, #tpu.memory_space<vmem>>, vector<1x8xf32>
    %155 = arith.mulf %150, %153 : vector<1x8xf32>
    %156 = arith.subf %154, %155 : vector<1x8xf32>
    %157 = vector.broadcast %153 : vector<1x8xf32> to vector<256x8xf32>
    %158 = arith.mulf %108, %157 : vector<256x8xf32>
    %159 = vector.broadcast %156 : vector<1x8xf32> to vector<256x8xf32>
    %160 = arith.addf %158, %159 : vector<256x8xf32>
    %cst_107 = arith.constant 0.000000e+00 : f32
    %161 = vector.broadcast %cst_107 : f32 to vector<256x8xf32>
    %162 = arith.maximumf %160, %161 : vector<256x8xf32>
    %163 = vector.shape_cast %162 : vector<256x8xf32> to vector<16x16x8xf32>
    %c1_108 = arith.constant 1 : index
    %c1_109 = arith.constant 1 : index
    %c0_110 = arith.constant 0 : index
    %164 = vector.load %arg15[%c1_108, %c1_109, %c0_110] : memref<18x18x8xf32, #tpu.memory_space<vmem>>, vector<16x16x8xf32>
    tpu.vector_store %arg15[%c1_108, %c1_109, %c0_110], %163 {strides = array<i32>} : memref<18x18x8xf32, #tpu.memory_space<vmem>>, vector<16x16x8xf32>,
    %c0_111 = arith.constant 0 : index
    %c0_112 = arith.constant 0 : index
    %c0_113 = arith.constant 0 : index
    %165 = vector.load %arg15[%c0_111, %c0_112, %c0_113] : memref<18x18x8xf32, #tpu.memory_space<vmem>>, vector<16x16x8xf32>
    %166 = vector.shape_cast %165 : vector<16x16x8xf32> to vector<256x8xf32>
    %c0_114 = arith.constant 0 : index
    %c1_115 = arith.constant 1 : index
    %c0_116 = arith.constant 0 : index
    %167 = vector.load %arg15[%c0_114, %c1_115, %c0_116] : memref<18x18x8xf32, #tpu.memory_space<vmem>>, vector<16x16x8xf32>
    %168 = vector.shape_cast %167 : vector<16x16x8xf32> to vector<256x8xf32>
    %c0_117 = arith.constant 0 : index
    %c2_118 = arith.constant 2 : index
    %c0_119 = arith.constant 0 : index
    %169 = vector.load %arg15[%c0_117, %c2_118, %c0_119] : memref<18x18x8xf32, #tpu.memory_space<vmem>>, vector<16x16x8xf32>
    %170 = vector.shape_cast %169 : vector<16x16x8xf32> to vector<256x8xf32>
    %c1_120 = arith.constant 1 : index
    %c0_121 = arith.constant 0 : index
    %c0_122 = arith.constant 0 : index
    %171 = vector.load %arg15[%c1_120, %c0_121, %c0_122] : memref<18x18x8xf32, #tpu.memory_space<vmem>>, vector<16x16x8xf32>
    %172 = vector.shape_cast %171 : vector<16x16x8xf32> to vector<256x8xf32>
    %c1_123 = arith.constant 1 : index
    %c1_124 = arith.constant 1 : index
    %c0_125 = arith.constant 0 : index
    %173 = vector.load %arg15[%c1_123, %c1_124, %c0_125] : memref<18x18x8xf32, #tpu.memory_space<vmem>>, vector<16x16x8xf32>
    %174 = vector.shape_cast %173 : vector<16x16x8xf32> to vector<256x8xf32>
    %c1_126 = arith.constant 1 : index
    %c2_127 = arith.constant 2 : index
    %c0_128 = arith.constant 0 : index
    %175 = vector.load %arg15[%c1_126, %c2_127, %c0_128] : memref<18x18x8xf32, #tpu.memory_space<vmem>>, vector<16x16x8xf32>
    %176 = vector.shape_cast %175 : vector<16x16x8xf32> to vector<256x8xf32>
    %c2_129 = arith.constant 2 : index
    %c0_130 = arith.constant 0 : index
    %c0_131 = arith.constant 0 : index
    %177 = vector.load %arg15[%c2_129, %c0_130, %c0_131] : memref<18x18x8xf32, #tpu.memory_space<vmem>>, vector<16x16x8xf32>
    %178 = vector.shape_cast %177 : vector<16x16x8xf32> to vector<256x8xf32>
    %c2_132 = arith.constant 2 : index
    %c1_133 = arith.constant 1 : index
    %c0_134 = arith.constant 0 : index
    %179 = vector.load %arg15[%c2_132, %c1_133, %c0_134] : memref<18x18x8xf32, #tpu.memory_space<vmem>>, vector<16x16x8xf32>
    %180 = vector.shape_cast %179 : vector<16x16x8xf32> to vector<256x8xf32>
    %c2_135 = arith.constant 2 : index
    %c2_136 = arith.constant 2 : index
    %c0_137 = arith.constant 0 : index
    %181 = vector.load %arg15[%c2_135, %c2_136, %c0_137] : memref<18x18x8xf32, #tpu.memory_space<vmem>>, vector<16x16x8xf32>
    %182 = vector.shape_cast %181 : vector<16x16x8xf32> to vector<256x8xf32>
    %183 = tpu.concatenate %166, %168, %170, %172, %174, %176, %178, %180, %182 in 1 : vector<256x8xf32>, vector<256x8xf32>, vector<256x8xf32>, vector<256x8xf32>, vector<256x8xf32>, vector<256x8xf32>, vector<256x8xf32>, vector<256x8xf32>, vector<256x8xf32> -> vector<256x72xf32>
    %c0_138 = arith.constant 0 : index
    %c0_139 = arith.constant 0 : index
    %184 = vector.load %arg10[%c0_138, %c0_139] : memref<72x8xf32, #tpu.memory_space<vmem>>, vector<72x8xf32>
    %cst_140 = arith.constant dense<0.000000e+00> : vector<256x8xf32>
    %185 = tpu.matmul %183, %184, %cst_140 {dimension_numbers = #tpu.dot_dimension_numbers<[1], [0], [0], [1], [0, 0, 1, 1], [], []>} : vector<256x72xf32>, vector<72x8xf32>, vector<256x8xf32> -> vector<256x8xf32>
    %c0_141 = arith.constant 0 : index
    %c0_142 = arith.constant 0 : index
    %186 = vector.load %arg11[%c0_141, %c0_142] : memref<1x8xf32, #tpu.memory_space<vmem>>, vector<1x8xf32>
    %187 = vector.broadcast %186 : vector<1x8xf32> to vector<256x8xf32>
    %188 = arith.addf %185, %187 : vector<256x8xf32>
    %cst_143 = arith.constant dense<0.000000e+00> : vector<8xf32>
    %189 = vector.multi_reduction <add>, %188, %cst_143 [0] : vector<256x8xf32> to vector<8xf32>
    %190 = vector.shape_cast %189 : vector<8xf32> to vector<1x8xf32>
    %191 = arith.mulf %188, %188 : vector<256x8xf32>
    %cst_144 = arith.constant dense<0.000000e+00> : vector<8xf32>
    %192 = vector.multi_reduction <add>, %191, %cst_144 [0] : vector<256x8xf32> to vector<8xf32>
    %193 = vector.shape_cast %192 : vector<8xf32> to vector<1x8xf32>
    %194 = vector.extract_strided_slice %190 {offsets = [0, 0], sizes = [1, 4], strides = [1, 1]} : vector<1x8xf32> to vector<1x4xf32>
    %195 = vector.shape_cast %194 : vector<1x4xf32> to vector<1x1x4xf32>
    %cst_145 = arith.constant dense<0.000000e+00> : vector<1xf32>
    %196 = vector.multi_reduction <add>, %195, %cst_145 [1, 2] : vector<1x1x4xf32> to vector<1xf32>
    %197 = vector.shape_cast %196 : vector<1xf32> to vector<1x1x1xf32>
    %198 = vector.extract %197[0, 0, 0] : f32 from vector<1x1x1xf32>
    %cst_146 = arith.constant 1.024000e+03 : f32
    %199 = arith.divf %198, %cst_146 : f32
    %200 = vector.extract_strided_slice %193 {offsets = [0, 0], sizes = [1, 4], strides = [1, 1]} : vector<1x8xf32> to vector<1x4xf32>
    %201 = vector.shape_cast %200 : vector<1x4xf32> to vector<1x1x4xf32>
    %cst_147 = arith.constant dense<0.000000e+00> : vector<1xf32>
    %202 = vector.multi_reduction <add>, %201, %cst_147 [1, 2] : vector<1x1x4xf32> to vector<1xf32>
    %203 = vector.shape_cast %202 : vector<1xf32> to vector<1x1x1xf32>
    %204 = vector.extract %203[0, 0, 0] : f32 from vector<1x1x1xf32>
    %cst_148 = arith.constant 1.024000e+03 : f32
    %205 = arith.divf %204, %cst_148 : f32
    %206 = arith.mulf %199, %199 : f32
    %207 = arith.subf %205, %206 : f32
    %cst_149 = arith.constant 9.99999974E-6 : f32
    %208 = arith.addf %207, %cst_149 : f32
    %209 = math.rsqrt %208 : f32
    %210 = vector.broadcast %199 : f32 to vector<1x4xf32>
    %211 = vector.broadcast %209 : f32 to vector<1x4xf32>
    %212 = vector.extract_strided_slice %190 {offsets = [0, 4], sizes = [1, 4], strides = [1, 1]} : vector<1x8xf32> to vector<1x4xf32>
    %213 = vector.shape_cast %212 : vector<1x4xf32> to vector<1x1x4xf32>
    %cst_150 = arith.constant dense<0.000000e+00> : vector<1xf32>
    %214 = vector.multi_reduction <add>, %213, %cst_150 [1, 2] : vector<1x1x4xf32> to vector<1xf32>
    %215 = vector.shape_cast %214 : vector<1xf32> to vector<1x1x1xf32>
    %216 = vector.extract %215[0, 0, 0] : f32 from vector<1x1x1xf32>
    %cst_151 = arith.constant 1.024000e+03 : f32
    %217 = arith.divf %216, %cst_151 : f32
    %218 = vector.extract_strided_slice %193 {offsets = [0, 4], sizes = [1, 4], strides = [1, 1]} : vector<1x8xf32> to vector<1x4xf32>
    %219 = vector.shape_cast %218 : vector<1x4xf32> to vector<1x1x4xf32>
    %cst_152 = arith.constant dense<0.000000e+00> : vector<1xf32>
    %220 = vector.multi_reduction <add>, %219, %cst_152 [1, 2] : vector<1x1x4xf32> to vector<1xf32>
    %221 = vector.shape_cast %220 : vector<1xf32> to vector<1x1x1xf32>
    %222 = vector.extract %221[0, 0, 0] : f32 from vector<1x1x1xf32>
    %cst_153 = arith.constant 1.024000e+03 : f32
    %223 = arith.divf %222, %cst_153 : f32
    %224 = arith.mulf %217, %217 : f32
    %225 = arith.subf %223, %224 : f32
    %cst_154 = arith.constant 9.99999974E-6 : f32
    %226 = arith.addf %225, %cst_154 : f32
    %227 = math.rsqrt %226 : f32
    %228 = vector.broadcast %217 : f32 to vector<1x4xf32>
    %229 = vector.broadcast %227 : f32 to vector<1x4xf32>
    %230 = tpu.concatenate %210, %228 in 1 : vector<1x4xf32>, vector<1x4xf32> -> vector<1x8xf32>
    %231 = tpu.concatenate %211, %229 in 1 : vector<1x4xf32>, vector<1x4xf32> -> vector<1x8xf32>
    %c0_155 = arith.constant 0 : index
    %c0_156 = arith.constant 0 : index
    %232 = vector.load %arg12[%c0_155, %c0_156] : memref<1x8xf32, #tpu.memory_space<vmem>>, vector<1x8xf32>
    %233 = arith.mulf %232, %231 : vector<1x8xf32>
    %c0_157 = arith.constant 0 : index
    %c0_158 = arith.constant 0 : index
    %234 = vector.load %arg13[%c0_157, %c0_158] : memref<1x8xf32, #tpu.memory_space<vmem>>, vector<1x8xf32>
    %235 = arith.mulf %230, %233 : vector<1x8xf32>
    %236 = arith.subf %234, %235 : vector<1x8xf32>
    %237 = vector.broadcast %233 : vector<1x8xf32> to vector<256x8xf32>
    %238 = arith.mulf %188, %237 : vector<256x8xf32>
    %239 = vector.broadcast %236 : vector<1x8xf32> to vector<256x8xf32>
    %240 = arith.addf %238, %239 : vector<256x8xf32>
    %cst_159 = arith.constant 0.000000e+00 : f32
    %241 = vector.broadcast %cst_159 : f32 to vector<256x8xf32>
    %242 = arith.maximumf %240, %241 : vector<256x8xf32>
    %c0_160 = arith.constant 0 : index
    %c0_161 = arith.constant 0 : index
    %c0_162 = arith.constant 0 : index
    %243 = vector.load %arg14[%c0_160, %c0_161, %c0_162] : memref<1x256x8xf32, #tpu.memory_space<vmem>>, vector<1x256x8xf32>
    %244 = vector.shape_cast %243 : vector<1x256x8xf32> to vector<256x8xf32>
    %245 = vector.shape_cast %242 : vector<256x8xf32> to vector<1x256x8xf32>
    tpu.vector_store %arg14[%c0_160, %c0_161, %c0_162], %245 {strides = array<i32>} : memref<1x256x8xf32, #tpu.memory_space<vmem>>, vector<1x256x8xf32>,
    return
  }
  func.func @transform_0(%arg0: i32) -> (i32, i32, i32, i32) {
    %c0_i32 = arith.constant 0 : i32
    %c0_i32_0 = arith.constant 0 : i32
    %c0_i32_1 = arith.constant 0 : i32
    %c0_i32_2 = arith.constant 0 : i32
    return %arg0, %c0_i32, %c0_i32_0, %c0_i32_1 : i32, i32, i32, i32
  }
  func.func @transform_1(%arg0: i32) -> (i32, i32) {
    %c0_i32 = arith.constant 0 : i32
    %c0_i32_0 = arith.constant 0 : i32
    %c0_i32_1 = arith.constant 0 : i32
    return %c0_i32, %c0_i32_0 : i32, i32
  }
  func.func @transform_2(%arg0: i32) -> (i32, i32) {
    %c0_i32 = arith.constant 0 : i32
    %c0_i32_0 = arith.constant 0 : i32
    %c0_i32_1 = arith.constant 0 : i32
    return %c0_i32, %c0_i32_0 : i32, i32
  }
  func.func @transform_3(%arg0: i32) -> (i32, i32) {
    %c0_i32 = arith.constant 0 : i32
    %c0_i32_0 = arith.constant 0 : i32
    %c0_i32_1 = arith.constant 0 : i32
    return %c0_i32, %c0_i32_0 : i32, i32
  }
  func.func @transform_4(%arg0: i32) -> (i32, i32) {
    %c0_i32 = arith.constant 0 : i32
    %c0_i32_0 = arith.constant 0 : i32
    %c0_i32_1 = arith.constant 0 : i32
    return %c0_i32, %c0_i32_0 : i32, i32
  }
  func.func @transform_5(%arg0: i32) -> (i32, i32) {
    %c0_i32 = arith.constant 0 : i32
    %c0_i32_0 = arith.constant 0 : i32
    %c0_i32_1 = arith.constant 0 : i32
    return %c0_i32, %c0_i32_0 : i32, i32
  }
  func.func @transform_6(%arg0: i32) -> (i32, i32) {
    %c0_i32 = arith.constant 0 : i32
    %c0_i32_0 = arith.constant 0 : i32
    %c0_i32_1 = arith.constant 0 : i32
    return %c0_i32, %c0_i32_0 : i32, i32
  }
  func.func @transform_7(%arg0: i32) -> (i32, i32) {
    %c0_i32 = arith.constant 0 : i32
    %c0_i32_0 = arith.constant 0 : i32
    %c0_i32_1 = arith.constant 0 : i32
    return %c0_i32, %c0_i32_0 : i32, i32
  }
  func.func @transform_8(%arg0: i32) -> (i32, i32) {
    %c0_i32 = arith.constant 0 : i32
    %c0_i32_0 = arith.constant 0 : i32
    %c0_i32_1 = arith.constant 0 : i32
    return %c0_i32, %c0_i32_0 : i32, i32
  }
  func.func @transform_9(%arg0: i32) -> (i32, i32) {
    %c0_i32 = arith.constant 0 : i32
    %c0_i32_0 = arith.constant 0 : i32
    %c0_i32_1 = arith.constant 0 : i32
    return %c0_i32, %c0_i32_0 : i32, i32
  }
  func.func @transform_10(%arg0: i32) -> (i32, i32) {
    %c0_i32 = arith.constant 0 : i32
    %c0_i32_0 = arith.constant 0 : i32
    %c0_i32_1 = arith.constant 0 : i32
    return %c0_i32, %c0_i32_0 : i32, i32
  }
  func.func @transform_11(%arg0: i32) -> (i32, i32) {
    %c0_i32 = arith.constant 0 : i32
    %c0_i32_0 = arith.constant 0 : i32
    %c0_i32_1 = arith.constant 0 : i32
    return %c0_i32, %c0_i32_0 : i32, i32
  }
  func.func @transform_12(%arg0: i32) -> (i32, i32) {
    %c0_i32 = arith.constant 0 : i32
    %c0_i32_0 = arith.constant 0 : i32
    %c0_i32_1 = arith.constant 0 : i32
    return %c0_i32, %c0_i32_0 : i32, i32
  }
  func.func @transform_13(%arg0: i32) -> (i32, i32, i32) {
    %c0_i32 = arith.constant 0 : i32
    %c0_i32_0 = arith.constant 0 : i32
    %c0_i32_1 = arith.constant 0 : i32
    return %arg0, %c0_i32, %c0_i32_0 : i32, i32, i32
  }
}

</mosaic_0001>

<bundles_post_ra>
// kernel: tpu_custom_call.1
= control target key start
LH: loop header
LB: loop body
LE: loop exit
PB: predicated region body
PF: predicated region fallthrough
CT: control target
= control target key end

     0   :  { %s8156_s25 = smov 0   ;;  %s12561_s0 = inlined_call_operand.vmem [shape: f32[2,16,16,4], index: 0, kind: input, shape index: {}]   ;;  %s12562_s1 = inlined_call_operand.vmem [shape: f32[36,8], index: 1, kind: input, shape index: {}]   ;;  %s12563_s2 = inlined_call_operand.vmem [shape: f32[1,8], index: 2, kind: input, shape index: {}]   ;;  %s12564_s3 = inlined_call_operand.vmem [shape: f32[1,8], index: 3, kind: input, shape index: {}]   ;;  %s12565_s4 = inlined_call_operand.vmem [shape: f32[1,8], index: 4, kind: input, shape index: {}]   ;;  %s12566_s5 = inlined_call_operand.vmem [shape: f32[72,8], index: 5, kind: input, shape index: {}]   ;;  %s12567_s6 = inlined_call_operand.vmem [shape: f32[1,8], index: 6, kind: input, shape index: {}]   ;;  %s12568_s7 = inlined_call_operand.vmem [shape: f32[1,8], index: 7, kind: input, shape index: {}]   ;;  %s12569_s8 = inlined_call_operand.vmem [shape: f32[1,8], index: 8, kind: input, shape index: {}]   ;;  %s12570_s9 = inlined_call_operand.vmem [shape: f32[72,8], index: 9, kind: input, shape index: {}]   ;;  %s12571_s10 = inlined_call_operand.vmem [shape: f32[1,8], index: 10, kind: input, shape index: {}]   ;;  %s12572_s11 = inlined_call_operand.vmem [shape: f32[1,8], index: 11, kind: input, shape index: {}]   ;;  %s12573_s12 = inlined_call_operand.vmem [shape: f32[1,8], index: 12, kind: input, shape index: {}]   ;;  %s12574_s13 = inlined_call_operand.vmem [shape: f32[2,256,8], index: 13, kind: output, shape index: {}]  }
   0x1 LB: > { %s7526_s26 = sadd.s32 4294967295, %s8070_s25   ;;  %p7530_p0 = scmp.ge.s32.totalorder %s8070_s25, 1  ;;  %s8070_s25 = sphi %s8156_s25, %s23_s25  }
   0x2   : > { %p387_p1 = scmp.lt.s32.totalorder %s8070_s25, 3 }
   0x4   : > { %p388_p2 = pnand %p7530_p0, %p387_p1 }
   0x5   : > { %vm441_vm0 = vcmask (!%p388_p2), 64512   ;;  %vm444_vm1 = vcmask (!%p388_p2), 58368   ;;  %v8072_v0 = vmov (!%p388_p2), 0.0   ;;  %p431_p3 = scmp.lt.s32.totalorder (!%p388_p2), %s7526_s26, 1  ;;  %vm530_vm2 = vcmask (!%p388_p2), 31744   ;;  %s12588_s14 = smov (!%p388_p2), 8  }
   0x6   : > { %391 = sbr.rel (%p388_p2) target bundleno = 3925 (0xf55), region = 72  ;;  %442 = vst.msk [vmem:[#allocation2] sm:$0xff] (!%p388_p2), %vm441_vm0, %v8072_v0  ;;  %443 = vst.msk [vmem:[#allocation2 + $0x8] sm:$0xff] (!%p388_p2), %vm441_vm0, %v8072_v0  ;;  %s8074_s15 = smov (!%p388_p2), 4   ;;  %v2138_v23 = vld [vmem:[%s12562_s1] sm:$0xff] (!%p388_p2)  ;;  %v2139_v24 = vld [vmem:[%s12562_s1 + $0x8] sm:$0xff] (!%p388_p2) }
   0x7   : > { %446 = vst.msk [vmem:[#allocation2 + $0x18] sm:$0xff] (!%p388_p2), %vm441_vm0, %v8072_v0  ;;  %447 = vst.msk [vmem:[#allocation2 + $0x20] sm:$0xff] (!%p388_p2), %vm441_vm0, %v8072_v0  ;;  %s8075_s16 = smov (!%p388_p2), 12   ;;  %s12578_s17 = smov (!%p388_p2), 16   ;;  %v7948_v25 = vpack.c.bf16 (!%p388_p2), %v2139_v24, %v2138_v23  ;;  %v2140_v27 = vld [vmem:[%s12562_s1 + $0x10] sm:$0xff] (!%p388_p2)  ;;  %v2141_v28 = vld [vmem:[%s12562_s1 + $0x18] sm:$0xff] (!%p388_p2) }
   0x8   : > { %449 = vst.msk [vmem:[#allocation2 + $0x30] sm:$0xff] (!%p388_p2), %vm441_vm0, %v8072_v0  ;;  %450 = vst.msk [vmem:[#allocation2 + $0x38] sm:$0xff] (!%p388_p2), %vm441_vm0, %v8072_v0  ;;  %s8077_s18 = smov (!%p388_p2), 20   ;;  %s8078_s23 = smov (!%p388_p2), 24   ;;  %v7952_v31 = vpack.c.bf16 (!%p388_p2), %v2141_v28, %v2140_v27  ;;  %v2142_v32 = vld [vmem:[%s12562_s1 + $0x20] sm:$0xf] (!%p388_p2) }
   0x9   : > { %452 = vst.msk [vmem:[#allocation2 + $0x48] sm:$0xff] (!%p388_p2), %vm441_vm0, %v8072_v0  ;;  %453 = vst.msk [vmem:[#allocation2 + $0x50] sm:$0xff] (!%p388_p2), %vm441_vm0, %v8072_v0  ;;  %7949 = vmatprep.subr.bf16.mxu0 (!%p388_p2), %v7948_v25  ;;  %7988 = vmatprep.subr.bf16.mxu1 (!%p388_p2), %v7948_v25  ;;  %s8079_s20 = smov (!%p388_p2), 28   ;;  %vm2247_vm3 = vcmask (!%p388_p2), 1043456   ;;  %s12590_s24 = smov (!%p388_p2), 32   ;;  %vm1940_vm4 = vcmask (!%p388_p2), 97280  }
   0xa   : > { %455 = vst.msk [vmem:[#allocation2 + $0x60] sm:$0xff] (!%p388_p2), %vm441_vm0, %v8072_v0  ;;  %456 = vst.msk [vmem:[#allocation2 + $0x68] sm:$0xff] (!%p388_p2), %vm441_vm0, %v8072_v0  ;;  %7951 = vmatpush3.bf16.msra.mxu0 (!%p388_p2), %v7948_v25  ;;  %7991 = vmatpush3.bf16.msra.mxu1 (!%p388_p2), %v7948_v25  ;;  %vm1973_vm5 = vcmask (!%p388_p2), 130048   ;;  %vm2006_vm6 = vcmask (!%p388_p2), 162816   ;;  %vm2039_vm7 = vcmask (!%p388_p2), 195584   ;;  %vm2072_vm8 = vcmask (!%p388_p2), 228352  }
   0xb   : > { %458 = vst.msk [vmem:[#allocation2 + $0x78] sm:$0xff] (!%p388_p2), %vm441_vm0, %v8072_v0  ;;  %459 = vst.msk [vmem:[#allocation2 + $0x80] sm:$0xff] (!%p388_p2), %vm441_vm0, %v8072_v0  ;;  %7953 = vmatprep.subr.bf16.mxu0 (!%p388_p2), %v7952_v31  ;;  %7989 = vmatprep.subr.bf16.mxu1 (!%p388_p2), %v7952_v31  ;;  %vm2105_vm9 = vcmask (!%p388_p2), 261120   ;;  %vm2150_vm10 = vcmask (!%p388_p2), 293888   ;;  %vm2646_vm11 = vcmask (!%p388_p2), 24576   ;;  %vm4310_vm12 = vcmask (!%p388_p2), 326656  }
   0xc   : > { %461 = vst.msk [vmem:[#allocation2 + $0x90] sm:$0xff] (!%p388_p2), %vm441_vm0, %v8072_v0  ;;  %462 = vst.msk [vmem:[#allocation2 + $0x98] sm:$0xff] (!%p388_p2), %vm441_vm0, %v8072_v0  ;;  %vm4343_vm13 = vcmask (!%p388_p2), 392192   ;;  %vm4376_vm14 = vcmask (!%p388_p2), 457728   ;;  %vm4409_vm15 = vcmask (!%p388_p2), 523264  }
   0xd   : > { %464 = vst.msk [vmem:[#allocation2 + $0xa8] sm:$0xff] %vm441_vm0, %v8072_v0  ;;  %465 = vst.msk [vmem:[#allocation2 + $0xb0] sm:$0xff] %vm441_vm0, %v8072_v0  ;;  %s12602_s26 = smov (!%p431_p3, %s7526_s26), 1  ;;  %v627_v4 = vld [vmem:[#allocation2 + $0x2] sm:$0xff] }
   0xe   : > { %467 = vst.msk [vmem:[#allocation2 + $0xc0] sm:$0xff] %vm441_vm0, %v8072_v0  ;;  %468 = vst.msk [vmem:[#allocation2 + $0xc8] sm:$0xff] %vm441_vm0, %v8072_v0  ;;  %s12575_s27 = sshll.u32 %s12602_s26, 8  ;;  %v595_v5 = vld [vmem:[#allocation2 + $0x1] sm:$0xff]  ;;  %1012 = vrot.lane.b32.xlu1 %v627_v4, %s12588_s14  ;;  %7955 = vmatpush3.bf16.msra.mxu0 %v7952_v31 }
   0xf   : > { %470 = vst.msk [vmem:[#allocation2 + $0xd8] sm:$0xff] %vm441_vm0, %v8072_v0  ;;  %471 = vst.msk [vmem:[#allocation2 + $0xe0] sm:$0xff] %vm441_vm0, %v8072_v0  ;;  %s8230_s30 = scalar_lea.vmem %s12561_s0, %s12575_s27  ;;  %884 = vrot.lane.b32.xlu0 %v595_v5, %s8074_s15  ;;  %7992 = vmatpush3.bf16.msra.mxu1 %v7952_v31  ;;  %v564_v25 = vld [vmem:[#allocation2 + $0x8] sm:$0xff] }
  0x10   : > { %473 = vst.msk [vmem:[#allocation2 + $0xf0] sm:$0xff] %vm441_vm0, %v8072_v0  ;;  %474 = vst.msk [vmem:[#allocation2 + $0xf8] sm:$0xff] %vm441_vm0, %v8072_v0  ;;  %v497_v1 = vld [vmem:[%s8230_s30] sm:$0xff]  ;;  %v498_v2 = vld [vmem:[%s8230_s30 + $0x8] sm:$0xff]  ;;  %7766 = vmatprep.subr.msk.mxu0 %vm2247_vm3, %v2142_v32  ;;  %7990 = vmatprep.subr.msk.mxu1 %vm2247_vm3, %v2142_v32 }
  0x11   : > { %476 = vst.msk [vmem:[#allocation2 + $0x108] sm:$0xff] %vm441_vm0, %v8072_v0  ;;  %477 = vst.msk [vmem:[#allocation2 + $0x110] sm:$0xff] %vm441_vm0, %v8072_v0  ;;  %v499_v3 = vld [vmem:[%s8230_s30 + $0x10] sm:$0xff]  ;;  %v500_v8 = vld [vmem:[%s8230_s30 + $0x18] sm:$0xff] }
  0x12   : > { %479 = vst.msk [vmem:[#allocation2 + $0x120] sm:$0xff] %vm441_vm0, %v8072_v0  ;;  %480 = vst.msk [vmem:[#allocation2 + $0x128] sm:$0xff] %vm441_vm0, %v8072_v0  ;;  %v501_v9 = vld [vmem:[%s8230_s30 + $0x20] sm:$0xff]  ;;  %v502_v10 = vld [vmem:[%s8230_s30 + $0x28] sm:$0xff]  ;;  %7767 = vmatpush3.msk.msra.mxu0 %vm2247_vm3, %v2142_v32 }
  0x13   : > { %482 = vst.msk [vmem:[#allocation2 + $0x138] sm:$0xff] %vm441_vm0, %v8072_v0  ;;  %483 = vst.msk [vmem:[#allocation2 + $0x140] sm:$0xff] %vm441_vm0, %v8072_v0  ;;  %v503_v11 = vld [vmem:[%s8230_s30 + $0x30] sm:$0xff]  ;;  %v504_v12 = vld [vmem:[%s8230_s30 + $0x38] sm:$0xff]  ;;  %7993 = vmatpush3.msk.msra.mxu1 %vm2247_vm3, %v2142_v32 }
  0x14   : > { %485 = vst.msk [vmem:[#allocation2 + $0x150] sm:$0xff] %vm441_vm0, %v8072_v0  ;;  %486 = vst.msk [vmem:[#allocation2 + $0x158] sm:$0xff] %vm441_vm0, %v8072_v0  ;;  %v505_v13 = vld [vmem:[%s8230_s30 + $0x40] sm:$0xff]  ;;  %v506_v14 = vld [vmem:[%s8230_s30 + $0x48] sm:$0xff] }
  0x15   : > { %488 = vst.msk [vmem:[#allocation2 + $0x168] sm:$0xff] %vm441_vm0, %v8072_v0  ;;  %489 = vst.msk [vmem:[#allocation2 + $0x170] sm:$0xff] %vm441_vm0, %v8072_v0  ;;  %v507_v20 = vld [vmem:[%s8230_s30 + $0x50] sm:$0xff]  ;;  %v508_v26 = vld [vmem:[%s8230_s30 + $0x58] sm:$0xff] }
  0x16   : > { %491 = vst.msk [vmem:[#allocation2 + $0x180] sm:$0xff] %vm441_vm0, %v8072_v0  ;;  %492 = vst.msk [vmem:[#allocation2 + $0x188] sm:$0xff] %vm441_vm0, %v8072_v0  ;;  %v509_v36 = vld [vmem:[%s8230_s30 + $0x60] sm:$0xff]  ;;  %v510_v38 = vld [vmem:[%s8230_s30 + $0x68] sm:$0xff] }
  0x17   : > { %494 = vst.msk [vmem:[#allocation2 + $0x198] sm:$0xff] %vm441_vm0, %v8072_v0  ;;  %495 = vst.msk [vmem:[#allocation2 + $0x1a0] sm:$0xff] %vm441_vm0, %v8072_v0  ;;  %v511_v44 = vld [vmem:[%s8230_s30 + $0x70] sm:$0xff]  ;;  %v512_v46 = vld [vmem:[%s8230_s30 + $0x78] sm:$0xff] }
  0x18   : > { %445 = vst.msk [vmem:[#allocation2 + $0x10] sm:$0x3] %vm444_vm1, %v8072_v0  ;;  %448 = vst.msk [vmem:[#allocation2 + $0x28] sm:$0x3] %vm444_vm1, %v8072_v0  ;;  %v513_v52 = vld [vmem:[%s8230_s30 + $0x80] sm:$0xff]  ;;  %v514_v58 = vld [vmem:[%s8230_s30 + $0x88] sm:$0xff] }
  0x19   : > { %451 = vst.msk [vmem:[#allocation2 + $0x40] sm:$0x3] %vm444_vm1, %v8072_v0  ;;  %454 = vst.msk [vmem:[#allocation2 + $0x58] sm:$0x3] %vm444_vm1, %v8072_v0  ;;  %v516_v28 = vld [vmem:[%s8230_s30 + $0x98] sm:$0xff] }
  0x1a   : > { %457 = vst.msk [vmem:[#allocation2 + $0x70] sm:$0x3] %vm444_vm1, %v8072_v0  ;;  %460 = vst.msk [vmem:[#allocation2 + $0x88] sm:$0x3] %vm444_vm1, %v8072_v0 }
  0x1b   : > { %463 = vst.msk [vmem:[#allocation2 + $0xa0] sm:$0x3] %vm444_vm1, %v8072_v0  ;;  %466 = vst.msk [vmem:[#allocation2 + $0xb8] sm:$0x3] %vm444_vm1, %v8072_v0 }
  0x1c   : > { %469 = vst.msk [vmem:[#allocation2 + $0xd0] sm:$0x3] %vm444_vm1, %v8072_v0  ;;  %472 = vst.msk [vmem:[#allocation2 + $0xe8] sm:$0x3] %vm444_vm1, %v8072_v0 }
  0x1d   : > { %475 = vst.msk [vmem:[#allocation2 + $0x100] sm:$0x3] %vm444_vm1, %v8072_v0  ;;  %478 = vst.msk [vmem:[#allocation2 + $0x118] sm:$0x3] %vm444_vm1, %v8072_v0 }
  0x1e   : > { %481 = vst.msk [vmem:[#allocation2 + $0x130] sm:$0x3] %vm444_vm1, %v8072_v0  ;;  %484 = vst.msk [vmem:[#allocation2 + $0x148] sm:$0x3] %vm444_vm1, %v8072_v0 }
  0x1f   : > { %487 = vst.msk [vmem:[#allocation2 + $0x160] sm:$0x3] %vm444_vm1, %v8072_v0  ;;  %490 = vst.msk [vmem:[#allocation2 + $0x178] sm:$0x3] %vm444_vm1, %v8072_v0  ;;  %v628_v6 = vld [vmem:[#allocation2 + $0xa] sm:$0xff] }
  0x20   : > { %493 = vst.msk [vmem:[#allocation2 + $0x190] sm:$0x3] %vm444_vm1, %v8072_v0  ;;  %496 = vst.msk [vmem:[#allocation2 + $0x1a8] sm:$0x3] %vm444_vm1, %v8072_v0  ;;  %v596_v7 = vld [vmem:[#allocation2 + $0x9] sm:$0xff]  ;;  %1014 = vrot.lane.b32.xlu1 %v628_v6, %s12588_s14  ;;  %vm4458_vm1 = vcmask 588800  }
  0x21   : > { %531 = vst.msk [vmem:[#allocation2 + $0x19] sm:$0xff] %vm530_vm2, %v497_v1  ;;  %532 = vst.msk [vmem:[#allocation2 + $0x21] sm:$0xff] %vm530_vm2, %v498_v2  ;;  %886 = vrot.lane.b32.xlu0 %v596_v7, %s8074_s15 }
  0x22   : > { %533 = vst.msk [vmem:[#allocation2 + $0x31] sm:$0xff] %vm530_vm2, %v499_v3  ;;  %534 = vst.msk [vmem:[#allocation2 + $0x39] sm:$0xff] %vm530_vm2, %v500_v8 }
  0x23   : > { %535 = vst.msk [vmem:[#allocation2 + $0x49] sm:$0xff] %vm530_vm2, %v501_v9  ;;  %536 = vst.msk [vmem:[#allocation2 + $0x51] sm:$0xff] %vm530_vm2, %v502_v10 }
  0x24   : > { %537 = vst.msk [vmem:[#allocation2 + $0x61] sm:$0xff] %vm530_vm2, %v503_v11  ;;  %538 = vst.msk [vmem:[#allocation2 + $0x69] sm:$0xff] %vm530_vm2, %v504_v12  ;;  %v563_v12 = vld [vmem:[#allocation2] sm:$0xff] }
  0x25   : > { %539 = vst.msk [vmem:[#allocation2 + $0x79] sm:$0xff] %vm530_vm2, %v505_v13  ;;  %540 = vst.msk [vmem:[#allocation2 + $0x81] sm:$0xff] %vm530_vm2, %v506_v14  ;;  %v515_v13 = vld [vmem:[%s8230_s30 + $0x90] sm:$0xff] }
  0x26   : > { %541 = vst.msk [vmem:[#allocation2 + $0x91] sm:$0xff] %vm530_vm2, %v507_v20  ;;  %542 = vst.msk [vmem:[#allocation2 + $0x99] sm:$0xff] %vm530_vm2, %v508_v26 }
  0x27   : > { %543 = vst.msk [vmem:[#allocation2 + $0xa9] sm:$0xff] %vm530_vm2, %v509_v36  ;;  %544 = vst.msk [vmem:[#allocation2 + $0xb1] sm:$0xff] %vm530_vm2, %v510_v38 }
  0x28   : > { %v8256_v15 = vld [vmem:[#allocation2 + $0x20] sm:$0xff]  ;;  %v8258_v16 = vld [vmem:[#allocation2 + $0x18] sm:$0xff]  ;;  %545 = vst.msk [vmem:[#allocation2 + $0xc1] sm:$0xff] %vm530_vm2, %v511_v44  ;;  %546 = vst.msk [vmem:[#allocation2 + $0xc9] sm:$0xff] %vm530_vm2, %v512_v46 }
  0x29   : > { %1142 = vrot.lane.b32.xlu1 %v8256_v15, %s8075_s16  ;;  %1140 = vrot.lane.b32.xlu0 %v8258_v16, %s8075_s16  ;;  %v691_v17 = vld [vmem:[#allocation2 + $0x19] sm:$0xff]  ;;  %v692_v18 = vld [vmem:[#allocation2 + $0x21] sm:$0xff]  ;;  %v8272_v22 = vld [vmem:[#allocation2 + $0x30] sm:$0xff]  ;;  %547 = vst.msk [vmem:[#allocation2 + $0xd9] sm:$0xff] %vm530_vm2, %v513_v52 }
  0x2a   : > { %v723_v19 = vld [vmem:[#allocation2 + $0x1a] sm:$0xff]  ;;  %v724_v21 = vld [vmem:[#allocation2 + $0x22] sm:$0xff]  ;;  %v788_v30 = vld [vmem:[#allocation2 + $0x31] sm:$0xff]  ;;  %548 = vst.msk [vmem:[#allocation2 + $0xe1] sm:$0xff] %vm530_vm2, %v514_v58 }
  0x2b   : > { %v8294_v29 = vld [vmem:[#allocation2 + $0x38] sm:$0xff]  ;;  %v8315_v37 = vld [vmem:[#allocation2 + $0x48] sm:$0xff]  ;;  %v8325_v39 = vld [vmem:[#allocation2 + $0x50] sm:$0xff]  ;;  %549 = vst.msk [vmem:[#allocation2 + $0xf1] sm:$0xff] %vm530_vm2, %v515_v13 }
  0x2c   : > { %v789_v33 = vld [vmem:[#allocation2 + $0x39] sm:$0xff]  ;;  %v790_v40 = vld [vmem:[#allocation2 + $0x49] sm:$0xff]  ;;  %v791_v41 = vld [vmem:[#allocation2 + $0x51] sm:$0xff]  ;;  %550 = vst.msk [vmem:[#allocation2 + $0xf9] sm:$0xff] %vm530_vm2, %v516_v28 }
  0x2d   : > { %1268 = vrot.lane.b32.xlu0 %v691_v17, %s12578_s17  ;;  %888 = vrot.lane.b32.xlu1 %v691_v17, %s8074_s15  ;;  %v820_v34 = vld [vmem:[#allocation2 + $0x32] sm:$0xff]  ;;  %v821_v35 = vld [vmem:[#allocation2 + $0x3a] sm:$0xff]  ;;  %v822_v42 = vld [vmem:[#allocation2 + $0x4a] sm:$0xff] }
  0x2e   : > { %v823_v43 = vld [vmem:[#allocation2 + $0x52] sm:$0xff]  ;;  %v8343_v45 = vld [vmem:[#allocation2 + $0x60] sm:$0xff]  ;;  %v8353_v47 = vld [vmem:[#allocation2 + $0x68] sm:$0xff] }
  0x2f   : > { %v792_v48 = vld [vmem:[#allocation2 + $0x61] sm:$0xff]  ;;  %v793_v49 = vld [vmem:[#allocation2 + $0x69] sm:$0xff]  ;;  %v8371_v55 = vld [vmem:[#allocation2 + $0x78] sm:$0xff] }
  0x30   : > { %v824_v50 = vld [vmem:[#allocation2 + $0x62] sm:$0xff]  ;;  %v825_v51 = vld [vmem:[#allocation2 + $0x6a] sm:$0xff]  ;;  %v794_v62 = vld [vmem:[#allocation2 + $0x79] sm:$0xff] }
  0x31   : > { %1270 = vrot.lane.b32.xlu0 %v692_v18, %s12578_s17  ;;  %1396 = vrot.lane.b32.xlu1 %v723_v19, %s8077_s18  ;;  %v8385_v61 = vld [vmem:[#allocation2 + $0x80] sm:$0xff]  ;;  %v8415_v20 = vld [vmem:[#allocation2 + $0x90] sm:$0xff]  ;;  %v8439_v38 = vld [vmem:[#allocation2 + $0x98] sm:$0xff] }
  0x32   : > { %v795_v3 = vld [vmem:[#allocation2 + $0x81] sm:$0xff] }
  0x33   : > { %v826_v4 = vld [vmem:[#allocation2 + $0x7a] sm:$0xff]  ;;  %v827_v9 = vld [vmem:[#allocation2 + $0x82] sm:$0xff] }
  0x35   : > { %890 = vrot.lane.b32.xlu0 %v692_v18, %s8074_s15  ;;  %1016 = vrot.lane.b32.xlu1 %v723_v19, %s12588_s14 }
  0x39   : > { %1398 = vrot.lane.b32.xlu0 %v724_v21, %s8077_s18  ;;  %1524 = vrot.lane.b32.xlu1 %v8272_v22, %s8078_s23 }
  0x3d   : > { %1018 = vrot.lane.b32.xlu0 %v724_v21, %s12588_s14  ;;  %1144 = vrot.lane.b32.xlu1 %v8272_v22, %s8075_s16 }
  0x41   : > { %1526 = vrot.lane.b32.xlu0 %v8294_v29, %s8078_s23  ;;  %1652 = vrot.lane.b32.xlu1 %v788_v30, %s8079_s20 }
  0x45   : > { %1146 = vrot.lane.b32.xlu0 %v8294_v29, %s8075_s16  ;;  %1272 = vrot.lane.b32.xlu1 %v788_v30, %s12578_s17 }
  0x49   : > { %1654 = vrot.lane.b32.xlu0 %v789_v33, %s8079_s20  ;;  %1780 = vrot.lane.b32.xlu1 %v820_v34, %s12590_s24 }
  0x4d   : > { %892 = vrot.lane.b32.xlu0 %v788_v30, %s8074_s15  ;;  %1274 = vrot.lane.b32.xlu1 %v789_v33, %s12578_s17 }
  0x51   : > { %1400 = vrot.lane.b32.xlu0 %v820_v34, %s8077_s18  ;;  %1782 = vrot.lane.b32.xlu1 %v821_v35, %s12590_s24 }
  0x55   : > { %894 = vrot.lane.b32.xlu0 %v789_v33, %s8074_s15  ;;  %1020 = vrot.lane.b32.xlu1 %v820_v34, %s12588_s14 }
  0x59   : > { %1402 = vrot.lane.b32.xlu0 %v821_v35, %s8077_s18  ;;  %1528 = vrot.lane.b32.xlu1 %v8315_v37, %s8078_s23 }
  0x5d   : > { %1022 = vrot.lane.b32.xlu0 %v821_v35, %s12588_s14  ;;  %1148 = vrot.lane.b32.xlu1 %v8315_v37, %s8075_s16 }
  0x61   : > { %1530 = vrot.lane.b32.xlu0 %v8325_v39, %s8078_s23  ;;  %1656 = vrot.lane.b32.xlu1 %v790_v40, %s8079_s20 }
  0x65   : > { %1150 = vrot.lane.b32.xlu0 %v8325_v39, %s8075_s16  ;;  %1276 = vrot.lane.b32.xlu1 %v790_v40, %s12578_s17 }
  0x69   : > { %1658 = vrot.lane.b32.xlu0 %v791_v41, %s8079_s20  ;;  %1784 = vrot.lane.b32.xlu1 %v822_v42, %s12590_s24 }
  0x6d   : > { %896 = vrot.lane.b32.xlu0 %v790_v40, %s8074_s15  ;;  %1278 = vrot.lane.b32.xlu1 %v791_v41, %s12578_s17  ;;  %v796_v40 = vld [vmem:[#allocation2 + $0x91] sm:$0xff] }
  0x71   : > { %1404 = vrot.lane.b32.xlu0 %v822_v42, %s8077_s18  ;;  %1786 = vrot.lane.b32.xlu1 %v823_v43, %s12590_s24 }
  0x75   : > { %898 = vrot.lane.b32.xlu0 %v791_v41, %s8074_s15  ;;  %1024 = vrot.lane.b32.xlu1 %v822_v42, %s12588_s14 }
  0x79   : > { %1406 = vrot.lane.b32.xlu0 %v823_v43, %s8077_s18  ;;  %1532 = vrot.lane.b32.xlu1 %v8343_v45, %s8078_s23 }
  0x7d   : > { %1026 = vrot.lane.b32.xlu0 %v823_v43, %s12588_s14  ;;  %1152 = vrot.lane.b32.xlu1 %v8343_v45, %s8075_s16 }
  0x80   : > { %v1013_v53 = vpop.permute.xlu1 %1012 }
  0x81   : > { %1534 = vrot.lane.b32.xlu0 %v8353_v47, %s8078_s23  ;;  %1660 = vrot.lane.b32.xlu1 %v792_v48, %s8079_s20  ;;  %v885_v54 = vpop.permute.xlu0 %884 }
  0x82   : > { %v1876_v14 = vsel %vm530_vm2, %v563_v12, %v885_v54  ;;  %v828_v54 = vld [vmem:[#allocation2 + $0x92] sm:$0xff] }
  0x83   : > { %v1908_v19 = vsel %vm441_vm0, %v1876_v14, %v1013_v53  ;;  %v797_v53 = vld [vmem:[#allocation2 + $0x99] sm:$0xff] }
  0x85   : > { %1154 = vrot.lane.b32.xlu0 %v8353_v47, %s8075_s16  ;;  %1280 = vrot.lane.b32.xlu1 %v792_v48, %s12578_s17 }
  0x89   : > { %1662 = vrot.lane.b32.xlu0 %v793_v49, %s8079_s20  ;;  %1788 = vrot.lane.b32.xlu1 %v824_v50, %s12590_s24 }
  0x8d   : > { %900 = vrot.lane.b32.xlu0 %v792_v48, %s8074_s15  ;;  %1282 = vrot.lane.b32.xlu1 %v793_v49, %s12578_s17 }
  0x91   : > { %1408 = vrot.lane.b32.xlu0 %v824_v50, %s8077_s18  ;;  %1790 = vrot.lane.b32.xlu1 %v825_v51, %s12590_s24 }
  0x92   : > { %v8373_v56 = vpop.permute.xlu1 %1014 }
  0x93   : > { %v887_v57 = vpop.permute.xlu0 %886 }
  0x94   : > { %v1877_v31 = vsel %vm530_vm2, %v564_v25, %v887_v57  ;;  %v8506_v25 = vld [vmem:[#allocation2 + $0xb0] sm:$0xff] }
  0x95   : > { %902 = vrot.lane.b32.xlu0 %v793_v49, %s8074_s15  ;;  %1028 = vrot.lane.b32.xlu1 %v824_v50, %s12588_s14  ;;  %v1909_v36 = vsel %vm441_vm0, %v1877_v31, %v8373_v56 }
  0x99   : > { %1410 = vrot.lane.b32.xlu0 %v825_v51, %s8077_s18  ;;  %1536 = vrot.lane.b32.xlu1 %v8371_v55, %s8078_s23 }
  0x9b   : > { %v8380_v59 = vpop.permute.xlu1 %1142  ;;  %v1141_v60 = vpop.permute.xlu0 %1140 }
  0x9c   : > { %v1941_v21 = vsel %vm1940_vm4, %v1908_v19, %v1141_v60  ;;  %v1942_v41 = vsel %vm1940_vm4, %v1909_v36, %v8380_v59  ;;  %v829_v60 = vld [vmem:[#allocation2 + $0x9a] sm:$0xff] }
  0x9d   : > { %1030 = vrot.lane.b32.xlu0 %v825_v51, %s12588_s14  ;;  %1156 = vrot.lane.b32.xlu1 %v8371_v55, %s8075_s16 }
  0x9f   : > { %v1269_v63 = vpop.permute.xlu0 %1268  ;;  %v8387_v0 = vpop.permute.xlu1 %888 }
  0xa0   : > { %v1974_v26 = vsel %vm1973_vm5, %v1941_v21, %v1269_v63 }
  0xa1   : > { %1538 = vrot.lane.b32.xlu0 %v8385_v61, %s8078_s23  ;;  %1664 = vrot.lane.b32.xlu1 %v794_v62, %s8079_s20 }
  0xa3   : > { %v1271_v1 = vpop.permute.xlu0 %1270  ;;  %v1397_v2 = vpop.permute.xlu1 %1396 }
  0xa4   : > { %v2007_v27 = vsel %vm2006_vm6, %v1974_v26, %v1397_v2  ;;  %v1975_v44 = vsel %vm1973_vm5, %v1942_v41, %v1271_v1  ;;  %v517_v1 = vld [vmem:[%s8230_s30 + $0xa0] sm:$0xff]  ;;  %v798_v26 = vld [vmem:[#allocation2 + $0xa9] sm:$0xff] }
  0xa5   : > { %1158 = vrot.lane.b32.xlu0 %v8385_v61, %s8075_s16  ;;  %1284 = vrot.lane.b32.xlu1 %v794_v62, %s12578_s17  ;;  %551 = vst.msk [vmem:[#allocation2 + $0x109] sm:$0xff] %vm530_vm2, %v517_v1 }
  0xa7   : > { %v8395_v5 = vpop.permute.xlu0 %890  ;;  %v8397_v6 = vpop.permute.xlu1 %1016 }
  0xa8   : > { %v1879_v21 = vsel %vm530_vm2, %v8256_v15, %v8395_v5 }
  0xa9   : > { %1666 = vrot.lane.b32.xlu0 %v795_v3, %s8079_s20  ;;  %1792 = vrot.lane.b32.xlu1 %v826_v4, %s12590_s24 }
  0xab   : > { %v1399_v7 = vpop.permute.xlu0 %1398  ;;  %v1525_v8 = vpop.permute.xlu1 %1524 }
  0xac   : > { %v2040_v30 = vsel %vm2039_vm7, %v2007_v27, %v1525_v8  ;;  %v2008_v46 = vsel %vm2006_vm6, %v1975_v44, %v1399_v7  ;;  %v8480_v8 = vld [vmem:[#allocation2 + $0xa8] sm:$0xff]  ;;  %v831_v44 = vld [vmem:[#allocation2 + $0xb2] sm:$0xff] }
  0xad   : > { %904 = vrot.lane.b32.xlu0 %v794_v62, %s8074_s15  ;;  %1286 = vrot.lane.b32.xlu1 %v795_v3, %s12578_s17 }
  0xaf   : > { %v8403_v10 = vpop.permute.xlu0 %1018  ;;  %v8405_v11 = vpop.permute.xlu1 %1144 }
  0xb1   : > { %1412 = vrot.lane.b32.xlu0 %v826_v4, %s8077_s18  ;;  %1794 = vrot.lane.b32.xlu1 %v827_v9, %s12590_s24 }
  0xb3   : > { %v1527_v17 = vpop.permute.xlu0 %1526  ;;  %v1653_v18 = vpop.permute.xlu1 %1652 }
  0xb4   : > { %v2073_v32 = vsel %vm2072_vm8, %v2040_v30, %v1653_v18  ;;  %v2041_v48 = vsel %vm2039_vm7, %v2008_v46, %v1527_v17 }
  0xb5   : > { %906 = vrot.lane.b32.xlu0 %v795_v3, %s8074_s15  ;;  %1032 = vrot.lane.b32.xlu1 %v826_v4, %s12588_s14  ;;  %v1878_v4 = vsel %vm530_vm2, %v8258_v16, %v8387_v0  ;;  %v518_v0 = vld [vmem:[%s8230_s30 + $0xa8] sm:$0xff] }
  0xb6   : > { %v1910_v7 = vsel %vm441_vm0, %v1878_v4, %v8397_v6  ;;  %552 = vst.msk [vmem:[#allocation2 + $0x111] sm:$0xff] %vm530_vm2, %v518_v0 }
  0xb7   : > { %v8418_v23 = vpop.permute.xlu0 %1146  ;;  %v8420_v24 = vpop.permute.xlu1 %1272 }
  0xb9   : > { %1414 = vrot.lane.b32.xlu0 %v827_v9, %s8077_s18  ;;  %1540 = vrot.lane.b32.xlu1 %v8415_v20, %s8078_s23 }
  0xbb   : > { %v1655_v33 = vpop.permute.xlu0 %1654  ;;  %v1781_v34 = vpop.permute.xlu1 %1780 }
  0xbc   : > { %v2106_v35 = vsel %vm2105_vm9, %v2073_v32, %v1781_v34  ;;  %v2074_v49 = vsel %vm2072_vm8, %v2041_v48, %v1655_v33  ;;  %v799_v34 = vld [vmem:[#allocation2 + $0xb1] sm:$0xff] }
  0xbd   : > { %1034 = vrot.lane.b32.xlu0 %v827_v9, %s12588_s14  ;;  %1160 = vrot.lane.b32.xlu1 %v8415_v20, %s8075_s16  ;;  %v1943_v9 = vsel %vm1940_vm4, %v1910_v7, %v8405_v11 }
  0xbe   : > { %7768 = vmatprep.mubr.msk.f32.mxu0 %vm2150_vm10, %v2106_v35  ;;  %v1976_v14 = vsel %vm1973_vm5, %v1943_v9, %v8420_v24  ;;  %v1911_v24 = vsel %vm441_vm0, %v1879_v21, %v8403_v10  ;;  %v830_v35 = vld [vmem:[#allocation2 + $0xaa] sm:$0xff]  ;;  %v832_v21 = vld [vmem:[#allocation2 + $0xc2] sm:$0xff] }
  0xbf   : > { %v8443_v42 = vpop.permute.xlu0 %892  ;;  %v1275_v43 = vpop.permute.xlu1 %1274  ;;  %v1944_v27 = vsel %vm1940_vm4, %v1911_v24, %v8418_v23 }
  0xc0   : > { %v1977_v15 = vsel %vm1973_vm5, %v1944_v27, %v1275_v43 }
  0xc1   : > { %1542 = vrot.lane.b32.xlu0 %v8439_v38, %s8078_s23  ;;  %1668 = vrot.lane.b32.xlu1 %v796_v40, %s8079_s20 }
  0xc3   : > { %v1401_v50 = vpop.permute.xlu0 %1400  ;;  %v1783_v51 = vpop.permute.xlu1 %1782 }
  0xc4   : > { %v2107_v52 = vsel %vm2105_vm9, %v2074_v49, %v1783_v51  ;;  %v2009_v16 = vsel %vm2006_vm6, %v1976_v14, %v1401_v50  ;;  %v519_v49 = vld [vmem:[%s8230_s30 + $0xb0] sm:$0xff]  ;;  %v800_v14 = vld [vmem:[#allocation2 + $0xc1] sm:$0xff] }
  0xc5   : > { %1162 = vrot.lane.b32.xlu0 %v8439_v38, %s8075_s16  ;;  %1288 = vrot.lane.b32.xlu1 %v796_v40, %s12578_s17  ;;  %553 = vst.msk [vmem:[#allocation2 + $0x121] sm:$0xff] %vm530_vm2, %v519_v49 }
  0xc6   : > { %7769 = vmatmul.mubr.msk.f32.vlgmr.msra.gmra.mrb[0].mxu0 %vm2150_vm10, %v2107_v52  ;;  %v1880_v52 = vsel %vm530_vm2, %v8272_v22, %v8443_v42  ;;  %v520_v22 = vld [vmem:[%s8230_s30 + $0xb8] sm:$0xff] }
  0xc7   : > { %v8457_v56 = vpop.permute.xlu0 %894  ;;  %v8459_v57 = vpop.permute.xlu1 %1020  ;;  %554 = vst.msk [vmem:[#allocation2 + $0x129] sm:$0xff] %vm530_vm2, %v520_v22 }
  0xc8   : > { %v1881_v7 = vsel %vm530_vm2, %v8294_v29, %v8457_v56 }
  0xc9   : > { %1670 = vrot.lane.b32.xlu0 %v797_v53, %s8079_s20  ;;  %1796 = vrot.lane.b32.xlu1 %v828_v54, %s12590_s24 }
  0xcb   : > { %v1403_v58 = vpop.permute.xlu0 %1402  ;;  %v1529_v59 = vpop.permute.xlu1 %1528 }
  0xcc   : > { %v2042_v6 = vsel %vm2039_vm7, %v2009_v16, %v1529_v59  ;;  %v2010_v5 = vsel %vm2006_vm6, %v1977_v15, %v1403_v58  ;;  %v833_v15 = vld [vmem:[#allocation2 + $0xca] sm:$0xff] }
  0xcd   : > { %908 = vrot.lane.b32.xlu0 %v796_v40, %s8074_s15  ;;  %1290 = vrot.lane.b32.xlu1 %v797_v53, %s12578_s17 }
  0xcf   : > { %v8465_v62 = vpop.permute.xlu0 %1022  ;;  %v8467_v63 = vpop.permute.xlu1 %1148 }
  0xd0   : > { %v1913_v9 = vsel %vm441_vm0, %v1881_v7, %v8465_v62  ;;  %v834_v7 = vld [vmem:[#allocation2 + $0xda] sm:$0xff] }
  0xd1   : > { %1416 = vrot.lane.b32.xlu0 %v828_v54, %s8077_s18  ;;  %1798 = vrot.lane.b32.xlu1 %v829_v60, %s12590_s24 }
  0xd3   : > { %v1531_v2 = vpop.permute.xlu0 %1530  ;;  %v1657_v3 = vpop.permute.xlu1 %1656 }
  0xd4   : > { %v2075_v11 = vsel %vm2072_vm8, %v2042_v6, %v1657_v3  ;;  %v2043_v10 = vsel %vm2039_vm7, %v2010_v5, %v1531_v2 }
  0xd5   : > { %910 = vrot.lane.b32.xlu0 %v797_v53, %s8074_s15  ;;  %1036 = vrot.lane.b32.xlu1 %v828_v54, %s12588_s14  ;;  %v1912_v53 = vsel %vm441_vm0, %v1880_v52, %v8459_v57  ;;  %v8547_v54 = vld [vmem:[#allocation2 + $0xc0] sm:$0xff] }
  0xd6   : > { %v1945_v58 = vsel %vm1940_vm4, %v1912_v53, %v8467_v63 }
  0xd7   : > { %v8484_v12 = vpop.permute.xlu0 %1150  ;;  %v1277_v13 = vpop.permute.xlu1 %1276 }
  0xd8   : > { %v1978_v1 = vsel %vm1973_vm5, %v1945_v58, %v1277_v13  ;;  %v8572_v13 = vld [vmem:[#allocation2 + $0xc8] sm:$0xff]  ;;  %v1946_v16 = vsel %vm1940_vm4, %v1913_v9, %v8484_v12 }
  0xd9   : > { %1418 = vrot.lane.b32.xlu0 %v829_v60, %s8077_s18  ;;  %1544 = vrot.lane.b32.xlu1 %v8480_v8, %s8078_s23 }
  0xdb   : > { %v1659_v17 = vpop.permute.xlu0 %1658  ;;  %v1785_v18 = vpop.permute.xlu1 %1784 }
  0xdc   : > { %v2108_v19 = vsel %vm2105_vm9, %v2075_v11, %v1785_v18  ;;  %v2076_v31 = vsel %vm2072_vm8, %v2043_v10, %v1659_v17 }
  0xdd   : > { %1038 = vrot.lane.b32.xlu0 %v829_v60, %s12588_s14  ;;  %1164 = vrot.lane.b32.xlu1 %v8480_v8, %s8075_s16 }
  0xde   : > { %7771 = vmatprep.mubr.msk.f32.mxu0 %vm2150_vm10, %v2108_v19  ;;  %v801_v19 = vld [vmem:[#allocation2 + $0xc9] sm:$0xff] }
  0xdf   : > { %v8510_v28 = vpop.permute.xlu0 %896  ;;  %v1279_v30 = vpop.permute.xlu1 %1278 }
  0xe0   : > { %v1979_v29 = vsel %vm1973_vm5, %v1946_v16, %v1279_v30 }
  0xe1   : > { %1546 = vrot.lane.b32.xlu0 %v8506_v25, %s8078_s23  ;;  %1672 = vrot.lane.b32.xlu1 %v798_v26, %s8079_s20 }
  0xe3   : > { %v1405_v32 = vpop.permute.xlu0 %1404  ;;  %v1787_v33 = vpop.permute.xlu1 %1786 }
  0xe4   : > { %v2109_v23 = vsel %vm2105_vm9, %v2076_v31, %v1787_v33  ;;  %v2011_v2 = vsel %vm2006_vm6, %v1978_v1, %v1405_v32  ;;  %v521_v31 = vld [vmem:[%s8230_s30 + $0xc0] sm:$0xff] }
  0xe5   : > { %1166 = vrot.lane.b32.xlu0 %v8506_v25, %s8075_s16  ;;  %1292 = vrot.lane.b32.xlu1 %v798_v26, %s12578_s17  ;;  %555 = vst.msk [vmem:[#allocation2 + $0x139] sm:$0xff] %vm530_vm2, %v521_v31  ;;  %v802_v1 = vld [vmem:[#allocation2 + $0xd9] sm:$0xff] }
  0xe6   : > { %7772 = vmatmul.mubr.msk.f32.gmra.mrb[2].mxu0 %vm2150_vm10, %v2109_v23  ;;  %v1882_v23 = vsel %vm530_vm2, %v8315_v37, %v8510_v28  ;;  %v522_v37 = vld [vmem:[%s8230_s30 + $0xc8] sm:$0xff] }
  0xe7   : > { %v8524_v36 = vpop.permute.xlu0 %898  ;;  %v8526_v40 = vpop.permute.xlu1 %1024  ;;  %556 = vst.msk [vmem:[#allocation2 + $0x141] sm:$0xff] %vm530_vm2, %v522_v37 }
  0xe8   : > { %v1883_v53 = vsel %vm530_vm2, %v8325_v39, %v8524_v36 }
  0xe9   : > { %1674 = vrot.lane.b32.xlu0 %v799_v34, %s8079_s20  ;;  %1800 = vrot.lane.b32.xlu1 %v830_v35, %s12590_s24 }
  0xeb   : > { %v1407_v41 = vpop.permute.xlu0 %1406  ;;  %v1533_v43 = vpop.permute.xlu1 %1532 }
  0xec   : > { %v2044_v42 = vsel %vm2039_vm7, %v2011_v2, %v1533_v43  ;;  %v2012_v56 = vsel %vm2006_vm6, %v1979_v29, %v1407_v41  ;;  %v835_v29 = vld [vmem:[#allocation2 + $0xe2] sm:$0xff] }
  0xed   : > { %912 = vrot.lane.b32.xlu0 %v798_v26, %s8074_s15  ;;  %1294 = vrot.lane.b32.xlu1 %v799_v34, %s12578_s17 }
  0xef   : > { %v8532_v46 = vpop.permute.xlu0 %1026  ;;  %v8534_v48 = vpop.permute.xlu1 %1152 }
  0xf0   : > { %v1915_v58 = vsel %vm441_vm0, %v1883_v53, %v8532_v46  ;;  %v836_v53 = vld [vmem:[#allocation2 + $0xf2] sm:$0xff] }
  0xf1   : > { %1420 = vrot.lane.b32.xlu0 %v830_v35, %s8077_s18  ;;  %1802 = vrot.lane.b32.xlu1 %v831_v44, %s12590_s24 }
  0xf3   : > { %v1535_v50 = vpop.permute.xlu0 %1534  ;;  %v1661_v51 = vpop.permute.xlu1 %1660 }
  0xf4   : > { %v2077_v57 = vsel %vm2072_vm8, %v2044_v42, %v1661_v51  ;;  %v2045_v62 = vsel %vm2039_vm7, %v2012_v56, %v1535_v50 }
  0xf5   : > { %914 = vrot.lane.b32.xlu0 %v799_v34, %s8074_s15  ;;  %1040 = vrot.lane.b32.xlu1 %v830_v35, %s12588_s14  ;;  %v1914_v34 = vsel %vm441_vm0, %v1882_v23, %v8526_v40  ;;  %v8613_v35 = vld [vmem:[#allocation2 + $0xd8] sm:$0xff] }
  0xf6   : > { %v1947_v41 = vsel %vm1940_vm4, %v1914_v34, %v8534_v48 }
  0xf7   : > { %v8551_v59 = vpop.permute.xlu0 %1154  ;;  %v1281_v60 = vpop.permute.xlu1 %1280 }
  0xf8   : > { %v1980_v49 = vsel %vm1973_vm5, %v1947_v41, %v1281_v60  ;;  %v8638_v60 = vld [vmem:[#allocation2 + $0xe0] sm:$0xff]  ;;  %v1948_v2 = vsel %vm1940_vm4, %v1915_v58, %v8551_v59 }
  0xf9   : > { %1422 = vrot.lane.b32.xlu0 %v831_v44, %s8077_s18  ;;  %1548 = vrot.lane.b32.xlu1 %v8547_v54, %s8078_s23 }
  0xfb   : > { %v1663_v63 = vpop.permute.xlu0 %1662  ;;  %v1789_v3 = vpop.permute.xlu1 %1788 }
  0xfc   : > { %v2110_v4 = vsel %vm2105_vm9, %v2077_v57, %v1789_v3  ;;  %v2078_v11 = vsel %vm2072_vm8, %v2045_v62, %v1663_v63 }
  0xfd   : > { %1042 = vrot.lane.b32.xlu0 %v831_v44, %s12588_s14  ;;  %1168 = vrot.lane.b32.xlu1 %v8547_v54, %s8075_s16 }
  0xfe   : > { %7774 = vmatprep.mubr.msk.f32.mxu0 %vm2150_vm10, %v2110_v4  ;;  %v803_v4 = vld [vmem:[#allocation2 + $0xe1] sm:$0xff] }
  0xff   : > { %v8576_v0 = vpop.permute.xlu0 %900  ;;  %v1283_v6 = vpop.permute.xlu1 %1282 }
 0x100   : > { %v1981_v39 = vsel %vm1973_vm5, %v1948_v2, %v1283_v6 }
 0x101   : > { %1550 = vrot.lane.b32.xlu0 %v8572_v13, %s8078_s23  ;;  %1676 = vrot.lane.b32.xlu1 %v800_v14, %s8079_s20 }
 0x103   : > { %v1409_v17 = vpop.permute.xlu0 %1408  ;;  %v1791_v18 = vpop.permute.xlu1 %1790 }
 0x104   : > { %v2111_v12 = vsel %vm2105_vm9, %v2078_v11, %v1791_v18  ;;  %v2013_v50 = vsel %vm2006_vm6, %v1980_v49, %v1409_v17  ;;  %v523_v11 = vld [vmem:[%s8230_s30 + $0xd0] sm:$0xff] }
 0x105   : > { %1170 = vrot.lane.b32.xlu0 %v8572_v13, %s8075_s16  ;;  %1296 = vrot.lane.b32.xlu1 %v800_v14, %s12578_s17  ;;  %557 = vst.msk [vmem:[#allocation2 + $0x151] sm:$0xff] %vm530_vm2, %v523_v11  ;;  %v804_v49 = vld [vmem:[#allocation2 + $0xf1] sm:$0xff] }
 0x106   : > { %7775 = vmatmul.mubr.msk.f32.gmra.mrb[4].mxu0 %vm2150_vm10, %v2111_v12  ;;  %v1884_v12 = vsel %vm530_vm2, %v8343_v45, %v8576_v0  ;;  %v524_v45 = vld [vmem:[%s8230_s30 + $0xd8] sm:$0xff] }
 0x107   : > { %v8590_v24 = vpop.permute.xlu0 %902  ;;  %v8592_v26 = vpop.permute.xlu1 %1028  ;;  %558 = vst.msk [vmem:[#allocation2 + $0x159] sm:$0xff] %vm530_vm2, %v524_v45 }
 0x108   : > { %v1885_v34 = vsel %vm530_vm2, %v8353_v47, %v8590_v24 }
 0x109   : > { %1678 = vrot.lane.b32.xlu0 %v801_v19, %s8079_s20  ;;  %1804 = vrot.lane.b32.xlu1 %v832_v21, %s12590_s24 }
 0x10b   : > { %v1411_v27 = vpop.permute.xlu0 %1410  ;;  %v1537_v30 = vpop.permute.xlu1 %1536 }
 0x10c   : > { %v2046_v28 = vsel %vm2039_vm7, %v2013_v50, %v1537_v30  ;;  %v2014_v36 = vsel %vm2006_vm6, %v1981_v39, %v1411_v27  ;;  %v837_v39 = vld [vmem:[#allocation2 + $0xfa] sm:$0xff] }
 0x10d   : > { %916 = vrot.lane.b32.xlu0 %v800_v14, %s8074_s15  ;;  %1298 = vrot.lane.b32.xlu1 %v801_v19, %s12578_s17 }
 0x10f   : > { %v8598_v5 = vpop.permute.xlu0 %1030  ;;  %v8600_v10 = vpop.permute.xlu1 %1156 }
 0x110   : > { %v1917_v41 = vsel %vm441_vm0, %v1885_v34, %v8598_v5  ;;  %v838_v34 = vld [vmem:[#allocation2 + $0x10a] sm:$0xff] }
 0x111   : > { %1424 = vrot.lane.b32.xlu0 %v832_v21, %s8077_s18  ;;  %1806 = vrot.lane.b32.xlu1 %v833_v15, %s12590_s24 }
 0x113   : > { %v1539_v32 = vpop.permute.xlu0 %1538  ;;  %v1665_v33 = vpop.permute.xlu1 %1664 }
 0x114   : > { %v2079_v40 = vsel %vm2072_vm8, %v2046_v28, %v1665_v33  ;;  %v2047_v46 = vsel %vm2039_vm7, %v2014_v36, %v1539_v32 }
 0x115   : > { %918 = vrot.lane.b32.xlu0 %v801_v19, %s8074_s15  ;;  %1044 = vrot.lane.b32.xlu1 %v832_v21, %s12588_s14  ;;  %v1916_v19 = vsel %vm441_vm0, %v1884_v12, %v8592_v26  ;;  %v8679_v21 = vld [vmem:[#allocation2 + $0xf0] sm:$0xff] }
 0x116   : > { %v1949_v27 = vsel %vm1940_vm4, %v1916_v19, %v8600_v10 }
 0x117   : > { %v8617_v43 = vpop.permute.xlu0 %1158  ;;  %v1285_v44 = vpop.permute.xlu1 %1284 }
 0x118   : > { %v1982_v31 = vsel %vm1973_vm5, %v1949_v27, %v1285_v44  ;;  %v8704_v44 = vld [vmem:[#allocation2 + $0xf8] sm:$0xff]  ;;  %v1950_v50 = vsel %vm1940_vm4, %v1917_v41, %v8617_v43 }
 0x119   : > { %1426 = vrot.lane.b32.xlu0 %v833_v15, %s8077_s18  ;;  %1552 = vrot.lane.b32.xlu1 %v8613_v35, %s8078_s23 }
 0x11b   : > { %v1667_v48 = vpop.permute.xlu0 %1666  ;;  %v1793_v51 = vpop.permute.xlu1 %1792 }
 0x11c   : > { %v2112_v52 = vsel %vm2105_vm9, %v2079_v40, %v1793_v51  ;;  %v2080_v57 = vsel %vm2072_vm8, %v2047_v46, %v1667_v48 }
 0x11d   : > { %1046 = vrot.lane.b32.xlu0 %v833_v15, %s12588_s14  ;;  %1172 = vrot.lane.b32.xlu1 %v8613_v35, %s8075_s16 }
 0x11e   : > { %7777 = vmatprep.mubr.msk.f32.mxu0 %vm2150_vm10, %v2112_v52  ;;  %v805_v52 = vld [vmem:[#allocation2 + $0xf9] sm:$0xff] }
 0x11f   : > { %v8642_v22 = vpop.permute.xlu0 %904  ;;  %v1287_v42 = vpop.permute.xlu1 %1286 }
 0x120   : > { %v1983_v47 = vsel %vm1973_vm5, %v1950_v50, %v1287_v42 }
 0x121   : > { %1554 = vrot.lane.b32.xlu0 %v8638_v60, %s8078_s23  ;;  %1680 = vrot.lane.b32.xlu1 %v802_v1, %s8079_s20 }
 0x123   : > { %v1413_v63 = vpop.permute.xlu0 %1412  ;;  %v1795_v3 = vpop.permute.xlu1 %1794 }
 0x124   : > { %v2113_v59 = vsel %vm2105_vm9, %v2080_v57, %v1795_v3  ;;  %v2015_v32 = vsel %vm2006_vm6, %v1982_v31, %v1413_v63  ;;  %v525_v57 = vld [vmem:[%s8230_s30 + $0xe0] sm:$0xff]  ;;  %v806_v31 = vld [vmem:[#allocation2 + $0x109] sm:$0xff] }
 0x125   : > { %1174 = vrot.lane.b32.xlu0 %v8638_v60, %s8075_s16  ;;  %1300 = vrot.lane.b32.xlu1 %v802_v1, %s12578_s17  ;;  %559 = vst.msk [vmem:[#allocation2 + $0x169] sm:$0xff] %vm530_vm2, %v525_v57 }
 0x126   : > { %7778 = vmatmul.mubr.msk.f32.gmra.mrb[6].mxu0 %vm2150_vm10, %v2113_v59  ;;  %v1886_v59 = vsel %vm530_vm2, %v8371_v55, %v8642_v22  ;;  %v526_v55 = vld [vmem:[%s8230_s30 + $0xe8] sm:$0xff] }
 0x127   : > { %v8656_v9 = vpop.permute.xlu0 %906  ;;  %v8658_v14 = vpop.permute.xlu1 %1032  ;;  %560 = vst.msk [vmem:[#allocation2 + $0x171] sm:$0xff] %vm530_vm2, %v526_v55 }
 0x128   : > { %v1887_v19 = vsel %vm530_vm2, %v8385_v61, %v8656_v9 }
 0x129   : > { %1682 = vrot.lane.b32.xlu0 %v803_v4, %s8079_s20  ;;  %1808 = vrot.lane.b32.xlu1 %v834_v7, %s12590_s24 }
 0x12b   : > { %v1415_v16 = vpop.permute.xlu0 %1414  ;;  %v1541_v6 = vpop.permute.xlu1 %1540 }
 0x12c   : > { %v2048_v0 = vsel %vm2039_vm7, %v2015_v32, %v1541_v6  ;;  %v2016_v24 = vsel %vm2006_vm6, %v1983_v47, %v1415_v16  ;;  %v839_v47 = vld [vmem:[#allocation2 + $0x112] sm:$0xff] }
 0x12d   : > { %920 = vrot.lane.b32.xlu0 %v802_v1, %s8074_s15  ;;  %1302 = vrot.lane.b32.xlu1 %v803_v4, %s12578_s17 }
 0x12f   : > { %v8664_v56 = vpop.permute.xlu0 %1034  ;;  %v8666_v62 = vpop.permute.xlu1 %1160 }
 0x130   : > { %v1919_v27 = vsel %vm441_vm0, %v1887_v19, %v8664_v56  ;;  %v840_v19 = vld [vmem:[#allocation2 + $0x122] sm:$0xff] }
 0x131   : > { %1428 = vrot.lane.b32.xlu0 %v834_v7, %s8077_s18  ;;  %1810 = vrot.lane.b32.xlu1 %v835_v29, %s12590_s24 }
 0x133   : > { %v1543_v17 = vpop.permute.xlu0 %1542  ;;  %v1669_v18 = vpop.permute.xlu1 %1668 }
 0x134   : > { %v2081_v26 = vsel %vm2072_vm8, %v2048_v0, %v1669_v18  ;;  %v2049_v5 = vsel %vm2039_vm7, %v2016_v24, %v1543_v17 }
 0x135   : > { %922 = vrot.lane.b32.xlu0 %v803_v4, %s8074_s15  ;;  %1048 = vrot.lane.b32.xlu1 %v834_v7, %s12588_s14  ;;  %v1918_v4 = vsel %vm441_vm0, %v1886_v59, %v8658_v14  ;;  %v8745_v7 = vld [vmem:[#allocation2 + $0x108] sm:$0xff] }
 0x136   : > { %v1951_v16 = vsel %vm1940_vm4, %v1918_v4, %v8666_v62 }
 0x137   : > { %v8683_v30 = vpop.permute.xlu0 %1162  ;;  %v1289_v15 = vpop.permute.xlu1 %1288 }
 0x138   : > { %v1984_v11 = vsel %vm1973_vm5, %v1951_v16, %v1289_v15  ;;  %v8770_v15 = vld [vmem:[#allocation2 + $0x110] sm:$0xff]  ;;  %v1952_v32 = vsel %vm1940_vm4, %v1919_v27, %v8683_v30 }
 0x139   : > { %1430 = vrot.lane.b32.xlu0 %v835_v29, %s8077_s18  ;;  %1556 = vrot.lane.b32.xlu1 %v8679_v21, %s8078_s23 }
 0x13b   : > { %v1671_v10 = vpop.permute.xlu0 %1670  ;;  %v1797_v33 = vpop.permute.xlu1 %1796 }
 0x13c   : > { %v2114_v23 = vsel %vm2105_vm9, %v2081_v26, %v1797_v33  ;;  %v2082_v40 = vsel %vm2072_vm8, %v2049_v5, %v1671_v10 }
 0x13d   : > { %1050 = vrot.lane.b32.xlu0 %v835_v29, %s12588_s14  ;;  %1176 = vrot.lane.b32.xlu1 %v8679_v21, %s8075_s16 }
 0x13e   : > { %7780 = vmatprep.mubr.msk.f32.mxu0 %vm2150_vm10, %v2114_v23  ;;  %v807_v23 = vld [vmem:[#allocation2 + $0x111] sm:$0xff] }
 0x13f   : > { %v8708_v37 = vpop.permute.xlu0 %908  ;;  %v1291_v28 = vpop.permute.xlu1 %1290 }
 0x140   : > { %v1985_v61 = vsel %vm1973_vm5, %v1952_v32, %v1291_v28 }
 0x141   : > { %1558 = vrot.lane.b32.xlu0 %v8704_v44, %s8078_s23  ;;  %1684 = vrot.lane.b32.xlu1 %v804_v49, %s8079_s20 }
 0x143   : > { %v1417_v48 = vpop.permute.xlu0 %1416  ;;  %v1799_v51 = vpop.permute.xlu1 %1798 }
 0x144   : > { %v2115_v43 = vsel %vm2105_vm9, %v2082_v40, %v1799_v51  ;;  %v2017_v17 = vsel %vm2006_vm6, %v1984_v11, %v1417_v48  ;;  %v527_v40 = vld [vmem:[%s8230_s30 + $0xf0] sm:$0xff]  ;;  %v808_v11 = vld [vmem:[#allocation2 + $0x121] sm:$0xff] }
 0x145   : > { %1178 = vrot.lane.b32.xlu0 %v8704_v44, %s8075_s16  ;;  %1304 = vrot.lane.b32.xlu1 %v804_v49, %s12578_s17  ;;  %561 = vst.msk [vmem:[#allocation2 + $0x181] sm:$0xff] %vm530_vm2, %v527_v40 }
 0x146   : > { %7781 = vmatmul.mubr.msk.f32.gmra.mrb[8].mxu0 %vm2150_vm10, %v2115_v43  ;;  %v1888_v43 = vsel %vm530_vm2, %v8415_v20, %v8708_v37  ;;  %v528_v20 = vld [vmem:[%s8230_s30 + $0xf8] sm:$0xff] }
 0x147   : > { %v8722_v58 = vpop.permute.xlu0 %910  ;;  %v8724_v1 = vpop.permute.xlu1 %1036  ;;  %562 = vst.msk [vmem:[#allocation2 + $0x189] sm:$0xff] %vm530_vm2, %v528_v20 }
 0x148   : > { %v1889_v4 = vsel %vm530_vm2, %v8439_v38, %v8722_v58 }
 0x149   : > { %1686 = vrot.lane.b32.xlu0 %v805_v52, %s8079_s20  ;;  %1812 = vrot.lane.b32.xlu1 %v836_v53, %s12590_s24 }
 0x14b   : > { %v1419_v2 = vpop.permute.xlu0 %1418  ;;  %v1545_v42 = vpop.permute.xlu1 %1544 }
 0x14c   : > { %v2050_v22 = vsel %vm2039_vm7, %v2017_v17, %v1545_v42  ;;  %v2018_v9 = vsel %vm2006_vm6, %v1985_v61, %v1419_v2  ;;  %v841_v61 = vld [vmem:[#allocation2 + $0x12a] sm:$0xff] }
 0x14d   : > { %924 = vrot.lane.b32.xlu0 %v804_v49, %s8074_s15  ;;  %1306 = vrot.lane.b32.xlu1 %v805_v52, %s12578_s17 }
 0x14f   : > { %v8730_v36 = vpop.permute.xlu0 %1038  ;;  %v8732_v46 = vpop.permute.xlu1 %1164 }
 0x150   : > { %v1921_v16 = vsel %vm441_vm0, %v1889_v4, %v8730_v36  ;;  %v842_v4 = vld [vmem:[#allocation2 + $0x13a] sm:$0xff] }
 0x151   : > { %1432 = vrot.lane.b32.xlu0 %v836_v53, %s8077_s18  ;;  %1814 = vrot.lane.b32.xlu1 %v837_v39, %s12590_s24 }
 0x153   : > { %v1547_v63 = vpop.permute.xlu0 %1546  ;;  %v1673_v3 = vpop.permute.xlu1 %1672 }
 0x154   : > { %v2083_v14 = vsel %vm2072_vm8, %v2050_v22, %v1673_v3  ;;  %v2051_v56 = vsel %vm2039_vm7, %v2018_v9, %v1547_v63 }
 0x155   : > { %926 = vrot.lane.b32.xlu0 %v805_v52, %s8074_s15  ;;  %1052 = vrot.lane.b32.xlu1 %v836_v53, %s12588_s14  ;;  %v1920_v52 = vsel %vm441_vm0, %v1888_v43, %v8724_v1  ;;  %v8811_v53 = vld [vmem:[#allocation2 + $0x120] sm:$0xff] }
 0x156   : > { %v1953_v2 = vsel %vm1940_vm4, %v1920_v52, %v8732_v46 }
 0x157   : > { %v8749_v6 = vpop.permute.xlu0 %1166  ;;  %v1293_v29 = vpop.permute.xlu1 %1292 }
 0x158   : > { %v1986_v57 = vsel %vm1973_vm5, %v1953_v2, %v1293_v29  ;;  %v8836_v29 = vld [vmem:[#allocation2 + $0x128] sm:$0xff]  ;;  %v1954_v17 = vsel %vm1940_vm4, %v1921_v16, %v8749_v6 }
 0x159   : > { %1434 = vrot.lane.b32.xlu0 %v837_v39, %s8077_s18  ;;  %1560 = vrot.lane.b32.xlu1 %v8745_v7, %s8078_s23 }
 0x15b   : > { %v1675_v62 = vpop.permute.xlu0 %1674  ;;  %v1801_v18 = vpop.permute.xlu1 %1800 }
 0x15c   : > { %v2116_v12 = vsel %vm2105_vm9, %v2083_v14, %v1801_v18  ;;  %v2084_v26 = vsel %vm2072_vm8, %v2051_v56, %v1675_v62 }
 0x15d   : > { %1054 = vrot.lane.b32.xlu0 %v837_v39, %s12588_s14  ;;  %1180 = vrot.lane.b32.xlu1 %v8745_v7, %s8075_s16 }
 0x15e   : > { %7783 = vmatprep.mubr.msk.f32.mxu0 %vm2150_vm10, %v2116_v12  ;;  %v809_v12 = vld [vmem:[#allocation2 + $0x129] sm:$0xff] }
 0x15f   : > { %v8774_v45 = vpop.permute.xlu0 %912  ;;  %v1295_v0 = vpop.permute.xlu1 %1294 }
 0x160   : > { %v1987_v38 = vsel %vm1973_vm5, %v1954_v17, %v1295_v0 }
 0x161   : > { %1562 = vrot.lane.b32.xlu0 %v8770_v15, %s8078_s23  ;;  %1688 = vrot.lane.b32.xlu1 %v806_v31, %s8079_s20 }
 0x163   : > { %v1421_v10 = vpop.permute.xlu0 %1420  ;;  %v1803_v33 = vpop.permute.xlu1 %1802 }
 0x164   : > { %v2117_v30 = vsel %vm2105_vm9, %v2084_v26, %v1803_v33  ;;  %v2019_v63 = vsel %vm2006_vm6, %v1986_v57, %v1421_v10  ;;  %v1890_v33 = vsel %vm530_vm2, %v8480_v8, %v8774_v45  ;;  %v810_v57 = vld [vmem:[#allocation2 + $0x139] sm:$0xff] }
 0x165   : > { %1182 = vrot.lane.b32.xlu0 %v8770_v15, %s8075_s16  ;;  %1308 = vrot.lane.b32.xlu1 %v806_v31, %s12578_s17 }
 0x166   : > { %7784 = vmatmul.mubr.msk.f32.gmra.mrb[10].mxu0 %vm2150_vm10, %v2117_v30 }
 0x167   : > { %v8788_v41 = vpop.permute.xlu0 %914  ;;  %v8790_v49 = vpop.permute.xlu1 %1040 }
 0x168   : > { %v1922_v30 = vsel %vm441_vm0, %v1890_v33, %v8790_v49  ;;  %v1891_v52 = vsel %vm530_vm2, %v8506_v25, %v8788_v41 }
 0x169   : > { %1690 = vrot.lane.b32.xlu0 %v807_v23, %s8079_s20  ;;  %1816 = vrot.lane.b32.xlu1 %v838_v34, %s12590_s24 }
 0x16b   : > { %v1423_v50 = vpop.permute.xlu0 %1422  ;;  %v1549_v28 = vpop.permute.xlu1 %1548 }
 0x16c   : > { %v2052_v37 = vsel %vm2039_vm7, %v2019_v63, %v1549_v28  ;;  %v2020_v58 = vsel %vm2006_vm6, %v1987_v38, %v1423_v50  ;;  %v843_v38 = vld [vmem:[#allocation2 + $0x142] sm:$0xff] }
 0x16d   : > { %928 = vrot.lane.b32.xlu0 %v806_v31, %s8074_s15  ;;  %1310 = vrot.lane.b32.xlu1 %v807_v23, %s12578_s17 }
 0x16f   : > { %v8796_v24 = vpop.permute.xlu0 %1042  ;;  %v8798_v5 = vpop.permute.xlu1 %1168 }
 0x170   : > { %v1923_v2 = vsel %vm441_vm0, %v1891_v52, %v8796_v24 }
 0x171   : > { %1436 = vrot.lane.b32.xlu0 %v838_v34, %s8077_s18  ;;  %1818 = vrot.lane.b32.xlu1 %v839_v47, %s12590_s24 }
 0x173   : > { %v1551_v48 = vpop.permute.xlu0 %1550  ;;  %v1677_v51 = vpop.permute.xlu1 %1676 }
 0x174   : > { %v2085_v1 = vsel %vm2072_vm8, %v2052_v37, %v1677_v51  ;;  %v2053_v36 = vsel %vm2039_vm7, %v2020_v58, %v1551_v48 }
 0x175   : > { %930 = vrot.lane.b32.xlu0 %v807_v23, %s8074_s15  ;;  %1056 = vrot.lane.b32.xlu1 %v838_v34, %s12588_s14  ;;  %v8875_v23 = vld [vmem:[#allocation2 + $0x138] sm:$0xff]  ;;  %v1955_v34 = vsel %vm1940_vm4, %v1922_v30, %v8798_v5 }
 0x177   : > { %v8815_v42 = vpop.permute.xlu0 %1170  ;;  %v1297_v39 = vpop.permute.xlu1 %1296 }
 0x178   : > { %v1956_v63 = vsel %vm1940_vm4, %v1923_v2, %v8815_v42  ;;  %v813_v2 = vld [vmem:[#allocation2 + $0x159] sm:$0xff] }
 0x179   : > { %1438 = vrot.lane.b32.xlu0 %v839_v47, %s8077_s18  ;;  %1564 = vrot.lane.b32.xlu1 %v8811_v53, %s8078_s23 }
 0x17b   : > { %v1679_v46 = vpop.permute.xlu0 %1678  ;;  %v1805_v3 = vpop.permute.xlu1 %1804 }
 0x17c   : > { %v2118_v59 = vsel %vm2105_vm9, %v2085_v1, %v1805_v3  ;;  %v2086_v14 = vsel %vm2072_vm8, %v2053_v36, %v1679_v46 }
 0x17d   : > { %1058 = vrot.lane.b32.xlu0 %v839_v47, %s12588_s14  ;;  %1184 = vrot.lane.b32.xlu1 %v8811_v53, %s8075_s16  ;;  %v1988_v47 = vsel %vm1973_vm5, %v1955_v34, %v1297_v39  ;;  %v8902_v39 = vld [vmem:[#allocation2 + $0x140] sm:$0xff] }
 0x17e   : > { %7786 = vmatprep.mubr.msk.f32.mxu0 %vm2150_vm10, %v2118_v59  ;;  %v811_v59 = vld [vmem:[#allocation2 + $0x141] sm:$0xff] }
 0x17f   : > { %v8840_v55 = vpop.permute.xlu0 %916  ;;  %v1299_v22 = vpop.permute.xlu1 %1298 }
 0x180   : > { %v1989_v25 = vsel %vm1973_vm5, %v1956_v63, %v1299_v22 }
 0x181   : > { %1566 = vrot.lane.b32.xlu0 %v8836_v29, %s8078_s23  ;;  %1692 = vrot.lane.b32.xlu1 %v808_v11, %s8079_s20 }
 0x183   : > { %v1425_v62 = vpop.permute.xlu0 %1424  ;;  %v1807_v18 = vpop.permute.xlu1 %1806 }
 0x184   : > { %v2119_v6 = vsel %vm2105_vm9, %v2086_v14, %v1807_v18  ;;  %v2021_v40 = vsel %vm2006_vm6, %v1988_v47, %v1425_v62  ;;  %v1892_v18 = vsel %vm530_vm2, %v8547_v54, %v8840_v55  ;;  %v8968_v47 = vld [vmem:[#allocation2 + $0x158] sm:$0xff] }
 0x185   : > { %1186 = vrot.lane.b32.xlu0 %v8836_v29, %s8075_s16  ;;  %1312 = vrot.lane.b32.xlu1 %v808_v11, %s12578_s17 }
 0x186   : > { %7787 = vmatmul.mubr.msk.f32.gmra.mrb[12].mxu0 %vm2150_vm10, %v2119_v6 }
 0x187   : > { %v8854_v27 = vpop.permute.xlu0 %918  ;;  %v8856_v31 = vpop.permute.xlu1 %1044 }
 0x188   : > { %v1924_v6 = vsel %vm441_vm0, %v1892_v18, %v8856_v31  ;;  %v1893_v34 = vsel %vm530_vm2, %v8572_v13, %v8854_v27 }
 0x189   : > { %1694 = vrot.lane.b32.xlu0 %v809_v12, %s8079_s20  ;;  %1820 = vrot.lane.b32.xlu1 %v840_v19, %s12590_s24 }
 0x18b   : > { %v1427_v32 = vpop.permute.xlu0 %1426  ;;  %v1553_v0 = vpop.permute.xlu1 %1552 }
 0x18c   : > { %v2054_v45 = vsel %vm2039_vm7, %v2021_v40, %v1553_v0  ;;  %v2022_v41 = vsel %vm2006_vm6, %v1989_v25, %v1427_v32  ;;  %v812_v40 = vld [vmem:[#allocation2 + $0x151] sm:$0xff] }
 0x18d   : > { %932 = vrot.lane.b32.xlu0 %v808_v11, %s8074_s15  ;;  %1314 = vrot.lane.b32.xlu1 %v809_v12, %s12578_s17 }
 0x18f   : > { %v8862_v9 = vpop.permute.xlu0 %1046  ;;  %v8864_v56 = vpop.permute.xlu1 %1172 }
 0x191   : > { %1440 = vrot.lane.b32.xlu0 %v840_v19, %s8077_s18  ;;  %1822 = vrot.lane.b32.xlu1 %v841_v61, %s12590_s24 }
 0x193   : > { %v1555_v26 = vpop.permute.xlu0 %1554  ;;  %v1681_v10 = vpop.permute.xlu1 %1680 }
 0x194   : > { %v2087_v5 = vsel %vm2072_vm8, %v2054_v45, %v1681_v10  ;;  %v2055_v24 = vsel %vm2039_vm7, %v2022_v41, %v1555_v26 }
 0x195   : > { %934 = vrot.lane.b32.xlu0 %v809_v12, %s8074_s15  ;;  %1060 = vrot.lane.b32.xlu1 %v840_v19, %s12588_s14  ;;  %v8941_v12 = vld [vmem:[#allocation2 + $0x150] sm:$0xff]  ;;  %v1957_v19 = vsel %vm1940_vm4, %v1924_v6, %v8864_v56 }
 0x197   : > { %v8879_v50 = vpop.permute.xlu0 %1174  ;;  %v1301_v28 = vpop.permute.xlu1 %1300 }
 0x199   : > { %v8883_v8 = vpop.f32.mrb[0].mxu0  ;;  %1442 = vrot.lane.b32.xlu0 %v841_v61, %s8077_s18  ;;  %1568 = vrot.lane.b32.xlu1 %v8875_v23, %s8078_s23 }
 0x19a   : > { %v8889_v49 = vpop.f32.mrb[1].mxu0 }
 0x19b   : > { %v1683_v48 = vpop.permute.xlu0 %1682  ;;  %v1809_v51 = vpop.permute.xlu1 %1808 }
 0x19c   : > { %v2120_v43 = vsel %vm2105_vm9, %v2087_v5, %v1809_v51  ;;  %v2088_v1 = vsel %vm2072_vm8, %v2055_v24, %v1683_v48  ;;  %v845_v24 = vld [vmem:[#allocation2 + $0x15a] sm:$0xff] }
 0x19d   : > { %1062 = vrot.lane.b32.xlu0 %v841_v61, %s12588_s14  ;;  %1188 = vrot.lane.b32.xlu1 %v8875_v23, %s8075_s16  ;;  %v1990_v61 = vsel %vm1973_vm5, %v1957_v19, %v1301_v28  ;;  %v1925_v28 = vsel %vm441_vm0, %v1893_v34, %v8862_v9 }
 0x19e   : > { %7789 = vmatprep.mubr.msk.f32.mxu0 %vm2150_vm10, %v2120_v43  ;;  %v1958_v45 = vsel %vm1940_vm4, %v1925_v28, %v8879_v50 }
 0x19f   : > { %v8906_v20 = vpop.permute.xlu0 %920  ;;  %v1303_v37 = vpop.permute.xlu1 %1302 }
 0x1a0   : > { %v1991_v13 = vsel %vm1973_vm5, %v1958_v45, %v1303_v37  ;;  %v815_v45 = vld [vmem:[#allocation2 + $0x171] sm:$0xff] }
 0x1a1   : > { %1570 = vrot.lane.b32.xlu0 %v8902_v39, %s8078_s23  ;;  %1696 = vrot.lane.b32.xlu1 %v810_v57, %s8079_s20 }
 0x1a3   : > { %v1429_v46 = vpop.permute.xlu0 %1428  ;;  %v1811_v3 = vpop.permute.xlu1 %1810 }
 0x1a4   : > { %v2121_v42 = vsel %vm2105_vm9, %v2088_v1, %v1811_v3  ;;  %v2023_v26 = vsel %vm2006_vm6, %v1990_v61, %v1429_v46 }
 0x1a5   : > { %1190 = vrot.lane.b32.xlu0 %v8902_v39, %s8075_s16  ;;  %1316 = vrot.lane.b32.xlu1 %v810_v57, %s12578_s17 }
 0x1a6   : > { %7790 = vmatmul.mubr.msk.f32.gmra.mrb[14].mxu0 %vm2150_vm10, %v2121_v42 }
 0x1a7   : > { %v8920_v16 = vpop.permute.xlu0 %922  ;;  %v8922_v11 = vpop.permute.xlu1 %1048 }
 0x1a9   : > { %1698 = vrot.lane.b32.xlu0 %v811_v59, %s8079_s20  ;;  %1824 = vrot.lane.b32.xlu1 %v842_v4, %s12590_s24 }
 0x1ab   : > { %v1431_v17 = vpop.permute.xlu0 %1430  ;;  %v1557_v22 = vpop.permute.xlu1 %1556 }
 0x1ac   : > { %v2056_v55 = vsel %vm2039_vm7, %v2023_v26, %v1557_v22  ;;  %v2024_v27 = vsel %vm2006_vm6, %v1991_v13, %v1431_v17  ;;  %v9007_v17 = vld [vmem:[#allocation2 + $0x168] sm:$0xff] }
 0x1ad   : > { %936 = vrot.lane.b32.xlu0 %v810_v57, %s8074_s15  ;;  %1318 = vrot.lane.b32.xlu1 %v811_v59, %s12578_s17  ;;  %v844_v57 = vld [vmem:[#allocation2 + $0x152] sm:$0xff] }
 0x1af   : > { %v8928_v58 = vpop.permute.xlu0 %1050  ;;  %v8930_v36 = vpop.permute.xlu1 %1176 }
 0x1b1   : > { %1444 = vrot.lane.b32.xlu0 %v842_v4, %s8077_s18  ;;  %1826 = vrot.lane.b32.xlu1 %v843_v38, %s12590_s24 }
 0x1b3   : > { %v1559_v14 = vpop.permute.xlu0 %1558  ;;  %v1685_v62 = vpop.permute.xlu1 %1684 }
 0x1b4   : > { %v2089_v56 = vsel %vm2072_vm8, %v2056_v55, %v1685_v62  ;;  %v2057_v9 = vsel %vm2039_vm7, %v2024_v27, %v1559_v14  ;;  %v9034_v55 = vld [vmem:[#allocation2 + $0x170] sm:$0xff] }
 0x1b5   : > { %938 = vrot.lane.b32.xlu0 %v811_v59, %s8074_s15  ;;  %1064 = vrot.lane.b32.xlu1 %v842_v4, %s12588_s14  ;;  %v1894_v59 = vsel %vm530_vm2, %v8613_v35, %v8906_v20 }
 0x1b6   : > { %v1926_v4 = vsel %vm441_vm0, %v1894_v59, %v8922_v11 }
 0x1b7   : > { %v8945_v32 = vpop.permute.xlu0 %1178  ;;  %v1305_v0 = vpop.permute.xlu1 %1304  ;;  %v1959_v22 = vsel %vm1940_vm4, %v1926_v4, %v8930_v36 }
 0x1b8   : > { %v1992_v62 = vsel %vm1973_vm5, %v1959_v22, %v1305_v0  ;;  %v1895_v0 = vsel %vm530_vm2, %v8638_v60, %v8920_v16 }
 0x1b9   : > { %v8949_v54 = vpop.f32.mrb[2].mxu0  ;;  %1446 = vrot.lane.b32.xlu0 %v843_v38, %s8077_s18  ;;  %1572 = vrot.lane.b32.xlu1 %v8941_v12, %s8078_s23  ;;  %v1927_v26 = vsel %vm441_vm0, %v1895_v0, %v8928_v58 }
 0x1ba   : > { %v8955_v31 = vpop.f32.mrb[3].mxu0 }
 0x1bb   : > { %v1687_v10 = vpop.permute.xlu0 %1686  ;;  %v1813_v33 = vpop.permute.xlu1 %1812 }
 0x1bc   : > { %v2122_v30 = vsel %vm2105_vm9, %v2089_v56, %v1813_v33  ;;  %v2090_v51 = vsel %vm2072_vm8, %v2057_v9, %v1687_v10  ;;  %v814_v56 = vld [vmem:[#allocation2 + $0x169] sm:$0xff]  ;;  %v1960_v10 = vsel %vm1940_vm4, %v1927_v26, %v8945_v32 }
 0x1bd   : > { %1066 = vrot.lane.b32.xlu0 %v843_v38, %s12588_s14  ;;  %1192 = vrot.lane.b32.xlu1 %v8941_v12, %s8075_s16 }
 0x1be   : > { %7792 = vmatprep.mubr.msk.f32.mxu1 %vm2150_vm10, %v2122_v30 }
 0x1bf   : > { %v8972_v5 = vpop.permute.xlu0 %924  ;;  %v1307_v48 = vpop.permute.xlu1 %1306 }
 0x1c0   : > { %v1993_v60 = vsel %vm1973_vm5, %v1960_v10, %v1307_v48  ;;  %v846_v48 = vld [vmem:[#allocation2 + $0x16a] sm:$0xff] }
 0x1c1   : > { %1574 = vrot.lane.b32.xlu0 %v8968_v47, %s8078_s23  ;;  %1700 = vrot.lane.b32.xlu1 %v812_v40, %s8079_s20 }
 0x1c3   : > { %v1433_v43 = vpop.permute.xlu0 %1432  ;;  %v1815_v52 = vpop.permute.xlu1 %1814 }
 0x1c4   : > { %v2123_v50 = vsel %vm2105_vm9, %v2090_v51, %v1815_v52  ;;  %v2025_v18 = vsel %vm2006_vm6, %v1992_v62, %v1433_v43  ;;  %v847_v43 = vld [vmem:[#allocation2 + $0x172] sm:$0xff] }
 0x1c5   : > { %1194 = vrot.lane.b32.xlu0 %v8968_v47, %s8075_s16  ;;  %1320 = vrot.lane.b32.xlu1 %v812_v40, %s12578_s17 }
 0x1c6   : > { %7793 = vmatmul.mubr.msk.f32.vlgmr.msra.gmra.mrb[0].mxu1 %vm2150_vm10, %v2123_v50 }
 0x1c7   : > { %v8986_v63 = vpop.permute.xlu0 %926  ;;  %v8988_v37 = vpop.permute.xlu1 %1052 }
 0x1c9   : > { %1702 = vrot.lane.b32.xlu0 %v813_v2, %s8079_s20  ;;  %1828 = vrot.lane.b32.xlu1 %v844_v57, %s12590_s24 }
 0x1cb   : > { %v1435_v25 = vpop.permute.xlu0 %1434  ;;  %v1561_v41 = vpop.permute.xlu1 %1560 }
 0x1cc   : > { %v2058_v20 = vsel %vm2039_vm7, %v2025_v18, %v1561_v41  ;;  %v2026_v16 = vsel %vm2006_vm6, %v1993_v60, %v1435_v25  ;;  %v1896_v25 = vsel %vm530_vm2, %v8679_v21, %v8972_v5 }
 0x1cd   : > { %940 = vrot.lane.b32.xlu0 %v812_v40, %s8074_s15  ;;  %1322 = vrot.lane.b32.xlu1 %v813_v2, %s12578_s17  ;;  %v1928_v41 = vsel %vm441_vm0, %v1896_v25, %v8988_v37 }
 0x1cf   : > { %v8994_v1 = vpop.permute.xlu0 %1054  ;;  %v8996_v46 = vpop.permute.xlu1 %1180 }
 0x1d1   : > { %1448 = vrot.lane.b32.xlu0 %v844_v57, %s8077_s18  ;;  %1830 = vrot.lane.b32.xlu1 %v845_v24, %s12590_s24 }
 0x1d3   : > { %v1563_v3 = vpop.permute.xlu0 %1562  ;;  %v1689_v42 = vpop.permute.xlu1 %1688 }
 0x1d4   : > { %v2091_v36 = vsel %vm2072_vm8, %v2058_v20, %v1689_v42  ;;  %v2059_v58 = vsel %vm2039_vm7, %v2026_v16, %v1563_v3  ;;  %v1961_v3 = vsel %vm1940_vm4, %v1928_v41, %v8996_v46  ;;  %v848_v16 = vld [vmem:[#allocation2 + $0x182] sm:$0xff]  ;;  %v818_v41 = vld [vmem:[#allocation2 + $0x199] sm:$0xff] }
 0x1d5   : > { %942 = vrot.lane.b32.xlu0 %v813_v2, %s8074_s15  ;;  %1068 = vrot.lane.b32.xlu1 %v844_v57, %s12588_s14 }
 0x1d7   : > { %v9011_v38 = vpop.permute.xlu0 %1182  ;;  %v1309_v14 = vpop.permute.xlu1 %1308 }
 0x1d8   : > { %v1994_v4 = vsel %vm1973_vm5, %v1961_v3, %v1309_v14  ;;  %v1897_v14 = vsel %vm530_vm2, %v8704_v44, %v8986_v63 }
 0x1d9   : > { %v9015_v35 = vpop.f32.mrb[4].mxu0  ;;  %1450 = vrot.lane.b32.xlu0 %v845_v24, %s8077_s18  ;;  %1576 = vrot.lane.b32.xlu1 %v9007_v17, %s8078_s23 }
 0x1da   : > { %v9021_v11 = vpop.f32.mrb[5].mxu0 }
 0x1db   : > { %v1691_v6 = vpop.permute.xlu0 %1690  ;;  %v1817_v19 = vpop.permute.xlu1 %1816 }
 0x1dc   : > { %v2124_v61 = vsel %vm2105_vm9, %v2091_v36, %v1817_v19  ;;  %v2092_v34 = vsel %vm2072_vm8, %v2059_v58, %v1691_v6  ;;  %v1929_v36 = vsel %vm441_vm0, %v1897_v14, %v8994_v1  ;;  %v785_v6 = vld [vmem:[#allocation2 + $0x188] sm:$0xff] }
 0x1dd   : > { %1070 = vrot.lane.b32.xlu0 %v845_v24, %s12588_s14  ;;  %1196 = vrot.lane.b32.xlu1 %v9007_v17, %s8075_s16  ;;  %v784_v24 = vld [vmem:[#allocation2 + $0x180] sm:$0xff] }
 0x1de   : > { %7795 = vmatprep.mubr.msk.f32.mxu1 %vm2150_vm10, %v2124_v61  ;;  %v816_v19 = vld [vmem:[#allocation2 + $0x181] sm:$0xff]  ;;  %v1962_v61 = vsel %vm1940_vm4, %v1929_v36, %v9011_v38 }
 0x1df   : > { %v9038_v33 = vpop.permute.xlu0 %928  ;;  %v1311_v30 = vpop.permute.xlu1 %1310 }
 0x1e0   : > { %v1995_v44 = vsel %vm1973_vm5, %v1962_v61, %v1311_v30  ;;  %v817_v30 = vld [vmem:[#allocation2 + $0x189] sm:$0xff] }
 0x1e1   : > { %1578 = vrot.lane.b32.xlu0 %v9034_v55, %s8078_s23  ;;  %1704 = vrot.lane.b32.xlu1 %v814_v56, %s8079_s20 }
 0x1e3   : > { %v1437_v28 = vpop.permute.xlu0 %1436  ;;  %v1819_v40 = vpop.permute.xlu1 %1818 }
 0x1e4   : > { %v2125_v32 = vsel %vm2105_vm9, %v2092_v34, %v1819_v40  ;;  %v2027_v22 = vsel %vm2006_vm6, %v1994_v4, %v1437_v28 }
 0x1e5   : > { %1198 = vrot.lane.b32.xlu0 %v9034_v55, %s8075_s16  ;;  %1324 = vrot.lane.b32.xlu1 %v814_v56, %s12578_s17 }
 0x1e6   : > { %7796 = vmatmul.mubr.msk.f32.gmra.mrb[2].mxu1 %vm2150_vm10, %v2125_v32  ;;  %v849_v32 = vld [vmem:[#allocation2 + $0x18a] sm:$0xff] }
 0x1e7   : > { %v9052_v13 = vpop.permute.xlu0 %930  ;;  %v9054_v27 = vpop.permute.xlu1 %1056 }
 0x1e8   : > { %v1899_v36 = vsel %vm530_vm2, %v8770_v15, %v9052_v13 }
 0x1e9   : > { %1706 = vrot.lane.b32.xlu0 %v815_v45, %s8079_s20  ;;  %1832 = vrot.lane.b32.xlu1 %v846_v48, %s12590_s24 }
 0x1eb   : > { %v1439_v9 = vpop.permute.xlu0 %1438  ;;  %v1565_v51 = vpop.permute.xlu1 %1564 }
 0x1ec   : > { %v2060_v5 = vsel %vm2039_vm7, %v2027_v22, %v1565_v51  ;;  %v2028_v63 = vsel %vm2006_vm6, %v1995_v44, %v1439_v9  ;;  %v786_v9 = vld [vmem:[#allocation2 + $0x198] sm:$0xff]  ;;  %v787_v51 = vld [vmem:[#allocation2 + $0x1a0] sm:$0xff] }
 0x1ed   : > { %944 = vrot.lane.b32.xlu0 %v814_v56, %s8074_s15  ;;  %1326 = vrot.lane.b32.xlu1 %v815_v45, %s12578_s17 }
 0x1ef   : > { %v9060_v52 = vpop.permute.xlu0 %1058  ;;  %v9062_v50 = vpop.permute.xlu1 %1184 }
 0x1f1   : > { %1452 = vrot.lane.b32.xlu0 %v846_v48, %s8077_s18  ;;  %1834 = vrot.lane.b32.xlu1 %v847_v43, %s12590_s24 }
 0x1f3   : > { %v1567_v2 = vpop.permute.xlu0 %1566  ;;  %v1693_v57 = vpop.permute.xlu1 %1692 }
 0x1f4   : > { %v2093_v46 = vsel %vm2072_vm8, %v2060_v5, %v1693_v57  ;;  %v2061_v1 = vsel %vm2039_vm7, %v2028_v63, %v1567_v2  ;;  %v1898_v57 = vsel %vm530_vm2, %v8745_v7, %v9038_v33 }
 0x1f5   : > { %946 = vrot.lane.b32.xlu0 %v815_v45, %s8074_s15  ;;  %1072 = vrot.lane.b32.xlu1 %v846_v48, %s12588_s14  ;;  %v1930_v25 = vsel %vm441_vm0, %v1898_v57, %v9054_v27 }
 0x1f6   : > { %v1963_v3 = vsel %vm1940_vm4, %v1930_v25, %v9062_v50 }
 0x1f7   : > { %v9075_v42 = vpop.permute.xlu0 %1186  ;;  %v9077_v59 = vpop.permute.xlu1 %1312 }
 0x1f8   : > { %v1996_v5 = vsel %vm1973_vm5, %v1963_v3, %v9077_v59 }
 0x1f9   : > { %v9081_v21 = vpop.f32.mrb[6].mxu0  ;;  %1454 = vrot.lane.b32.xlu0 %v847_v43, %s8077_s18  ;;  %1580 = vrot.lane.b32.xlu1 %v784_v24, %s8078_s23 }
 0x1fa   : > { %v9086_v37 = vpop.f32.mrb[7].mxu0 }
 0x1fb   : > { %v1695_v62 = vpop.permute.xlu0 %1694  ;;  %v1821_v18 = vpop.permute.xlu1 %1820 }
 0x1fc   : > { %v2126_v20 = vsel %vm2105_vm9, %v2093_v46, %v1821_v18  ;;  %v2094_v56 = vsel %vm2072_vm8, %v2061_v1, %v1695_v62  ;;  %v850_v62 = vld [vmem:[#allocation2 + $0x19a] sm:$0xff]  ;;  %v851_v18 = vld [vmem:[#allocation2 + $0x1a2] sm:$0xff] }
 0x1fd   : > { %1074 = vrot.lane.b32.xlu0 %v847_v43, %s12588_s14  ;;  %1200 = vrot.lane.b32.xlu1 %v784_v24, %s8075_s16  ;;  %v819_v24 = vld [vmem:[#allocation2 + $0x1a1] sm:$0xff] }
 0x1fe   : > { %7798 = vmatprep.mubr.msk.f32.mxu1 %vm2150_vm10, %v2126_v20 }
 0x1ff   : > { %v9100_v0 = vpop.permute.xlu0 %932  ;;  %v9102_v26 = vpop.permute.xlu1 %1314 }
 0x201   : > { %1582 = vrot.lane.b32.xlu0 %v785_v6, %s8078_s23  ;;  %1708 = vrot.lane.b32.xlu1 %v816_v19, %s8079_s20 }
 0x203   : > { %v1441_v10 = vpop.permute.xlu0 %1440  ;;  %v1823_v60 = vpop.permute.xlu1 %1822 }
 0x204   : > { %v2127_v38 = vsel %vm2105_vm9, %v2094_v56, %v1823_v60  ;;  %v2029_v46 = vsel %vm2006_vm6, %v1996_v5, %v1441_v10 }
 0x205   : > { %1202 = vrot.lane.b32.xlu0 %v785_v6, %s8075_s16  ;;  %1328 = vrot.lane.b32.xlu1 %v816_v19, %s12578_s17  ;;  %v1931_v6 = vsel %vm441_vm0, %v1899_v36, %v9060_v52  ;;  %s12576_s16 = smov 124  }
 0x206   : > { %7799 = vmatmul.mubr.msk.f32.gmra.mrb[4].mxu1 %vm2150_vm10, %v2127_v38  ;;  %v1964_v19 = vsel %vm1940_vm4, %v1931_v6, %v9075_v42 }
 0x207   : > { %v9114_v58 = vpop.permute.xlu0 %934  ;;  %v9116_v34 = vpop.permute.xlu1 %1060  ;;  %v1997_v63 = vsel %vm1973_vm5, %v1964_v19, %v9102_v26 }
 0x209   : > { %1710 = vrot.lane.b32.xlu0 %v817_v30, %s8079_s20  ;;  %1836 = vrot.lane.b32.xlu1 %v848_v16, %s12590_s24 }
 0x20b   : > { %v1443_v28 = vpop.permute.xlu0 %1442  ;;  %v1569_v40 = vpop.permute.xlu1 %1568 }
 0x20c   : > { %v2062_v33 = vsel %vm2039_vm7, %v2029_v46, %v1569_v40  ;;  %v2030_v1 = vsel %vm2006_vm6, %v1997_v63, %v1443_v28  ;;  %v1900_v28 = vsel %vm530_vm2, %v8811_v53, %v9100_v0 }
 0x20d   : > { %1330 = vrot.lane.b32.xlu0 %v817_v30, %s12578_s17  ;;  %1456 = vrot.lane.b32.xlu1 %v848_v16, %s8077_s18 }
 0x20f   : > { %v9122_v45 = vpop.permute.xlu0 %1062  ;;  %v1189_v48 = vpop.permute.xlu1 %1188 }
 0x211   : > { %1838 = vrot.lane.b32.xlu0 %v849_v32, %s12590_s24  ;;  %1458 = vrot.lane.b32.xlu1 %v849_v32, %s8077_s18 }
 0x213   : > { %v1571_v43 = vpop.permute.xlu0 %1570  ;;  %v1697_v2 = vpop.permute.xlu1 %1696 }
 0x214   : > { %v2095_v50 = vsel %vm2072_vm8, %v2062_v33, %v1697_v2  ;;  %v2063_v15 = vsel %vm2039_vm7, %v2030_v1, %v1571_v43 }
 0x215   : > { %1584 = vrot.lane.b32.xlu0 %v786_v9, %s8078_s23  ;;  %1586 = vrot.lane.b32.xlu1 %v787_v51, %s8078_s23  ;;  %v1932_v9 = vsel %vm441_vm0, %v1900_v28, %v9116_v34 }
 0x216   : > { %v1965_v51 = vsel %vm1940_vm4, %v1932_v9, %v1189_v48  ;;  %v1901_v48 = vsel %vm530_vm2, %v8836_v29, %v9114_v58 }
 0x217   : > { %v1191_v4 = vpop.permute.xlu0 %1190  ;;  %v1317_v22 = vpop.permute.xlu1 %1316 }
 0x218   : > { %v1998_v57 = vsel %vm1973_vm5, %v1965_v51, %v1317_v22  ;;  %v1933_v22 = vsel %vm441_vm0, %v1901_v48, %v9122_v45 }
 0x219   : > { %v9138_v7 = vpop.f32.mrb[8].mxu0  ;;  %1712 = vrot.lane.b32.xlu0 %v818_v41, %s8079_s20  ;;  %1714 = vrot.lane.b32.xlu1 %v819_v24, %s8079_s20  ;;  %v1966_v46 = vsel %vm1940_vm4, %v1933_v22, %v1191_v4 }
 0x21a   : > { %v9143_v27 = vpop.f32.mrb[9].mxu0 }
 0x21b   : > { %v1699_v20 = vpop.permute.xlu0 %1698  ;;  %v1825_v14 = vpop.permute.xlu1 %1824 }
 0x21c   : > { %v2128_v59 = vsel %vm2105_vm9, %v2095_v50, %v1825_v14  ;;  %v2096_v13 = vsel %vm2072_vm8, %v2063_v15, %v1699_v20 }
 0x21d   : > { %1840 = vrot.lane.b32.xlu0 %v850_v62, %s12590_s24  ;;  %1842 = vrot.lane.b32.xlu1 %v851_v18, %s12590_s24 }
 0x21e   : > { %7801 = vmatprep.mubr.msk.f32.mxu1 %vm2150_vm10, %v2128_v59 }
 0x21f   : > { %v937_v61 = vpop.permute.xlu0 %936  ;;  %v1319_v44 = vpop.permute.xlu1 %1318 }
 0x220   : > { %v1999_v18 = vsel %vm1973_vm5, %v1966_v46, %v1319_v44  ;;  %v1902_v15 = vsel %vm530_vm2, %v8875_v23, %v937_v61 }
 0x223   : > { %v1445_v56 = vpop.permute.xlu0 %1444  ;;  %v1827_v10 = vpop.permute.xlu1 %1826 }
 0x224   : > { %v2129_v52 = vsel %vm2105_vm9, %v2096_v13, %v1827_v10  ;;  %v2031_v25 = vsel %vm2006_vm6, %v1998_v57, %v1445_v56 }
 0x225   : > { %7802 = vmatmul.mubr.msk.f32.gmra.mrb[6].mxu1 %vm2150_vm10, %v2129_v52 }
 0x227   : > { %v939_v60 = vpop.permute.xlu0 %938  ;;  %v1065_v38 = vpop.permute.xlu1 %1064 }
 0x228   : > { %v1934_v13 = vsel %vm441_vm0, %v1902_v15, %v1065_v38  ;;  %v1903_v38 = vsel %vm530_vm2, %v8902_v39, %v939_v60 }
 0x22b   : > { %v1447_v42 = vpop.permute.xlu0 %1446  ;;  %v1573_v30 = vpop.permute.xlu1 %1572 }
 0x22c   : > { %v2064_v24 = vsel %vm2039_vm7, %v2031_v25, %v1573_v30  ;;  %v2032_v50 = vsel %vm2006_vm6, %v1999_v18, %v1447_v42 }
 0x22f   : > { %v1067_v16 = vpop.permute.xlu0 %1066  ;;  %v1193_v40 = vpop.permute.xlu1 %1192 }
 0x230   : > { %v1967_v56 = vsel %vm1940_vm4, %v1934_v13, %v1193_v40  ;;  %v1935_v40 = vsel %vm441_vm0, %v1903_v38, %v1067_v16 }
 0x233   : > { %v1575_v32 = vpop.permute.xlu0 %1574  ;;  %v1701_v26 = vpop.permute.xlu1 %1700 }
 0x234   : > { %v2097_v5 = vsel %vm2072_vm8, %v2064_v24, %v1701_v26  ;;  %v2065_v20 = vsel %vm2039_vm7, %v2032_v50, %v1575_v32 }
 0x237   : > { %v1195_v43 = vpop.permute.xlu0 %1194  ;;  %v1321_v2 = vpop.permute.xlu1 %1320 }
 0x238   : > { %v2000_v42 = vsel %vm1973_vm5, %v1967_v56, %v1321_v2  ;;  %v1968_v2 = vsel %vm1940_vm4, %v1935_v40, %v1195_v43 }
 0x239   : > { %v9172_v41 = vpop.f32.mrb[10].mxu0 }
 0x23a   : > { %v9175_v3 = vpop.f32.mrb[11].mxu0 }
 0x23b   : > { %v1703_v53 = vpop.permute.xlu0 %1702  ;;  %v1829_v0 = vpop.permute.xlu1 %1828 }
 0x23c   : > { %v2130_v34 = vsel %vm2105_vm9, %v2097_v5, %v1829_v0  ;;  %v2098_v14 = vsel %vm2072_vm8, %v2065_v20, %v1703_v53 }
 0x23d   : > { %7804 = vmatprep.mubr.msk.f32.mxu1 %vm2150_vm10, %v2130_v34 }
 0x23f   : > { %v941_v33 = vpop.permute.xlu0 %940  ;;  %v1323_v62 = vpop.permute.xlu1 %1322 }
 0x240   : > { %v2001_v24 = vsel %vm1973_vm5, %v1968_v2, %v1323_v62  ;;  %v1904_v20 = vsel %vm530_vm2, %v8941_v12, %v941_v33 }
 0x243   : > { %v1449_v59 = vpop.permute.xlu0 %1448  ;;  %v1831_v36 = vpop.permute.xlu1 %1830 }
 0x244   : > { %v2131_v29 = vsel %vm2105_vm9, %v2098_v14, %v1831_v36  ;;  %v2033_v30 = vsel %vm2006_vm6, %v2000_v42, %v1449_v59 }
 0x245   : > { %7805 = vmatmul.mubr.msk.f32.gmra.mrb[8].mxu1 %vm2150_vm10, %v2131_v29 }
 0x247   : > { %v943_v58 = vpop.permute.xlu0 %942  ;;  %v1069_v45 = vpop.permute.xlu1 %1068 }
 0x248   : > { %v1936_v14 = vsel %vm441_vm0, %v1904_v20, %v1069_v45  ;;  %v1905_v45 = vsel %vm530_vm2, %v8968_v47, %v943_v58 }
 0x24b   : > { %v1451_v6 = vpop.permute.xlu0 %1450  ;;  %v1577_v4 = vpop.permute.xlu1 %1576 }
 0x24c   : > { %v2066_v26 = vsel %vm2039_vm7, %v2033_v30, %v1577_v4  ;;  %v2034_v5 = vsel %vm2006_vm6, %v2001_v24, %v1451_v6 }
 0x24f   : > { %v1071_v19 = vpop.permute.xlu0 %1070  ;;  %v1197_v63 = vpop.permute.xlu1 %1196 }
 0x250   : > { %v1969_v59 = vsel %vm1940_vm4, %v1936_v14, %v1197_v63  ;;  %v1937_v63 = vsel %vm441_vm0, %v1905_v45, %v1071_v19 }
 0x253   : > { %v1579_v1 = vpop.permute.xlu0 %1578  ;;  %v1705_v44 = vpop.permute.xlu1 %1704 }
 0x254   : > { %v2099_v9 = vsel %vm2072_vm8, %v2066_v26, %v1705_v44  ;;  %v2067_v53 = vsel %vm2039_vm7, %v2034_v5, %v1579_v1 }
 0x257   : > { %v1199_v10 = vpop.permute.xlu0 %1198  ;;  %v1325_v52 = vpop.permute.xlu1 %1324 }
 0x258   : > { %v2002_v6 = vsel %vm1973_vm5, %v1969_v59, %v1325_v52  ;;  %v1970_v52 = vsel %vm1940_vm4, %v1937_v63, %v1199_v10 }
 0x259   : > { %v9198_v32 = vpop.f32.mrb[12].mxu0 }
 0x25a   : > { %v9201_v28 = vpop.f32.mrb[13].mxu0 }
 0x25b   : > { %v1707_v51 = vpop.permute.xlu0 %1706  ;;  %v1833_v23 = vpop.permute.xlu1 %1832 }
 0x25c   : > { %v2132_v61 = vsel %vm2105_vm9, %v2099_v9, %v1833_v23  ;;  %v2100_v0 = vsel %vm2072_vm8, %v2067_v53, %v1707_v51 }
 0x25d   : > { %7807 = vmatprep.mubr.msk.f32.mxu1 %vm2150_vm10, %v2132_v61 }
 0x25f   : > { %v945_v57 = vpop.permute.xlu0 %944  ;;  %v1327_v25 = vpop.permute.xlu1 %1326 }
 0x260   : > { %v2003_v26 = vsel %vm1973_vm5, %v1970_v52, %v1327_v25  ;;  %v1906_v10 = vsel %vm530_vm2, %v9007_v17, %v945_v57 }
 0x263   : > { %v1453_v34 = vpop.permute.xlu0 %1452  ;;  %v1835_v48 = vpop.permute.xlu1 %1834 }
 0x264   : > { %v2133_v39 = vsel %vm2105_vm9, %v2100_v0, %v1835_v48  ;;  %v2035_v4 = vsel %vm2006_vm6, %v2002_v6, %v1453_v34 }
 0x265   : > { %7808 = vmatmul.mubr.msk.f32.gmra.mrb[10].mxu1 %vm2150_vm10, %v2133_v39 }
 0x267   : > { %v947_v60 = vpop.permute.xlu0 %946  ;;  %v1073_v16 = vpop.permute.xlu1 %1072 }
 0x268   : > { %v1907_v40 = vsel %vm530_vm2, %v9034_v55, %v947_v60  ;;  %v1938_v2 = vsel %vm441_vm0, %v1906_v10, %v1073_v16 }
 0x26b   : > { %v1455_v22 = vpop.permute.xlu0 %1454  ;;  %v1581_v43 = vpop.permute.xlu1 %1580 }
 0x26c   : > { %v2068_v44 = vsel %vm2039_vm7, %v2035_v4, %v1581_v43  ;;  %v2036_v9 = vsel %vm2006_vm6, %v2003_v26, %v1455_v22  ;;  %v9279_v4 = vld [vmem:[%s12563_s2] ss:$0 sm:$0xff] }
 0x26d   : > { %v9307_v52 = vadd.f32 %v8949_v54, %v9279_v4  ;;  %v9332_v10 = vadd.f32 %v9279_v4, %v9086_v37 }
 0x26f   : > { %v1075_v46 = vpop.permute.xlu0 %1074  ;;  %v1201_v18 = vpop.permute.xlu1 %1200 }
 0x270   : > { %v1939_v25 = vsel %vm441_vm0, %v1907_v40, %v1075_v46  ;;  %v1971_v24 = vsel %vm1940_vm4, %v1938_v2, %v1201_v18 }
 0x273   : > { %v1583_v50 = vpop.permute.xlu0 %1582  ;;  %v1709_v62 = vpop.permute.xlu1 %1708 }
 0x274   : > { %v2101_v13 = vsel %vm2072_vm8, %v2068_v44, %v1709_v62  ;;  %v2069_v51 = vsel %vm2039_vm7, %v2036_v9, %v1583_v50  ;;  %v9283_v44 = vadd.f32 %v8883_v8, %v9279_v4 }
 0x276   : > { %v2477_v45 = vsel %vm441_vm0, %v9283_v44, 0.0 }
 0x277   : > { %v1203_v36 = vpop.permute.xlu0 %1202  ;;  %v1329_v29 = vpop.permute.xlu1 %1328 }
 0x278   : > { %v1972_v5 = vsel %vm1940_vm4, %v1939_v25, %v1203_v36  ;;  %v2004_v34 = vsel %vm1973_vm5, %v1971_v24, %v1329_v29 }
 0x279   : > { %v9222_v1 = vpop.f32.mrb[14].mxu0 }
 0x27a   : > { %v9225_v15 = vpop.f32.mrb[15].mxu0 }
 0x27b   : > { %v1711_v56 = vpop.permute.xlu0 %1710  ;;  %v1837_v12 = vpop.permute.xlu1 %1836 }
 0x27c   : > { %v2134_v33 = vsel %vm2105_vm9, %v2101_v13, %v1837_v12  ;;  %v2102_v23 = vsel %vm2072_vm8, %v2069_v51, %v1711_v56  ;;  %v9287_v13 = vadd.f32 %v9279_v4, %v8889_v49  ;;  %v9291_v56 = vadd.f32 %v9279_v4, %v8955_v31 }
 0x27d   : > { %7810 = vmatprep.mubr.msk.f32.mxu1 %vm2150_vm10, %v2134_v33  ;;  %v2546_v12 = vmul.f32 %v9283_v44, %v9283_v44 }
 0x27e   : > { %v2545_v33 = vmul.f32 %v9287_v13, %v9287_v13  ;;  %v2476_v8 = vsel %vm441_vm0, %v9287_v13, 0.0  ;;  %v2547_v49 = vmul.f32 %v9291_v56, %v9291_v56 }
 0x27f   : > { %v1331_v42 = vpop.permute.xlu0 %1330  ;;  %v1457_v30 = vpop.permute.xlu1 %1456  ;;  %v2578_v63 = vsel %vm441_vm0, %v2546_v12, 0.0  ;;  %v2478_v26 = vadd.f32 %v2477_v45, %v2476_v8 }
 0x280   : > { %v2005_v48 = vsel %vm1973_vm5, %v1972_v5, %v1331_v42  ;;  %v2037_v39 = vsel %vm2006_vm6, %v2004_v34, %v1457_v30  ;;  %v2577_v31 = vsel %vm441_vm0, %v2545_v33, 0.0  ;;  %v2479_v42 = vsel %vm441_vm0, %v9291_v56, 0.0 }
 0x281   : > { %v9313_v30 = vadd.f32 %v9279_v4, %v9021_v11  ;;  %v2580_v9 = vsel %vm441_vm0, %v2547_v49, 0.0  ;;  %v2579_v51 = vadd.f32 %v2578_v63, %v2577_v31  ;;  %v9326_v11 = vadd.f32 %v9015_v35, %v9279_v4 }
 0x282   : > { %v9370_v33 = vadd.f32 %v9279_v4, %v9175_v3  ;;  %v9382_v3 = vadd.f32 %v9172_v41, %v9279_v4 }
 0x283   : > { %v1839_v61 = vpop.permute.xlu0 %1838  ;;  %v1459_v38 = vpop.permute.xlu1 %1458  ;;  %v2581_v54 = vadd.f32 %v2580_v9, %v2579_v51  ;;  %v2550_v35 = vmul.f32 %v9326_v11, %v9326_v11  ;;  %v2485_v37 = vsel %vm441_vm0, %v9326_v11, 0.0 }
 0x284   : > { %v2135_v47 = vsel %vm2105_vm9, %v2102_v23, %v1839_v61  ;;  %v2038_v17 = vsel %vm2006_vm6, %v2005_v48, %v1459_v38  ;;  %v2480_v23 = vadd.f32 %v2479_v42, %v2478_v26  ;;  %v2548_v61 = vmul.f32 %v9307_v52, %v9307_v52 }
 0x285   : > { %7811 = vmatmul.mubr.msk.f32.gmra.mrb[12].mxu1 %vm2150_vm10, %v2135_v47  ;;  %v2549_v38 = vmul.f32 %v9313_v30, %v9313_v30  ;;  %v9346_v48 = vadd.f32 %v9081_v21, %v9279_v4  ;;  %v2495_v51 = vsel %vm441_vm0, %v9370_v33, 0.0 }
 0x286   : > { %v2582_v25 = vsel %vm441_vm0, %v2548_v61, 0.0 }
 0x287   : > { %v1585_v58 = vpop.permute.xlu0 %1584  ;;  %v1587_v19 = vpop.permute.xlu1 %1586  ;;  %v2584_v24 = vsel %vm441_vm0, %v2549_v38, 0.0 }
 0x288   : > { %v2070_v55 = vsel %vm2039_vm7, %v2037_v39, %v1585_v58  ;;  %v2071_v57 = vsel %vm2039_vm7, %v2038_v17, %v1587_v19  ;;  %v2481_v58 = vsel %vm441_vm0, %v9307_v52, 0.0  ;;  %v2483_v19 = vsel %vm441_vm0, %v9313_v30, 0.0 }
 0x289   : > { %v2482_v2 = vadd.f32 %v2481_v58, %v2480_v23  ;;  %v2487_v39 = vsel %vm441_vm0, %v9332_v10, 0.0  ;;  %v9352_v17 = vadd.f32 %v9279_v4, %v9143_v27  ;;  %v9364_v27 = vadd.f32 %v9138_v7, %v9279_v4 }
 0x28a   : > { %v2555_v7 = vmul.f32 %v9370_v33, %v9370_v33  ;;  %v9388_v23 = vadd.f32 %v9279_v4, %v9201_v28  ;;  %v9400_v28 = vadd.f32 %v9198_v32, %v9279_v4 }
 0x28b   : > { %v1713_v53 = vpop.permute.xlu0 %1712  ;;  %v1715_v0 = vpop.permute.xlu1 %1714  ;;  %v2484_v5 = vadd.f32 %v2483_v19, %v2482_v2  ;;  %v2553_v21 = vmul.f32 %v9352_v17, %v9352_v17  ;;  %v2491_v12 = vsel %vm441_vm0, %v9352_v17, 0.0  ;;  %v2554_v42 = vmul.f32 %v9364_v27, %v9364_v27 }
 0x28c   : > { %v2103_v60 = vsel %vm2072_vm8, %v2070_v55, %v1713_v53  ;;  %v2104_v16 = vsel %vm2072_vm8, %v2071_v57, %v1715_v0  ;;  %v2583_v53 = vadd.f32 %v2582_v25, %v2581_v54  ;;  %v2551_v0 = vmul.f32 %v9332_v10, %v9332_v10 }
 0x28d   : > { %v2486_v55 = vadd.f32 %v2485_v37, %v2484_v5  ;;  %v2586_v57 = vsel %vm441_vm0, %v2550_v35, 0.0  ;;  %v2592_v49 = vsel %vm441_vm0, %v2553_v21, 0.0  ;;  %v2493_v9 = vsel %vm441_vm0, %v9364_v27, 0.0 }
 0x28e   : > { %v2585_v34 = vadd.f32 %v2584_v24, %v2583_v53  ;;  %v2594_v38 = vsel %vm441_vm0, %v2554_v42, 0.0  ;;  %v2596_v54 = vsel %vm441_vm0, %v2555_v7, 0.0  ;;  %v2556_v2 = vmul.f32 %v9382_v3, %v9382_v3 }
 0x28f   : > { %v1841_v22 = vpop.permute.xlu0 %1840  ;;  %v1843_v43 = vpop.permute.xlu1 %1842  ;;  %v2557_v41 = vmul.f32 %v9388_v23, %v9388_v23  ;;  %v2497_v24 = vsel %vm441_vm0, %v9382_v3, 0.0  ;;  %v2499_v5 = vsel %vm441_vm0, %v9388_v23, 0.0  ;;  %v9406_v53 = vadd.f32 %v9279_v4, %v9225_v15 }
 0x290   : > { %v2136_v46 = vsel %vm2105_vm9, %v2103_v60, %v1841_v22  ;;  %v2137_v18 = vsel %vm2105_vm9, %v2104_v16, %v1843_v43  ;;  %v2588_v60 = vsel %vm441_vm0, %v2551_v0, 0.0  ;;  %v2488_v16 = vadd.f32 %v2487_v39, %v2486_v55 }
 0x291   : > { %7813 = vmatprep.mubr.msk.f32.mxu1 %vm2150_vm10, %v2136_v46  ;;  %v2587_v22 = vadd.f32 %v2586_v57, %v2585_v34  ;;  %v2552_v43 = vmul.f32 %v9346_v48, %v9346_v48  ;;  %v2598_v0 = vsel %vm441_vm0, %v2556_v2, 0.0  ;;  %v2600_v34 = vsel %vm441_vm0, %v2557_v41, 0.0 }
 0x292   : > { %7814 = vmatmul.mubr.msk.f32.gmra.mrb[14].mxu1 %vm2150_vm10, %v2137_v18  ;;  %v2489_v18 = vsel %vm441_vm0, %v9346_v48, 0.0  ;;  %v2558_v55 = vmul.f32 %v9400_v28, %v9400_v28  ;;  %v2559_v32 = vmul.f32 %v9406_v53, %v9406_v53  ;;  %v9418_v15 = vadd.f32 %v9222_v1, %v9279_v4 }
 0x293   : > { %v2589_v46 = vadd.f32 %v2588_v60, %v2587_v22  ;;  %v2490_v45 = vadd.f32 %v2489_v18, %v2488_v16  ;;  %v2590_v8 = vsel %vm441_vm0, %v2552_v43, 0.0  ;;  %v2501_v60 = vsel %vm441_vm0, %v9400_v28, 0.0 }
 0x294   : > { %v2503_v16 = vsel %vm441_vm0, %v9406_v53, 0.0  ;;  %v2604_v18 = vsel %vm441_vm0, %v2559_v32, 0.0  ;;  %v2560_v1 = vmul.f32 %v9418_v15, %v9418_v15 }
 0x295   : > { %v2492_v63 = vadd.f32 %v2491_v12, %v2490_v45  ;;  %v2591_v31 = vadd.f32 %v2590_v8, %v2589_v46  ;;  %v2602_v46 = vsel %vm441_vm0, %v2558_v55, 0.0 }
 0x297   : > { %v2593_v26 = vadd.f32 %v2592_v49, %v2591_v31  ;;  %v2494_v61 = vadd.f32 %v2493_v9, %v2492_v63  ;;  %v2606_v9 = vsel %vm441_vm0, %v2560_v1, 0.0 }
 0x299   : > { %v9260_v50 = vpop.f32.mrb[0].mxu1  ;;  %v2496_v58 = vadd.f32 %v2495_v51, %v2494_v61  ;;  %v2595_v19 = vadd.f32 %v2594_v38, %v2593_v26 }
 0x29a   : > { %v9262_v62 = vpop.f32.mrb[1].mxu1  ;;  %v9438_v31 = vadd.f32 %v9260_v50, %v9279_v4 }
 0x29b   : > { %v2597_v25 = vadd.f32 %v2596_v54, %v2595_v19  ;;  %v2498_v35 = vadd.f32 %v2497_v24, %v2496_v58  ;;  %v9424_v22 = vadd.f32 %v9279_v4, %v9262_v62  ;;  %v2505_v62 = vsel %vm441_vm0, %v9418_v15, 0.0 }
 0x29c   : > { %v2562_v54 = vmul.f32 %v9438_v31, %v9438_v31  ;;  %v2509_v19 = vsel %vm441_vm0, %v9438_v31, 0.0 }
 0x29d   : > { %v2500_v37 = vadd.f32 %v2499_v5, %v2498_v35  ;;  %v2599_v39 = vadd.f32 %v2598_v0, %v2597_v25  ;;  %v2561_v49 = vmul.f32 %v9424_v22, %v9424_v22  ;;  %v2507_v42 = vsel %vm441_vm0, %v9424_v22, 0.0 }
 0x29e   : > { %v2610_v24 = vsel %vm441_vm0, %v2562_v54, 0.0 }
 0x29f   : > { %v2601_v57 = vadd.f32 %v2600_v34, %v2599_v39  ;;  %v2502_v43 = vadd.f32 %v2501_v60, %v2500_v37  ;;  %v2608_v51 = vsel %vm441_vm0, %v2561_v49, 0.0 }
 0x2a1   : > { %v2504_v45 = vadd.f32 %v2503_v16, %v2502_v43  ;;  %v2603_v8 = vadd.f32 %v2602_v46, %v2601_v57 }
 0x2a3   : > { %v2605_v63 = vadd.f32 %v2604_v18, %v2603_v8  ;;  %v2506_v26 = vadd.f32 %v2505_v62, %v2504_v45 }
 0x2a5   : > { %v2508_v61 = vadd.f32 %v2507_v42, %v2506_v26  ;;  %v2607_v38 = vadd.f32 %v2606_v9, %v2605_v63 }
 0x2a7   : > { %v2609_v58 = vadd.f32 %v2608_v51, %v2607_v38  ;;  %v2510_v25 = vadd.f32 %v2509_v19, %v2508_v61 }
 0x2a9   : > { %v2611_v0 = vadd.f32 %v2610_v24, %v2609_v58 }
 0x2b9   : > { %v9264_v20 = vpop.f32.mrb[2].mxu1 }
 0x2ba   : > { %v9266_v14 = vpop.f32.mrb[3].mxu1 }
 0x2bb   : > { %v9444_v7 = vadd.f32 %v9279_v4, %v9266_v14  ;;  %v9456_v14 = vadd.f32 %v9264_v20, %v9279_v4 }
 0x2bd   : > { %v2563_v50 = vmul.f32 %v9444_v7, %v9444_v7  ;;  %v2511_v2 = vsel %vm441_vm0, %v9444_v7, 0.0  ;;  %v2564_v34 = vmul.f32 %v9456_v14, %v9456_v14  ;;  %v2513_v39 = vsel %vm441_vm0, %v9456_v14, 0.0 }
 0x2be   : > { %v2512_v35 = vadd.f32 %v2511_v2, %v2510_v25 }
 0x2bf   : > { %v2612_v5 = vsel %vm441_vm0, %v2563_v50, 0.0  ;;  %v2614_v60 = vsel %vm441_vm0, %v2564_v34, 0.0 }
 0x2c0   : > { %v2613_v37 = vadd.f32 %v2612_v5, %v2611_v0  ;;  %v2514_v57 = vadd.f32 %v2513_v39, %v2512_v35 }
 0x2c2   : > { %v2615_v46 = vadd.f32 %v2614_v60, %v2613_v37 }
 0x2d9   : > { %v9268_v59 = vpop.f32.mrb[4].mxu1 }
 0x2da   : > { %v9270_v36 = vpop.f32.mrb[5].mxu1 }
 0x2db   : > { %v9462_v41 = vadd.f32 %v9279_v4, %v9270_v36  ;;  %v9474_v36 = vadd.f32 %v9268_v59, %v9279_v4 }
 0x2dd   : > { %v2565_v20 = vmul.f32 %v9462_v41, %v9462_v41  ;;  %v2515_v55 = vsel %vm441_vm0, %v9462_v41, 0.0  ;;  %v2566_v18 = vmul.f32 %v9474_v36, %v9474_v36  ;;  %v2517_v8 = vsel %vm441_vm0, %v9474_v36, 0.0 }
 0x2de   : > { %v2516_v43 = vadd.f32 %v2515_v55, %v2514_v57 }
 0x2df   : > { %v2616_v16 = vsel %vm441_vm0, %v2565_v20, 0.0  ;;  %v2618_v62 = vsel %vm441_vm0, %v2566_v18, 0.0 }
 0x2e0   : > { %v2617_v45 = vadd.f32 %v2616_v16, %v2615_v46  ;;  %v2518_v63 = vadd.f32 %v2517_v8, %v2516_v43 }
 0x2e2   : > { %v2619_v9 = vadd.f32 %v2618_v62, %v2617_v45 }
 0x2f8   : > { %v9272_v29 = vpop.f32.mrb[6].mxu1 }
 0x2f9   : > { %v9274_v6 = vpop.f32.mrb[7].mxu1 }
 0x2fa   : > { %v9480_v32 = vadd.f32 %v9279_v4, %v9274_v6  ;;  %v9492_v6 = vadd.f32 %v9272_v29, %v9279_v4 }
 0x2fc   : > { %v2567_v59 = vmul.f32 %v9480_v32, %v9480_v32  ;;  %v2519_v1 = vsel %vm441_vm0, %v9480_v32, 0.0  ;;  %v2568_v51 = vmul.f32 %v9492_v6, %v9492_v6  ;;  %v2521_v38 = vsel %vm441_vm0, %v9492_v6, 0.0 }
 0x2fd   : > { %v2520_v26 = vadd.f32 %v2519_v1, %v2518_v63 }
 0x2fe   : > { %v2620_v42 = vsel %vm441_vm0, %v2567_v59, 0.0  ;;  %v2622_v19 = vsel %vm441_vm0, %v2568_v51, 0.0 }
 0x2ff   : > { %v2621_v61 = vadd.f32 %v2620_v42, %v2619_v9  ;;  %v2522_v58 = vadd.f32 %v2521_v38, %v2520_v26 }
 0x301   : > { %v2623_v24 = vadd.f32 %v2622_v19, %v2621_v61 }
 0x318   : > { %v9320_v47 = vpop.f32.mrb[8].mxu1 }
 0x319   : > { %v9334_v40 = vpop.f32.mrb[9].mxu1 }
 0x31a   : > { %v9498_v49 = vadd.f32 %v9279_v4, %v9334_v40  ;;  %v9510_v40 = vadd.f32 %v9320_v47, %v9279_v4 }
 0x31c   : > { %v2569_v29 = vmul.f32 %v9498_v49, %v9498_v49  ;;  %v2523_v54 = vsel %vm441_vm0, %v9498_v49, 0.0  ;;  %v2570_v35 = vmul.f32 %v9510_v40, %v9510_v40 }
 0x31d   : > { %v2524_v25 = vadd.f32 %v2523_v54, %v2522_v58 }
 0x31e   : > { %v2624_v2 = vsel %vm441_vm0, %v2569_v29, 0.0  ;;  %v2626_v57 = vsel %vm441_vm0, %v2570_v35, 0.0 }
 0x31f   : > { %v2625_v34 = vadd.f32 %v2624_v2, %v2623_v24 }
 0x321   : > { %v2627_v43 = vadd.f32 %v2626_v57, %v2625_v34 }
 0x338   : > { %v9426_v21 = vpop.f32.mrb[10].mxu1 }
 0x339   : > { %v2447_v12 = vpop.f32.mrb[11].mxu1  ;;  %v9527_v20 = vadd.f32 %v9426_v21, %v9279_v4 }
 0x33a   : > { %v9515_v50 = vadd.f32 %v9279_v4, %v2447_v12  ;;  %v2525_v12 = vsel %vm441_vm0, %v9510_v40, 0.0 }
 0x33b   : > { %v2526_v55 = vadd.f32 %v2525_v12, %v2524_v25  ;;  %v2572_v46 = vmul.f32 %v9527_v20, %v9527_v20  ;;  %v2529_v59 = vsel %vm441_vm0, %v9527_v20, 0.0 }
 0x33c   : > { %v2571_v47 = vmul.f32 %v9515_v50, %v9515_v50  ;;  %v2527_v37 = vsel %vm441_vm0, %v9515_v50, 0.0 }
 0x33d   : > { %v2528_v16 = vadd.f32 %v2527_v37, %v2526_v55  ;;  %v2630_v63 = vsel %vm441_vm0, %v2572_v46, 0.0 }
 0x33e   : > { %v2628_v60 = vsel %vm441_vm0, %v2571_v47, 0.0 }
 0x33f   : > { %v2629_v18 = vadd.f32 %v2628_v60, %v2627_v43  ;;  %v2530_v1 = vadd.f32 %v2529_v59, %v2528_v16 }
 0x341   : > { %v2631_v26 = vadd.f32 %v2630_v63, %v2629_v18 }
 0x358   : > { %v7812_v5 = vpop.f32.mrb[12].mxu1 }
 0x359   : > { %v2457_v0 = vpop.f32.mrb[13].mxu1  ;;  %v9543_v45 = vadd.f32 %v7812_v5, %v9279_v4 }
 0x35a   : > { %v9532_v39 = vadd.f32 %v9279_v4, %v2457_v0 }
 0x35b   : > { %v2574_v9 = vmul.f32 %v9543_v45, %v9543_v45  ;;  %v2533_v54 = vsel %vm441_vm0, %v9543_v45, 0.0 }
 0x35c   : > { %v2573_v21 = vmul.f32 %v9532_v39, %v9532_v39  ;;  %v2531_v8 = vsel %vm441_vm0, %v9532_v39, 0.0 }
 0x35d   : > { %v2532_v42 = vadd.f32 %v2531_v8, %v2530_v1  ;;  %v2634_v2 = vsel %vm441_vm0, %v2574_v9, 0.0 }
 0x35e   : > { %v2632_v62 = vsel %vm441_vm0, %v2573_v21, 0.0 }
 0x35f   : > { %v2633_v29 = vadd.f32 %v2632_v62, %v2631_v26  ;;  %v2534_v19 = vadd.f32 %v2533_v54, %v2532_v42 }
 0x361   : > { %v2635_v47 = vadd.f32 %v2634_v2, %v2633_v29 }
 0x365   : > { %v7815_v51 = vpop.f32.mrb[14].mxu1 }
 0x366   : > { %v9552_v61 = vadd.f32 %v7815_v51, %v9279_v4  ;;  %v2467_v38 = vpop.f32.mrb[15].mxu1 }
 0x367   : > { %v9557_v58 = vadd.f32 %v9279_v4, %v2467_v38 }
 0x368   : > { %v2576_v25 = vmul.f32 %v9552_v61, %v9552_v61  ;;  %v2537_v0 = vsel %vm441_vm0, %v9552_v61, 0.0 }
 0x369   : > { %v2535_v24 = vsel %vm441_vm0, %v9557_v58, 0.0  ;;  %v2575_v5 = vmul.f32 %v9557_v58, %v9557_v58 }
 0x36a   : > { %v2536_v35 = vadd.f32 %v2535_v24, %v2534_v19  ;;  %v2638_v37 = vsel %vm441_vm0, %v2576_v25, 0.0 }
 0x36b   : > { %v2636_v4 = vsel %vm441_vm0, %v2575_v5, 0.0 }
 0x36c   : > { %v2538_v34 = vadd.f32 %v2537_v0, %v2536_v35  ;;  %v2637_v12 = vadd.f32 %v2636_v4, %v2635_v47 }
 0x36e   : > { %v2539_v55 = vrot.slane %v2538_v34, 4  ;;  %v2639_v57 = vadd.f32 %v2638_v37, %v2637_v12 }
 0x370   : > { %v2540_v60 = vadd.f32 %v2539_v55, %v2538_v34  ;;  %v2640_v16 = vrot.slane %v2639_v57, 4 }
 0x372   : > { %v2541_v43 = vrot.slane %v2540_v60, 2  ;;  %v2641_v46 = vadd.f32 %v2640_v16, %v2639_v57 }
 0x374   : > { %v2542_v21 = vadd.f32 %v2541_v43, %v2540_v60  ;;  %v2642_v18 = vrot.slane %v2641_v46, 2 }
 0x376   : > { %v2543_v59 = vrot.slane %v2542_v21, 1  ;;  %v2643_v8 = vadd.f32 %v2642_v18, %v2641_v46 }
 0x378   : > { %v2544_v1 = vadd.f32 %v2543_v59, %v2542_v21  ;;  %v2644_v63 = vrot.slane %v2643_v8, 1 }
 0x37a   : > { %v2647_v62 = vsel %vm2646_vm11, %v2544_v1, 0.0  ;;  %v2645_v42 = vadd.f32 %v2644_v63, %v2643_v8 }
 0x37b   : > { %2648 = vadd.xlane.f32.xlu0 %v2647_v62 }
 0x37c   : > { %v2660_v26 = vsel %vm2646_vm11, %v2645_v42, 0.0 }
 0x37d   : > { %2661 = vadd.xlane.f32.xlu1 %v2660_v26 }
 0x38e   : > { %2699 = vrot.lane.b32.xlu1 %v2645_v42, %s12576_s16 }
 0x391   : > { %2682 = vrot.lane.b32.xlu0 %v2544_v1, %s12576_s16  ;;  %s12580_s16 = smov 64  }
 0x408   : > { %v2649_v9 = vpop.xlane.xlu0 %2648 }
 0x409   : > { %v2650_v51 = vrot.slane %v2649_v9, 4 }
 0x40a   : > { %v2662_v29 = vpop.xlane.xlu1 %2661 }
 0x40b   : > { %v2651_v38 = vadd.f32 %v2650_v51, %v2649_v9  ;;  %v2663_v54 = vrot.slane %v2662_v29, 4 }
 0x40c   : > { %v2683_v19 = vpop.permute.xlu0 %2682 }
 0x40d   : > { %v2664_v2 = vadd.f32 %v2663_v54, %v2662_v29  ;;  %v2685_v25 = vsel %vm2646_vm11, %v2683_v19, 0.0  ;;  %v2652_v24 = vrot.slane %v2651_v38, 2  ;;  %v2902_v29 = vld [vmem:[#allocation2 + $0x1] sm:$0xff]  ;;  %v2935_v19 = vld [vmem:[#allocation2 + $0xa] sm:$0xff] }
 0x40e   : > { %v2700_v5 = vpop.permute.xlu1 %2699  ;;  %2686 = vadd.xlane.f32.xlu0 %v2685_v25  ;;  %v2934_v54 = vld [vmem:[#allocation2 + $0x2] sm:$0xff] }
 0x40f   : > { %v2702_v35 = vsel %vm2646_vm11, %v2700_v5, 0.0  ;;  %v2653_v47 = vadd.f32 %v2652_v24, %v2651_v38  ;;  %v2665_v0 = vrot.slane %v2664_v2, 2  ;;  %v2903_v38 = vld [vmem:[#allocation2 + $0x9] sm:$0xff] }
 0x410   : > { %2703 = vadd.xlane.f32.xlu1 %v2702_v35 }
 0x411   : > { %v2654_v4 = vrot.slane %v2653_v47, 1  ;;  %v2666_v34 = vadd.f32 %v2665_v0, %v2664_v2 }
 0x413   : > { %v2655_v12 = vadd.f32 %v2654_v4, %v2653_v47  ;;  %v2667_v37 = vrot.slane %v2666_v34, 1  ;;  %v2731_v47 = vlaneseq  ;;  %v2725_v4 = vld [vmem:[%s12564_s3] sm:$0x1] }
 0x415   : > { %7994 = vpush %v2655_v12  ;;  %v2668_v55 = vadd.f32 %v2667_v37, %v2666_v34  ;;  %v2732_v0 = vshrl.u32 %v2731_v47, 7 }
 0x417   : > { %7996 = vpush %v2668_v55  ;;  %v9589_v37 = vsub.s32 0, %v2732_v0 }
 0x421   : > { %3192 = vrot.lane.b32.xlu1 %v2903_v38, %s12588_s14 }
 0x424   : > { %3190 = vrot.lane.b32.xlu0 %v2902_v29, %s12588_s14 }
 0x425   : > { %3320 = vrot.lane.b32.xlu1 %v2935_v19, %s12578_s17 }
 0x428   : > { %3318 = vrot.lane.b32.xlu0 %v2934_v54, %s12578_s17 }
 0x446   : > { %s7995_s18 = spop %7994 }
 0x447   : > { %s9576_s28 = smul.f32 0.0009765625, %s7995_s18 }
 0x448   : > { %s7997_s29 = spop %7996 }
 0x449   : > { %s2673_s19 = smul.f32 %s9576_s28, %s9576_s28  ;;  %v2679_v2 = vstv %s9576_s28  ;;  %s12584_s28 = smov 48  }
 0x44a   : > { %s2672_s20 = smul.f32 0.0009765625, %s7997_s29 }
 0x44c   : > { %s2674_s21 = ssub.f32 %s2672_s20, %s2673_s19 }
 0x44e   : > { %s2675_s22 = sadd.f32 1e-05, %s2674_s21 }
 0x450   : > { %v2676_v57 = vstv %s2675_s22 }
 0x451   : > { %8052 = vrsqrt.f32 %v2676_v57 }
 0x45b   : > { %v8053_v60 = vpop.eup %8052 }
 0x45c   : > { %7998 = vpush %v8053_v60  ;;  %v2727_v60 = vld [vmem:[%s12565_s4] sm:$0x1] }
 0x48d   : > { %s7999_s30 = spop %7998 }
 0x48e   : > { %v2680_v34 = vstv %s7999_s30 }
 0x49b   : > { %v2687_v16 = vpop.xlane.xlu0 %2686 }
 0x49c   : > { %v2688_v43 = vrot.slane %v2687_v16, 4 }
 0x49d   : > { %v2704_v46 = vpop.xlane.xlu1 %2703 }
 0x49e   : > { %v2689_v21 = vadd.f32 %v2688_v43, %v2687_v16  ;;  %v2705_v18 = vrot.slane %v2704_v46, 4 }
 0x4a0   : > { %v2706_v59 = vadd.f32 %v2705_v18, %v2704_v46  ;;  %v2690_v8 = vrot.slane %v2689_v21, 2 }
 0x4a2   : > { %v2691_v1 = vadd.f32 %v2690_v8, %v2689_v21  ;;  %v2707_v63 = vrot.slane %v2706_v59, 2 }
 0x4a4   : > { %v2692_v62 = vrot.slane %v2691_v1, 1  ;;  %v2708_v42 = vadd.f32 %v2707_v63, %v2706_v59 }
 0x4a6   : > { %v2693_v26 = vadd.f32 %v2692_v62, %v2691_v1  ;;  %v2709_v9 = vrot.slane %v2708_v42, 1 }
 0x4a8   : > { %8000 = vpush %v2693_v26  ;;  %v2710_v51 = vadd.f32 %v2709_v9, %v2708_v42 }
 0x4aa   : > { %8002 = vpush %v2710_v51 }
 0x4d9   : > { %s8001_s15 = spop %8000 }
 0x4da   : > { %s2697_s18 = smul.f32 0.0009765625, %s8001_s15 }
 0x4db   : > { %s8003_s29 = spop %8002 }
 0x4dc   : > { %s2715_s19 = smul.f32 %s2697_s18, %s2697_s18  ;;  %v2721_v25 = vstv %s2697_s18 }
 0x4dd   : > { %v2723_v24 = vsel %vm530_vm2, %v2679_v2, %v2721_v25  ;;  %s2714_s20 = smul.f32 0.0009765625, %s8003_s29  ;;  %s12592_s29 = smov 16  }
 0x4df   : > { %s2716_s21 = ssub.f32 %s2714_s20, %s2715_s19  ;;  %s12593_s19 = smov 124  }
 0x4e1   : > { %s2717_s22 = sadd.f32 1e-05, %s2716_s21 }
 0x4e3   : > { %v2718_v5 = vstv %s2717_s22  ;;  %s12582_s22 = smov 56  }
 0x4e4   : > { %8054 = vrsqrt.f32 %v2718_v5 }
 0x4ee   : > { %v8055_v35 = vpop.eup %8054 }
 0x4ef   : > { %8004 = vpush %v8055_v35 }
 0x520   : > { %s8005_s27 = spop %8004 }
 0x521   : > { %v2722_v12 = vstv %s8005_s27  ;;  %s12586_s27 = smov 40  }
 0x522   : > { %v2724_v55 = vsel %vm530_vm2, %v2680_v34, %v2722_v12 }
 0x523   : > { %v2726_v57 = vmul.f32 %v2725_v4, %v2724_v55 }
 0x525   : > { %v2728_v16 = vmul.f32 %v2726_v57, %v2723_v24  ;;  %v2734_v43 = vrot.slane %v2726_v57, %v9589_v37 }
 0x527   : > { %v2729_v46 = vsub.f32 %v2727_v60, %v2728_v16  ;;  %v2736_v21 = vmul.f32 %v2734_v43, %v9287_v13  ;;  %v2737_v18 = vmul.f32 %v2734_v43, %v9283_v44  ;;  %v2738_v59 = vmul.f32 %v2734_v43, %v9291_v56 }
 0x528   : > { %v2739_v8 = vmul.f32 %v2734_v43, %v9307_v52  ;;  %v2740_v1 = vmul.f32 %v2734_v43, %v9313_v30  ;;  %v2741_v63 = vmul.f32 %v2734_v43, %v9326_v11  ;;  %v2742_v62 = vmul.f32 %v2734_v43, %v9332_v10 }
 0x529   : > { %v2772_v42 = vrot.slane %v2729_v46, %v9589_v37  ;;  %v2743_v26 = vmul.f32 %v2734_v43, %v9346_v48  ;;  %v2744_v9 = vmul.f32 %v2734_v43, %v9352_v17  ;;  %v2745_v13 = vmul.f32 %v2734_v43, %v9364_v27 }
 0x52a   : > { %v2746_v44 = vmul.f32 %v2734_v43, %v9370_v33  ;;  %v2747_v56 = vmul.f32 %v2734_v43, %v9382_v3  ;;  %v2748_v52 = vmul.f32 %v2734_v43, %v9388_v23  ;;  %v2749_v30 = vmul.f32 %v2734_v43, %v9400_v28 }
 0x52b   : > { %v2750_v11 = vmul.f32 %v2734_v43, %v9406_v53  ;;  %v2751_v10 = vmul.f32 %v2734_v43, %v9418_v15  ;;  %v2752_v51 = vmul.f32 %v2734_v43, %v9424_v22  ;;  %v2753_v48 = vmul.f32 %v2734_v43, %v9438_v31 }
 0x52c   : > { %v2754_v17 = vmul.f32 %v2734_v43, %v9444_v7  ;;  %v2755_v27 = vmul.f32 %v2734_v43, %v9456_v14  ;;  %v2756_v33 = vmul.f32 %v2734_v43, %v9462_v41  ;;  %v2757_v3 = vmul.f32 %v2734_v43, %v9474_v36 }
 0x52d   : > { %v2758_v23 = vmul.f32 %v2734_v43, %v9480_v32  ;;  %v2759_v28 = vmul.f32 %v2734_v43, %v9492_v6  ;;  %v2760_v53 = vmul.f32 %v2734_v43, %v9498_v49  ;;  %v2761_v15 = vmul.f32 %v2734_v43, %v9510_v40 }
 0x52e   : > { %v2762_v22 = vmul.f32 %v2734_v43, %v9515_v50  ;;  %v2763_v31 = vmul.f32 %v2734_v43, %v9527_v20  ;;  %v2764_v7 = vmul.f32 %v2734_v43, %v9532_v39  ;;  %v2765_v14 = vmul.f32 %v2734_v43, %v9543_v45 }
 0x52f   : > { %v2766_v41 = vmul.f32 %v2734_v43, %v9557_v58  ;;  %v2767_v36 = vmul.f32 %v2734_v43, %v9552_v61  ;;  %v2774_v29 = vadd.f32 %v2772_v42, %v2736_v21  ;;  %v2775_v32 = vadd.f32 %v2772_v42, %v2737_v18 }
 0x530   : > { %v2776_v38 = vadd.f32 %v2772_v42, %v2738_v59  ;;  %v2777_v6 = vadd.f32 %v2772_v42, %v2739_v8  ;;  %v2778_v54 = vadd.f32 %v2772_v42, %v2740_v1  ;;  %v2779_v49 = vadd.f32 %v2772_v42, %v2741_v63 }
 0x531   : > { %v2780_v19 = vadd.f32 %v2772_v42, %v2742_v62  ;;  %v2781_v40 = vadd.f32 %v2772_v42, %v2743_v26  ;;  %v2782_v2 = vadd.f32 %v2772_v42, %v2744_v9  ;;  %v2783_v50 = vadd.f32 %v2772_v42, %v2745_v13 }
 0x532   : > { %v2784_v25 = vadd.f32 %v2772_v42, %v2746_v44  ;;  %v2785_v20 = vadd.f32 %v2772_v42, %v2747_v56  ;;  %v2786_v24 = vadd.f32 %v2772_v42, %v2748_v52  ;;  %v2787_v39 = vadd.f32 %v2772_v42, %v2749_v30 }
 0x533   : > { %v2788_v5 = vadd.f32 %v2772_v42, %v2750_v11  ;;  %v2789_v45 = vadd.f32 %v2772_v42, %v2751_v10  ;;  %v2790_v35 = vadd.f32 %v2772_v42, %v2752_v51  ;;  %v2791_v58 = vadd.f32 %v2772_v42, %v2753_v48 }
 0x534   : > { %v9629_v47 = vadd.f32 %v2772_v42, %v2754_v17  ;;  %v9631_v61 = vadd.f32 %v2772_v42, %v2755_v27  ;;  %v9633_v0 = vadd.f32 %v2772_v42, %v2756_v33  ;;  %v9635_v4 = vadd.f32 %v2772_v42, %v2757_v3 }
 0x535   : > { %v9637_v34 = vadd.f32 %v2772_v42, %v2758_v23  ;;  %v9639_v12 = vadd.f32 %v2772_v42, %v2759_v28  ;;  %v9641_v55 = vadd.f32 %v2772_v42, %v2760_v53  ;;  %v9643_v57 = vadd.f32 %v2772_v42, %v2761_v15 }
 0x536   : > { %v9645_v60 = vadd.f32 %v2772_v42, %v2762_v22  ;;  %v9647_v16 = vadd.f32 %v2772_v42, %v2763_v31  ;;  %v9649_v43 = vadd.f32 %v2772_v42, %v2764_v7  ;;  %v9651_v46 = vadd.f32 %v2772_v42, %v2765_v14 }
 0x537   : > { %v9653_v21 = vadd.f32 %v2772_v42, %v2766_v41  ;;  %v9655_v18 = vadd.f32 %v2772_v42, %v2767_v36  ;;  %v2806_v59 = vmax.f32 %v2774_v29, 0.0  ;;  %v2807_v8 = vmax.f32 %v2775_v32, 0.0 }
 0x538   : > { %v2808_v1 = vmax.f32 %v2776_v38, 0.0  ;;  %v2809_v63 = vmax.f32 %v2777_v6, 0.0  ;;  %v2810_v62 = vmax.f32 %v2778_v54, 0.0  ;;  %v2811_v26 = vmax.f32 %v2779_v49, 0.0 }
 0x539   : > { %v2812_v9 = vmax.f32 %v2780_v19, 0.0  ;;  %v2813_v13 = vmax.f32 %v2781_v40, 0.0  ;;  %v2814_v44 = vmax.f32 %v2782_v2, 0.0  ;;  %v2815_v56 = vmax.f32 %v2783_v50, 0.0  ;;  %2838 = vst.msk [vmem:[#allocation2 + $0x19] sm:$0xff] %vm441_vm0, %v2806_v59  ;;  %2839 = vst.msk [vmem:[#allocation2 + $0x21] sm:$0xff] %vm441_vm0, %v2807_v8 }
 0x53a   : > { %v2816_v52 = vmax.f32 %v2784_v25, 0.0  ;;  %v2817_v30 = vmax.f32 %v2785_v20, 0.0  ;;  %v2818_v11 = vmax.f32 %v2786_v24, 0.0  ;;  %v2819_v10 = vmax.f32 %v2787_v39, 0.0  ;;  %2840 = vst.msk [vmem:[#allocation2 + $0x31] sm:$0xff] %vm441_vm0, %v2808_v1  ;;  %2841 = vst.msk [vmem:[#allocation2 + $0x39] sm:$0xff] %vm441_vm0, %v2809_v63 }
 0x53b   : > { %2842 = vst.msk [vmem:[#allocation2 + $0x49] sm:$0xff] %vm441_vm0, %v2810_v62  ;;  %2843 = vst.msk [vmem:[#allocation2 + $0x51] sm:$0xff] %vm441_vm0, %v2811_v26  ;;  %v2820_v42 = vmax.f32 %v2788_v5, 0.0  ;;  %v2821_v51 = vmax.f32 %v2789_v45, 0.0  ;;  %v2822_v48 = vmax.f32 %v2790_v35, 0.0  ;;  %v2823_v17 = vmax.f32 %v2791_v58, 0.0 }
 0x53c   : > { %2844 = vst.msk [vmem:[#allocation2 + $0x61] sm:$0xff] %vm441_vm0, %v2812_v9  ;;  %2845 = vst.msk [vmem:[#allocation2 + $0x69] sm:$0xff] %vm441_vm0, %v2813_v13  ;;  %v2824_v27 = vmax.f32 %v9629_v47, 0.0  ;;  %v2825_v33 = vmax.f32 %v9631_v61, 0.0  ;;  %v2826_v3 = vmax.f32 %v9633_v0, 0.0  ;;  %v2827_v23 = vmax.f32 %v9635_v4, 0.0  ;;  %v3191_v9 = vpop.permute.xlu0 %3190  ;;  %v3193_v13 = vpop.permute.xlu1 %3192 }
 0x53d   : > { %2846 = vst.msk [vmem:[#allocation2 + $0x79] sm:$0xff] %vm441_vm0, %v2814_v44  ;;  %2847 = vst.msk [vmem:[#allocation2 + $0x81] sm:$0xff] %vm441_vm0, %v2815_v56  ;;  %v2828_v28 = vmax.f32 %v9637_v34, 0.0  ;;  %v2829_v53 = vmax.f32 %v9639_v12, 0.0  ;;  %v2830_v15 = vmax.f32 %v9641_v55, 0.0  ;;  %v2831_v22 = vmax.f32 %v9643_v57, 0.0 }
 0x53e   : > { %2848 = vst.msk [vmem:[#allocation2 + $0x91] sm:$0xff] %vm441_vm0, %v2816_v52  ;;  %2849 = vst.msk [vmem:[#allocation2 + $0x99] sm:$0xff] %vm441_vm0, %v2817_v30  ;;  %v2832_v31 = vmax.f32 %v9645_v60, 0.0  ;;  %v2833_v7 = vmax.f32 %v9647_v16, 0.0  ;;  %v2834_v14 = vmax.f32 %v9649_v43, 0.0  ;;  %v2835_v41 = vmax.f32 %v9651_v46, 0.0 }
 0x53f   : > { %2850 = vst.msk [vmem:[#allocation2 + $0xa9] sm:$0xff] %vm441_vm0, %v2818_v11  ;;  %2851 = vst.msk [vmem:[#allocation2 + $0xb1] sm:$0xff] %vm441_vm0, %v2819_v10  ;;  %v2836_v36 = vmax.f32 %v9653_v21, 0.0  ;;  %v2837_v29 = vmax.f32 %v9655_v18, 0.0  ;;  %v4442_v19 = vld [vmem:[%s12566_s5] sm:$0xff]  ;;  %v4443_v40 = vld [vmem:[%s12566_s5 + $0x8] sm:$0xff] }
 0x540   : > { %2852 = vst.msk [vmem:[#allocation2 + $0xc1] sm:$0xff] %vm441_vm0, %v2820_v42  ;;  %2853 = vst.msk [vmem:[#allocation2 + $0xc9] sm:$0xff] %vm441_vm0, %v2821_v51  ;;  %v9701_v32 = vld [vmem:[#allocation2 + $0x20] sm:$0xff]  ;;  %v9703_v38 = vld [vmem:[#allocation2 + $0x18] sm:$0xff]  ;;  %v7956_v2 = vpack.c.bf16 %v4443_v40, %v4442_v19  ;;  %v3319_v44 = vpop.permute.xlu0 %3318  ;;  %v9816_v56 = vpop.permute.xlu1 %3320 }
 0x541   : > { %2854 = vst.msk [vmem:[#allocation2 + $0xd9] sm:$0xff] %vm441_vm0, %v2822_v48  ;;  %2855 = vst.msk [vmem:[#allocation2 + $0xe1] sm:$0xff] %vm441_vm0, %v2823_v17  ;;  %3448 = vrot.lane.b32.xlu1 %v9701_v32, %s8078_s23  ;;  %3446 = vrot.lane.b32.xlu0 %v9703_v38, %s8078_s23  ;;  %v2998_v6 = vld [vmem:[#allocation2 + $0x19] sm:$0xff]  ;;  %v2999_v54 = vld [vmem:[#allocation2 + $0x21] sm:$0xff] }
 0x542   : > { %2856 = vst.msk [vmem:[#allocation2 + $0xf1] sm:$0xff] %vm441_vm0, %v2824_v27  ;;  %2857 = vst.msk [vmem:[#allocation2 + $0xf9] sm:$0xff] %vm441_vm0, %v2825_v33  ;;  %v3030_v49 = vld [vmem:[#allocation2 + $0x1a] sm:$0xff]  ;;  %v4444_v50 = vld [vmem:[%s12566_s5 + $0x10] sm:$0xff]  ;;  %7957 = vmatprep.subr.bf16.mxu1 %v7956_v2 }
 0x543   : > { %2858 = vst.msk [vmem:[#allocation2 + $0x109] sm:$0xff] %vm441_vm0, %v2826_v3  ;;  %2859 = vst.msk [vmem:[#allocation2 + $0x111] sm:$0xff] %vm441_vm0, %v2827_v23  ;;  %v4445_v25 = vld [vmem:[%s12566_s5 + $0x18] sm:$0xff]  ;;  %7959 = vmatpush3.bf16.msra.mxu1 %v7956_v2  ;;  %v3031_v24 = vld [vmem:[#allocation2 + $0x22] sm:$0xff] }
 0x544   : > { %2860 = vst.msk [vmem:[#allocation2 + $0x121] sm:$0xff] %vm441_vm0, %v2828_v28  ;;  %2861 = vst.msk [vmem:[#allocation2 + $0x129] sm:$0xff] %vm441_vm0, %v2829_v53  ;;  %v7960_v20 = vpack.c.bf16 %v4445_v25, %v4444_v50  ;;  %v9729_v39 = vld [vmem:[#allocation2 + $0x30] sm:$0xff]  ;;  %v4446_v5 = vld [vmem:[%s12566_s5 + $0x20] sm:$0xff] }
 0x545   : > { %2862 = vst.msk [vmem:[#allocation2 + $0x139] sm:$0xff] %vm441_vm0, %v2830_v15  ;;  %2863 = vst.msk [vmem:[#allocation2 + $0x141] sm:$0xff] %vm441_vm0, %v2831_v22  ;;  %3574 = vrot.lane.b32.xlu0 %v2998_v6, %s12590_s24  ;;  %3194 = vrot.lane.b32.xlu1 %v2998_v6, %s12588_s14  ;;  %v4447_v45 = vld [vmem:[%s12566_s5 + $0x28] sm:$0xff]  ;;  %v4448_v58 = vld [vmem:[%s12566_s5 + $0x30] sm:$0xff] }
 0x546   : > { %2864 = vst.msk [vmem:[#allocation2 + $0x151] sm:$0xff] %vm441_vm0, %v2832_v31  ;;  %2865 = vst.msk [vmem:[#allocation2 + $0x159] sm:$0xff] %vm441_vm0, %v2833_v7  ;;  %7961 = vmatprep.subr.bf16.mxu1 %v7960_v20  ;;  %v7964_v35 = vpack.c.bf16 %v4447_v45, %v4446_v5  ;;  %v4449_v47 = vld [vmem:[%s12566_s5 + $0x38] sm:$0xff]  ;;  %v4450_v34 = vld [vmem:[%s12566_s5 + $0x40] sm:$0xff] }
 0x547   : > { %2866 = vst.msk [vmem:[#allocation2 + $0x169] sm:$0xff] %vm441_vm0, %v2834_v14  ;;  %2867 = vst.msk [vmem:[#allocation2 + $0x171] sm:$0xff] %vm441_vm0, %v2835_v41  ;;  %7963 = vmatpush3.bf16.msra.mxu1 %v7960_v20  ;;  %v7968_v61 = vpack.c.bf16 %v4449_v47, %v4448_v58  ;;  %v9749_v0 = vld [vmem:[#allocation2 + $0x38] sm:$0xff]  ;;  %v9768_v60 = vld [vmem:[#allocation2 + $0x48] sm:$0xff] }
 0x548   : > { %2868 = vst.msk [vmem:[#allocation2 + $0x181] sm:$0xff] %vm441_vm0, %v2836_v36  ;;  %2869 = vst.msk [vmem:[#allocation2 + $0x189] sm:$0xff] %vm441_vm0, %v2837_v29  ;;  %7965 = vmatprep.subr.bf16.mxu1 %v7964_v35  ;;  %v3094_v4 = vld [vmem:[#allocation2 + $0x31] sm:$0xff]  ;;  %v3095_v12 = vld [vmem:[#allocation2 + $0x39] sm:$0xff] }
 0x549   : > { %3576 = vrot.lane.b32.xlu0 %v2999_v54, %s12590_s24  ;;  %3702 = vrot.lane.b32.xlu1 %v3030_v49, %s12586_s27  ;;  %v3126_v55 = vld [vmem:[#allocation2 + $0x32] sm:$0xff]  ;;  %v3127_v57 = vld [vmem:[#allocation2 + $0x3a] sm:$0xff]  ;;  %v3096_v43 = vld [vmem:[#allocation2 + $0x49] sm:$0xff] }
 0x54a   : > { %v9776_v16 = vld [vmem:[#allocation2 + $0x50] sm:$0xff]  ;;  %v9792_v59 = vld [vmem:[#allocation2 + $0x60] sm:$0xff]  ;;  %v9800_v8 = vld [vmem:[#allocation2 + $0x68] sm:$0xff] }
 0x54b   : > { %7967 = vmatpush3.bf16.msra.mxu1 %v7964_v35  ;;  %v3097_v46 = vld [vmem:[#allocation2 + $0x51] sm:$0xff]  ;;  %v3098_v1 = vld [vmem:[#allocation2 + $0x61] sm:$0xff]  ;;  %v3099_v63 = vld [vmem:[#allocation2 + $0x69] sm:$0xff] }
 0x54c   : > { %7969 = vmatprep.subr.bf16.mxu1 %v7968_v61  ;;  %v3128_v21 = vld [vmem:[#allocation2 + $0x4a] sm:$0xff]  ;;  %v3129_v18 = vld [vmem:[#allocation2 + $0x52] sm:$0xff]  ;;  %v3130_v62 = vld [vmem:[#allocation2 + $0x62] sm:$0xff] }
 0x54d   : > { %3196 = vrot.lane.b32.xlu0 %v2999_v54, %s12588_s14  ;;  %3322 = vrot.lane.b32.xlu1 %v3030_v49, %s12592_s29  ;;  %v3131_v26 = vld [vmem:[#allocation2 + $0x6a] sm:$0xff]  ;;  %v9818_v52 = vld [vmem:[#allocation2 + $0x78] sm:$0xff]  ;;  %v9828_v51 = vld [vmem:[#allocation2 + $0x80] sm:$0xff] }
 0x54e   : > { %v3100_v48 = vld [vmem:[#allocation2 + $0x79] sm:$0xff]  ;;  %v3101_v23 = vld [vmem:[#allocation2 + $0x81] sm:$0xff]  ;;  %v9860_v50 = vld [vmem:[#allocation2 + $0x90] sm:$0xff] }
 0x54f   : > { %7971 = vmatpush3.bf16.msra.mxu1 %v7968_v61  ;;  %v3132_v28 = vld [vmem:[#allocation2 + $0x7a] sm:$0xff]  ;;  %v3133_v14 = vld [vmem:[#allocation2 + $0x82] sm:$0xff] }
 0x550   : > { %7832 = vmatprep.subr.mxu1 %v4450_v34  ;;  %v2870_v7 = vld [vmem:[#allocation2] sm:$0xff]  ;;  %v2871_v40 = vld [vmem:[#allocation2 + $0x8] sm:$0xff] }
 0x551   : > { %3704 = vrot.lane.b32.xlu0 %v3031_v24, %s12586_s27  ;;  %3830 = vrot.lane.b32.xlu1 %v9729_v39, %s12584_s28  ;;  %v4182_v41 = vsel %vm441_vm0, %v2870_v7, %v3191_v9  ;;  %v3103_v9 = vld [vmem:[#allocation2 + $0x99] sm:$0xff] }
 0x552   : > { %v4214_v6 = vsel %vm1973_vm5, %v4182_v41, %v3319_v44 }
 0x553   : > { %7833 = vmatpush3.msra.mxu1 %v4450_v34 }
 0x555   : > { %3324 = vrot.lane.b32.xlu0 %v3031_v24, %s12592_s29  ;;  %3450 = vrot.lane.b32.xlu1 %v9729_v39, %s8078_s23  ;;  %v4183_v24 = vsel %vm441_vm0, %v2871_v40, %v3193_v13  ;;  %v3134_v13 = vld [vmem:[#allocation2 + $0x92] sm:$0xff] }
 0x556   : > { %v4215_v47 = vsel %vm1973_vm5, %v4183_v24, %v9816_v56 }
 0x559   : > { %3832 = vrot.lane.b32.xlu0 %v9749_v0, %s12584_s28  ;;  %3958 = vrot.lane.b32.xlu1 %v3094_v4, %s12582_s22 }
 0x55d   : > { %3452 = vrot.lane.b32.xlu0 %v9749_v0, %s8078_s23  ;;  %3578 = vrot.lane.b32.xlu1 %v3094_v4, %s12590_s24 }
 0x561   : > { %3960 = vrot.lane.b32.xlu0 %v3095_v12, %s12582_s22  ;;  %4086 = vrot.lane.b32.xlu1 %v3126_v55, %s12580_s16 }
 0x565   : > { %3198 = vrot.lane.b32.xlu0 %v3094_v4, %s12588_s14  ;;  %3580 = vrot.lane.b32.xlu1 %v3095_v12, %s12590_s24 }
 0x569   : > { %3706 = vrot.lane.b32.xlu0 %v3126_v55, %s12586_s27  ;;  %4088 = vrot.lane.b32.xlu1 %v3127_v57, %s12580_s16 }
 0x56d   : > { %3200 = vrot.lane.b32.xlu0 %v3095_v12, %s12588_s14  ;;  %3326 = vrot.lane.b32.xlu1 %v3126_v55, %s12592_s29  ;;  %v9880_v55 = vld [vmem:[#allocation2 + $0x98] sm:$0xff] }
 0x571   : > { %3708 = vrot.lane.b32.xlu0 %v3127_v57, %s12586_s27  ;;  %3834 = vrot.lane.b32.xlu1 %v9768_v60, %s12584_s28 }
 0x575   : > { %3328 = vrot.lane.b32.xlu0 %v3127_v57, %s12592_s29  ;;  %3454 = vrot.lane.b32.xlu1 %v9768_v60, %s8078_s23  ;;  %v3102_v57 = vld [vmem:[#allocation2 + $0x91] sm:$0xff] }
 0x579   : > { %3836 = vrot.lane.b32.xlu0 %v9776_v16, %s12584_s28  ;;  %3962 = vrot.lane.b32.xlu1 %v3096_v43, %s12582_s22 }
 0x57d   : > { %3456 = vrot.lane.b32.xlu0 %v9776_v16, %s8078_s23  ;;  %3582 = vrot.lane.b32.xlu1 %v3096_v43, %s12590_s24 }
 0x581   : > { %3964 = vrot.lane.b32.xlu0 %v3097_v46, %s12582_s22  ;;  %4090 = vrot.lane.b32.xlu1 %v3128_v21, %s12580_s16 }
 0x585   : > { %3202 = vrot.lane.b32.xlu0 %v3096_v43, %s12588_s14  ;;  %3584 = vrot.lane.b32.xlu1 %v3097_v46, %s12590_s24 }
 0x589   : > { %3710 = vrot.lane.b32.xlu0 %v3128_v21, %s12586_s27  ;;  %4092 = vrot.lane.b32.xlu1 %v3129_v18, %s12580_s16 }
 0x58d   : > { %3204 = vrot.lane.b32.xlu0 %v3097_v46, %s12588_s14  ;;  %3330 = vrot.lane.b32.xlu1 %v3128_v21, %s12592_s29 }
 0x591   : > { %3712 = vrot.lane.b32.xlu0 %v3129_v18, %s12586_s27  ;;  %3838 = vrot.lane.b32.xlu1 %v9792_v59, %s12584_s28 }
 0x595   : > { %3332 = vrot.lane.b32.xlu0 %v3129_v18, %s12592_s29  ;;  %3458 = vrot.lane.b32.xlu1 %v9792_v59, %s8078_s23 }
 0x599   : > { %3840 = vrot.lane.b32.xlu0 %v9800_v8, %s12584_s28  ;;  %3966 = vrot.lane.b32.xlu1 %v3098_v1, %s12582_s22 }
 0x59d   : > { %3460 = vrot.lane.b32.xlu0 %v9800_v8, %s8078_s23  ;;  %3586 = vrot.lane.b32.xlu1 %v3098_v1, %s12590_s24 }
 0x5a1   : > { %3968 = vrot.lane.b32.xlu0 %v3099_v63, %s12582_s22  ;;  %4094 = vrot.lane.b32.xlu1 %v3130_v62, %s12580_s16 }
 0x5a5   : > { %3206 = vrot.lane.b32.xlu0 %v3098_v1, %s12588_s14  ;;  %3588 = vrot.lane.b32.xlu1 %v3099_v63, %s12590_s24 }
 0x5a9   : > { %3714 = vrot.lane.b32.xlu0 %v3130_v62, %s12586_s27  ;;  %4096 = vrot.lane.b32.xlu1 %v3131_v26, %s12580_s16 }
 0x5ad   : > { %3208 = vrot.lane.b32.xlu0 %v3099_v63, %s12588_s14  ;;  %3334 = vrot.lane.b32.xlu1 %v3130_v62, %s12592_s29 }
 0x5b1   : > { %3716 = vrot.lane.b32.xlu0 %v3131_v26, %s12586_s27  ;;  %3842 = vrot.lane.b32.xlu1 %v9818_v52, %s12584_s28 }
 0x5b3   : > { %v3449_v30 = vpop.permute.xlu1 %3448  ;;  %v3447_v11 = vpop.permute.xlu0 %3446 }
 0x5b4   : > { %v4246_v54 = vsel %vm2039_vm7, %v4214_v6, %v3447_v11  ;;  %v4247_v61 = vsel %vm2039_vm7, %v4215_v47, %v3449_v30  ;;  %v3105_v47 = vld [vmem:[#allocation2 + $0xb1] sm:$0xff] }
 0x5b5   : > { %3336 = vrot.lane.b32.xlu0 %v3131_v26, %s12592_s29  ;;  %3462 = vrot.lane.b32.xlu1 %v9818_v52, %s8078_s23 }
 0x5b7   : > { %v9826_v10 = vpop.permute.xlu1 %3194  ;;  %v3575_v42 = vpop.permute.xlu0 %3574 }
 0x5b8   : > { %v4278_v2 = vsel %vm2105_vm9, %v4246_v54, %v3575_v42  ;;  %v3135_v42 = vld [vmem:[#allocation2 + $0x9a] sm:$0xff] }
 0x5b9   : > { %3844 = vrot.lane.b32.xlu0 %v9828_v51, %s12584_s28  ;;  %3970 = vrot.lane.b32.xlu1 %v3100_v48, %s12582_s22 }
 0x5bb   : > { %v3703_v17 = vpop.permute.xlu1 %3702  ;;  %v3577_v27 = vpop.permute.xlu0 %3576 }
 0x5bc   : > { %v4311_v25 = vsel %vm4310_vm12, %v4278_v2, %v3703_v17  ;;  %v4279_v12 = vsel %vm2105_vm9, %v4247_v61, %v3577_v27  ;;  %v4184_v27 = vsel %vm441_vm0, %v9703_v38, %v9826_v10 }
 0x5bd   : > { %3464 = vrot.lane.b32.xlu0 %v9828_v51, %s8078_s23  ;;  %3590 = vrot.lane.b32.xlu1 %v3100_v48, %s12590_s24 }
 0x5bf   : > { %v9836_v33 = vpop.permute.xlu1 %3322  ;;  %v9838_v3 = vpop.permute.xlu0 %3196 }
 0x5c1   : > { %3972 = vrot.lane.b32.xlu0 %v3101_v23, %s12582_s22  ;;  %4098 = vrot.lane.b32.xlu1 %v3132_v28, %s12580_s16 }
 0x5c3   : > { %v3831_v53 = vpop.permute.xlu1 %3830  ;;  %v3705_v15 = vpop.permute.xlu0 %3704 }
 0x5c4   : > { %v4344_v20 = vsel %vm4343_vm13, %v4311_v25, %v3831_v53  ;;  %v4312_v43 = vsel %vm4310_vm12, %v4279_v12, %v3705_v15  ;;  %v9943_v25 = vld [vmem:[#allocation2 + $0xb0] sm:$0xff] }
 0x5c5   : > { %3210 = vrot.lane.b32.xlu0 %v3100_v48, %s12588_s14  ;;  %3592 = vrot.lane.b32.xlu1 %v3101_v23, %s12590_s24 }
 0x5c7   : > { %v9844_v22 = vpop.permute.xlu1 %3450  ;;  %v9846_v31 = vpop.permute.xlu0 %3324 }
 0x5c9   : > { %3718 = vrot.lane.b32.xlu0 %v3132_v28, %s12586_s27  ;;  %4100 = vrot.lane.b32.xlu1 %v3133_v14, %s12580_s16 }
 0x5cb   : > { %v3959_v36 = vpop.permute.xlu1 %3958  ;;  %v3833_v29 = vpop.permute.xlu0 %3832 }
 0x5cc   : > { %v4377_v5 = vsel %vm4376_vm14, %v4344_v20, %v3959_v36  ;;  %v4345_v46 = vsel %vm4343_vm13, %v4312_v43, %v3833_v29  ;;  %v4185_v29 = vsel %vm441_vm0, %v9701_v32, %v9838_v3  ;;  %v3104_v32 = vld [vmem:[#allocation2 + $0xa9] sm:$0xff]  ;;  %v3137_v43 = vld [vmem:[#allocation2 + $0xb2] sm:$0xff] }
 0x5cd   : > { %3212 = vrot.lane.b32.xlu0 %v3101_v23, %s12588_s14  ;;  %3338 = vrot.lane.b32.xlu1 %v3132_v28, %s12592_s29  ;;  %v4216_v23 = vsel %vm1973_vm5, %v4184_v27, %v9836_v33  ;;  %v4217_v6 = vsel %vm1973_vm5, %v4185_v29, %v9846_v31  ;;  %v3138_v29 = vld [vmem:[#allocation2 + $0xc2] sm:$0xff] }
 0x5ce   : > { %v4248_v28 = vsel %vm2039_vm7, %v4216_v23, %v9844_v22 }
 0x5cf   : > { %v9855_v49 = vpop.permute.xlu1 %3578  ;;  %v9857_v19 = vpop.permute.xlu0 %3452 }
 0x5d0   : > { %v4280_v7 = vsel %vm2105_vm9, %v4248_v28, %v9855_v49  ;;  %v4249_v54 = vsel %vm2039_vm7, %v4217_v6, %v9857_v19  ;;  %v3107_v6 = vld [vmem:[#allocation2 + $0xc9] sm:$0xff] }
 0x5d1   : > { %3720 = vrot.lane.b32.xlu0 %v3133_v14, %s12586_s27  ;;  %3846 = vrot.lane.b32.xlu1 %v9860_v50, %s12584_s28 }
 0x5d3   : > { %v4087_v45 = vpop.permute.xlu1 %4086  ;;  %v3961_v35 = vpop.permute.xlu0 %3960 }
 0x5d4   : > { %v4410_v58 = vsel %vm4409_vm15, %v4377_v5, %v4087_v45  ;;  %v4378_v21 = vsel %vm4376_vm14, %v4345_v46, %v3961_v35 }
 0x5d5   : > { %3340 = vrot.lane.b32.xlu0 %v3133_v14, %s12592_s29  ;;  %3466 = vrot.lane.b32.xlu1 %v9860_v50, %s8078_s23  ;;  %v9920_v14 = vld [vmem:[#allocation2 + $0xa8] sm:$0xff] }
 0x5d6   : > { %7834 = vmatprep.mubr.msk.f32.mxu1 %vm4458_vm1, %v4410_v58  ;;  %v3136_v58 = vld [vmem:[#allocation2 + $0xaa] sm:$0xff] }
 0x5d7   : > { %v3581_v4 = vpop.permute.xlu1 %3580  ;;  %v9877_v34 = vpop.permute.xlu0 %3198 }
 0x5d8   : > { %v4281_v2 = vsel %vm2105_vm9, %v4249_v54, %v3581_v4 }
 0x5d9   : > { %3848 = vrot.lane.b32.xlu0 %v9880_v55, %s12584_s28  ;;  %3974 = vrot.lane.b32.xlu1 %v3102_v57, %s12582_s22 }
 0x5db   : > { %v4089_v18 = vpop.permute.xlu1 %4088  ;;  %v3707_v1 = vpop.permute.xlu0 %3706 }
 0x5dc   : > { %v4411_v63 = vsel %vm4409_vm15, %v4378_v21, %v4089_v18  ;;  %v4313_v38 = vsel %vm4310_vm12, %v4280_v7, %v3707_v1  ;;  %v4186_v18 = vsel %vm441_vm0, %v9729_v39, %v9877_v34 }
 0x5dd   : > { %3468 = vrot.lane.b32.xlu0 %v9880_v55, %s8078_s23  ;;  %3594 = vrot.lane.b32.xlu1 %v3102_v57, %s12590_s24 }
 0x5de   : > { %7835 = vmatmul.mubr.msk.f32.vlgmr.msra.gmra.mrb[16].mxu1 %vm4458_vm1, %v4411_v63 }
 0x5df   : > { %v9893_v62 = vpop.permute.xlu1 %3326  ;;  %v9895_v26 = vpop.permute.xlu0 %3200 }
 0x5e0   : > { %v4218_v1 = vsel %vm1973_vm5, %v4186_v18, %v9893_v62 }
 0x5e1   : > { %3976 = vrot.lane.b32.xlu0 %v3103_v9, %s12582_s22  ;;  %4102 = vrot.lane.b32.xlu1 %v3134_v13, %s12580_s16 }
 0x5e3   : > { %v3835_v44 = vpop.permute.xlu1 %3834  ;;  %v3709_v56 = vpop.permute.xlu0 %3708 }
 0x5e4   : > { %v4346_v10 = vsel %vm4343_vm13, %v4313_v38, %v3835_v44  ;;  %v4314_v3 = vsel %vm4310_vm12, %v4281_v2, %v3709_v56  ;;  %v9982_v56 = vld [vmem:[#allocation2 + $0xc0] sm:$0xff] }
 0x5e5   : > { %3214 = vrot.lane.b32.xlu0 %v3102_v57, %s12588_s14  ;;  %3596 = vrot.lane.b32.xlu1 %v3103_v9, %s12590_s24  ;;  %v3106_v38 = vld [vmem:[#allocation2 + $0xc1] sm:$0xff] }
 0x5e7   : > { %v9901_v30 = vpop.permute.xlu1 %3454  ;;  %v9903_v11 = vpop.permute.xlu0 %3328 }
 0x5e8   : > { %v4250_v63 = vsel %vm2039_vm7, %v4218_v1, %v9901_v30 }
 0x5e9   : > { %3722 = vrot.lane.b32.xlu0 %v3134_v13, %s12586_s27  ;;  %4104 = vrot.lane.b32.xlu1 %v3135_v42, %s12580_s16 }
 0x5eb   : > { %v3963_v48 = vpop.permute.xlu1 %3962  ;;  %v3837_v17 = vpop.permute.xlu0 %3836 }
 0x5ec   : > { %v4379_v33 = vsel %vm4376_vm14, %v4346_v10, %v3963_v48  ;;  %v4347_v31 = vsel %vm4343_vm13, %v4314_v3, %v3837_v17  ;;  %v4187_v17 = vsel %vm441_vm0, %v9749_v0, %v9895_v26  ;;  %v10005_v0 = vld [vmem:[#allocation2 + $0xc8] sm:$0xff] }
 0x5ed   : > { %3216 = vrot.lane.b32.xlu0 %v3103_v9, %s12588_s14  ;;  %3342 = vrot.lane.b32.xlu1 %v3134_v13, %s12592_s29  ;;  %v4219_v27 = vsel %vm1973_vm5, %v4187_v17, %v9903_v11  ;;  %v3139_v3 = vld [vmem:[#allocation2 + $0xca] sm:$0xff]  ;;  %v3140_v17 = vld [vmem:[#allocation2 + $0xda] sm:$0xff] }
 0x5ef   : > { %v3583_v53 = vpop.permute.xlu1 %3582  ;;  %v9916_v15 = vpop.permute.xlu0 %3456 }
 0x5f0   : > { %v4282_v44 = vsel %vm2105_vm9, %v4250_v63, %v3583_v53  ;;  %v4251_v23 = vsel %vm2039_vm7, %v4219_v27, %v9916_v15  ;;  %v3109_v27 = vld [vmem:[#allocation2 + $0xe1] sm:$0xff] }
 0x5f1   : > { %3724 = vrot.lane.b32.xlu0 %v3135_v42, %s12586_s27  ;;  %3850 = vrot.lane.b32.xlu1 %v9920_v14, %s12584_s28 }
 0x5f3   : > { %v4091_v22 = vpop.permute.xlu1 %4090  ;;  %v3965_v41 = vpop.permute.xlu0 %3964 }
 0x5f4   : > { %v4412_v36 = vsel %vm4409_vm15, %v4379_v33, %v4091_v22  ;;  %v4380_v20 = vsel %vm4376_vm14, %v4347_v31, %v3965_v41 }
 0x5f5   : > { %3344 = vrot.lane.b32.xlu0 %v3135_v42, %s12592_s29  ;;  %3470 = vrot.lane.b32.xlu1 %v9920_v14, %s8078_s23 }
 0x5f6   : > { %7837 = vmatprep.mubr.msk.f32.mxu1 %vm4458_vm1, %v4412_v36 }
 0x5f7   : > { %v3585_v49 = vpop.permute.xlu1 %3584  ;;  %v9940_v40 = vpop.permute.xlu0 %3202 }
 0x5f8   : > { %v4283_v7 = vsel %vm2105_vm9, %v4251_v23, %v3585_v49 }
 0x5f9   : > { %3852 = vrot.lane.b32.xlu0 %v9943_v25, %s12584_s28  ;;  %3978 = vrot.lane.b32.xlu1 %v3104_v32, %s12582_s22 }
 0x5fb   : > { %v4093_v19 = vpop.permute.xlu1 %4092  ;;  %v3711_v24 = vpop.permute.xlu0 %3710 }
 0x5fc   : > { %v4413_v5 = vsel %vm4409_vm15, %v4380_v20, %v4093_v19  ;;  %v4315_v42 = vsel %vm4310_vm12, %v4282_v44, %v3711_v24  ;;  %v4188_v19 = vsel %vm441_vm0, %v9768_v60, %v9940_v40 }
 0x5fd   : > { %3598 = vrot.lane.b32.xlu1 %v3104_v32, %s12590_s24  ;;  %3472 = vrot.lane.b32.xlu0 %v9943_v25, %s8078_s23 }
 0x5fe   : > { %7838 = vmatmul.mubr.msk.f32.gmra.mrb[18].mxu1 %vm4458_vm1, %v4413_v5 }
 0x5ff   : > { %v9956_v45 = vpop.permute.xlu1 %3330  ;;  %v9958_v35 = vpop.permute.xlu0 %3204 }
 0x600   : > { %v4220_v24 = vsel %vm1973_vm5, %v4188_v19, %v9956_v45 }
 0x601   : > { %4106 = vrot.lane.b32.xlu1 %v3136_v58, %s12580_s16  ;;  %3980 = vrot.lane.b32.xlu0 %v3105_v47, %s12582_s22 }
 0x603   : > { %v3839_v61 = vpop.permute.xlu1 %3838  ;;  %v3713_v4 = vpop.permute.xlu0 %3712 }
 0x604   : > { %v4348_v39 = vsel %vm4343_vm13, %v4315_v42, %v3839_v61  ;;  %v4316_v26 = vsel %vm4310_vm12, %v4283_v7, %v3713_v4  ;;  %v10044_v4 = vld [vmem:[#allocation2 + $0xd8] sm:$0xff] }
 0x605   : > { %3600 = vrot.lane.b32.xlu1 %v3105_v47, %s12590_s24  ;;  %3218 = vrot.lane.b32.xlu0 %v3104_v32, %s12588_s14  ;;  %v3108_v42 = vld [vmem:[#allocation2 + $0xd9] sm:$0xff] }
 0x607   : > { %v9964_v12 = vpop.permute.xlu1 %3458  ;;  %v9966_v57 = vpop.permute.xlu0 %3332 }
 0x608   : > { %v4252_v5 = vsel %vm2039_vm7, %v4220_v24, %v9964_v12 }
 0x609   : > { %4108 = vrot.lane.b32.xlu1 %v3137_v43, %s12580_s16  ;;  %3726 = vrot.lane.b32.xlu0 %v3136_v58, %s12586_s27 }
 0x60b   : > { %v3967_v46 = vpop.permute.xlu1 %3966  ;;  %v3841_v21 = vpop.permute.xlu0 %3840 }
 0x60c   : > { %v4381_v34 = vsel %vm4376_vm14, %v4348_v39, %v3967_v46  ;;  %v4349_v11 = vsel %vm4343_vm13, %v4316_v26, %v3841_v21  ;;  %v4189_v21 = vsel %vm441_vm0, %v9776_v16, %v9958_v35  ;;  %v10067_v16 = vld [vmem:[#allocation2 + $0xe0] sm:$0xff] }
 0x60d   : > { %3346 = vrot.lane.b32.xlu1 %v3136_v58, %s12592_s29  ;;  %3220 = vrot.lane.b32.xlu0 %v3105_v47, %s12588_s14  ;;  %v4221_v18 = vsel %vm1973_vm5, %v4189_v21, %v9966_v57  ;;  %v3141_v26 = vld [vmem:[#allocation2 + $0xe2] sm:$0xff]  ;;  %v3142_v21 = vld [vmem:[#allocation2 + $0xf2] sm:$0xff] }
 0x60f   : > { %v3587_v9 = vpop.permute.xlu1 %3586  ;;  %v9979_v13 = vpop.permute.xlu0 %3460 }
 0x610   : > { %v4284_v61 = vsel %vm2105_vm9, %v4252_v5, %v3587_v9  ;;  %v4253_v1 = vsel %vm2039_vm7, %v4221_v18, %v9979_v13  ;;  %v3111_v18 = vld [vmem:[#allocation2 + $0xf9] sm:$0xff] }
 0x611   : > { %3854 = vrot.lane.b32.xlu1 %v9982_v56, %s12584_s28  ;;  %3728 = vrot.lane.b32.xlu0 %v3137_v43, %s12586_s27 }
 0x613   : > { %v4095_v62 = vpop.permute.xlu1 %4094  ;;  %v3969_v30 = vpop.permute.xlu0 %3968 }
 0x614   : > { %v4414_v48 = vsel %vm4409_vm15, %v4381_v34, %v4095_v62  ;;  %v4382_v10 = vsel %vm4376_vm14, %v4349_v11, %v3969_v30 }
 0x615   : > { %3474 = vrot.lane.b32.xlu1 %v9982_v56, %s8078_s23  ;;  %3348 = vrot.lane.b32.xlu0 %v3137_v43, %s12592_s29 }
 0x616   : > { %7840 = vmatprep.mubr.msk.f32.mxu1 %vm4458_vm1, %v4414_v48 }
 0x617   : > { %v3589_v28 = vpop.permute.xlu1 %3588  ;;  %v10002_v53 = vpop.permute.xlu0 %3206 }
 0x618   : > { %v4285_v44 = vsel %vm2105_vm9, %v4253_v1, %v3589_v28 }
 0x619   : > { %3982 = vrot.lane.b32.xlu1 %v3106_v38, %s12582_s22  ;;  %3856 = vrot.lane.b32.xlu0 %v10005_v0, %s12584_s28 }
 0x61b   : > { %v4097_v15 = vpop.permute.xlu1 %4096  ;;  %v3715_v33 = vpop.permute.xlu0 %3714 }
 0x61c   : > { %v4415_v22 = vsel %vm4409_vm15, %v4382_v10, %v4097_v15  ;;  %v4317_v43 = vsel %vm4310_vm12, %v4284_v61, %v3715_v33  ;;  %v4190_v15 = vsel %vm441_vm0, %v9792_v59, %v10002_v53 }
 0x61d   : > { %3602 = vrot.lane.b32.xlu1 %v3106_v38, %s12590_s24  ;;  %3476 = vrot.lane.b32.xlu0 %v10005_v0, %s8078_s23 }
 0x61e   : > { %7841 = vmatmul.mubr.msk.f32.gmra.mrb[20].mxu1 %vm4458_vm1, %v4415_v22 }
 0x61f   : > { %v10018_v41 = vpop.permute.xlu1 %3334  ;;  %v10020_v36 = vpop.permute.xlu0 %3208 }
 0x620   : > { %v4222_v33 = vsel %vm1973_vm5, %v4190_v15, %v10018_v41 }
 0x621   : > { %4110 = vrot.lane.b32.xlu1 %v3138_v29, %s12580_s16  ;;  %3984 = vrot.lane.b32.xlu0 %v3107_v6, %s12582_s22 }
 0x623   : > { %v3843_v54 = vpop.permute.xlu1 %3842  ;;  %v3717_v49 = vpop.permute.xlu0 %3716 }
 0x624   : > { %v4350_v60 = vsel %vm4343_vm13, %v4317_v43, %v3843_v54  ;;  %v4318_v35 = vsel %vm4310_vm12, %v4285_v44, %v3717_v49  ;;  %v10106_v49 = vld [vmem:[#allocation2 + $0xf0] sm:$0xff] }
 0x625   : > { %3604 = vrot.lane.b32.xlu1 %v3107_v6, %s12590_s24  ;;  %3222 = vrot.lane.b32.xlu0 %v3106_v38, %s12588_s14  ;;  %v3110_v43 = vld [vmem:[#allocation2 + $0xf1] sm:$0xff] }
 0x627   : > { %v10026_v2 = vpop.permute.xlu1 %3462  ;;  %v10028_v32 = vpop.permute.xlu0 %3336 }
 0x628   : > { %v4254_v22 = vsel %vm2039_vm7, %v4222_v33, %v10026_v2 }
 0x629   : > { %4112 = vrot.lane.b32.xlu1 %v3139_v3, %s12580_s16  ;;  %3730 = vrot.lane.b32.xlu0 %v3138_v29, %s12586_s27 }
 0x62b   : > { %v3971_v31 = vpop.permute.xlu1 %3970  ;;  %v3845_v20 = vpop.permute.xlu0 %3844 }
 0x62c   : > { %v4383_v40 = vsel %vm4376_vm14, %v4350_v60, %v3971_v31  ;;  %v4351_v57 = vsel %vm4343_vm13, %v4318_v35, %v3845_v20  ;;  %v4191_v20 = vsel %vm441_vm0, %v9800_v8, %v10020_v36  ;;  %v10129_v8 = vld [vmem:[#allocation2 + $0xf8] sm:$0xff] }
 0x62d   : > { %3350 = vrot.lane.b32.xlu1 %v3138_v29, %s12592_s29  ;;  %3224 = vrot.lane.b32.xlu0 %v3107_v6, %s12588_s14  ;;  %v4223_v19 = vsel %vm1973_vm5, %v4191_v20, %v10028_v32  ;;  %v3143_v35 = vld [vmem:[#allocation2 + $0xfa] sm:$0xff]  ;;  %v3144_v20 = vld [vmem:[#allocation2 + $0x10a] sm:$0xff] }
 0x62f   : > { %v3591_v58 = vpop.permute.xlu1 %3590  ;;  %v10041_v47 = vpop.permute.xlu0 %3464 }
 0x630   : > { %v4286_v54 = vsel %vm2105_vm9, %v4254_v22, %v3591_v58  ;;  %v4255_v24 = vsel %vm2039_vm7, %v4223_v19, %v10041_v47  ;;  %v3113_v19 = vld [vmem:[#allocation2 + $0x111] sm:$0xff] }
 0x631   : > { %3858 = vrot.lane.b32.xlu1 %v10044_v4, %s12584_s28  ;;  %3732 = vrot.lane.b32.xlu0 %v3139_v3, %s12586_s27 }
 0x633   : > { %v4099_v45 = vpop.permute.xlu1 %4098  ;;  %v3973_v12 = vpop.permute.xlu0 %3972 }
 0x634   : > { %v4416_v46 = vsel %vm4409_vm15, %v4383_v40, %v4099_v45  ;;  %v4384_v39 = vsel %vm4376_vm14, %v4351_v57, %v3973_v12 }
 0x635   : > { %3478 = vrot.lane.b32.xlu1 %v10044_v4, %s8078_s23  ;;  %3352 = vrot.lane.b32.xlu0 %v3139_v3, %s12592_s29 }
 0x636   : > { %7843 = vmatprep.mubr.msk.f32.mxu1 %vm4458_vm1, %v4416_v46 }
 0x637   : > { %v3593_v63 = vpop.permute.xlu1 %3592  ;;  %v10064_v9 = vpop.permute.xlu0 %3210 }
 0x638   : > { %v4287_v61 = vsel %vm2105_vm9, %v4255_v24, %v3593_v63 }
 0x639   : > { %3986 = vrot.lane.b32.xlu1 %v3108_v42, %s12582_s22  ;;  %3860 = vrot.lane.b32.xlu0 %v10067_v16, %s12584_s28 }
 0x63b   : > { %v4101_v13 = vpop.permute.xlu1 %4100  ;;  %v3719_v34 = vpop.permute.xlu0 %3718 }
 0x63c   : > { %v4417_v62 = vsel %vm4409_vm15, %v4384_v39, %v4101_v13  ;;  %v4319_v3 = vsel %vm4310_vm12, %v4286_v54, %v3719_v34  ;;  %v4192_v13 = vsel %vm441_vm0, %v9818_v52, %v10064_v9 }
 0x63d   : > { %3606 = vrot.lane.b32.xlu1 %v3108_v42, %s12590_s24  ;;  %3480 = vrot.lane.b32.xlu0 %v10067_v16, %s8078_s23 }
 0x63e   : > { %7844 = vmatmul.mubr.msk.f32.gmra.mrb[22].mxu1 %vm4458_vm1, %v4417_v62 }
 0x63f   : > { %v10080_v30 = vpop.permute.xlu1 %3338  ;;  %v10082_v48 = vpop.permute.xlu0 %3212 }
 0x640   : > { %v4224_v34 = vsel %vm1973_vm5, %v4192_v13, %v10080_v30 }
 0x641   : > { %4114 = vrot.lane.b32.xlu1 %v3140_v17, %s12580_s16  ;;  %3988 = vrot.lane.b32.xlu0 %v3109_v27, %s12582_s22 }
 0x643   : > { %v3847_v23 = vpop.permute.xlu1 %3846  ;;  %v3721_v28 = vpop.permute.xlu0 %3720 }
 0x644   : > { %v4352_v59 = vsel %vm4343_vm13, %v4319_v3, %v3847_v23  ;;  %v4320_v36 = vsel %vm4310_vm12, %v4287_v61, %v3721_v28  ;;  %v10168_v28 = vld [vmem:[#allocation2 + $0x108] sm:$0xff] }
 0x645   : > { %3608 = vrot.lane.b32.xlu1 %v3109_v27, %s12590_s24  ;;  %3226 = vrot.lane.b32.xlu0 %v3108_v42, %s12588_s14  ;;  %v3112_v3 = vld [vmem:[#allocation2 + $0x109] sm:$0xff] }
 0x647   : > { %v10088_v7 = vpop.permute.xlu1 %3466  ;;  %v10090_v38 = vpop.permute.xlu0 %3340 }
 0x648   : > { %v4256_v62 = vsel %vm2039_vm7, %v4224_v34, %v10088_v7 }
 0x649   : > { %4116 = vrot.lane.b32.xlu1 %v3141_v26, %s12580_s16  ;;  %3734 = vrot.lane.b32.xlu0 %v3140_v17, %s12586_s27 }
 0x64b   : > { %v3975_v11 = vpop.permute.xlu1 %3974  ;;  %v3849_v10 = vpop.permute.xlu0 %3848 }
 0x64c   : > { %v4385_v53 = vsel %vm4376_vm14, %v4352_v59, %v3975_v11  ;;  %v4353_v32 = vsel %vm4343_vm13, %v4320_v36, %v3849_v10  ;;  %v4193_v10 = vsel %vm441_vm0, %v9828_v51, %v10082_v48  ;;  %v10191_v51 = vld [vmem:[#allocation2 + $0x110] sm:$0xff] }
 0x64d   : > { %3354 = vrot.lane.b32.xlu1 %v3140_v17, %s12592_s29  ;;  %3228 = vrot.lane.b32.xlu0 %v3109_v27, %s12588_s14  ;;  %v4225_v15 = vsel %vm1973_vm5, %v4193_v10, %v10090_v38  ;;  %v3145_v36 = vld [vmem:[#allocation2 + $0x112] sm:$0xff]  ;;  %v3146_v10 = vld [vmem:[#allocation2 + $0x122] sm:$0xff] }
 0x64f   : > { %v3595_v29 = vpop.permute.xlu1 %3594  ;;  %v10103_v6 = vpop.permute.xlu0 %3468 }
 0x650   : > { %v4288_v23 = vsel %vm2105_vm9, %v4256_v62, %v3595_v29  ;;  %v4257_v33 = vsel %vm2039_vm7, %v4225_v15, %v10103_v6  ;;  %v3115_v15 = vld [vmem:[#allocation2 + $0x129] sm:$0xff] }
 0x651   : > { %3862 = vrot.lane.b32.xlu1 %v10106_v49, %s12584_s28  ;;  %3736 = vrot.lane.b32.xlu0 %v3141_v26, %s12586_s27 }
 0x653   : > { %v4103_v41 = vpop.permute.xlu1 %4102  ;;  %v3977_v2 = vpop.permute.xlu0 %3976 }
 0x654   : > { %v4418_v31 = vsel %vm4409_vm15, %v4385_v53, %v4103_v41  ;;  %v4386_v60 = vsel %vm4376_vm14, %v4353_v32, %v3977_v2 }
 0x655   : > { %3482 = vrot.lane.b32.xlu1 %v10106_v49, %s8078_s23  ;;  %3356 = vrot.lane.b32.xlu0 %v3141_v26, %s12592_s29 }
 0x656   : > { %7846 = vmatprep.mubr.msk.f32.mxu1 %vm4458_vm1, %v4418_v31 }
 0x657   : > { %v3597_v5 = vpop.permute.xlu1 %3596  ;;  %v10126_v58 = vpop.permute.xlu0 %3214 }
 0x658   : > { %v4289_v54 = vsel %vm2105_vm9, %v4257_v33, %v3597_v5 }
 0x659   : > { %3990 = vrot.lane.b32.xlu1 %v3110_v43, %s12582_s22  ;;  %3864 = vrot.lane.b32.xlu0 %v10129_v8, %s12584_s28 }
 0x65b   : > { %v4105_v47 = vpop.permute.xlu1 %4104  ;;  %v3723_v40 = vpop.permute.xlu0 %3722 }
 0x65c   : > { %v4419_v45 = vsel %vm4409_vm15, %v4386_v60, %v4105_v47  ;;  %v4321_v26 = vsel %vm4310_vm12, %v4288_v23, %v3723_v40  ;;  %v4194_v47 = vsel %vm441_vm0, %v9860_v50, %v10126_v58 }
 0x65d   : > { %3610 = vrot.lane.b32.xlu1 %v3110_v43, %s12590_s24  ;;  %3484 = vrot.lane.b32.xlu0 %v10129_v8, %s8078_s23 }
 0x65e   : > { %7847 = vmatmul.mubr.msk.f32.gmra.mrb[24].mxu1 %vm4458_vm1, %v4419_v45 }
 0x65f   : > { %v10142_v12 = vpop.permute.xlu1 %3342  ;;  %v10144_v46 = vpop.permute.xlu0 %3216 }
 0x660   : > { %v4226_v40 = vsel %vm1973_vm5, %v4194_v47, %v10142_v12 }
 0x661   : > { %4118 = vrot.lane.b32.xlu1 %v3142_v21, %s12580_s16  ;;  %3992 = vrot.lane.b32.xlu0 %v3111_v18, %s12582_s22 }
 0x663   : > { %v3851_v1 = vpop.permute.xlu1 %3850  ;;  %v3725_v63 = vpop.permute.xlu0 %3724 }
 0x664   : > { %v4354_v52 = vsel %vm4343_vm13, %v4321_v26, %v3851_v1  ;;  %v4322_v48 = vsel %vm4310_vm12, %v4289_v54, %v3725_v63  ;;  %v10230_v63 = vld [vmem:[#allocation2 + $0x120] sm:$0xff] }
 0x665   : > { %3612 = vrot.lane.b32.xlu1 %v3111_v18, %s12590_s24  ;;  %3230 = vrot.lane.b32.xlu0 %v3110_v43, %s12588_s14  ;;  %v3114_v26 = vld [vmem:[#allocation2 + $0x121] sm:$0xff] }
 0x667   : > { %v10150_v44 = vpop.permute.xlu1 %3470  ;;  %v10152_v42 = vpop.permute.xlu0 %3344 }
 0x668   : > { %v4258_v45 = vsel %vm2039_vm7, %v4226_v40, %v10150_v44 }
 0x669   : > { %4120 = vrot.lane.b32.xlu1 %v3143_v35, %s12580_s16  ;;  %3738 = vrot.lane.b32.xlu0 %v3142_v21, %s12586_s27 }
 0x66b   : > { %v3979_v57 = vpop.permute.xlu1 %3978  ;;  %v3853_v39 = vpop.permute.xlu0 %3852 }
 0x66c   : > { %v4387_v9 = vsel %vm4376_vm14, %v4354_v52, %v3979_v57  ;;  %v4355_v38 = vsel %vm4343_vm13, %v4322_v48, %v3853_v39  ;;  %v4195_v39 = vsel %vm441_vm0, %v9880_v55, %v10144_v46  ;;  %v10253_v55 = vld [vmem:[#allocation2 + $0x128] sm:$0xff] }
 0x66d   : > { %3358 = vrot.lane.b32.xlu1 %v3142_v21, %s12592_s29  ;;  %3232 = vrot.lane.b32.xlu0 %v3111_v18, %s12588_s14  ;;  %v4227_v13 = vsel %vm1973_vm5, %v4195_v39, %v10152_v42  ;;  %v3147_v48 = vld [vmem:[#allocation2 + $0x12a] sm:$0xff] }
 0x66f   : > { %v3599_v17 = vpop.permute.xlu1 %3598  ;;  %v10165_v27 = vpop.permute.xlu0 %3472 }
 0x670   : > { %v4290_v1 = vsel %vm2105_vm9, %v4258_v45, %v3599_v17  ;;  %v4259_v34 = vsel %vm2039_vm7, %v4227_v13, %v10165_v27 }
 0x671   : > { %3866 = vrot.lane.b32.xlu1 %v10168_v28, %s12584_s28  ;;  %3740 = vrot.lane.b32.xlu0 %v3143_v35, %s12586_s27 }
 0x673   : > { %v4107_v30 = vpop.permute.xlu1 %4106  ;;  %v3981_v7 = vpop.permute.xlu0 %3980 }
 0x674   : > { %v4420_v11 = vsel %vm4409_vm15, %v4387_v9, %v4107_v30  ;;  %v4388_v59 = vsel %vm4376_vm14, %v4355_v38, %v3981_v7 }
 0x675   : > { %3486 = vrot.lane.b32.xlu1 %v10168_v28, %s8078_s23  ;;  %3360 = vrot.lane.b32.xlu0 %v3143_v35, %s12592_s29 }
 0x676   : > { %7849 = vmatprep.mubr.msk.f32.mxu1 %vm4458_vm1, %v4420_v11 }
 0x677   : > { %v3601_v22 = vpop.permute.xlu1 %3600  ;;  %v10188_v29 = vpop.permute.xlu0 %3218 }
 0x678   : > { %v4291_v23 = vsel %vm2105_vm9, %v4259_v34, %v3601_v22  ;;  %v3148_v34 = vld [vmem:[#allocation2 + $0x13a] sm:$0xff] }
 0x679   : > { %3994 = vrot.lane.b32.xlu1 %v3112_v3, %s12582_s22  ;;  %3868 = vrot.lane.b32.xlu0 %v10191_v51, %s12584_s28 }
 0x67b   : > { %v4109_v6 = vpop.permute.xlu1 %4108  ;;  %v3727_v53 = vpop.permute.xlu0 %3726 }
 0x67c   : > { %v4421_v41 = vsel %vm4409_vm15, %v4388_v59, %v4109_v6  ;;  %v4323_v35 = vsel %vm4310_vm12, %v4290_v1, %v3727_v53  ;;  %v4196_v6 = vsel %vm441_vm0, %v9920_v14, %v10188_v29 }
 0x67d   : > { %3614 = vrot.lane.b32.xlu1 %v3112_v3, %s12590_s24  ;;  %3488 = vrot.lane.b32.xlu0 %v10191_v51, %s8078_s23 }
 0x67e   : > { %7850 = vmatmul.mubr.msk.f32.gmra.mrb[26].mxu1 %vm4458_vm1, %v4421_v41 }
 0x67f   : > { %v10204_v2 = vpop.permute.xlu1 %3346  ;;  %v10206_v31 = vpop.permute.xlu0 %3220 }
 0x680   : > { %v4228_v53 = vsel %vm1973_vm5, %v4196_v6, %v10204_v2  ;;  %v4197_v40 = vsel %vm441_vm0, %v9943_v25, %v10206_v31  ;;  %v10319_v25 = vld [vmem:[#allocation2 + $0x140] sm:$0xff] }
 0x681   : > { %4122 = vrot.lane.b32.xlu1 %v3144_v20, %s12580_s16  ;;  %3996 = vrot.lane.b32.xlu0 %v3113_v19, %s12582_s22 }
 0x683   : > { %v3855_v24 = vpop.permute.xlu1 %3854  ;;  %v3729_v5 = vpop.permute.xlu0 %3728 }
 0x684   : > { %v4356_v50 = vsel %vm4343_vm13, %v4323_v35, %v3855_v24  ;;  %v4324_v46 = vsel %vm4310_vm12, %v4291_v23, %v3729_v5  ;;  %v10292_v5 = vld [vmem:[#allocation2 + $0x138] sm:$0xff] }
 0x685   : > { %3616 = vrot.lane.b32.xlu1 %v3113_v19, %s12590_s24  ;;  %3234 = vrot.lane.b32.xlu0 %v3112_v3, %s12588_s14 }
 0x687   : > { %v10212_v61 = vpop.permute.xlu1 %3474  ;;  %v10214_v43 = vpop.permute.xlu0 %3348 }
 0x688   : > { %v4260_v41 = vsel %vm2039_vm7, %v4228_v53, %v10212_v61  ;;  %v4229_v45 = vsel %vm1973_vm5, %v4197_v40, %v10214_v43 }
 0x689   : > { %4124 = vrot.lane.b32.xlu1 %v3145_v36, %s12580_s16  ;;  %3742 = vrot.lane.b32.xlu0 %v3144_v20, %s12586_s27 }
 0x68b   : > { %v3983_v32 = vpop.permute.xlu1 %3982  ;;  %v3857_v60 = vpop.permute.xlu0 %3856 }
 0x68c   : > { %v4389_v58 = vsel %vm4376_vm14, %v4356_v50, %v3983_v32  ;;  %v4357_v42 = vsel %vm4343_vm13, %v4324_v46, %v3857_v60 }
 0x68d   : > { %3362 = vrot.lane.b32.xlu1 %v3144_v20, %s12592_s29  ;;  %3236 = vrot.lane.b32.xlu0 %v3113_v19, %s12588_s14 }
 0x68f   : > { %v3603_v21 = vpop.permute.xlu1 %3602  ;;  %v10227_v18 = vpop.permute.xlu0 %3476 }
 0x690   : > { %v4292_v24 = vsel %vm2105_vm9, %v4260_v41, %v3603_v21  ;;  %v4261_v21 = vsel %vm2039_vm7, %v4229_v45, %v10227_v18 }
 0x691   : > { %3870 = vrot.lane.b32.xlu1 %v10230_v63, %s12584_s28  ;;  %3744 = vrot.lane.b32.xlu0 %v3145_v36, %s12586_s27 }
 0x693   : > { %v4111_v12 = vpop.permute.xlu1 %4110  ;;  %v3985_v44 = vpop.permute.xlu0 %3984 }
 0x694   : > { %v4422_v57 = vsel %vm4409_vm15, %v4389_v58, %v4111_v12  ;;  %v4390_v52 = vsel %vm4376_vm14, %v4357_v42, %v3985_v44  ;;  %v3116_v58 = vld [vmem:[#allocation2 + $0x139] sm:$0xff] }
 0x695   : > { %3490 = vrot.lane.b32.xlu1 %v10230_v63, %s8078_s23  ;;  %3364 = vrot.lane.b32.xlu0 %v3145_v36, %s12592_s29 }
 0x696   : > { %7852 = vmatprep.mubr.msk.f32.mxu1 %vm4458_vm1, %v4422_v57 }
 0x697   : > { %v3605_v62 = vpop.permute.xlu1 %3604  ;;  %v10250_v17 = vpop.permute.xlu0 %3222 }
 0x698   : > { %v4293_v50 = vsel %vm2105_vm9, %v4261_v21, %v3605_v62  ;;  %v3117_v62 = vld [vmem:[#allocation2 + $0x141] sm:$0xff] }
 0x699   : > { %3998 = vrot.lane.b32.xlu1 %v3114_v26, %s12582_s22  ;;  %3872 = vrot.lane.b32.xlu0 %v10253_v55, %s12584_s28 }
 0x69b   : > { %v4113_v27 = vpop.permute.xlu1 %4112  ;;  %v3731_v9 = vpop.permute.xlu0 %3730 }
 0x69c   : > { %v4423_v30 = vsel %vm4409_vm15, %v4390_v52, %v4113_v27  ;;  %v4325_v36 = vsel %vm4310_vm12, %v4292_v24, %v3731_v9  ;;  %v3149_v52 = vld [vmem:[#allocation2 + $0x142] sm:$0xff] }
 0x69d   : > { %3618 = vrot.lane.b32.xlu1 %v3114_v26, %s12590_s24  ;;  %3492 = vrot.lane.b32.xlu0 %v10253_v55, %s8078_s23 }
 0x69e   : > { %7853 = vmatmul.mubr.msk.f32.gmra.mrb[28].mxu1 %vm4458_vm1, %v4423_v30  ;;  %v4198_v30 = vsel %vm441_vm0, %v9982_v56, %v10250_v17 }
 0x69f   : > { %v10266_v7 = vpop.permute.xlu1 %3350  ;;  %v10268_v11 = vpop.permute.xlu0 %3224 }
 0x6a1   : > { %4126 = vrot.lane.b32.xlu1 %v3146_v10, %s12580_s16  ;;  %4000 = vrot.lane.b32.xlu0 %v3115_v15, %s12582_s22 }
 0x6a3   : > { %v3859_v33 = vpop.permute.xlu1 %3858  ;;  %v3733_v22 = vpop.permute.xlu0 %3732 }
 0x6a4   : > { %v4358_v29 = vsel %vm4343_vm13, %v4325_v36, %v3859_v33  ;;  %v4326_v31 = vsel %vm4310_vm12, %v4293_v50, %v3733_v22  ;;  %v3150_v50 = vld [vmem:[#allocation2 + $0x152] sm:$0xff] }
 0x6a5   : > { %3620 = vrot.lane.b32.xlu1 %v3115_v15, %s12590_s24  ;;  %3238 = vrot.lane.b32.xlu0 %v3114_v26, %s12588_s14 }
 0x6a7   : > { %v10274_v54 = vpop.permute.xlu1 %3478  ;;  %v10276_v3 = vpop.permute.xlu0 %3352 }
 0x6a9   : > { %4128 = vrot.lane.b32.xlu1 %v3147_v48, %s12580_s16  ;;  %3746 = vrot.lane.b32.xlu0 %v3146_v10, %s12586_s27 }
 0x6ab   : > { %v3987_v38 = vpop.permute.xlu1 %3986  ;;  %v3861_v59 = vpop.permute.xlu0 %3860 }
 0x6ac   : > { %v4391_v61 = vsel %vm4376_vm14, %v4358_v29, %v3987_v38  ;;  %v4359_v43 = vsel %vm4343_vm13, %v4326_v31, %v3861_v59  ;;  %v10358_v38 = vld [vmem:[#allocation2 + $0x150] sm:$0xff] }
 0x6ad   : > { %3366 = vrot.lane.b32.xlu1 %v3146_v10, %s12592_s29  ;;  %3240 = vrot.lane.b32.xlu0 %v3115_v15, %s12588_s14  ;;  %v4230_v10 = vsel %vm1973_vm5, %v4198_v30, %v10266_v7  ;;  %v10424_v30 = vld [vmem:[#allocation2 + $0x168] sm:$0xff] }
 0x6ae   : > { %v4262_v15 = vsel %vm2039_vm7, %v4230_v10, %v10274_v54 }
 0x6af   : > { %v3607_v20 = vpop.permute.xlu1 %3606  ;;  %v10289_v19 = vpop.permute.xlu0 %3480 }
 0x6b1   : > { %v10295_v14 = vpop.f32.mrb[16].mxu1  ;;  %3874 = vrot.lane.b32.xlu1 %v10292_v5, %s12584_s28  ;;  %3748 = vrot.lane.b32.xlu0 %v3147_v48, %s12586_s27 }
 0x6b2   : > { %v10301_v2 = vpop.f32.mrb[17].mxu1 }
 0x6b3   : > { %v4115_v32 = vpop.permute.xlu1 %4114  ;;  %v3989_v60 = vpop.permute.xlu0 %3988 }
 0x6b4   : > { %v4424_v47 = vsel %vm4409_vm15, %v4391_v61, %v4115_v32  ;;  %v4392_v12 = vsel %vm4376_vm14, %v4359_v43, %v3989_v60  ;;  %v3118_v60 = vld [vmem:[#allocation2 + $0x151] sm:$0xff] }
 0x6b5   : > { %3494 = vrot.lane.b32.xlu1 %v10292_v5, %s8078_s23  ;;  %3368 = vrot.lane.b32.xlu0 %v3147_v48, %s12592_s29  ;;  %v4294_v48 = vsel %vm2105_vm9, %v4262_v15, %v3607_v20  ;;  %v4199_v20 = vsel %vm441_vm0, %v10005_v0, %v10268_v11  ;;  %v10385_v0 = vld [vmem:[#allocation2 + $0x158] sm:$0xff] }
 0x6b6   : > { %7855 = vmatprep.mubr.msk.f32.mxu1 %vm4458_vm1, %v4424_v47  ;;  %v4231_v24 = vsel %vm1973_vm5, %v4199_v20, %v10276_v3  ;;  %v3120_v20 = vld [vmem:[#allocation2 + $0x169] sm:$0xff] }
 0x6b7   : > { %v3609_v1 = vpop.permute.xlu1 %3608  ;;  %v10316_v35 = vpop.permute.xlu0 %3226  ;;  %v4263_v36 = vsel %vm2039_vm7, %v4231_v24, %v10289_v19 }
 0x6b8   : > { %v4295_v32 = vsel %vm2105_vm9, %v4263_v36, %v3609_v1 }
 0x6b9   : > { %4002 = vrot.lane.b32.xlu1 %v3116_v58, %s12582_s22  ;;  %3876 = vrot.lane.b32.xlu0 %v10319_v25, %s12584_s28 }
 0x6bb   : > { %v4117_v18 = vpop.permute.xlu1 %4116  ;;  %v3735_v44 = vpop.permute.xlu0 %3734 }
 0x6bc   : > { %v4425_v57 = vsel %vm4409_vm15, %v4392_v12, %v4117_v18  ;;  %v4327_v59 = vsel %vm4310_vm12, %v4294_v48, %v3735_v44  ;;  %v3151_v44 = vld [vmem:[#allocation2 + $0x15a] sm:$0xff] }
 0x6bd   : > { %3622 = vrot.lane.b32.xlu1 %v3116_v58, %s12590_s24  ;;  %3496 = vrot.lane.b32.xlu0 %v10319_v25, %s8078_s23 }
 0x6be   : > { %7856 = vmatmul.mubr.msk.f32.gmra.mrb[30].mxu1 %vm4458_vm1, %v4425_v57 }
 0x6bf   : > { %v10332_v39 = vpop.permute.xlu1 %3354  ;;  %v10334_v13 = vpop.permute.xlu0 %3228 }
 0x6c1   : > { %4130 = vrot.lane.b32.xlu1 %v3148_v34, %s12580_s16  ;;  %4004 = vrot.lane.b32.xlu0 %v3117_v62, %s12582_s22 }
 0x6c3   : > { %v3863_v23 = vpop.permute.xlu1 %3862  ;;  %v3737_v26 = vpop.permute.xlu0 %3736 }
 0x6c4   : > { %v4360_v17 = vsel %vm4343_vm13, %v4327_v59, %v3863_v23  ;;  %v4328_v11 = vsel %vm4310_vm12, %v4295_v32, %v3737_v26  ;;  %v4201_v59 = vsel %vm441_vm0, %v10067_v16, %v10334_v13  ;;  %v10451_v16 = vld [vmem:[#allocation2 + $0x170] sm:$0xff] }
 0x6c5   : > { %3624 = vrot.lane.b32.xlu1 %v3117_v62, %s12590_s24  ;;  %3242 = vrot.lane.b32.xlu0 %v3116_v58, %s12588_s14  ;;  %v3119_v58 = vld [vmem:[#allocation2 + $0x159] sm:$0xff] }
 0x6c7   : > { %v10340_v46 = vpop.permute.xlu1 %3482  ;;  %v10342_v42 = vpop.permute.xlu0 %3356 }
 0x6c9   : > { %4132 = vrot.lane.b32.xlu1 %v3149_v52, %s12580_s16  ;;  %3750 = vrot.lane.b32.xlu0 %v3148_v34, %s12586_s27 }
 0x6cb   : > { %v3991_v27 = vpop.permute.xlu1 %3990  ;;  %v3865_v9 = vpop.permute.xlu0 %3864 }
 0x6cc   : > { %v4393_v54 = vsel %vm4376_vm14, %v4360_v17, %v3991_v27  ;;  %v4361_v3 = vsel %vm4343_vm13, %v4328_v11, %v3865_v9  ;;  %v4233_v17 = vsel %vm1973_vm5, %v4201_v59, %v10342_v42  ;;  %v3152_v11 = vld [vmem:[#allocation2 + $0x16a] sm:$0xff] }
 0x6cd   : > { %3370 = vrot.lane.b32.xlu1 %v3148_v34, %s12592_s29  ;;  %3244 = vrot.lane.b32.xlu0 %v3117_v62, %s12588_s14  ;;  %v4200_v62 = vsel %vm441_vm0, %v10044_v4, %v10316_v35 }
 0x6ce   : > { %v4232_v23 = vsel %vm1973_vm5, %v4200_v62, %v10332_v39 }
 0x6cf   : > { %v3611_v33 = vpop.permute.xlu1 %3610  ;;  %v10355_v22 = vpop.permute.xlu0 %3484  ;;  %v4264_v26 = vsel %vm2039_vm7, %v4232_v23, %v10340_v46 }
 0x6d0   : > { %v4296_v9 = vsel %vm2105_vm9, %v4264_v26, %v3611_v33  ;;  %v3090_v26 = vld [vmem:[#allocation2 + $0x180] sm:$0xff] }
 0x6d1   : > { %v10361_v56 = vpop.f32.mrb[18].mxu1  ;;  %3878 = vrot.lane.b32.xlu1 %v10358_v38, %s12584_s28  ;;  %3752 = vrot.lane.b32.xlu0 %v3149_v52, %s12586_s27 }
 0x6d2   : > { %v10367_v7 = vpop.f32.mrb[19].mxu1 }
 0x6d3   : > { %v4119_v6 = vpop.permute.xlu1 %4118  ;;  %v3993_v53 = vpop.permute.xlu0 %3992 }
 0x6d4   : > { %v4426_v41 = vsel %vm4409_vm15, %v4393_v54, %v4119_v6  ;;  %v4394_v47 = vsel %vm4376_vm14, %v4361_v3, %v3993_v53  ;;  %v4265_v54 = vsel %vm2039_vm7, %v4233_v17, %v10355_v22  ;;  %v3121_v3 = vld [vmem:[#allocation2 + $0x171] sm:$0xff] }
 0x6d5   : > { %3498 = vrot.lane.b32.xlu1 %v10358_v38, %s8078_s23  ;;  %3372 = vrot.lane.b32.xlu0 %v3149_v52, %s12592_s29 }
 0x6d6   : > { %7858 = vmatprep.mubr.msk.f32.mxu1 %vm4458_vm1, %v4426_v41 }
 0x6d7   : > { %v3613_v29 = vpop.permute.xlu1 %3612  ;;  %v10382_v61 = vpop.permute.xlu0 %3230 }
 0x6d8   : > { %v4297_v41 = vsel %vm2105_vm9, %v4265_v54, %v3613_v29  ;;  %v3122_v54 = vld [vmem:[#allocation2 + $0x181] sm:$0xff] }
 0x6d9   : > { %4006 = vrot.lane.b32.xlu1 %v3118_v60, %s12582_s22  ;;  %3880 = vrot.lane.b32.xlu0 %v10385_v0, %s12584_s28 }
 0x6db   : > { %v4121_v19 = vpop.permute.xlu1 %4120  ;;  %v3739_v40 = vpop.permute.xlu0 %3738 }
 0x6dc   : > { %v4427_v45 = vsel %vm4409_vm15, %v4394_v47, %v4121_v19  ;;  %v4329_v10 = vsel %vm4310_vm12, %v4296_v9, %v3739_v40 }
 0x6dd   : > { %3626 = vrot.lane.b32.xlu1 %v3118_v60, %s12590_s24  ;;  %3500 = vrot.lane.b32.xlu0 %v10385_v0, %s8078_s23 }
 0x6de   : > { %7859 = vmatmul.mubr.msk.f32.gmra.mrb[32].mxu1 %vm4458_vm1, %v4427_v45 }
 0x6df   : > { %v10398_v21 = vpop.permute.xlu1 %3358  ;;  %v10400_v1 = vpop.permute.xlu0 %3232 }
 0x6e1   : > { %4134 = vrot.lane.b32.xlu1 %v3150_v50, %s12580_s16  ;;  %4008 = vrot.lane.b32.xlu0 %v3119_v58, %s12582_s22 }
 0x6e3   : > { %v3867_v31 = vpop.permute.xlu1 %3866  ;;  %v3741_v43 = vpop.permute.xlu0 %3740 }
 0x6e4   : > { %v4362_v35 = vsel %vm4343_vm13, %v4329_v10, %v3867_v31  ;;  %v4330_v13 = vsel %vm4310_vm12, %v4297_v41, %v3741_v43  ;;  %v4202_v43 = vsel %vm441_vm0, %v10106_v49, %v10382_v61 }
 0x6e5   : > { %3628 = vrot.lane.b32.xlu1 %v3119_v58, %s12590_s24  ;;  %3246 = vrot.lane.b32.xlu0 %v3118_v60, %s12588_s14 }
 0x6e7   : > { %v10406_v12 = vpop.permute.xlu1 %3486  ;;  %v10408_v18 = vpop.permute.xlu0 %3360 }
 0x6e9   : > { %4136 = vrot.lane.b32.xlu1 %v3151_v44, %s12580_s16  ;;  %3754 = vrot.lane.b32.xlu0 %v3150_v50, %s12586_s27 }
 0x6eb   : > { %v3995_v57 = vpop.permute.xlu1 %3994  ;;  %v3869_v34 = vpop.permute.xlu0 %3868 }
 0x6ec   : > { %v4395_v46 = vsel %vm4376_vm14, %v4362_v35, %v3995_v57  ;;  %v4363_v42 = vsel %vm4343_vm13, %v4330_v13, %v3869_v34 }
 0x6ed   : > { %3374 = vrot.lane.b32.xlu1 %v3150_v50, %s12592_s29  ;;  %3248 = vrot.lane.b32.xlu0 %v3119_v58, %s12588_s14  ;;  %v3153_v50 = vld [vmem:[#allocation2 + $0x172] sm:$0xff] }
 0x6ef   : > { %v3615_v52 = vpop.permute.xlu1 %3614  ;;  %v10421_v27 = vpop.permute.xlu0 %3488 }
 0x6f1   : > { %v10427_v4 = vpop.f32.mrb[20].mxu1  ;;  %3882 = vrot.lane.b32.xlu1 %v10424_v30, %s12584_s28  ;;  %3756 = vrot.lane.b32.xlu0 %v3151_v44, %s12586_s27 }
 0x6f2   : > { %v10433_v39 = vpop.f32.mrb[21].mxu1 }
 0x6f3   : > { %v4123_v15 = vpop.permute.xlu1 %4122  ;;  %v3997_v48 = vpop.permute.xlu0 %3996 }
 0x6f4   : > { %v4428_v33 = vsel %vm4409_vm15, %v4395_v46, %v4123_v15  ;;  %v4396_v24 = vsel %vm4376_vm14, %v4363_v42, %v3997_v48 }
 0x6f5   : > { %3502 = vrot.lane.b32.xlu1 %v10424_v30, %s8078_s23  ;;  %3376 = vrot.lane.b32.xlu0 %v3151_v44, %s12592_s29  ;;  %v4234_v44 = vsel %vm1973_vm5, %v4202_v43, %v10398_v21 }
 0x6f6   : > { %7861 = vmatprep.mubr.msk.f32.mxu1 %vm4458_vm1, %v4428_v33  ;;  %v4266_v57 = vsel %vm2039_vm7, %v4234_v44, %v10406_v12 }
 0x6f7   : > { %v3617_v6 = vpop.permute.xlu1 %3616  ;;  %v10448_v53 = vpop.permute.xlu0 %3234  ;;  %v4298_v23 = vsel %vm2105_vm9, %v4266_v57, %v3615_v52  ;;  %v4203_v52 = vsel %vm441_vm0, %v10129_v8, %v10400_v1  ;;  %v3091_v8 = vld [vmem:[#allocation2 + $0x188] sm:$0xff] }
 0x6f8   : > { %v4235_v15 = vsel %vm1973_vm5, %v4203_v52, %v10408_v18  ;;  %v4204_v43 = vsel %vm441_vm0, %v10168_v28, %v10448_v53  ;;  %v3125_v57 = vld [vmem:[#allocation2 + $0x1a1] sm:$0xff] }
 0x6f9   : > { %4010 = vrot.lane.b32.xlu1 %v3120_v20, %s12582_s22  ;;  %3884 = vrot.lane.b32.xlu0 %v10451_v16, %s12584_s28  ;;  %v4267_v48 = vsel %vm2039_vm7, %v4235_v15, %v10421_v27 }
 0x6fa   : > { %v4299_v17 = vsel %vm2105_vm9, %v4267_v48, %v3617_v6 }
 0x6fb   : > { %v4125_v22 = vpop.permute.xlu1 %4124  ;;  %v3743_v36 = vpop.permute.xlu0 %3742 }
 0x6fc   : > { %v4429_v32 = vsel %vm4409_vm15, %v4396_v24, %v4125_v22  ;;  %v4331_v9 = vsel %vm4310_vm12, %v4298_v23, %v3743_v36  ;;  %v3154_v24 = vld [vmem:[#allocation2 + $0x182] sm:$0xff]  ;;  %v3124_v23 = vld [vmem:[#allocation2 + $0x199] sm:$0xff] }
 0x6fd   : > { %3630 = vrot.lane.b32.xlu1 %v3120_v20, %s12590_s24  ;;  %3504 = vrot.lane.b32.xlu0 %v10451_v16, %s8078_s23  ;;  %v3123_v22 = vld [vmem:[#allocation2 + $0x189] sm:$0xff] }
 0x6fe   : > { %7862 = vmatmul.mubr.msk.f32.gmra.mrb[34].mxu1 %vm4458_vm1, %v4429_v32 }
 0x6ff   : > { %v10464_v29 = vpop.permute.xlu1 %3362  ;;  %v10466_v60 = vpop.permute.xlu0 %3236 }
 0x700   : > { %v4236_v44 = vsel %vm1973_vm5, %v4204_v43, %v10464_v29  ;;  %v4205_v48 = vsel %vm441_vm0, %v10191_v51, %v10466_v60 }
 0x701   : > { %4138 = vrot.lane.b32.xlu1 %v3152_v11, %s12580_s16  ;;  %4012 = vrot.lane.b32.xlu0 %v3121_v3, %s12582_s22 }
 0x703   : > { %v3871_v47 = vpop.permute.xlu1 %3870  ;;  %v3745_v19 = vpop.permute.xlu0 %3744 }
 0x704   : > { %v4364_v61 = vsel %vm4343_vm13, %v4331_v9, %v3871_v47  ;;  %v4332_v1 = vsel %vm4310_vm12, %v4299_v17, %v3745_v19  ;;  %v3061_v47 = vld [vmem:[#allocation2 + $0x18a] sm:$0xff]  ;;  %v3093_v19 = vld [vmem:[#allocation2 + $0x1a0] sm:$0xff] }
 0x705   : > { %3632 = vrot.lane.b32.xlu1 %v3121_v3, %s12590_s24  ;;  %3250 = vrot.lane.b32.xlu0 %v3120_v20, %s12588_s14 }
 0x707   : > { %v10472_v40 = vpop.permute.xlu1 %3490  ;;  %v10474_v45 = vpop.permute.xlu0 %3364 }
 0x708   : > { %v4237_v17 = vsel %vm1973_vm5, %v4205_v48, %v10474_v45 }
 0x709   : > { %4140 = vrot.lane.b32.xlu1 %v3153_v50, %s12580_s16  ;;  %3758 = vrot.lane.b32.xlu0 %v3152_v11, %s12586_s27 }
 0x70b   : > { %v3999_v58 = vpop.permute.xlu1 %3998  ;;  %v3873_v31 = vpop.permute.xlu0 %3872 }
 0x70c   : > { %v4397_v12 = vsel %vm4376_vm14, %v4364_v61, %v3999_v58  ;;  %v4365_v18 = vsel %vm4343_vm13, %v4332_v1, %v3873_v31 }
 0x70d   : > { %3378 = vrot.lane.b32.xlu1 %v3152_v11, %s12592_s29  ;;  %3252 = vrot.lane.b32.xlu0 %v3121_v3, %s12588_s14 }
 0x70f   : > { %v10487_v34 = vpop.permute.xlu1 %3618  ;;  %v10489_v62 = vpop.permute.xlu0 %3492 }
 0x711   : > { %v10493_v49 = vpop.f32.mrb[22].mxu1  ;;  %3886 = vrot.lane.b32.xlu1 %v3090_v26, %s12584_s28  ;;  %3760 = vrot.lane.b32.xlu0 %v3153_v50, %s12586_s27 }
 0x712   : > { %v10498_v21 = vpop.f32.mrb[23].mxu1 }
 0x713   : > { %v4127_v10 = vpop.permute.xlu1 %4126  ;;  %v4001_v35 = vpop.permute.xlu0 %4000 }
 0x714   : > { %v4430_v46 = vsel %vm4409_vm15, %v4397_v12, %v4127_v10  ;;  %v4398_v41 = vsel %vm4376_vm14, %v4365_v18, %v4001_v35  ;;  %v3157_v35 = vld [vmem:[#allocation2 + $0x1a2] sm:$0xff] }
 0x715   : > { %3506 = vrot.lane.b32.xlu1 %v3090_v26, %s8078_s23  ;;  %3380 = vrot.lane.b32.xlu0 %v3153_v50, %s12592_s29  ;;  %v3092_v50 = vld [vmem:[#allocation2 + $0x198] sm:$0xff]  ;;  %v4268_v26 = vsel %vm2039_vm7, %v4236_v44, %v10472_v40 }
 0x716   : > { %7864 = vmatprep.mubr.msk.f32.mxu1 %vm4458_vm1, %v4430_v46  ;;  %v4300_v12 = vsel %vm2105_vm9, %v4268_v26, %v10487_v34  ;;  %v3156_v46 = vld [vmem:[#allocation2 + $0x19a] sm:$0xff] }
 0x717   : > { %v10512_v33 = vpop.permute.xlu1 %3620  ;;  %v10514_v59 = vpop.permute.xlu0 %3238 }
 0x719   : > { %4014 = vrot.lane.b32.xlu1 %v3122_v54, %s12582_s22  ;;  %3888 = vrot.lane.b32.xlu0 %v3091_v8, %s12584_s28 }
 0x71b   : > { %v4129_v20 = vpop.permute.xlu1 %4128  ;;  %v3747_v27 = vpop.permute.xlu0 %3746 }
 0x71c   : > { %v4431_v13 = vsel %vm4409_vm15, %v4398_v41, %v4129_v20  ;;  %v4333_v10 = vsel %vm4310_vm12, %v4300_v12, %v3747_v27 }
 0x71d   : > { %3634 = vrot.lane.b32.xlu1 %v3122_v54, %s12590_s24  ;;  %3508 = vrot.lane.b32.xlu0 %v3091_v8, %s8078_s23  ;;  %v4269_v54 = vsel %vm2039_vm7, %v4237_v17, %v10489_v62 }
 0x71e   : > { %7865 = vmatmul.mubr.msk.f32.gmra.mrb[36].mxu1 %vm4458_vm1, %v4431_v13  ;;  %v4301_v18 = vsel %vm2105_vm9, %v4269_v54, %v10512_v33 }
 0x71f   : > { %v10526_v6 = vpop.permute.xlu1 %3366  ;;  %v10528_v42 = vpop.permute.xlu0 %3240 }
 0x721   : > { %4142 = vrot.lane.b32.xlu1 %v3154_v24, %s12580_s16  ;;  %4016 = vrot.lane.b32.xlu0 %v3123_v22, %s12582_s22 }
 0x723   : > { %v3875_v36 = vpop.permute.xlu1 %3874  ;;  %v3749_v32 = vpop.permute.xlu0 %3748 }
 0x724   : > { %v4366_v53 = vsel %vm4343_vm13, %v4333_v10, %v3875_v36  ;;  %v4334_v41 = vsel %vm4310_vm12, %v4301_v18, %v3749_v32  ;;  %v4206_v32 = vsel %vm441_vm0, %v10230_v63, %v10514_v59 }
 0x725   : > { %3762 = vrot.lane.b32.xlu1 %v3154_v24, %s12586_s27  ;;  %3636 = vrot.lane.b32.xlu0 %v3123_v22, %s12590_s24  ;;  %s12595_s24 = smov 8  }
 0x727   : > { %v3495_v11 = vpop.permute.xlu1 %3494  ;;  %v10534_v3 = vpop.permute.xlu0 %3368 }
 0x729   : > { %3764 = vrot.lane.b32.xlu1 %v3061_v47, %s12586_s27  ;;  %4144 = vrot.lane.b32.xlu0 %v3061_v47, %s12580_s16 }
 0x72b   : > { %v4003_v58 = vpop.permute.xlu1 %4002  ;;  %v3877_v31 = vpop.permute.xlu0 %3876 }
 0x72c   : > { %v4399_v40 = vsel %vm4376_vm14, %v4366_v53, %v4003_v58  ;;  %v4367_v51 = vsel %vm4343_vm13, %v4334_v41, %v3877_v31 }
 0x72d   : > { %3892 = vrot.lane.b32.xlu1 %v3093_v19, %s12584_s28  ;;  %3890 = vrot.lane.b32.xlu0 %v3092_v50, %s12584_s28  ;;  %v4238_v50 = vsel %vm1973_vm5, %v4206_v32, %v10526_v6 }
 0x72e   : > { %v4270_v58 = vsel %vm2039_vm7, %v4238_v50, %v3495_v11  ;;  %v4207_v11 = vsel %vm441_vm0, %v10253_v55, %v10528_v42 }
 0x72f   : > { %v3623_v9 = vpop.permute.xlu1 %3622  ;;  %v3497_v61 = vpop.permute.xlu0 %3496 }
 0x730   : > { %v4302_v44 = vsel %vm2105_vm9, %v4270_v58, %v3623_v9  ;;  %v4239_v9 = vsel %vm1973_vm5, %v4207_v11, %v10534_v3 }
 0x731   : > { %v10550_v28 = vpop.f32.mrb[24].mxu1  ;;  %4020 = vrot.lane.b32.xlu1 %v3125_v57, %s12582_s22  ;;  %4018 = vrot.lane.b32.xlu0 %v3124_v23, %s12582_s22  ;;  %v4271_v53 = vsel %vm2039_vm7, %v4239_v9, %v3497_v61 }
 0x732   : > { %v10555_v29 = vpop.f32.mrb[25].mxu1 }
 0x733   : > { %v4131_v52 = vpop.permute.xlu1 %4130  ;;  %v4005_v15 = vpop.permute.xlu0 %4004 }
 0x734   : > { %v4432_v34 = vsel %vm4409_vm15, %v4399_v40, %v4131_v52  ;;  %v4400_v60 = vsel %vm4376_vm14, %v4367_v51, %v4005_v15 }
 0x735   : > { %4148 = vrot.lane.b32.xlu1 %v3157_v35, %s12580_s16  ;;  %4146 = vrot.lane.b32.xlu0 %v3156_v46, %s12580_s16 }
 0x736   : > { %7867 = vmatprep.mubr.msk.f32.mxu1 %vm4458_vm1, %v4432_v34 }
 0x737   : > { %v3625_v8 = vpop.permute.xlu1 %3624  ;;  %v3243_v1 = vpop.permute.xlu0 %3242 }
 0x738   : > { %v4303_v40 = vsel %vm2105_vm9, %v4271_v53, %v3625_v8 }
 0x73b   : > { %v4133_v20 = vpop.permute.xlu1 %4132  ;;  %v3751_v27 = vpop.permute.xlu0 %3750 }
 0x73c   : > { %v4433_v45 = vsel %vm4409_vm15, %v4400_v60, %v4133_v20  ;;  %v4335_v57 = vsel %vm4310_vm12, %v4302_v44, %v3751_v27  ;;  %v4208_v60 = vsel %vm441_vm0, %v10292_v5, %v3243_v1 }
 0x73d   : > { %7868 = vmatmul.mubr.msk.f32.gmra.mrb[38].mxu1 %vm4458_vm1, %v4433_v45 }
 0x73f   : > { %v3371_v13 = vpop.permute.xlu1 %3370  ;;  %v3245_v24 = vpop.permute.xlu0 %3244 }
 0x740   : > { %v4240_v20 = vsel %vm1973_vm5, %v4208_v60, %v3371_v13  ;;  %v4209_v13 = vsel %vm441_vm0, %v10319_v25, %v3245_v24 }
 0x743   : > { %v3879_v62 = vpop.permute.xlu1 %3878  ;;  %v3753_v22 = vpop.permute.xlu0 %3752 }
 0x744   : > { %v4368_v26 = vsel %vm4343_vm13, %v4335_v57, %v3879_v62  ;;  %v4336_v52 = vsel %vm4310_vm12, %v4303_v40, %v3753_v22 }
 0x747   : > { %v3499_v36 = vpop.permute.xlu1 %3498  ;;  %v3373_v47 = vpop.permute.xlu0 %3372 }
 0x748   : > { %v4272_v27 = vsel %vm2039_vm7, %v4240_v20, %v3499_v36  ;;  %v4241_v36 = vsel %vm1973_vm5, %v4209_v13, %v3373_v47 }
 0x74b   : > { %v4007_v19 = vpop.permute.xlu1 %4006  ;;  %v3881_v33 = vpop.permute.xlu0 %3880 }
 0x74c   : > { %v4401_v10 = vsel %vm4376_vm14, %v4368_v26, %v4007_v19  ;;  %v4369_v15 = vsel %vm4343_vm13, %v4336_v52, %v3881_v33 }
 0x74f   : > { %v3627_v31 = vpop.permute.xlu1 %3626  ;;  %v3501_v43 = vpop.permute.xlu0 %3500 }
 0x750   : > { %v4304_v22 = vsel %vm2105_vm9, %v4272_v27, %v3627_v31  ;;  %v4273_v31 = vsel %vm2039_vm7, %v4241_v36, %v3501_v43 }
 0x751   : > { %v10584_v23 = vpop.f32.mrb[26].mxu1 }
 0x752   : > { %v10587_v12 = vpop.f32.mrb[27].mxu1 }
 0x753   : > { %v4135_v63 = vpop.permute.xlu1 %4134  ;;  %v4009_v59 = vpop.permute.xlu0 %4008 }
 0x754   : > { %v4434_v6 = vsel %vm4409_vm15, %v4401_v10, %v4135_v63  ;;  %v4402_v34 = vsel %vm4376_vm14, %v4369_v15, %v4009_v59 }
 0x755   : > { %7870 = vmatprep.mubr.msk.f32.mxu1 %vm4458_vm1, %v4434_v6 }
 0x757   : > { %v3629_v35 = vpop.permute.xlu1 %3628  ;;  %v3247_v46 = vpop.permute.xlu0 %3246 }
 0x758   : > { %v4305_v10 = vsel %vm2105_vm9, %v4273_v31, %v3629_v35 }
 0x75b   : > { %v4137_v48 = vpop.permute.xlu1 %4136  ;;  %v3755_v17 = vpop.permute.xlu0 %3754 }
 0x75c   : > { %v4435_v55 = vsel %vm4409_vm15, %v4402_v34, %v4137_v48  ;;  %v4337_v19 = vsel %vm4310_vm12, %v4304_v22, %v3755_v17  ;;  %v4210_v34 = vsel %vm441_vm0, %v10358_v38, %v3247_v46 }
 0x75d   : > { %7871 = vmatmul.mubr.msk.f32.gmra.mrb[40].mxu1 %vm4458_vm1, %v4435_v55 }
 0x75f   : > { %v3375_v42 = vpop.permute.xlu1 %3374  ;;  %v3249_v3 = vpop.permute.xlu0 %3248 }
 0x760   : > { %v4242_v48 = vsel %vm1973_vm5, %v4210_v34, %v3375_v42  ;;  %v4211_v42 = vsel %vm441_vm0, %v10385_v0, %v3249_v3 }
 0x763   : > { %v3883_v54 = vpop.permute.xlu1 %3882  ;;  %v3757_v61 = vpop.permute.xlu0 %3756 }
 0x764   : > { %v4370_v32 = vsel %vm4343_vm13, %v4337_v19, %v3883_v54  ;;  %v4338_v63 = vsel %vm4310_vm12, %v4305_v10, %v3757_v61 }
 0x767   : > { %v3503_v18 = vpop.permute.xlu1 %3502  ;;  %v3377_v41 = vpop.permute.xlu0 %3376 }
 0x768   : > { %v4274_v17 = vsel %vm2039_vm7, %v4242_v48, %v3503_v18  ;;  %v4243_v18 = vsel %vm1973_vm5, %v4211_v42, %v3377_v41 }
 0x76b   : > { %v4011_v51 = vpop.permute.xlu1 %4010  ;;  %v3885_v8 = vpop.permute.xlu0 %3884 }
 0x76c   : > { %v4403_v58 = vsel %vm4376_vm14, %v4370_v32, %v4011_v51  ;;  %v4371_v59 = vsel %vm4343_vm13, %v4338_v63, %v3885_v8 }
 0x76f   : > { %v3631_v45 = vpop.permute.xlu1 %3630  ;;  %v3505_v62 = vpop.permute.xlu0 %3504 }
 0x770   : > { %v4306_v61 = vsel %vm2105_vm9, %v4274_v17, %v3631_v45  ;;  %v4275_v45 = vsel %vm2039_vm7, %v4243_v18, %v3505_v62 }
 0x771   : > { %v10610_v33 = vpop.f32.mrb[28].mxu1 }
 0x772   : > { %v10613_v50 = vpop.f32.mrb[29].mxu1 }
 0x773   : > { %v4139_v44 = vpop.permute.xlu1 %4138  ;;  %v4013_v5 = vpop.permute.xlu0 %4012 }
 0x774   : > { %v4436_v1 = vsel %vm4409_vm15, %v4403_v58, %v4139_v44  ;;  %v4404_v6 = vsel %vm4376_vm14, %v4371_v59, %v4013_v5 }
 0x775   : > { %7873 = vmatprep.mubr.msk.f32.mxu1 %vm4458_vm1, %v4436_v1 }
 0x777   : > { %v3633_v57 = vpop.permute.xlu1 %3632  ;;  %v3251_v26 = vpop.permute.xlu0 %3250 }
 0x778   : > { %v4307_v58 = vsel %vm2105_vm9, %v4275_v45, %v3633_v57  ;;  %v4212_v62 = vsel %vm441_vm0, %v10424_v30, %v3251_v26 }
 0x77b   : > { %v4141_v11 = vpop.permute.xlu1 %4140  ;;  %v3759_v9 = vpop.permute.xlu0 %3758 }
 0x77c   : > { %v4437_v25 = vsel %vm4409_vm15, %v4404_v6, %v4141_v11  ;;  %v4339_v51 = vsel %vm4310_vm12, %v4306_v61, %v3759_v9  ;;  %v5205_v61 = vld [vmem:[#allocation2 + $0x1] sm:$0xff] }
 0x77d   : > { %7874 = vmatmul.mubr.msk.f32.gmra.mrb[42].mxu1 %vm4458_vm1, %v4437_v25  ;;  %5493 = vrot.lane.b32.xlu0 %v5205_v61, %s12588_s14 }
 0x77f   : > { %v3379_v24 = vpop.permute.xlu1 %3378  ;;  %v3253_v47 = vpop.permute.xlu0 %3252 }
 0x780   : > { %v4213_v31 = vsel %vm441_vm0, %v10451_v16, %v3253_v47  ;;  %v4244_v57 = vsel %vm1973_vm5, %v4212_v62, %v3379_v24 }
 0x783   : > { %v3887_v53 = vpop.permute.xlu1 %3886  ;;  %v3761_v43 = vpop.permute.xlu0 %3760 }
 0x784   : > { %v4372_v60 = vsel %vm4343_vm13, %v4339_v51, %v3887_v53  ;;  %v4340_v44 = vsel %vm4310_vm12, %v4307_v58, %v3761_v43  ;;  %v5206_v51 = vld [vmem:[#allocation2 + $0x9] sm:$0xff] }
 0x785   : > { %5495 = vrot.lane.b32.xlu1 %v5206_v51, %s12588_s14  ;;  %s12594_s14 = smov 32  }
 0x787   : > { %v3507_v40 = vpop.permute.xlu1 %3506  ;;  %v3381_v52 = vpop.permute.xlu0 %3380 }
 0x788   : > { %v4245_v10 = vsel %vm1973_vm5, %v4213_v31, %v3381_v52  ;;  %v4276_v63 = vsel %vm2039_vm7, %v4244_v57, %v3507_v40 }
 0x78b   : > { %v4015_v15 = vpop.permute.xlu1 %4014  ;;  %v3889_v35 = vpop.permute.xlu0 %3888 }
 0x78c   : > { %v4405_v27 = vsel %vm4376_vm14, %v4372_v60, %v4015_v15  ;;  %v4373_v5 = vsel %vm4343_vm13, %v4340_v44, %v3889_v35  ;;  %v5237_v60 = vld [vmem:[#allocation2 + $0x2] sm:$0xff] }
 0x78d   : > { %5621 = vrot.lane.b32.xlu0 %v5237_v60, %s12592_s29 }
 0x78f   : > { %v3635_v55 = vpop.permute.xlu1 %3634  ;;  %v3509_v54 = vpop.permute.xlu0 %3508 }
 0x790   : > { %v4277_v59 = vsel %vm2039_vm7, %v4245_v10, %v3509_v54  ;;  %v4308_v9 = vsel %vm2105_vm9, %v4276_v63, %v3635_v55 }
 0x791   : > { %v10634_v8 = vpop.f32.mrb[30].mxu1 }
 0x792   : > { %v10637_v20 = vpop.f32.mrb[31].mxu1 }
 0x793   : > { %v4143_v22 = vpop.permute.xlu1 %4142  ;;  %v4017_v38 = vpop.permute.xlu0 %4016 }
 0x794   : > { %v4438_v46 = vsel %vm4409_vm15, %v4405_v27, %v4143_v22  ;;  %v4406_v1 = vsel %vm4376_vm14, %v4373_v5, %v4017_v38  ;;  %v5238_v27 = vld [vmem:[#allocation2 + $0xa] sm:$0xff] }
 0x795   : > { %7876 = vmatprep.mubr.msk.f32.mxu1 %vm4458_vm1, %v4438_v46  ;;  %5623 = vrot.lane.b32.xlu1 %v5238_v27, %s12592_s29  ;;  %v10695_v46 = vld [vmem:[%s12567_s6] ss:$0 sm:$0xff] }
 0x796   : > { %v10699_v42 = vadd.f32 %v10295_v14, %v10695_v46  ;;  %v10703_v18 = vadd.f32 %v10695_v46, %v10301_v2  ;;  %v10707_v45 = vadd.f32 %v10695_v46, %v10367_v7  ;;  %v10723_v5 = vadd.f32 %v10361_v56, %v10695_v46 }
 0x797   : > { %v3763_v19 = vpop.permute.xlu1 %3762  ;;  %v3637_v32 = vpop.permute.xlu0 %3636 }
 0x798   : > { %v4309_v25 = vsel %vm2105_vm9, %v4277_v59, %v3637_v32  ;;  %v4341_v53 = vsel %vm4310_vm12, %v4308_v9, %v3763_v19  ;;  %v4850_v19 = vmul.f32 %v10699_v42, %v10699_v42  ;;  %v4849_v32 = vmul.f32 %v10703_v18, %v10703_v18 }
 0x799   : > { %v4781_v58 = vsel %vm441_vm0, %v10699_v42, 0.0  ;;  %v4780_v14 = vsel %vm441_vm0, %v10703_v18, 0.0  ;;  %v4851_v2 = vmul.f32 %v10707_v45, %v10707_v45  ;;  %v4852_v62 = vmul.f32 %v10723_v5, %v10723_v5 }
 0x79a   : > { %v4882_v44 = vsel %vm441_vm0, %v4850_v19, 0.0  ;;  %v4881_v7 = vsel %vm441_vm0, %v4849_v32, 0.0  ;;  %v4785_v10 = vsel %vm441_vm0, %v10723_v5, 0.0  ;;  %v10748_v59 = vadd.f32 %v10695_v46, %v10498_v21 }
 0x79b   : > { %v3765_v13 = vpop.permute.xlu1 %3764  ;;  %v4145_v36 = vpop.permute.xlu0 %4144  ;;  %v4886_v9 = vsel %vm441_vm0, %v4852_v62, 0.0  ;;  %v10804_v62 = vadd.f32 %v10695_v46, %v10613_v50  ;;  %v10816_v50 = vadd.f32 %v10610_v33, %v10695_v46 }
 0x79c   : > { %v4439_v0 = vsel %vm4409_vm15, %v4406_v1, %v4145_v36  ;;  %v4342_v30 = vsel %vm4310_vm12, %v4309_v25, %v3765_v13  ;;  %v4783_v1 = vsel %vm441_vm0, %v10707_v45, 0.0  ;;  %v10729_v13 = vadd.f32 %v10695_v46, %v10433_v39 }
 0x79d   : > { %7877 = vmatmul.mubr.msk.f32.gmra.mrb[44].mxu1 %vm4458_vm1, %v4439_v0  ;;  %v4782_v36 = vadd.f32 %v4781_v58, %v4780_v14  ;;  %v4884_v0 = vsel %vm441_vm0, %v4851_v2, 0.0  ;;  %v10742_v39 = vadd.f32 %v10427_v4, %v10695_v46  ;;  %v10786_v58 = vadd.f32 %v10695_v46, %v10587_v12 }
 0x79e   : > { %v4853_v31 = vmul.f32 %v10729_v13, %v10729_v13  ;;  %v4787_v63 = vsel %vm441_vm0, %v10729_v13, 0.0  ;;  %v10798_v12 = vadd.f32 %v10584_v23, %v10695_v46  ;;  %v4861_v23 = vmul.f32 %v10804_v62, %v10804_v62 }
 0x79f   : > { %v3893_v3 = vpop.permute.xlu1 %3892  ;;  %v3891_v41 = vpop.permute.xlu0 %3890  ;;  %v4854_v4 = vmul.f32 %v10742_v39, %v10742_v39  ;;  %v4789_v21 = vsel %vm441_vm0, %v10742_v39, 0.0 }
 0x7a0   : > { %v4375_v16 = vsel %vm4343_vm13, %v4342_v30, %v3893_v3  ;;  %v4374_v26 = vsel %vm4343_vm13, %v4341_v53, %v3891_v41  ;;  %v4883_v3 = vadd.f32 %v4882_v44, %v4881_v7  ;;  %v4784_v41 = vadd.f32 %v4783_v1, %v4782_v36 }
 0x7a1   : > { %v4888_v25 = vsel %vm441_vm0, %v4853_v31, 0.0 }
 0x7a2   : > { %v4885_v56 = vadd.f32 %v4884_v0, %v4883_v3 }
 0x7a3   : > { %v4021_v6 = vpop.permute.xlu1 %4020  ;;  %v4019_v11 = vpop.permute.xlu0 %4018 }
 0x7a4   : > { %v4408_v24 = vsel %vm4376_vm14, %v4375_v16, %v4021_v6  ;;  %v4407_v47 = vsel %vm4376_vm14, %v4374_v26, %v4019_v11  ;;  %v4786_v11 = vadd.f32 %v4785_v10, %v4784_v41  ;;  %v4887_v30 = vadd.f32 %v4886_v9, %v4885_v56 }
 0x7a5   : > { %v4855_v16 = vmul.f32 %v10748_v59, %v10748_v59  ;;  %v4799_v41 = vsel %vm441_vm0, %v10786_v58, 0.0  ;;  %v4860_v9 = vmul.f32 %v10798_v12, %v10798_v12 }
 0x7a6   : > { %v4788_v53 = vadd.f32 %v4787_v63, %v4786_v11  ;;  %v4889_v26 = vadd.f32 %v4888_v25, %v4887_v30  ;;  %v4803_v30 = vsel %vm441_vm0, %v10804_v62, 0.0 }
 0x7a7   : > { %v4149_v43 = vpop.permute.xlu1 %4148  ;;  %v4147_v40 = vpop.permute.xlu0 %4146 }
 0x7a8   : > { %v4441_v52 = vsel %vm4409_vm15, %v4408_v24, %v4149_v43  ;;  %v4440_v15 = vsel %vm4409_vm15, %v4407_v47, %v4147_v40  ;;  %v10762_v24 = vadd.f32 %v10493_v49, %v10695_v46  ;;  %v4791_v47 = vsel %vm441_vm0, %v10748_v59, 0.0 }
 0x7a9   : > { %7879 = vmatprep.mubr.msk.f32.mxu1 %vm4458_vm1, %v4440_v15  ;;  %v10768_v43 = vadd.f32 %v10695_v46, %v10555_v29  ;;  %v4790_v40 = vadd.f32 %v4789_v21, %v4788_v53  ;;  %v4892_v15 = vsel %vm441_vm0, %v4855_v16, 0.0  ;;  %v10780_v29 = vadd.f32 %v10550_v28, %v10695_v46 }
 0x7aa   : > { %7880 = vmatmul.mubr.msk.f32.gmra.mrb[46].mxu1 %vm4458_vm1, %v4441_v52  ;;  %v4890_v52 = vsel %vm441_vm0, %v4854_v4, 0.0  ;;  %v4856_v60 = vmul.f32 %v10762_v24, %v10762_v24  ;;  %v4793_v19 = vsel %vm441_vm0, %v10762_v24, 0.0  ;;  %v4859_v28 = vmul.f32 %v10786_v58, %v10786_v58 }
 0x7ab   : > { %v4792_v61 = vadd.f32 %v4791_v47, %v4790_v40  ;;  %v4891_v51 = vadd.f32 %v4890_v52, %v4889_v26  ;;  %v4857_v49 = vmul.f32 %v10768_v43, %v10768_v43  ;;  %v4795_v32 = vsel %vm441_vm0, %v10768_v43, 0.0 }
 0x7ac   : > { %v4894_v2 = vsel %vm441_vm0, %v4856_v60, 0.0  ;;  %v4858_v36 = vmul.f32 %v10780_v29, %v10780_v29  ;;  %v4797_v3 = vsel %vm441_vm0, %v10780_v29, 0.0  ;;  %v4900_v10 = vsel %vm441_vm0, %v4859_v28, 0.0 }
 0x7ad   : > { %v4893_v27 = vadd.f32 %v4892_v15, %v4891_v51  ;;  %v4794_v14 = vadd.f32 %v4793_v19, %v4792_v61  ;;  %v4896_v44 = vsel %vm441_vm0, %v4857_v49, 0.0  ;;  %v4801_v53 = vsel %vm441_vm0, %v10798_v12, 0.0 }
 0x7ae   : > { %v4898_v56 = vsel %vm441_vm0, %v4858_v36, 0.0  ;;  %v10822_v4 = vadd.f32 %v10695_v46, %v10637_v20  ;;  %v4902_v26 = vsel %vm441_vm0, %v4860_v9, 0.0  ;;  %v4904_v21 = vsel %vm441_vm0, %v4861_v23, 0.0 }
 0x7af   : > { %v4796_v7 = vadd.f32 %v4795_v32, %v4794_v14  ;;  %v4895_v1 = vadd.f32 %v4894_v2, %v4893_v27  ;;  %v4862_v52 = vmul.f32 %v10816_v50, %v10816_v50  ;;  %v4805_v61 = vsel %vm441_vm0, %v10816_v50, 0.0 }
 0x7b0   : > { %v4863_v33 = vmul.f32 %v10822_v4, %v10822_v4  ;;  %v10834_v20 = vadd.f32 %v10634_v8, %v10695_v46  ;;  %v4807_v51 = vsel %vm441_vm0, %v10822_v4, 0.0 }
 0x7b1   : > { %v10672_v35 = vpop.f32.mrb[32].mxu1  ;;  %v4897_v0 = vadd.f32 %v4896_v44, %v4895_v1  ;;  %v4798_v31 = vadd.f32 %v4797_v3, %v4796_v7  ;;  %v4906_v19 = vsel %vm441_vm0, %v4862_v52, 0.0 }
 0x7b2   : > { %v10674_v34 = vpop.f32.mrb[33].mxu1  ;;  %v4908_v32 = vsel %vm441_vm0, %v4863_v33, 0.0  ;;  %v4864_v8 = vmul.f32 %v10834_v20, %v10834_v20  ;;  %v10854_v36 = vadd.f32 %v10672_v35, %v10695_v46 }
 0x7b3   : > { %v4800_v63 = vadd.f32 %v4799_v41, %v4798_v31  ;;  %v4899_v11 = vadd.f32 %v4898_v56, %v4897_v0  ;;  %v10840_v60 = vadd.f32 %v10695_v46, %v10674_v34  ;;  %v4809_v34 = vsel %vm441_vm0, %v10834_v20, 0.0 }
 0x7b4   : > { %v4910_v41 = vsel %vm441_vm0, %v4864_v8, 0.0  ;;  %v4813_v9 = vsel %vm441_vm0, %v10854_v36, 0.0 }
 0x7b5   : > { %v4901_v25 = vadd.f32 %v4900_v10, %v4899_v11  ;;  %v4802_v16 = vadd.f32 %v4801_v53, %v4800_v63  ;;  %v4865_v7 = vmul.f32 %v10840_v60, %v10840_v60  ;;  %v4811_v28 = vsel %vm441_vm0, %v10840_v60, 0.0 }
 0x7b6   : > { %v4866_v63 = vmul.f32 %v10854_v36, %v10854_v36 }
 0x7b7   : > { %v4804_v47 = vadd.f32 %v4803_v30, %v4802_v16  ;;  %v4903_v40 = vadd.f32 %v4902_v26, %v4901_v25  ;;  %v4912_v31 = vsel %vm441_vm0, %v4865_v7, 0.0 }
 0x7b8   : > { %v4914_v30 = vsel %vm441_vm0, %v4866_v63, 0.0 }
 0x7b9   : > { %v4905_v15 = vadd.f32 %v4904_v21, %v4903_v40  ;;  %v4806_v49 = vadd.f32 %v4805_v61, %v4804_v47 }
 0x7bb   : > { %v4808_v2 = vadd.f32 %v4807_v51, %v4806_v49  ;;  %v4907_v44 = vadd.f32 %v4906_v19, %v4905_v15 }
 0x7bd   : > { %v4909_v1 = vadd.f32 %v4908_v32, %v4907_v44  ;;  %v4810_v3 = vadd.f32 %v4809_v34, %v4808_v2 }
 0x7bf   : > { %v4812_v56 = vadd.f32 %v4811_v28, %v4810_v3  ;;  %v4911_v10 = vadd.f32 %v4910_v41, %v4909_v1 }
 0x7c1   : > { %v4913_v11 = vadd.f32 %v4912_v31, %v4911_v10  ;;  %v4814_v53 = vadd.f32 %v4813_v9, %v4812_v56 }
 0x7c3   : > { %v4915_v21 = vadd.f32 %v4914_v30, %v4913_v11 }
 0x7d1   : > { %v10676_v48 = vpop.f32.mrb[34].mxu1 }
 0x7d2   : > { %v10678_v17 = vpop.f32.mrb[35].mxu1 }
 0x7d3   : > { %v10860_v0 = vadd.f32 %v10695_v46, %v10678_v17  ;;  %v10872_v17 = vadd.f32 %v10676_v48, %v10695_v46 }
 0x7d5   : > { %v4867_v35 = vmul.f32 %v10860_v0, %v10860_v0  ;;  %v4815_v23 = vsel %vm441_vm0, %v10860_v0, 0.0  ;;  %v4868_v47 = vmul.f32 %v10872_v17, %v10872_v17  ;;  %v4817_v52 = vsel %vm441_vm0, %v10872_v17, 0.0 }
 0x7d6   : > { %v4816_v26 = vadd.f32 %v4815_v23, %v4814_v53 }
 0x7d7   : > { %v4916_v16 = vsel %vm441_vm0, %v4867_v35, 0.0  ;;  %v4918_v51 = vsel %vm441_vm0, %v4868_v47, 0.0 }
 0x7d8   : > { %v4917_v40 = vadd.f32 %v4916_v16, %v4915_v21  ;;  %v4818_v61 = vadd.f32 %v4817_v52, %v4816_v26 }
 0x7da   : > { %v4919_v32 = vadd.f32 %v4918_v51, %v4917_v40 }
 0x7f1   : > { %v10680_v55 = vpop.f32.mrb[36].mxu1 }
 0x7f2   : > { %v10682_v54 = vpop.f32.mrb[37].mxu1 }
 0x7f3   : > { %v10878_v25 = vadd.f32 %v10695_v46, %v10682_v54  ;;  %v10890_v54 = vadd.f32 %v10680_v55, %v10695_v46 }
 0x7f5   : > { %v4869_v48 = vmul.f32 %v10878_v25, %v10878_v25  ;;  %v4819_v33 = vsel %vm441_vm0, %v10878_v25, 0.0  ;;  %v4870_v2 = vmul.f32 %v10890_v54, %v10890_v54  ;;  %v4821_v8 = vsel %vm441_vm0, %v10890_v54, 0.0 }
 0x7f6   : > { %v4820_v19 = vadd.f32 %v4819_v33, %v4818_v61 }
 0x7f7   : > { %v4920_v49 = vsel %vm441_vm0, %v4869_v48, 0.0  ;;  %v4922_v28 = vsel %vm441_vm0, %v4870_v2, 0.0 }
 0x7f8   : > { %v4921_v44 = vadd.f32 %v4920_v49, %v4919_v32  ;;  %v4822_v34 = vadd.f32 %v4821_v8, %v4820_v19 }
 0x7fa   : > { %v4923_v31 = vadd.f32 %v4922_v28, %v4921_v44 }
 0x810   : > { %v10688_v22 = vpop.f32.mrb[38].mxu1 }
 0x811   : > { %v10690_v38 = vpop.f32.mrb[39].mxu1 }
 0x812   : > { %v10896_v15 = vadd.f32 %v10695_v46, %v10690_v38  ;;  %v10908_v38 = vadd.f32 %v10688_v22, %v10695_v46 }
 0x814   : > { %v4871_v55 = vmul.f32 %v10896_v15, %v10896_v15  ;;  %v4823_v7 = vsel %vm441_vm0, %v10896_v15, 0.0  ;;  %v4872_v56 = vmul.f32 %v10908_v38, %v10908_v38  ;;  %v4825_v63 = vsel %vm441_vm0, %v10908_v38, 0.0 }
 0x815   : > { %v4824_v41 = vadd.f32 %v4823_v7, %v4822_v34 }
 0x816   : > { %v4924_v3 = vsel %vm441_vm0, %v4871_v55, 0.0  ;;  %v4926_v23 = vsel %vm441_vm0, %v4872_v56, 0.0 }
 0x817   : > { %v4925_v10 = vadd.f32 %v4924_v3, %v4923_v31  ;;  %v4826_v9 = vadd.f32 %v4825_v63, %v4824_v41 }
 0x819   : > { %v4927_v16 = vadd.f32 %v4926_v23, %v4925_v10 }
 0x830   : > { %v10736_v57 = vpop.f32.mrb[40].mxu1 }
 0x831   : > { %v10750_v6 = vpop.f32.mrb[41].mxu1 }
 0x832   : > { %v10914_v1 = vadd.f32 %v10695_v46, %v10750_v6  ;;  %v10926_v6 = vadd.f32 %v10736_v57, %v10695_v46 }
 0x834   : > { %v4873_v22 = vmul.f32 %v10914_v1, %v10914_v1  ;;  %v4827_v35 = vsel %vm441_vm0, %v10914_v1, 0.0  ;;  %v4874_v21 = vmul.f32 %v10926_v6, %v10926_v6 }
 0x835   : > { %v4828_v30 = vadd.f32 %v4827_v35, %v4826_v9 }
 0x836   : > { %v4928_v53 = vsel %vm441_vm0, %v4873_v22, 0.0  ;;  %v4930_v51 = vsel %vm441_vm0, %v4874_v21, 0.0 }
 0x837   : > { %v4929_v48 = vadd.f32 %v4928_v53, %v4927_v16 }
 0x839   : > { %v4931_v32 = vadd.f32 %v4930_v51, %v4929_v48 }
 0x850   : > { %v10842_v27 = vpop.f32.mrb[42].mxu1 }
 0x851   : > { %v4751_v14 = vpop.f32.mrb[43].mxu1  ;;  %v10943_v40 = vadd.f32 %v10842_v27, %v10695_v46 }
 0x852   : > { %v10931_v11 = vadd.f32 %v10695_v46, %v4751_v14  ;;  %v4829_v14 = vsel %vm441_vm0, %v10926_v6, 0.0 }
 0x853   : > { %v4830_v61 = vadd.f32 %v4829_v14, %v4828_v30  ;;  %v4876_v2 = vmul.f32 %v10943_v40, %v10943_v40  ;;  %v4833_v44 = vsel %vm441_vm0, %v10943_v40, 0.0 }
 0x854   : > { %v4875_v57 = vmul.f32 %v10931_v11, %v10931_v11  ;;  %v4831_v52 = vsel %vm441_vm0, %v10931_v11, 0.0 }
 0x855   : > { %v4832_v19 = vadd.f32 %v4831_v52, %v4830_v61  ;;  %v4934_v28 = vsel %vm441_vm0, %v4876_v2, 0.0 }
 0x856   : > { %v4932_v49 = vsel %vm441_vm0, %v4875_v57, 0.0 }
 0x857   : > { %v4933_v55 = vadd.f32 %v4932_v49, %v4931_v32  ;;  %v4834_v34 = vadd.f32 %v4833_v44, %v4832_v19 }
 0x859   : > { %v4935_v31 = vadd.f32 %v4934_v28, %v4933_v55 }
 0x870   : > { %v7878_v26 = vpop.f32.mrb[44].mxu1 }
 0x871   : > { %v4761_v47 = vpop.f32.mrb[45].mxu1  ;;  %v10959_v8 = vadd.f32 %v7878_v26, %v10695_v46 }
 0x872   : > { %v10948_v33 = vadd.f32 %v10695_v46, %v4761_v47 }
 0x873   : > { %v4878_v56 = vmul.f32 %v10959_v8, %v10959_v8  ;;  %v4837_v9 = vsel %vm441_vm0, %v10959_v8, 0.0 }
 0x874   : > { %v4877_v27 = vmul.f32 %v10948_v33, %v10948_v33  ;;  %v4835_v7 = vsel %vm441_vm0, %v10948_v33, 0.0 }
 0x875   : > { %v4836_v41 = vadd.f32 %v4835_v7, %v4834_v34  ;;  %v4938_v30 = vsel %vm441_vm0, %v4878_v56, 0.0 }
 0x876   : > { %v4936_v3 = vsel %vm441_vm0, %v4877_v27, 0.0 }
 0x877   : > { %v4937_v10 = vadd.f32 %v4936_v3, %v4935_v31  ;;  %v4838_v53 = vadd.f32 %v4837_v9, %v4836_v41 }
 0x879   : > { %v4939_v47 = vadd.f32 %v4938_v30, %v4937_v10  ;;  %v10992_v10 = vpop.permute.xlu1 %5495 }
 0x87d   : > { %v7881_v22 = vpop.f32.mrb[46].mxu1  ;;  %v10996_v9 = vpop.permute.xlu1 %5623 }
 0x87e   : > { %v10968_v63 = vadd.f32 %v7881_v22, %v10695_v46  ;;  %v4771_v35 = vpop.f32.mrb[47].mxu1  ;;  %v10990_v22 = vpop.permute.xlu0 %5493 }
 0x87f   : > { %v10973_v23 = vadd.f32 %v10695_v46, %v4771_v35 }
 0x880   : > { %v4880_v16 = vmul.f32 %v10968_v63, %v10968_v63  ;;  %v4841_v48 = vsel %vm441_vm0, %v10968_v63, 0.0 }
 0x881   : > { %v4839_v26 = vsel %vm441_vm0, %v10973_v23, 0.0  ;;  %v4879_v21 = vmul.f32 %v10973_v23, %v10973_v23 }
 0x882   : > { %v4840_v57 = vadd.f32 %v4839_v26, %v4838_v53  ;;  %v4942_v61 = vsel %vm441_vm0, %v4880_v16, 0.0  ;;  %v10994_v35 = vpop.permute.xlu0 %5621 }
 0x883   : > { %v4940_v46 = vsel %vm441_vm0, %v4879_v21, 0.0 }
 0x884   : > { %v4842_v14 = vadd.f32 %v4841_v48, %v4840_v57  ;;  %v4941_v52 = vadd.f32 %v4940_v46, %v4939_v47 }
 0x886   : > { %v4843_v51 = vrot.slane %v4842_v14, 4  ;;  %v4943_v49 = vadd.f32 %v4942_v61, %v4941_v52 }
 0x888   : > { %v4844_v19 = vadd.f32 %v4843_v51, %v4842_v14  ;;  %v4944_v32 = vrot.slane %v4943_v49, 4 }
 0x88a   : > { %v4845_v2 = vrot.slane %v4844_v19, 2  ;;  %v4945_v27 = vadd.f32 %v4944_v32, %v4943_v49 }
 0x88c   : > { %v4846_v55 = vadd.f32 %v4845_v2, %v4844_v19  ;;  %v4946_v44 = vrot.slane %v4945_v27, 2 }
 0x88e   : > { %v4847_v7 = vrot.slane %v4846_v55, 1  ;;  %v4947_v34 = vadd.f32 %v4946_v44, %v4945_v27 }
 0x890   : > { %v4848_v28 = vadd.f32 %v4847_v7, %v4846_v55  ;;  %v4948_v3 = vrot.slane %v4947_v34, 1 }
 0x892   : > { %4985 = vrot.lane.b32.xlu0 %v4848_v28, %s12593_s19  ;;  %v4949_v41 = vadd.f32 %v4948_v3, %v4947_v34  ;;  %v4950_v31 = vsel %vm2646_vm11, %v4848_v28, 0.0 }
 0x894   : > { %5002 = vrot.lane.b32.xlu1 %v4949_v41, %s12593_s19  ;;  %v4963_v56 = vsel %vm2646_vm11, %v4949_v41, 0.0 }
 0x8b1   : > { %4951 = vadd.xlane.f32.xlu0 %v4950_v31 }
 0x8b8   : > { %4964 = vadd.xlane.f32.xlu1 %v4963_v56 }
 0x904   : > { %v4986_v53 = vpop.permute.xlu0 %4985 }
 0x905   : > { %v4988_v30 = vsel %vm2646_vm11, %v4986_v53, 0.0 }
 0x906   : > { %v5003_v16 = vpop.permute.xlu1 %5002  ;;  %4989 = vadd.xlane.f32.xlu0 %v4988_v30 }
 0x907   : > { %v5005_v26 = vsel %vm2646_vm11, %v5003_v16, 0.0 }
 0x908   : > { %5006 = vadd.xlane.f32.xlu1 %v5005_v26 }
 0x93e   : > { %v4952_v21 = vpop.xlane.xlu0 %4951 }
 0x93f   : > { %v4953_v57 = vrot.slane %v4952_v21, 4 }
 0x941   : > { %v4954_v47 = vadd.f32 %v4953_v57, %v4952_v21 }
 0x943   : > { %v4955_v48 = vrot.slane %v4954_v47, 2 }
 0x945   : > { %v4965_v46 = vpop.xlane.xlu1 %4964  ;;  %v4956_v14 = vadd.f32 %v4955_v48, %v4954_v47 }
 0x946   : > { %v4966_v52 = vrot.slane %v4965_v46, 4 }
 0x947   : > { %v4957_v61 = vrot.slane %v4956_v14, 1 }
 0x948   : > { %v4967_v51 = vadd.f32 %v4966_v52, %v4965_v46 }
 0x949   : > { %v4958_v49 = vadd.f32 %v4957_v61, %v4956_v14 }
 0x94a   : > { %v4968_v19 = vrot.slane %v4967_v51, 2 }
 0x94b   : > { %8006 = vpush %v4958_v49 }
 0x94c   : > { %v4969_v32 = vadd.f32 %v4968_v19, %v4967_v51  ;;  %v5028_v51 = vld [vmem:[%s12568_s7] sm:$0x1] }
 0x94e   : > { %v4970_v2 = vrot.slane %v4969_v32, 1 }
 0x950   : > { %v4971_v27 = vadd.f32 %v4970_v2, %v4969_v32 }
 0x952   : > { %8008 = vpush %v4971_v27  ;;  %v5030_v27 = vld [vmem:[%s12569_s8] sm:$0x1] }
 0x97c   : > { %s8007_s20 = spop %8006 }
 0x97d   : > { %s11000_s21 = smul.f32 0.0009765625, %s8007_s20 }
 0x97f   : > { %s4976_s15 = smul.f32 %s11000_s21, %s11000_s21  ;;  %v4982_v48 = vstv %s11000_s21 }
 0x983   : > { %s8009_s17 = spop %8008 }
 0x984   : > { %s4975_s30 = smul.f32 0.0009765625, %s8009_s17 }
 0x986   : > { %s4977_s18 = ssub.f32 %s4975_s30, %s4976_s15 }
 0x988   : > { %s4978_s16 = sadd.f32 1e-05, %s4977_s18 }
 0x98a   : > { %v4979_v55 = vstv %s4978_s16 }
 0x98b   : > { %8056 = vrsqrt.f32 %v4979_v55 }
 0x993   : > { %v4990_v44 = vpop.xlane.xlu0 %4989 }
 0x994   : > { %v4991_v7 = vrot.slane %v4990_v44, 4 }
 0x995   : > { %v8057_v34 = vpop.eup %8056  ;;  %v5007_v28 = vpop.xlane.xlu1 %5006 }
 0x996   : > { %v4992_v3 = vadd.f32 %v4991_v7, %v4990_v44  ;;  %v5008_v41 = vrot.slane %v5007_v28, 4  ;;  %8010 = vpush %v8057_v34 }
 0x998   : > { %v5009_v31 = vadd.f32 %v5008_v41, %v5007_v28  ;;  %v4993_v56 = vrot.slane %v4992_v3, 2 }
 0x99a   : > { %v4994_v53 = vadd.f32 %v4993_v56, %v4992_v3  ;;  %v5010_v30 = vrot.slane %v5009_v31, 2 }
 0x99c   : > { %v4995_v16 = vrot.slane %v4994_v53, 1  ;;  %v5011_v26 = vadd.f32 %v5010_v30, %v5009_v31 }
 0x99e   : > { %v4996_v21 = vadd.f32 %v4995_v16, %v4994_v53  ;;  %v5012_v57 = vrot.slane %v5011_v26, 1 }
 0x9a0   : > { %8012 = vpush %v4996_v21  ;;  %v5013_v47 = vadd.f32 %v5012_v57, %v5011_v26 }
 0x9a2   : > { %8014 = vpush %v5013_v47 }
 0x9c7   : > { %s8011_s16 = spop %8010 }
 0x9c8   : > { %v4983_v49 = vstv %s8011_s16 }
 0x9d1   : > { %s8013_s20 = spop %8012 }
 0x9d2   : > { %s5000_s15 = smul.f32 0.0009765625, %s8013_s20  ;;  %s12597_s20 = smov 48  }
 0x9d3   : > { %s8015_s17 = spop %8014 }
 0x9d4   : > { %s5018_s30 = smul.f32 %s5000_s15, %s5000_s15  ;;  %v5024_v46 = vstv %s5000_s15  ;;  %s12599_s15 = smov 64  }
 0x9d5   : > { %v5026_v14 = vsel %vm530_vm2, %v4982_v48, %v5024_v46  ;;  %s5017_s18 = smul.f32 0.0009765625, %s8015_s17 }
 0x9d7   : > { %s5019_s22 = ssub.f32 %s5017_s18, %s5018_s30 }
 0x9d9   : > { %s5020_s28 = sadd.f32 1e-05, %s5019_s22 }
 0x9db   : > { %v5021_v52 = vstv %s5020_s28  ;;  %s12598_s28 = smov 56  }
 0x9dc   : > { %8058 = vrsqrt.f32 %v5021_v52 }
 0x9e6   : > { %v8059_v61 = vpop.eup %8058 }
 0x9e7   : > { %8016 = vpush %v8059_v61 }
 0xa18   : > { %s8017_s27 = spop %8016 }
 0xa19   : > { %v5025_v19 = vstv %s8017_s27  ;;  %s12596_s27 = smov 40  }
 0xa1a   : > { %v5027_v32 = vsel %vm530_vm2, %v4983_v49, %v5025_v19 }
 0xa1b   : > { %v5029_v2 = vmul.f32 %v5028_v51, %v5027_v32 }
 0xa1d   : > { %v5031_v55 = vmul.f32 %v5029_v2, %v5026_v14  ;;  %v5037_v44 = vrot.slane %v5029_v2, %v9589_v37 }
 0xa1f   : > { %v5032_v7 = vsub.f32 %v5030_v27, %v5031_v55  ;;  %v5039_v34 = vmul.f32 %v5037_v44, %v10703_v18  ;;  %v5040_v28 = vmul.f32 %v5037_v44, %v10699_v42  ;;  %v5041_v3 = vmul.f32 %v5037_v44, %v10707_v45 }
 0xa20   : > { %v5042_v41 = vmul.f32 %v5037_v44, %v10723_v5  ;;  %v5043_v31 = vmul.f32 %v5037_v44, %v10729_v13  ;;  %v5044_v56 = vmul.f32 %v5037_v44, %v10742_v39  ;;  %v5045_v53 = vmul.f32 %v5037_v44, %v10748_v59 }
 0xa21   : > { %v5075_v30 = vrot.slane %v5032_v7, %v9589_v37  ;;  %v5046_v16 = vmul.f32 %v5037_v44, %v10762_v24  ;;  %v5047_v26 = vmul.f32 %v5037_v44, %v10768_v43  ;;  %v5048_v18 = vmul.f32 %v5037_v44, %v10780_v29 }
 0xa22   : > { %v5049_v42 = vmul.f32 %v5037_v44, %v10786_v58  ;;  %v5050_v45 = vmul.f32 %v5037_v44, %v10798_v12  ;;  %v5051_v5 = vmul.f32 %v5037_v44, %v10804_v62  ;;  %v5052_v13 = vmul.f32 %v5037_v44, %v10816_v50 }
 0xa23   : > { %v5053_v39 = vmul.f32 %v5037_v44, %v10822_v4  ;;  %v5054_v59 = vmul.f32 %v5037_v44, %v10834_v20  ;;  %v5055_v21 = vmul.f32 %v5037_v44, %v10840_v60  ;;  %v5056_v24 = vmul.f32 %v5037_v44, %v10854_v36 }
 0xa24   : > { %v5057_v43 = vmul.f32 %v5037_v44, %v10860_v0  ;;  %v5058_v29 = vmul.f32 %v5037_v44, %v10872_v17  ;;  %v5059_v58 = vmul.f32 %v5037_v44, %v10878_v25  ;;  %v5060_v12 = vmul.f32 %v5037_v44, %v10890_v54 }
 0xa25   : > { %v5061_v62 = vmul.f32 %v5037_v44, %v10896_v15  ;;  %v5062_v50 = vmul.f32 %v5037_v44, %v10908_v38  ;;  %v5063_v4 = vmul.f32 %v5037_v44, %v10914_v1  ;;  %v5064_v20 = vmul.f32 %v5037_v44, %v10926_v6 }
 0xa26   : > { %v5065_v60 = vmul.f32 %v5037_v44, %v10931_v11  ;;  %v5066_v36 = vmul.f32 %v5037_v44, %v10943_v40  ;;  %v5067_v0 = vmul.f32 %v5037_v44, %v10948_v33  ;;  %v5068_v17 = vmul.f32 %v5037_v44, %v10959_v8 }
 0xa27   : > { %v5069_v25 = vmul.f32 %v5037_v44, %v10973_v23  ;;  %v5070_v54 = vmul.f32 %v5037_v44, %v10968_v63  ;;  %v5077_v57 = vadd.f32 %v5075_v30, %v5039_v34  ;;  %v5078_v15 = vadd.f32 %v5075_v30, %v5040_v28 }
 0xa28   : > { %v5079_v47 = vadd.f32 %v5075_v30, %v5041_v3  ;;  %v5080_v38 = vadd.f32 %v5075_v30, %v5042_v41  ;;  %v5081_v48 = vadd.f32 %v5075_v30, %v5043_v31  ;;  %v5082_v1 = vadd.f32 %v5075_v30, %v5044_v56 }
 0xa29   : > { %v5109_v46 = vmax.f32 %v5077_v57, 0.0  ;;  %v5110_v6 = vmax.f32 %v5078_v15, 0.0  ;;  %v5083_v14 = vadd.f32 %v5075_v30, %v5045_v53  ;;  %v5084_v11 = vadd.f32 %v5075_v30, %v5046_v16 }
 0xa2a   : > { %v5085_v52 = vadd.f32 %v5075_v30, %v5047_v26  ;;  %v5086_v40 = vadd.f32 %v5075_v30, %v5048_v18  ;;  %v5087_v61 = vadd.f32 %v5075_v30, %v5049_v42  ;;  %v5088_v33 = vadd.f32 %v5075_v30, %v5050_v45 }
 0xa2b   : > { %5141 = vst.msk [vmem:[#allocation2 + $0x19] sm:$0xff] %vm441_vm0, %v5109_v46  ;;  %5142 = vst.msk [vmem:[#allocation2 + $0x21] sm:$0xff] %vm441_vm0, %v5110_v6  ;;  %v5089_v8 = vadd.f32 %v5075_v30, %v5051_v5  ;;  %v5090_v63 = vadd.f32 %v5075_v30, %v5052_v13  ;;  %v5091_v23 = vadd.f32 %v5075_v30, %v5053_v39  ;;  %v5111_v26 = vmax.f32 %v5079_v47, 0.0 }
 0xa2c   : > { %v5092_v51 = vadd.f32 %v5075_v30, %v5054_v59  ;;  %v5093_v49 = vadd.f32 %v5075_v30, %v5055_v21  ;;  %v5094_v19 = vadd.f32 %v5075_v30, %v5056_v24  ;;  %v11049_v32 = vadd.f32 %v5075_v30, %v5057_v43 }
 0xa2d   : > { %v11051_v2 = vadd.f32 %v5075_v30, %v5058_v29  ;;  %v11053_v27 = vadd.f32 %v5075_v30, %v5059_v58  ;;  %v11055_v55 = vadd.f32 %v5075_v30, %v5060_v12  ;;  %v11057_v44 = vadd.f32 %v5075_v30, %v5061_v62  ;;  %5143 = vst.msk [vmem:[#allocation2 + $0x31] sm:$0xff] %vm441_vm0, %v5111_v26 }
 0xa2e   : > { %v11059_v7 = vadd.f32 %v5075_v30, %v5062_v50  ;;  %v11061_v34 = vadd.f32 %v5075_v30, %v5063_v4  ;;  %v11063_v28 = vadd.f32 %v5075_v30, %v5064_v20  ;;  %v11065_v3 = vadd.f32 %v5075_v30, %v5065_v60 }
 0xa2f   : > { %v11067_v41 = vadd.f32 %v5075_v30, %v5066_v36  ;;  %v11069_v31 = vadd.f32 %v5075_v30, %v5067_v0  ;;  %v11071_v56 = vadd.f32 %v5075_v30, %v5068_v17  ;;  %v11073_v53 = vadd.f32 %v5075_v30, %v5069_v25 }
 0xa30   : > { %v11075_v16 = vadd.f32 %v5075_v30, %v5070_v54  ;;  %v5112_v18 = vmax.f32 %v5080_v38, 0.0  ;;  %v5113_v42 = vmax.f32 %v5081_v48, 0.0  ;;  %v5114_v45 = vmax.f32 %v5082_v1, 0.0 }
 0xa31   : > { %v5115_v5 = vmax.f32 %v5083_v14, 0.0  ;;  %v5116_v13 = vmax.f32 %v5084_v11, 0.0  ;;  %v5117_v39 = vmax.f32 %v5085_v52, 0.0  ;;  %v5118_v59 = vmax.f32 %v5086_v40, 0.0  ;;  %v6741_v52 = vld [vmem:[%s12570_s9] sm:$0xff]  ;;  %v6742_v40 = vld [vmem:[%s12570_s9 + $0x8] sm:$0xff] }
 0xa32   : > { %v11077_v21 = vld [vmem:[#allocation2 + $0x20] sm:$0xff]  ;;  %v11079_v24 = vld [vmem:[#allocation2 + $0x18] sm:$0xff]  ;;  %v5119_v43 = vmax.f32 %v5087_v61, 0.0  ;;  %v5120_v29 = vmax.f32 %v5088_v33, 0.0  ;;  %v5121_v58 = vmax.f32 %v5089_v8, 0.0  ;;  %v5122_v12 = vmax.f32 %v5090_v63, 0.0 }
 0xa33   : > { %5144 = vst.msk [vmem:[#allocation2 + $0x39] sm:$0xff] %vm441_vm0, %v5112_v18  ;;  %5145 = vst.msk [vmem:[#allocation2 + $0x49] sm:$0xff] %vm441_vm0, %v5113_v42  ;;  %5751 = vrot.lane.b32.xlu1 %v11077_v21, %s8078_s23  ;;  %5749 = vrot.lane.b32.xlu0 %v11079_v24, %s8078_s23  ;;  %v5123_v30 = vmax.f32 %v5091_v23, 0.0  ;;  %v5124_v62 = vmax.f32 %v5092_v51, 0.0  ;;  %v5125_v50 = vmax.f32 %v5093_v49, 0.0  ;;  %v5126_v4 = vmax.f32 %v5094_v19, 0.0 }
 0xa34   : > { %5146 = vst.msk [vmem:[#allocation2 + $0x51] sm:$0xff] %vm441_vm0, %v5114_v45  ;;  %5147 = vst.msk [vmem:[#allocation2 + $0x61] sm:$0xff] %vm441_vm0, %v5115_v5  ;;  %v5127_v20 = vmax.f32 %v11049_v32, 0.0  ;;  %v5128_v60 = vmax.f32 %v11051_v2, 0.0  ;;  %v5129_v36 = vmax.f32 %v11053_v27, 0.0  ;;  %v5130_v0 = vmax.f32 %v11055_v55, 0.0 }
 0xa35   : > { %5148 = vst.msk [vmem:[#allocation2 + $0x69] sm:$0xff] %vm441_vm0, %v5116_v13  ;;  %5149 = vst.msk [vmem:[#allocation2 + $0x79] sm:$0xff] %vm441_vm0, %v5117_v39  ;;  %v5131_v17 = vmax.f32 %v11057_v44, 0.0  ;;  %v5132_v25 = vmax.f32 %v11059_v7, 0.0  ;;  %v5133_v54 = vmax.f32 %v11061_v34, 0.0  ;;  %v5134_v57 = vmax.f32 %v11063_v28, 0.0 }
 0xa36   : > { %5150 = vst.msk [vmem:[#allocation2 + $0x81] sm:$0xff] %vm441_vm0, %v5118_v59  ;;  %5151 = vst.msk [vmem:[#allocation2 + $0x91] sm:$0xff] %vm441_vm0, %v5119_v43  ;;  %v5135_v15 = vmax.f32 %v11065_v3, 0.0  ;;  %v5136_v47 = vmax.f32 %v11067_v41, 0.0  ;;  %v5137_v38 = vmax.f32 %v11069_v31, 0.0  ;;  %v5138_v48 = vmax.f32 %v11071_v56, 0.0 }
 0xa37   : > { %5152 = vst.msk [vmem:[#allocation2 + $0x99] sm:$0xff] %vm441_vm0, %v5120_v29  ;;  %5153 = vst.msk [vmem:[#allocation2 + $0xa9] sm:$0xff] %vm441_vm0, %v5121_v58  ;;  %v5301_v1 = vld [vmem:[#allocation2 + $0x19] sm:$0xff]  ;;  %v5139_v46 = vmax.f32 %v11073_v53, 0.0  ;;  %v5140_v6 = vmax.f32 %v11075_v16, 0.0  ;;  %v5302_v14 = vld [vmem:[#allocation2 + $0x21] sm:$0xff]  ;;  %v7972_v63 = vpack.c.bf16 %v6742_v40, %v6741_v52 }
 0xa38   : > { %5154 = vst.msk [vmem:[#allocation2 + $0xb1] sm:$0xff] %vm441_vm0, %v5122_v12  ;;  %5155 = vst.msk [vmem:[#allocation2 + $0xc1] sm:$0xff] %vm441_vm0, %v5123_v30  ;;  %5877 = vrot.lane.b32.xlu0 %v5301_v1, %s12594_s14  ;;  %5497 = vrot.lane.b32.xlu1 %v5301_v1, %s12595_s24  ;;  %v5333_v11 = vld [vmem:[#allocation2 + $0x1a] sm:$0xff]  ;;  %v6743_v61 = vld [vmem:[%s12570_s9 + $0x10] sm:$0xff] }
 0xa39   : > { %5156 = vst.msk [vmem:[#allocation2 + $0xc9] sm:$0xff] %vm441_vm0, %v5124_v62  ;;  %5157 = vst.msk [vmem:[#allocation2 + $0xd9] sm:$0xff] %vm441_vm0, %v5125_v50  ;;  %v5334_v33 = vld [vmem:[#allocation2 + $0x22] sm:$0xff]  ;;  %v11144_v8 = vld [vmem:[#allocation2 + $0x30] sm:$0xff]  ;;  %7973 = vmatprep.subr.bf16.mxu0 %v7972_v63 }
 0xa3a   : > { %5158 = vst.msk [vmem:[#allocation2 + $0xe1] sm:$0xff] %vm441_vm0, %v5126_v4  ;;  %5159 = vst.msk [vmem:[#allocation2 + $0xf1] sm:$0xff] %vm441_vm0, %v5127_v20  ;;  %v6744_v23 = vld [vmem:[%s12570_s9 + $0x18] sm:$0xff]  ;;  %v6745_v49 = vld [vmem:[%s12570_s9 + $0x20] sm:$0xff]  ;;  %7975 = vmatpush3.bf16.msra.mxu0 %v7972_v63 }
 0xa3b   : > { %5160 = vst.msk [vmem:[#allocation2 + $0xf9] sm:$0xff] %vm441_vm0, %v5128_v60  ;;  %5161 = vst.msk [vmem:[#allocation2 + $0x109] sm:$0xff] %vm441_vm0, %v5129_v36  ;;  %v7976_v51 = vpack.c.bf16 %v6744_v23, %v6743_v61  ;;  %v6746_v19 = vld [vmem:[%s12570_s9 + $0x28] sm:$0xff]  ;;  %v6747_v2 = vld [vmem:[%s12570_s9 + $0x30] sm:$0xff] }
 0xa3c   : > { %5162 = vst.msk [vmem:[#allocation2 + $0x111] sm:$0xff] %vm441_vm0, %v5130_v0  ;;  %5163 = vst.msk [vmem:[#allocation2 + $0x121] sm:$0xff] %vm441_vm0, %v5131_v17  ;;  %5879 = vrot.lane.b32.xlu0 %v5302_v14, %s12594_s14  ;;  %6005 = vrot.lane.b32.xlu1 %v5333_v11, %s12596_s27  ;;  %v7980_v32 = vpack.c.bf16 %v6746_v19, %v6745_v49  ;;  %v6748_v27 = vld [vmem:[%s12570_s9 + $0x38] sm:$0xff]  ;;  %v6749_v34 = vld [vmem:[%s12570_s9 + $0x40] sm:$0xff] }
 0xa3d   : > { %5164 = vst.msk [vmem:[#allocation2 + $0x129] sm:$0xff] %vm441_vm0, %v5132_v25  ;;  %5165 = vst.msk [vmem:[#allocation2 + $0x139] sm:$0xff] %vm441_vm0, %v5133_v54  ;;  %7977 = vmatprep.subr.bf16.mxu0 %v7976_v51  ;;  %v11167_v55 = vld [vmem:[#allocation2 + $0x38] sm:$0xff]  ;;  %v7984_v7 = vpack.c.bf16 %v6748_v27, %v6747_v2  ;;  %v11186_v31 = vld [vmem:[#allocation2 + $0x48] sm:$0xff] }
 0xa3e   : > { %5166 = vst.msk [vmem:[#allocation2 + $0x141] sm:$0xff] %vm441_vm0, %v5134_v57  ;;  %5167 = vst.msk [vmem:[#allocation2 + $0x151] sm:$0xff] %vm441_vm0, %v5135_v15  ;;  %7979 = vmatpush3.bf16.msra.mxu0 %v7976_v51  ;;  %v5397_v44 = vld [vmem:[#allocation2 + $0x31] sm:$0xff]  ;;  %v5398_v28 = vld [vmem:[#allocation2 + $0x39] sm:$0xff] }
 0xa3f   : > { %5168 = vst.msk [vmem:[#allocation2 + $0x159] sm:$0xff] %vm441_vm0, %v5136_v47  ;;  %5169 = vst.msk [vmem:[#allocation2 + $0x169] sm:$0xff] %vm441_vm0, %v5137_v38  ;;  %7981 = vmatprep.subr.bf16.mxu0 %v7980_v32  ;;  %v5429_v3 = vld [vmem:[#allocation2 + $0x32] sm:$0xff]  ;;  %v5430_v41 = vld [vmem:[#allocation2 + $0x3a] sm:$0xff] }
 0xa40   : > { %5170 = vst.msk [vmem:[#allocation2 + $0x171] sm:$0xff] %vm441_vm0, %v5138_v48  ;;  %5171 = vst.msk [vmem:[#allocation2 + $0x181] sm:$0xff] %vm441_vm0, %v5139_v46  ;;  %5499 = vrot.lane.b32.xlu0 %v5302_v14, %s12595_s24  ;;  %5625 = vrot.lane.b32.xlu1 %v5333_v11, %s12592_s29  ;;  %v11194_v56 = vld [vmem:[#allocation2 + $0x50] sm:$0xff]  ;;  %v11210_v42 = vld [vmem:[#allocation2 + $0x60] sm:$0xff] }
 0xa41   : > { %5172 = vst.msk [vmem:[#allocation2 + $0x189] sm:$0xff] %vm441_vm0, %v5140_v6  ;;  %v5399_v53 = vld [vmem:[#allocation2 + $0x49] sm:$0xff]  ;;  %v5400_v16 = vld [vmem:[#allocation2 + $0x51] sm:$0xff]  ;;  %v5401_v5 = vld [vmem:[#allocation2 + $0x61] sm:$0xff] }
 0xa42   : > { %7983 = vmatpush3.bf16.msra.mxu0 %v7980_v32  ;;  %v5431_v26 = vld [vmem:[#allocation2 + $0x4a] sm:$0xff]  ;;  %v5432_v18 = vld [vmem:[#allocation2 + $0x52] sm:$0xff]  ;;  %v5433_v39 = vld [vmem:[#allocation2 + $0x62] sm:$0xff] }
 0xa43   : > { %7985 = vmatprep.subr.bf16.mxu0 %v7984_v7  ;;  %v11218_v45 = vld [vmem:[#allocation2 + $0x68] sm:$0xff]  ;;  %v11234_v43 = vld [vmem:[#allocation2 + $0x78] sm:$0xff]  ;;  %v11244_v62 = vld [vmem:[#allocation2 + $0x80] sm:$0xff] }
 0xa44   : > { %6007 = vrot.lane.b32.xlu0 %v5334_v33, %s12596_s27  ;;  %6133 = vrot.lane.b32.xlu1 %v11144_v8, %s12597_s20  ;;  %v5402_v13 = vld [vmem:[#allocation2 + $0x69] sm:$0xff]  ;;  %v5403_v50 = vld [vmem:[#allocation2 + $0x79] sm:$0xff]  ;;  %v5404_v0 = vld [vmem:[#allocation2 + $0x81] sm:$0xff] }
 0xa45   : > { %v5434_v59 = vld [vmem:[#allocation2 + $0x6a] sm:$0xff]  ;;  %v5435_v17 = vld [vmem:[#allocation2 + $0x7a] sm:$0xff]  ;;  %v5436_v38 = vld [vmem:[#allocation2 + $0x82] sm:$0xff] }
 0xa46   : > { %7987 = vmatpush3.bf16.msra.mxu0 %v7984_v7  ;;  %v5173_v47 = vld [vmem:[#allocation2] sm:$0xff]  ;;  %v5174_v40 = vld [vmem:[#allocation2 + $0x8] sm:$0xff]  ;;  %v11297_v7 = vld [vmem:[#allocation2 + $0x98] sm:$0xff] }
 0xa47   : > { %7898 = vmatprep.subr.mxu0 %v6749_v34  ;;  %v6485_v48 = vsel %vm441_vm0, %v5173_v47, %v10990_v22 }
 0xa48   : > { %5627 = vrot.lane.b32.xlu0 %v5334_v33, %s12592_s29  ;;  %5753 = vrot.lane.b32.xlu1 %v11144_v8, %s8078_s23  ;;  %v6517_v6 = vsel %vm1973_vm5, %v6485_v48, %v10994_v35  ;;  %v11276_v33 = vld [vmem:[#allocation2 + $0x90] sm:$0xff]  ;;  %v6486_v35 = vsel %vm441_vm0, %v5174_v40, %v10992_v10 }
 0xa49   : > { %v6518_v32 = vsel %vm1973_vm5, %v6486_v35, %v10996_v9 }
 0xa4a   : > { %7899 = vmatpush3.msra.mxu0 %v6749_v34  ;;  %v5405_v34 = vld [vmem:[#allocation2 + $0x91] sm:$0xff] }
 0xa4c   : > { %6135 = vrot.lane.b32.xlu0 %v11167_v55, %s12597_s20  ;;  %6261 = vrot.lane.b32.xlu1 %v5397_v44, %s12598_s28 }
 0xa50   : > { %5755 = vrot.lane.b32.xlu0 %v11167_v55, %s8078_s23  ;;  %5881 = vrot.lane.b32.xlu1 %v5397_v44, %s12594_s14 }
 0xa54   : > { %6263 = vrot.lane.b32.xlu0 %v5398_v28, %s12598_s28  ;;  %6389 = vrot.lane.b32.xlu1 %v5429_v3, %s12599_s15 }
 0xa58   : > { %5501 = vrot.lane.b32.xlu0 %v5397_v44, %s12595_s24  ;;  %5883 = vrot.lane.b32.xlu1 %v5398_v28, %s12594_s14 }
 0xa5c   : > { %6009 = vrot.lane.b32.xlu0 %v5429_v3, %s12596_s27  ;;  %6391 = vrot.lane.b32.xlu1 %v5430_v41, %s12599_s15 }
 0xa60   : > { %5503 = vrot.lane.b32.xlu0 %v5398_v28, %s12595_s24  ;;  %5629 = vrot.lane.b32.xlu1 %v5429_v3, %s12592_s29 }
 0xa64   : > { %6011 = vrot.lane.b32.xlu0 %v5430_v41, %s12596_s27  ;;  %6137 = vrot.lane.b32.xlu1 %v11186_v31, %s12597_s20 }
 0xa68   : > { %5631 = vrot.lane.b32.xlu0 %v5430_v41, %s12592_s29  ;;  %5757 = vrot.lane.b32.xlu1 %v11186_v31, %s8078_s23 }
 0xa6c   : > { %6139 = vrot.lane.b32.xlu0 %v11194_v56, %s12597_s20  ;;  %6265 = vrot.lane.b32.xlu1 %v5399_v53, %s12598_s28 }
 0xa70   : > { %5759 = vrot.lane.b32.xlu0 %v11194_v56, %s8078_s23  ;;  %5885 = vrot.lane.b32.xlu1 %v5399_v53, %s12594_s14 }
 0xa74   : > { %6267 = vrot.lane.b32.xlu0 %v5400_v16, %s12598_s28  ;;  %6393 = vrot.lane.b32.xlu1 %v5431_v26, %s12599_s15 }
 0xa78   : > { %5505 = vrot.lane.b32.xlu0 %v5399_v53, %s12595_s24  ;;  %5887 = vrot.lane.b32.xlu1 %v5400_v16, %s12594_s14 }
 0xa7c   : > { %6013 = vrot.lane.b32.xlu0 %v5431_v26, %s12596_s27  ;;  %6395 = vrot.lane.b32.xlu1 %v5432_v18, %s12599_s15 }
 0xa80   : > { %5507 = vrot.lane.b32.xlu0 %v5400_v16, %s12595_s24  ;;  %5633 = vrot.lane.b32.xlu1 %v5431_v26, %s12592_s29 }
 0xa84   : > { %6015 = vrot.lane.b32.xlu0 %v5432_v18, %s12596_s27  ;;  %6141 = vrot.lane.b32.xlu1 %v11210_v42, %s12597_s20 }
 0xa88   : > { %5635 = vrot.lane.b32.xlu0 %v5432_v18, %s12592_s29  ;;  %5761 = vrot.lane.b32.xlu1 %v11210_v42, %s8078_s23 }
 0xa8c   : > { %6143 = vrot.lane.b32.xlu0 %v11218_v45, %s12597_s20  ;;  %6269 = vrot.lane.b32.xlu1 %v5401_v5, %s12598_s28 }
 0xa90   : > { %5763 = vrot.lane.b32.xlu0 %v11218_v45, %s8078_s23  ;;  %5889 = vrot.lane.b32.xlu1 %v5401_v5, %s12594_s14 }
 0xa94   : > { %6271 = vrot.lane.b32.xlu0 %v5402_v13, %s12598_s28  ;;  %6397 = vrot.lane.b32.xlu1 %v5433_v39, %s12599_s15 }
 0xa98   : > { %5509 = vrot.lane.b32.xlu0 %v5401_v5, %s12595_s24  ;;  %5891 = vrot.lane.b32.xlu1 %v5402_v13, %s12594_s14  ;;  %v5406_v5 = vld [vmem:[#allocation2 + $0x99] sm:$0xff] }
 0xa9c   : > { %6017 = vrot.lane.b32.xlu0 %v5433_v39, %s12596_s27  ;;  %6399 = vrot.lane.b32.xlu1 %v5434_v59, %s12599_s15 }
 0xaa0   : > { %5511 = vrot.lane.b32.xlu0 %v5402_v13, %s12595_s24  ;;  %5637 = vrot.lane.b32.xlu1 %v5433_v39, %s12592_s29  ;;  %v5437_v13 = vld [vmem:[#allocation2 + $0x92] sm:$0xff] }
 0xaa4   : > { %6019 = vrot.lane.b32.xlu0 %v5434_v59, %s12596_s27  ;;  %6145 = vrot.lane.b32.xlu1 %v11234_v43, %s12597_s20 }
 0xaa5   : > { %v5752_v29 = vpop.permute.xlu1 %5751  ;;  %v5750_v58 = vpop.permute.xlu0 %5749 }
 0xaa6   : > { %v6549_v14 = vsel %vm2039_vm7, %v6517_v6, %v5750_v58  ;;  %v6550_v2 = vsel %vm2039_vm7, %v6518_v32, %v5752_v29  ;;  %v5439_v32 = vld [vmem:[#allocation2 + $0xaa] sm:$0xff] }
 0xaa8   : > { %5639 = vrot.lane.b32.xlu0 %v5434_v59, %s12592_s29  ;;  %5765 = vrot.lane.b32.xlu1 %v11234_v43, %s8078_s23 }
 0xaaa   : > { %v5878_v12 = vpop.permute.xlu0 %5877  ;;  %v11242_v30 = vpop.permute.xlu1 %5497 }
 0xaab   : > { %v6581_v61 = vsel %vm2105_vm9, %v6549_v14, %v5878_v12  ;;  %v5438_v12 = vld [vmem:[#allocation2 + $0x9a] sm:$0xff] }
 0xaac   : > { %6147 = vrot.lane.b32.xlu0 %v11244_v62, %s12597_s20  ;;  %6273 = vrot.lane.b32.xlu1 %v5403_v50, %s12598_s28 }
 0xaae   : > { %v5880_v4 = vpop.permute.xlu0 %5879  ;;  %v6006_v20 = vpop.permute.xlu1 %6005 }
 0xaaf   : > { %v6613_v22 = vsel %vm4310_vm12, %v6581_v61, %v6006_v20  ;;  %v6582_v44 = vsel %vm2105_vm9, %v6550_v2, %v5880_v4  ;;  %v6487_v20 = vsel %vm441_vm0, %v11079_v24, %v11242_v30 }
 0xab0   : > { %5767 = vrot.lane.b32.xlu0 %v11244_v62, %s8078_s23  ;;  %5893 = vrot.lane.b32.xlu1 %v5403_v50, %s12594_s14 }
 0xab2   : > { %v11252_v60 = vpop.permute.xlu0 %5499  ;;  %v11254_v36 = vpop.permute.xlu1 %5625 }
 0xab4   : > { %6275 = vrot.lane.b32.xlu0 %v5404_v0, %s12598_s28  ;;  %6401 = vrot.lane.b32.xlu1 %v5435_v17, %s12599_s15 }
 0xab6   : > { %v6008_v25 = vpop.permute.xlu0 %6007  ;;  %v6134_v54 = vpop.permute.xlu1 %6133 }
 0xab7   : > { %v6645_v63 = vsel %vm4343_vm13, %v6613_v22, %v6134_v54  ;;  %v6614_v28 = vsel %vm4310_vm12, %v6582_v44, %v6008_v25  ;;  %v11359_v22 = vld [vmem:[#allocation2 + $0xb0] sm:$0xff] }
 0xab8   : > { %5513 = vrot.lane.b32.xlu0 %v5403_v50, %s12595_s24  ;;  %5895 = vrot.lane.b32.xlu1 %v5404_v0, %s12594_s14 }
 0xaba   : > { %v11260_v57 = vpop.permute.xlu0 %5627  ;;  %v11262_v15 = vpop.permute.xlu1 %5753 }
 0xabc   : > { %6021 = vrot.lane.b32.xlu0 %v5435_v17, %s12596_s27  ;;  %6403 = vrot.lane.b32.xlu1 %v5436_v38, %s12599_s15 }
 0xabe   : > { %v6136_v1 = vpop.permute.xlu0 %6135  ;;  %v6262_v46 = vpop.permute.xlu1 %6261 }
 0xabf   : > { %v6677_v23 = vsel %vm4376_vm14, %v6645_v63, %v6262_v46  ;;  %v6646_v9 = vsel %vm4343_vm13, %v6614_v28, %v6136_v1  ;;  %v6488_v46 = vsel %vm441_vm0, %v11077_v21, %v11252_v60  ;;  %v5407_v21 = vld [vmem:[#allocation2 + $0xa9] sm:$0xff]  ;;  %v5440_v28 = vld [vmem:[#allocation2 + $0xb2] sm:$0xff] }
 0xac0   : > { %5515 = vrot.lane.b32.xlu0 %v5404_v0, %s12595_s24  ;;  %5641 = vrot.lane.b32.xlu1 %v5435_v17, %s12592_s29  ;;  %v6519_v0 = vsel %vm1973_vm5, %v6487_v20, %v11254_v36  ;;  %v6520_v6 = vsel %vm1973_vm5, %v6488_v46, %v11260_v57  ;;  %v5410_v46 = vld [vmem:[#allocation2 + $0xc9] sm:$0xff] }
 0xac1   : > { %v6551_v17 = vsel %vm2039_vm7, %v6519_v0, %v11262_v15 }
 0xac2   : > { %v11273_v11 = vpop.permute.xlu0 %5755  ;;  %v5882_v52 = vpop.permute.xlu1 %5881 }
 0xac3   : > { %v6583_v47 = vsel %vm2105_vm9, %v6551_v17, %v5882_v52  ;;  %v6552_v14 = vsel %vm2039_vm7, %v6520_v6, %v11273_v11  ;;  %v5441_v6 = vld [vmem:[#allocation2 + $0xc2] sm:$0xff] }
 0xac4   : > { %6023 = vrot.lane.b32.xlu0 %v5436_v38, %s12596_s27  ;;  %6149 = vrot.lane.b32.xlu1 %v11276_v33, %s12597_s20 }
 0xac6   : > { %v6264_v51 = vpop.permute.xlu0 %6263  ;;  %v6390_v49 = vpop.permute.xlu1 %6389 }
 0xac7   : > { %v6709_v19 = vsel %vm4409_vm15, %v6677_v23, %v6390_v49  ;;  %v6678_v3 = vsel %vm4376_vm14, %v6646_v9, %v6264_v51 }
 0xac8   : > { %5643 = vrot.lane.b32.xlu0 %v5436_v38, %s12592_s29  ;;  %5769 = vrot.lane.b32.xlu1 %v11276_v33, %s8078_s23  ;;  %v11336_v38 = vld [vmem:[#allocation2 + $0xa8] sm:$0xff] }
 0xac9   : > { %7900 = vmatprep.mubr.msk.f32.mxu0 %vm4458_vm1, %v6709_v19  ;;  %v5408_v19 = vld [vmem:[#allocation2 + $0xb1] sm:$0xff] }
 0xaca   : > { %v11294_v27 = vpop.permute.xlu0 %5501  ;;  %v5884_v10 = vpop.permute.xlu1 %5883 }
 0xacb   : > { %v6584_v61 = vsel %vm2105_vm9, %v6552_v14, %v5884_v10 }
 0xacc   : > { %6151 = vrot.lane.b32.xlu0 %v11297_v7, %s12597_s20  ;;  %6277 = vrot.lane.b32.xlu1 %v5405_v34, %s12598_s28 }
 0xace   : > { %v6010_v41 = vpop.permute.xlu0 %6009  ;;  %v6392_v53 = vpop.permute.xlu1 %6391 }
 0xacf   : > { %v6710_v16 = vsel %vm4409_vm15, %v6678_v3, %v6392_v53  ;;  %v6615_v48 = vsel %vm4310_vm12, %v6583_v47, %v6010_v41  ;;  %v6489_v41 = vsel %vm441_vm0, %v11144_v8, %v11294_v27 }
 0xad0   : > { %5771 = vrot.lane.b32.xlu0 %v11297_v7, %s8078_s23  ;;  %5897 = vrot.lane.b32.xlu1 %v5405_v34, %s12594_s14 }
 0xad1   : > { %7901 = vmatmul.mubr.msk.f32.vlgmr.msra.gmra.mrb[16].mxu0 %vm4458_vm1, %v6710_v16 }
 0xad2   : > { %v11310_v26 = vpop.permute.xlu0 %5503  ;;  %v11312_v18 = vpop.permute.xlu1 %5629 }
 0xad3   : > { %v6521_v53 = vsel %vm1973_vm5, %v6489_v41, %v11312_v18 }
 0xad4   : > { %6279 = vrot.lane.b32.xlu0 %v5406_v5, %s12598_s28  ;;  %6405 = vrot.lane.b32.xlu1 %v5437_v13, %s12599_s15 }
 0xad6   : > { %v6012_v39 = vpop.permute.xlu0 %6011  ;;  %v6138_v59 = vpop.permute.xlu1 %6137 }
 0xad7   : > { %v6647_v24 = vsel %vm4343_vm13, %v6615_v48, %v6138_v59  ;;  %v6616_v60 = vsel %vm4310_vm12, %v6584_v61, %v6012_v39  ;;  %v11398_v59 = vld [vmem:[#allocation2 + $0xc0] sm:$0xff]  ;;  %v11421_v48 = vld [vmem:[#allocation2 + $0xc8] sm:$0xff] }
 0xad8   : > { %5517 = vrot.lane.b32.xlu0 %v5405_v34, %s12595_s24  ;;  %5899 = vrot.lane.b32.xlu1 %v5406_v5, %s12594_s14 }
 0xada   : > { %v11318_v29 = vpop.permute.xlu0 %5631  ;;  %v11320_v58 = vpop.permute.xlu1 %5757 }
 0xadb   : > { %v6553_v16 = vsel %vm2039_vm7, %v6521_v53, %v11320_v58 }
 0xadc   : > { %6025 = vrot.lane.b32.xlu0 %v5437_v13, %s12596_s27  ;;  %6407 = vrot.lane.b32.xlu1 %v5438_v12, %s12599_s15 }
 0xade   : > { %v6140_v50 = vpop.permute.xlu0 %6139  ;;  %v6266_v4 = vpop.permute.xlu1 %6265 }
 0xadf   : > { %v6679_v30 = vsel %vm4376_vm14, %v6647_v24, %v6266_v4  ;;  %v6648_v57 = vsel %vm4343_vm13, %v6616_v60, %v6140_v50  ;;  %v6490_v4 = vsel %vm441_vm0, %v11167_v55, %v11310_v26  ;;  %v5409_v55 = vld [vmem:[#allocation2 + $0xc1] sm:$0xff]  ;;  %v5442_v60 = vld [vmem:[#allocation2 + $0xca] sm:$0xff] }
 0xae0   : > { %5519 = vrot.lane.b32.xlu0 %v5406_v5, %s12595_s24  ;;  %5645 = vrot.lane.b32.xlu1 %v5437_v13, %s12592_s29  ;;  %v6522_v20 = vsel %vm1973_vm5, %v6490_v4, %v11318_v29  ;;  %v5412_v4 = vld [vmem:[#allocation2 + $0xe1] sm:$0xff] }
 0xae2   : > { %v11333_v25 = vpop.permute.xlu0 %5759  ;;  %v5886_v54 = vpop.permute.xlu1 %5885 }
 0xae3   : > { %v6585_v39 = vsel %vm2105_vm9, %v6553_v16, %v5886_v54  ;;  %v6554_v0 = vsel %vm2039_vm7, %v6522_v20, %v11333_v25  ;;  %v5443_v20 = vld [vmem:[#allocation2 + $0xda] sm:$0xff] }
 0xae4   : > { %6027 = vrot.lane.b32.xlu0 %v5438_v12, %s12596_s27  ;;  %6153 = vrot.lane.b32.xlu1 %v11336_v38, %s12597_s20 }
 0xae6   : > { %v6268_v36 = vpop.permute.xlu0 %6267  ;;  %v6394_v15 = vpop.permute.xlu1 %6393 }
 0xae7   : > { %v6711_v1 = vsel %vm4409_vm15, %v6679_v30, %v6394_v15  ;;  %v6680_v63 = vsel %vm4376_vm14, %v6648_v57, %v6268_v36 }
 0xae8   : > { %5647 = vrot.lane.b32.xlu0 %v5438_v12, %s12592_s29  ;;  %5773 = vrot.lane.b32.xlu1 %v11336_v38, %s8078_s23 }
 0xae9   : > { %7903 = vmatprep.mubr.msk.f32.mxu0 %vm4458_vm1, %v6711_v1 }
 0xaea   : > { %v11356_v52 = vpop.permute.xlu0 %5505  ;;  %v5888_v40 = vpop.permute.xlu1 %5887 }
 0xaeb   : > { %v6586_v47 = vsel %vm2105_vm9, %v6554_v0, %v5888_v40 }
 0xaec   : > { %6155 = vrot.lane.b32.xlu0 %v11359_v22, %s12597_s20  ;;  %6281 = vrot.lane.b32.xlu1 %v5407_v21, %s12598_s28 }
 0xaee   : > { %v6014_v11 = vpop.permute.xlu0 %6013  ;;  %v6396_v35 = vpop.permute.xlu1 %6395 }
 0xaef   : > { %v6712_v23 = vsel %vm4409_vm15, %v6680_v63, %v6396_v35  ;;  %v6617_v12 = vsel %vm4310_vm12, %v6585_v39, %v6014_v11  ;;  %v6491_v11 = vsel %vm441_vm0, %v11186_v31, %v11356_v52 }
 0xaf0   : > { %5775 = vrot.lane.b32.xlu0 %v11359_v22, %s8078_s23  ;;  %5901 = vrot.lane.b32.xlu1 %v5407_v21, %s12594_s14 }
 0xaf1   : > { %7904 = vmatmul.mubr.msk.f32.gmra.mrb[18].mxu0 %vm4458_vm1, %v6712_v23 }
 0xaf2   : > { %v11372_v51 = vpop.permute.xlu0 %5507  ;;  %v11374_v49 = vpop.permute.xlu1 %5633 }
 0xaf3   : > { %v6523_v35 = vsel %vm1973_vm5, %v6491_v11, %v11374_v49 }
 0xaf4   : > { %6283 = vrot.lane.b32.xlu0 %v5408_v19, %s12598_s28  ;;  %6409 = vrot.lane.b32.xlu1 %v5439_v32, %s12599_s15 }
 0xaf6   : > { %v6016_v2 = vpop.permute.xlu0 %6015  ;;  %v6142_v10 = vpop.permute.xlu1 %6141 }
 0xaf7   : > { %v6649_v8 = vsel %vm4343_vm13, %v6617_v12, %v6142_v10  ;;  %v6618_v26 = vsel %vm4310_vm12, %v6586_v47, %v6016_v2  ;;  %v11460_v10 = vld [vmem:[#allocation2 + $0xd8] sm:$0xff]  ;;  %v11483_v12 = vld [vmem:[#allocation2 + $0xe0] sm:$0xff] }
 0xaf8   : > { %5521 = vrot.lane.b32.xlu0 %v5407_v21, %s12595_s24  ;;  %5903 = vrot.lane.b32.xlu1 %v5408_v19, %s12594_s14 }
 0xafa   : > { %v11380_v44 = vpop.permute.xlu0 %5635  ;;  %v11382_v34 = vpop.permute.xlu1 %5761 }
 0xafb   : > { %v6555_v23 = vsel %vm2039_vm7, %v6523_v35, %v11382_v34 }
 0xafc   : > { %6029 = vrot.lane.b32.xlu0 %v5439_v32, %s12596_s27  ;;  %6411 = vrot.lane.b32.xlu1 %v5440_v28, %s12599_s15 }
 0xafe   : > { %v6144_v9 = vpop.permute.xlu0 %6143  ;;  %v6270_v3 = vpop.permute.xlu1 %6269 }
 0xaff   : > { %v6681_v27 = vsel %vm4376_vm14, %v6649_v8, %v6270_v3  ;;  %v6650_v29 = vsel %vm4343_vm13, %v6618_v26, %v6144_v9  ;;  %v6492_v3 = vsel %vm441_vm0, %v11194_v56, %v11372_v51  ;;  %v5411_v56 = vld [vmem:[#allocation2 + $0xd9] sm:$0xff]  ;;  %v5444_v26 = vld [vmem:[#allocation2 + $0xe2] sm:$0xff] }
 0xb00   : > { %5523 = vrot.lane.b32.xlu0 %v5408_v19, %s12595_s24  ;;  %5649 = vrot.lane.b32.xlu1 %v5439_v32, %s12592_s29  ;;  %v6524_v41 = vsel %vm1973_vm5, %v6492_v3, %v11380_v44  ;;  %v5414_v3 = vld [vmem:[#allocation2 + $0xf9] sm:$0xff] }
 0xb02   : > { %v11395_v5 = vpop.permute.xlu0 %5763  ;;  %v5890_v13 = vpop.permute.xlu1 %5889 }
 0xb03   : > { %v6587_v2 = vsel %vm2105_vm9, %v6555_v23, %v5890_v13  ;;  %v6556_v53 = vsel %vm2039_vm7, %v6524_v41, %v11395_v5  ;;  %v5445_v41 = vld [vmem:[#allocation2 + $0xf2] sm:$0xff] }
 0xb04   : > { %6031 = vrot.lane.b32.xlu0 %v5440_v28, %s12596_s27  ;;  %6157 = vrot.lane.b32.xlu1 %v11398_v59, %s12597_s20 }
 0xb06   : > { %v6272_v18 = vpop.permute.xlu0 %6271  ;;  %v6398_v58 = vpop.permute.xlu1 %6397 }
 0xb07   : > { %v6713_v50 = vsel %vm4409_vm15, %v6681_v27, %v6398_v58  ;;  %v6682_v24 = vsel %vm4376_vm14, %v6650_v29, %v6272_v18 }
 0xb08   : > { %5651 = vrot.lane.b32.xlu0 %v5440_v28, %s12592_s29  ;;  %5777 = vrot.lane.b32.xlu1 %v11398_v59, %s8078_s23 }
 0xb09   : > { %7906 = vmatprep.mubr.msk.f32.mxu0 %vm4458_vm1, %v6713_v50 }
 0xb0a   : > { %v11418_v17 = vpop.permute.xlu0 %5509  ;;  %v5892_v54 = vpop.permute.xlu1 %5891 }
 0xb0b   : > { %v6588_v39 = vsel %vm2105_vm9, %v6556_v53, %v5892_v54 }
 0xb0c   : > { %6159 = vrot.lane.b32.xlu0 %v11421_v48, %s12597_s20  ;;  %6285 = vrot.lane.b32.xlu1 %v5409_v55, %s12598_s28 }
 0xb0e   : > { %v6018_v25 = vpop.permute.xlu0 %6017  ;;  %v6400_v30 = vpop.permute.xlu1 %6399 }
 0xb0f   : > { %v6714_v36 = vsel %vm4409_vm15, %v6682_v24, %v6400_v30  ;;  %v6619_v28 = vsel %vm4310_vm12, %v6587_v2, %v6018_v25  ;;  %v6493_v25 = vsel %vm441_vm0, %v11210_v42, %v11418_v17 }
 0xb10   : > { %5779 = vrot.lane.b32.xlu0 %v11421_v48, %s8078_s23  ;;  %5905 = vrot.lane.b32.xlu1 %v5409_v55, %s12594_s14 }
 0xb11   : > { %7907 = vmatmul.mubr.msk.f32.gmra.mrb[20].mxu0 %vm4458_vm1, %v6714_v36 }
 0xb12   : > { %v11434_v15 = vpop.permute.xlu0 %5511  ;;  %v11436_v1 = vpop.permute.xlu1 %5637 }
 0xb13   : > { %v6525_v30 = vsel %vm1973_vm5, %v6493_v25, %v11436_v1 }
 0xb14   : > { %6287 = vrot.lane.b32.xlu0 %v5410_v46, %s12598_s28  ;;  %6413 = vrot.lane.b32.xlu1 %v5441_v6, %s12599_s15 }
 0xb16   : > { %v6020_v14 = vpop.permute.xlu0 %6019  ;;  %v6146_v40 = vpop.permute.xlu1 %6145 }
 0xb17   : > { %v6651_v31 = vsel %vm4343_vm13, %v6619_v28, %v6146_v40  ;;  %v6620_v51 = vsel %vm4310_vm12, %v6588_v39, %v6020_v14  ;;  %v11522_v40 = vld [vmem:[#allocation2 + $0xf0] sm:$0xff]  ;;  %v11545_v28 = vld [vmem:[#allocation2 + $0xf8] sm:$0xff] }
 0xb18   : > { %5525 = vrot.lane.b32.xlu0 %v5409_v55, %s12595_s24  ;;  %5907 = vrot.lane.b32.xlu1 %v5410_v46, %s12594_s14 }
 0xb1a   : > { %v11442_v61 = vpop.permute.xlu0 %5639  ;;  %v11444_v21 = vpop.permute.xlu1 %5765 }
 0xb1b   : > { %v6557_v36 = vsel %vm2039_vm7, %v6525_v30, %v11444_v21 }
 0xb1c   : > { %6033 = vrot.lane.b32.xlu0 %v5441_v6, %s12596_s27  ;;  %6415 = vrot.lane.b32.xlu1 %v5442_v60, %s12599_s15 }
 0xb1e   : > { %v6148_v57 = vpop.permute.xlu0 %6147  ;;  %v6274_v63 = vpop.permute.xlu1 %6273 }
 0xb1f   : > { %v6683_v52 = vsel %vm4376_vm14, %v6651_v31, %v6274_v63  ;;  %v6652_v44 = vsel %vm4343_vm13, %v6620_v51, %v6148_v57  ;;  %v6494_v63 = vsel %vm441_vm0, %v11218_v45, %v11434_v15  ;;  %v5413_v45 = vld [vmem:[#allocation2 + $0xf1] sm:$0xff]  ;;  %v5446_v51 = vld [vmem:[#allocation2 + $0xfa] sm:$0xff] }
 0xb20   : > { %5527 = vrot.lane.b32.xlu0 %v5410_v46, %s12595_s24  ;;  %5653 = vrot.lane.b32.xlu1 %v5441_v6, %s12592_s29  ;;  %v6526_v11 = vsel %vm1973_vm5, %v6494_v63, %v11442_v61  ;;  %v5416_v63 = vld [vmem:[#allocation2 + $0x111] sm:$0xff] }
 0xb22   : > { %v11457_v19 = vpop.permute.xlu0 %5767  ;;  %v5894_v32 = vpop.permute.xlu1 %5893 }
 0xb23   : > { %v6589_v14 = vsel %vm2105_vm9, %v6557_v36, %v5894_v32  ;;  %v6558_v35 = vsel %vm2039_vm7, %v6526_v11, %v11457_v19  ;;  %v5447_v11 = vld [vmem:[#allocation2 + $0x10a] sm:$0xff] }
 0xb24   : > { %6035 = vrot.lane.b32.xlu0 %v5442_v60, %s12596_s27  ;;  %6161 = vrot.lane.b32.xlu1 %v11460_v10, %s12597_s20 }
 0xb26   : > { %v6276_v49 = vpop.permute.xlu0 %6275  ;;  %v6402_v34 = vpop.permute.xlu1 %6401 }
 0xb27   : > { %v6715_v9 = vsel %vm4409_vm15, %v6683_v52, %v6402_v34  ;;  %v6684_v8 = vsel %vm4376_vm14, %v6652_v44, %v6276_v49 }
 0xb28   : > { %5655 = vrot.lane.b32.xlu0 %v5442_v60, %s12592_s29  ;;  %5781 = vrot.lane.b32.xlu1 %v11460_v10, %s8078_s23 }
 0xb29   : > { %7909 = vmatprep.mubr.msk.f32.mxu0 %vm4458_vm1, %v6715_v9 }
 0xb2a   : > { %v11480_v16 = vpop.permute.xlu0 %5513  ;;  %v5896_v13 = vpop.permute.xlu1 %5895 }
 0xb2b   : > { %v6590_v2 = vsel %vm2105_vm9, %v6558_v35, %v5896_v13 }
 0xb2c   : > { %6163 = vrot.lane.b32.xlu0 %v11483_v12, %s12597_s20  ;;  %6289 = vrot.lane.b32.xlu1 %v5411_v56, %s12598_s28 }
 0xb2e   : > { %v6022_v5 = vpop.permute.xlu0 %6021  ;;  %v6404_v27 = vpop.permute.xlu1 %6403 }
 0xb2f   : > { %v6716_v18 = vsel %vm4409_vm15, %v6684_v8, %v6404_v27  ;;  %v6621_v60 = vsel %vm4310_vm12, %v6589_v14, %v6022_v5  ;;  %v6495_v5 = vsel %vm441_vm0, %v11234_v43, %v11480_v16 }
 0xb30   : > { %5783 = vrot.lane.b32.xlu0 %v11483_v12, %s8078_s23  ;;  %5909 = vrot.lane.b32.xlu1 %v5411_v56, %s12594_s14 }
 0xb31   : > { %7910 = vmatmul.mubr.msk.f32.gmra.mrb[22].mxu0 %vm4458_vm1, %v6716_v18 }
 0xb32   : > { %v11496_v58 = vpop.permute.xlu0 %5515  ;;  %v11498_v50 = vpop.permute.xlu1 %5641 }
 0xb33   : > { %v6527_v27 = vsel %vm1973_vm5, %v6495_v5, %v11498_v50 }
 0xb34   : > { %6291 = vrot.lane.b32.xlu0 %v5412_v4, %s12598_s28  ;;  %6417 = vrot.lane.b32.xlu1 %v5443_v20, %s12599_s15 }
 0xb36   : > { %v6024_v0 = vpop.permute.xlu0 %6023  ;;  %v6150_v54 = vpop.permute.xlu1 %6149 }
 0xb37   : > { %v6653_v42 = vsel %vm4343_vm13, %v6621_v60, %v6150_v54  ;;  %v6622_v15 = vsel %vm4310_vm12, %v6590_v2, %v6024_v0  ;;  %v11584_v54 = vld [vmem:[#allocation2 + $0x108] sm:$0xff]  ;;  %v11607_v60 = vld [vmem:[#allocation2 + $0x110] sm:$0xff] }
 0xb38   : > { %5529 = vrot.lane.b32.xlu0 %v5411_v56, %s12595_s24  ;;  %5911 = vrot.lane.b32.xlu1 %v5412_v4, %s12594_s14 }
 0xb3a   : > { %v11504_v47 = vpop.permute.xlu0 %5643  ;;  %v11506_v55 = vpop.permute.xlu1 %5769 }
 0xb3b   : > { %v6559_v18 = vsel %vm2039_vm7, %v6527_v27, %v11506_v55 }
 0xb3c   : > { %6037 = vrot.lane.b32.xlu0 %v5443_v20, %s12596_s27  ;;  %6419 = vrot.lane.b32.xlu1 %v5444_v26, %s12599_s15 }
 0xb3e   : > { %v6152_v29 = vpop.permute.xlu0 %6151  ;;  %v6278_v24 = vpop.permute.xlu1 %6277 }
 0xb3f   : > { %v6685_v17 = vsel %vm4376_vm14, %v6653_v42, %v6278_v24  ;;  %v6654_v61 = vsel %vm4343_vm13, %v6622_v15, %v6152_v29  ;;  %v6496_v24 = vsel %vm441_vm0, %v11244_v62, %v11496_v58  ;;  %v5415_v62 = vld [vmem:[#allocation2 + $0x109] sm:$0xff]  ;;  %v5448_v15 = vld [vmem:[#allocation2 + $0x112] sm:$0xff] }
 0xb40   : > { %5531 = vrot.lane.b32.xlu0 %v5412_v4, %s12595_s24  ;;  %5657 = vrot.lane.b32.xlu1 %v5443_v20, %s12592_s29  ;;  %v6528_v25 = vsel %vm1973_vm5, %v6496_v24, %v11504_v47  ;;  %v5418_v24 = vld [vmem:[#allocation2 + $0x129] sm:$0xff] }
 0xb42   : > { %v11519_v46 = vpop.permute.xlu0 %5771  ;;  %v5898_v6 = vpop.permute.xlu1 %5897 }
 0xb43   : > { %v6591_v0 = vsel %vm2105_vm9, %v6559_v18, %v5898_v6  ;;  %v6560_v30 = vsel %vm2039_vm7, %v6528_v25, %v11519_v46  ;;  %v5449_v25 = vld [vmem:[#allocation2 + $0x122] sm:$0xff] }
 0xb44   : > { %6039 = vrot.lane.b32.xlu0 %v5444_v26, %s12596_s27  ;;  %6165 = vrot.lane.b32.xlu1 %v11522_v40, %s12597_s20 }
 0xb46   : > { %v6280_v1 = vpop.permute.xlu0 %6279  ;;  %v6406_v21 = vpop.permute.xlu1 %6405 }
 0xb47   : > { %v6717_v57 = vsel %vm4409_vm15, %v6685_v17, %v6406_v21  ;;  %v6686_v31 = vsel %vm4376_vm14, %v6654_v61, %v6280_v1 }
 0xb48   : > { %5659 = vrot.lane.b32.xlu0 %v5444_v26, %s12592_s29  ;;  %5785 = vrot.lane.b32.xlu1 %v11522_v40, %s8078_s23 }
 0xb49   : > { %7912 = vmatprep.mubr.msk.f32.mxu0 %vm4458_vm1, %v6717_v57 }
 0xb4a   : > { %v11542_v23 = vpop.permute.xlu0 %5517  ;;  %v5900_v32 = vpop.permute.xlu1 %5899 }
 0xb4b   : > { %v6592_v14 = vsel %vm2105_vm9, %v6560_v30, %v5900_v32 }
 0xb4c   : > { %6167 = vrot.lane.b32.xlu0 %v11545_v28, %s12597_s20  ;;  %6293 = vrot.lane.b32.xlu1 %v5413_v45, %s12598_s28 }
 0xb4e   : > { %v6026_v19 = vpop.permute.xlu0 %6025  ;;  %v6408_v52 = vpop.permute.xlu1 %6407 }
 0xb4f   : > { %v6718_v49 = vsel %vm4409_vm15, %v6686_v31, %v6408_v52  ;;  %v6623_v26 = vsel %vm4310_vm12, %v6591_v0, %v6026_v19  ;;  %v6497_v19 = vsel %vm441_vm0, %v11276_v33, %v11542_v23 }
 0xb50   : > { %5787 = vrot.lane.b32.xlu0 %v11545_v28, %s8078_s23  ;;  %5913 = vrot.lane.b32.xlu1 %v5413_v45, %s12594_s14 }
 0xb51   : > { %7913 = vmatmul.mubr.msk.f32.gmra.mrb[24].mxu0 %vm4458_vm1, %v6718_v49 }
 0xb52   : > { %v11558_v34 = vpop.permute.xlu0 %5519  ;;  %v11560_v9 = vpop.permute.xlu1 %5645 }
 0xb53   : > { %v6529_v52 = vsel %vm1973_vm5, %v6497_v19, %v11560_v9 }
 0xb54   : > { %6295 = vrot.lane.b32.xlu0 %v5414_v3, %s12598_s28  ;;  %6421 = vrot.lane.b32.xlu1 %v5445_v41, %s12599_s15 }
 0xb56   : > { %v6028_v53 = vpop.permute.xlu0 %6027  ;;  %v6154_v13 = vpop.permute.xlu1 %6153 }
 0xb57   : > { %v6655_v43 = vsel %vm4343_vm13, %v6623_v26, %v6154_v13  ;;  %v6624_v58 = vsel %vm4310_vm12, %v6592_v14, %v6028_v53  ;;  %v11646_v13 = vld [vmem:[#allocation2 + $0x120] sm:$0xff]  ;;  %v11669_v26 = vld [vmem:[#allocation2 + $0x128] sm:$0xff] }
 0xb58   : > { %5533 = vrot.lane.b32.xlu0 %v5413_v45, %s12595_s24  ;;  %5915 = vrot.lane.b32.xlu1 %v5414_v3, %s12594_s14 }
 0xb5a   : > { %v11566_v39 = vpop.permute.xlu0 %5647  ;;  %v11568_v56 = vpop.permute.xlu1 %5773 }
 0xb5b   : > { %v6561_v49 = vsel %vm2039_vm7, %v6529_v52, %v11568_v56 }
 0xb5c   : > { %6041 = vrot.lane.b32.xlu0 %v5445_v41, %s12596_s27  ;;  %6423 = vrot.lane.b32.xlu1 %v5446_v51, %s12599_s15 }
 0xb5e   : > { %v6156_v44 = vpop.permute.xlu0 %6155  ;;  %v6282_v8 = vpop.permute.xlu1 %6281 }
 0xb5f   : > { %v6687_v16 = vsel %vm4376_vm14, %v6655_v43, %v6282_v8  ;;  %v6656_v47 = vsel %vm4343_vm13, %v6624_v58, %v6156_v44  ;;  %v6498_v8 = vsel %vm441_vm0, %v11297_v7, %v11558_v34  ;;  %v5417_v7 = vld [vmem:[#allocation2 + $0x121] sm:$0xff]  ;;  %v5450_v58 = vld [vmem:[#allocation2 + $0x12a] sm:$0xff] }
 0xb60   : > { %5535 = vrot.lane.b32.xlu0 %v5414_v3, %s12595_s24  ;;  %5661 = vrot.lane.b32.xlu1 %v5445_v41, %s12592_s29  ;;  %v6530_v5 = vsel %vm1973_vm5, %v6498_v8, %v11566_v39 }
 0xb62   : > { %v11581_v4 = vpop.permute.xlu0 %5775  ;;  %v5902_v20 = vpop.permute.xlu1 %5901 }
 0xb63   : > { %v6593_v53 = vsel %vm2105_vm9, %v6561_v49, %v5902_v20  ;;  %v6562_v27 = vsel %vm2039_vm7, %v6530_v5, %v11581_v4 }
 0xb64   : > { %6043 = vrot.lane.b32.xlu0 %v5446_v51, %s12596_s27  ;;  %6169 = vrot.lane.b32.xlu1 %v11584_v54, %s12597_s20 }
 0xb66   : > { %v6284_v50 = vpop.permute.xlu0 %6283  ;;  %v6410_v55 = vpop.permute.xlu1 %6409 }
 0xb67   : > { %v6719_v29 = vsel %vm4409_vm15, %v6687_v16, %v6410_v55  ;;  %v6688_v42 = vsel %vm4376_vm14, %v6656_v47, %v6284_v50 }
 0xb68   : > { %5663 = vrot.lane.b32.xlu0 %v5446_v51, %s12592_s29  ;;  %5789 = vrot.lane.b32.xlu1 %v11584_v54, %s8078_s23 }
 0xb69   : > { %7915 = vmatprep.mubr.msk.f32.mxu0 %vm4458_vm1, %v6719_v29 }
 0xb6a   : > { %v11604_v36 = vpop.permute.xlu0 %5521  ;;  %v5904_v6 = vpop.permute.xlu1 %5903 }
 0xb6b   : > { %v6594_v0 = vsel %vm2105_vm9, %v6562_v27, %v5904_v6  ;;  %v5420_v27 = vld [vmem:[#allocation2 + $0x141] sm:$0xff] }
 0xb6c   : > { %6171 = vrot.lane.b32.xlu0 %v11607_v60, %s12597_s20  ;;  %6297 = vrot.lane.b32.xlu1 %v5415_v62, %s12598_s28 }
 0xb6e   : > { %v6030_v46 = vpop.permute.xlu0 %6029  ;;  %v6412_v17 = vpop.permute.xlu1 %6411 }
 0xb6f   : > { %v6720_v1 = vsel %vm4409_vm15, %v6688_v42, %v6412_v17  ;;  %v6625_v51 = vsel %vm4310_vm12, %v6593_v53, %v6030_v46  ;;  %v6499_v46 = vsel %vm441_vm0, %v11336_v38, %v11604_v36 }
 0xb70   : > { %5791 = vrot.lane.b32.xlu0 %v11607_v60, %s8078_s23  ;;  %5917 = vrot.lane.b32.xlu1 %v5415_v62, %s12594_s14 }
 0xb71   : > { %7916 = vmatmul.mubr.msk.f32.gmra.mrb[26].mxu0 %vm4458_vm1, %v6720_v1 }
 0xb72   : > { %v11620_v21 = vpop.permute.xlu0 %5523  ;;  %v11622_v57 = vpop.permute.xlu1 %5649 }
 0xb73   : > { %v6531_v17 = vsel %vm1973_vm5, %v6499_v46, %v11622_v57  ;;  %v6500_v52 = vsel %vm441_vm0, %v11359_v22, %v11620_v21  ;;  %v5419_v22 = vld [vmem:[#allocation2 + $0x139] sm:$0xff] }
 0xb74   : > { %6299 = vrot.lane.b32.xlu0 %v5416_v63, %s12598_s28  ;;  %6425 = vrot.lane.b32.xlu1 %v5447_v11, %s12599_s15 }
 0xb76   : > { %v6032_v35 = vpop.permute.xlu0 %6031  ;;  %v6158_v32 = vpop.permute.xlu1 %6157 }
 0xb77   : > { %v6657_v33 = vsel %vm4343_vm13, %v6625_v51, %v6158_v32  ;;  %v6626_v34 = vsel %vm4310_vm12, %v6594_v0, %v6032_v35  ;;  %v11708_v32 = vld [vmem:[#allocation2 + $0x138] sm:$0xff] }
 0xb78   : > { %5537 = vrot.lane.b32.xlu0 %v5415_v62, %s12595_s24  ;;  %5919 = vrot.lane.b32.xlu1 %v5416_v63, %s12594_s14 }
 0xb7a   : > { %v11628_v2 = vpop.permute.xlu0 %5651  ;;  %v11630_v45 = vpop.permute.xlu1 %5777 }
 0xb7b   : > { %v6563_v1 = vsel %vm2039_vm7, %v6531_v17, %v11630_v45  ;;  %v6532_v49 = vsel %vm1973_vm5, %v6500_v52, %v11628_v2 }
 0xb7c   : > { %6045 = vrot.lane.b32.xlu0 %v5447_v11, %s12596_s27  ;;  %6427 = vrot.lane.b32.xlu1 %v5448_v15, %s12599_s15 }
 0xb7e   : > { %v6160_v61 = vpop.permute.xlu0 %6159  ;;  %v6286_v31 = vpop.permute.xlu1 %6285 }
 0xb7f   : > { %v6689_v23 = vsel %vm4376_vm14, %v6657_v33, %v6286_v31  ;;  %v6658_v39 = vsel %vm4343_vm13, %v6626_v34, %v6160_v61 }
 0xb80   : > { %5539 = vrot.lane.b32.xlu0 %v5416_v63, %s12595_s24  ;;  %5665 = vrot.lane.b32.xlu1 %v5447_v11, %s12592_s29 }
 0xb82   : > { %v11643_v3 = vpop.permute.xlu0 %5779  ;;  %v5906_v41 = vpop.permute.xlu1 %5905 }
 0xb83   : > { %v6595_v35 = vsel %vm2105_vm9, %v6563_v1, %v5906_v41  ;;  %v6564_v41 = vsel %vm2039_vm7, %v6532_v49, %v11643_v3 }
 0xb84   : > { %6047 = vrot.lane.b32.xlu0 %v5448_v15, %s12596_s27  ;;  %6173 = vrot.lane.b32.xlu1 %v11646_v13, %s12597_s20 }
 0xb86   : > { %v6288_v9 = vpop.permute.xlu0 %6287  ;;  %v6414_v56 = vpop.permute.xlu1 %6413 }
 0xb87   : > { %v6721_v44 = vsel %vm4409_vm15, %v6689_v23, %v6414_v56  ;;  %v6690_v43 = vsel %vm4376_vm14, %v6658_v39, %v6288_v9  ;;  %v11735_v23 = vld [vmem:[#allocation2 + $0x140] sm:$0xff] }
 0xb88   : > { %5667 = vrot.lane.b32.xlu0 %v5448_v15, %s12592_s29  ;;  %5793 = vrot.lane.b32.xlu1 %v11646_v13, %s8078_s23 }
 0xb89   : > { %7918 = vmatprep.mubr.msk.f32.mxu0 %vm4458_vm1, %v6721_v44 }
 0xb8a   : > { %v11666_v18 = vpop.permute.xlu0 %5525  ;;  %v5908_v20 = vpop.permute.xlu1 %5907 }
 0xb8b   : > { %v6596_v33 = vsel %vm2105_vm9, %v6564_v41, %v5908_v20  ;;  %v5451_v20 = vld [vmem:[#allocation2 + $0x13a] sm:$0xff] }
 0xb8c   : > { %6175 = vrot.lane.b32.xlu0 %v11669_v26, %s12597_s20  ;;  %6301 = vrot.lane.b32.xlu1 %v5417_v7, %s12598_s28 }
 0xb8e   : > { %v6034_v4 = vpop.permute.xlu0 %6033  ;;  %v6416_v16 = vpop.permute.xlu1 %6415 }
 0xb8f   : > { %v6722_v50 = vsel %vm4409_vm15, %v6690_v43, %v6416_v16  ;;  %v6627_v15 = vsel %vm4310_vm12, %v6595_v35, %v6034_v4  ;;  %v5452_v43 = vld [vmem:[#allocation2 + $0x142] sm:$0xff] }
 0xb90   : > { %5795 = vrot.lane.b32.xlu0 %v11669_v26, %s8078_s23  ;;  %5921 = vrot.lane.b32.xlu1 %v5417_v7, %s12594_s14 }
 0xb91   : > { %7919 = vmatmul.mubr.msk.f32.gmra.mrb[28].mxu0 %vm4458_vm1, %v6722_v50  ;;  %v6501_v50 = vsel %vm441_vm0, %v11398_v59, %v11666_v18 }
 0xb92   : > { %v11682_v55 = vpop.permute.xlu0 %5527  ;;  %v11684_v29 = vpop.permute.xlu1 %5653 }
 0xb94   : > { %6303 = vrot.lane.b32.xlu0 %v5418_v24, %s12598_s28  ;;  %6429 = vrot.lane.b32.xlu1 %v5449_v25, %s12599_s15 }
 0xb96   : > { %v6036_v30 = vpop.permute.xlu0 %6035  ;;  %v6162_v6 = vpop.permute.xlu1 %6161 }
 0xb97   : > { %v6659_v36 = vsel %vm4343_vm13, %v6627_v15, %v6162_v6  ;;  %v6628_v21 = vsel %vm4310_vm12, %v6596_v33, %v6036_v30  ;;  %v5422_v33 = vld [vmem:[#allocation2 + $0x159] sm:$0xff] }
 0xb98   : > { %5541 = vrot.lane.b32.xlu0 %v5417_v7, %s12595_s24  ;;  %5923 = vrot.lane.b32.xlu1 %v5418_v24, %s12594_s14 }
 0xb9a   : > { %v11690_v14 = vpop.permute.xlu0 %5655  ;;  %v11692_v62 = vpop.permute.xlu1 %5781 }
 0xb9c   : > { %6049 = vrot.lane.b32.xlu0 %v5449_v25, %s12596_s27  ;;  %6431 = vrot.lane.b32.xlu1 %v5450_v58, %s12599_s15 }
 0xb9e   : > { %v6164_v47 = vpop.permute.xlu0 %6163  ;;  %v6290_v42 = vpop.permute.xlu1 %6289 }
 0xb9f   : > { %v6691_v45 = vsel %vm4376_vm14, %v6659_v36, %v6290_v42  ;;  %v6660_v2 = vsel %vm4343_vm13, %v6628_v21, %v6164_v47  ;;  %v11774_v47 = vld [vmem:[#allocation2 + $0x150] sm:$0xff] }
 0xba0   : > { %5543 = vrot.lane.b32.xlu0 %v5418_v24, %s12595_s24  ;;  %5669 = vrot.lane.b32.xlu1 %v5449_v25, %s12592_s29  ;;  %v6533_v24 = vsel %vm1973_vm5, %v6501_v50, %v11684_v29  ;;  %v11840_v50 = vld [vmem:[#allocation2 + $0x168] sm:$0xff] }
 0xba1   : > { %v6565_v25 = vsel %vm2039_vm7, %v6533_v24, %v11692_v62 }
 0xba2   : > { %v11705_v63 = vpop.permute.xlu0 %5783  ;;  %v5910_v11 = vpop.permute.xlu1 %5909 }
 0xba4   : > { %v11711_v38 = vpop.f32.mrb[16].mxu0  ;;  %6051 = vrot.lane.b32.xlu0 %v5450_v58, %s12596_s27  ;;  %6177 = vrot.lane.b32.xlu1 %v11708_v32, %s12597_s20 }
 0xba5   : > { %v11717_v57 = vpop.f32.mrb[17].mxu0 }
 0xba6   : > { %v6292_v61 = vpop.permute.xlu0 %6291  ;;  %v6418_v31 = vpop.permute.xlu1 %6417 }
 0xba7   : > { %v6723_v19 = vsel %vm4409_vm15, %v6691_v45, %v6418_v31  ;;  %v6692_v9 = vsel %vm4376_vm14, %v6660_v2, %v6292_v61  ;;  %v11801_v31 = vld [vmem:[#allocation2 + $0x158] sm:$0xff] }
 0xba8   : > { %5671 = vrot.lane.b32.xlu0 %v5450_v58, %s12592_s29  ;;  %5797 = vrot.lane.b32.xlu1 %v11708_v32, %s8078_s23  ;;  %v6597_v58 = vsel %vm2105_vm9, %v6565_v25, %v5910_v11  ;;  %v6502_v11 = vsel %vm441_vm0, %v11421_v48, %v11682_v55  ;;  %v5421_v48 = vld [vmem:[#allocation2 + $0x151] sm:$0xff] }
 0xba9   : > { %7921 = vmatprep.mubr.msk.f32.mxu0 %vm4458_vm1, %v6723_v19  ;;  %v6534_v35 = vsel %vm1973_vm5, %v6502_v11, %v11690_v14  ;;  %v11867_v11 = vld [vmem:[#allocation2 + $0x170] sm:$0xff] }
 0xbaa   : > { %v11732_v53 = vpop.permute.xlu0 %5529  ;;  %v5912_v51 = vpop.permute.xlu1 %5911  ;;  %v6566_v15 = vsel %vm2039_vm7, %v6534_v35, %v11705_v63 }
 0xbab   : > { %v6598_v61 = vsel %vm2105_vm9, %v6566_v15, %v5912_v51 }
 0xbac   : > { %6179 = vrot.lane.b32.xlu0 %v11735_v23, %s12597_s20  ;;  %6305 = vrot.lane.b32.xlu1 %v5419_v22, %s12598_s28 }
 0xbae   : > { %v6038_v3 = vpop.permute.xlu0 %6037  ;;  %v6420_v56 = vpop.permute.xlu1 %6419 }
 0xbaf   : > { %v6724_v44 = vsel %vm4409_vm15, %v6692_v9, %v6420_v56  ;;  %v6629_v42 = vsel %vm4310_vm12, %v6597_v58, %v6038_v3  ;;  %v5454_v56 = vld [vmem:[#allocation2 + $0x15a] sm:$0xff] }
 0xbb0   : > { %5799 = vrot.lane.b32.xlu0 %v11735_v23, %s8078_s23  ;;  %5925 = vrot.lane.b32.xlu1 %v5419_v22, %s12594_s14 }
 0xbb1   : > { %7922 = vmatmul.mubr.msk.f32.gmra.mrb[30].mxu0 %vm4458_vm1, %v6724_v44 }
 0xbb2   : > { %v11748_v8 = vpop.permute.xlu0 %5531  ;;  %v11750_v5 = vpop.permute.xlu1 %5657 }
 0xbb4   : > { %6307 = vrot.lane.b32.xlu0 %v5420_v27, %s12598_s28  ;;  %6433 = vrot.lane.b32.xlu1 %v5451_v20, %s12599_s15 }
 0xbb6   : > { %v6040_v0 = vpop.permute.xlu0 %6039  ;;  %v6166_v7 = vpop.permute.xlu1 %6165 }
 0xbb7   : > { %v6661_v18 = vsel %vm4343_vm13, %v6629_v42, %v6166_v7  ;;  %v6630_v55 = vsel %vm4310_vm12, %v6598_v61, %v6040_v0  ;;  %v6504_v42 = vsel %vm441_vm0, %v11483_v12, %v11748_v8  ;;  %v5423_v12 = vld [vmem:[#allocation2 + $0x169] sm:$0xff] }
 0xbb8   : > { %5545 = vrot.lane.b32.xlu0 %v5419_v22, %s12595_s24  ;;  %5927 = vrot.lane.b32.xlu1 %v5420_v27, %s12594_s14  ;;  %v5453_v22 = vld [vmem:[#allocation2 + $0x152] sm:$0xff] }
 0xbba   : > { %v11756_v34 = vpop.permute.xlu0 %5659  ;;  %v11758_v39 = vpop.permute.xlu1 %5785 }
 0xbbc   : > { %6053 = vrot.lane.b32.xlu0 %v5451_v20, %s12596_s27  ;;  %6435 = vrot.lane.b32.xlu1 %v5452_v43, %s12599_s15 }
 0xbbe   : > { %v6168_v4 = vpop.permute.xlu0 %6167  ;;  %v6294_v16 = vpop.permute.xlu1 %6293 }
 0xbbf   : > { %v6693_v62 = vsel %vm4376_vm14, %v6661_v18, %v6294_v16  ;;  %v6662_v14 = vsel %vm4343_vm13, %v6630_v55, %v6168_v4  ;;  %v6536_v18 = vsel %vm1973_vm5, %v6504_v42, %v11756_v34  ;;  %v5424_v55 = vld [vmem:[#allocation2 + $0x171] sm:$0xff] }
 0xbc0   : > { %5547 = vrot.lane.b32.xlu0 %v5420_v27, %s12595_s24  ;;  %5673 = vrot.lane.b32.xlu1 %v5451_v20, %s12592_s29  ;;  %v6503_v20 = vsel %vm441_vm0, %v11460_v10, %v11732_v53 }
 0xbc1   : > { %v6535_v0 = vsel %vm1973_vm5, %v6503_v20, %v11750_v5 }
 0xbc2   : > { %v11771_v30 = vpop.permute.xlu0 %5787  ;;  %v5914_v6 = vpop.permute.xlu1 %5913  ;;  %v6567_v7 = vsel %vm2039_vm7, %v6535_v0, %v11758_v39 }
 0xbc3   : > { %v6599_v16 = vsel %vm2105_vm9, %v6567_v7, %v5914_v6  ;;  %v5393_v7 = vld [vmem:[#allocation2 + $0x180] sm:$0xff] }
 0xbc4   : > { %v11777_v59 = vpop.f32.mrb[18].mxu0  ;;  %6055 = vrot.lane.b32.xlu0 %v5452_v43, %s12596_s27  ;;  %6181 = vrot.lane.b32.xlu1 %v11774_v47, %s12597_s20 }
 0xbc5   : > { %v11783_v29 = vpop.f32.mrb[19].mxu0 }
 0xbc6   : > { %v6296_v46 = vpop.permute.xlu0 %6295  ;;  %v6422_v17 = vpop.permute.xlu1 %6421 }
 0xbc7   : > { %v6725_v1 = vsel %vm4409_vm15, %v6693_v62, %v6422_v17  ;;  %v6694_v19 = vsel %vm4376_vm14, %v6662_v14, %v6296_v46  ;;  %v6568_v62 = vsel %vm2039_vm7, %v6536_v18, %v11771_v30  ;;  %v5455_v14 = vld [vmem:[#allocation2 + $0x16a] sm:$0xff] }
 0xbc8   : > { %5675 = vrot.lane.b32.xlu0 %v5452_v43, %s12592_s29  ;;  %5801 = vrot.lane.b32.xlu1 %v11774_v47, %s8078_s23 }
 0xbc9   : > { %7924 = vmatprep.mubr.msk.f32.mxu0 %vm4458_vm1, %v6725_v1 }
 0xbca   : > { %v11798_v36 = vpop.permute.xlu0 %5533  ;;  %v5916_v45 = vpop.permute.xlu1 %5915 }
 0xbcb   : > { %v6600_v1 = vsel %vm2105_vm9, %v6568_v62, %v5916_v45  ;;  %v5394_v62 = vld [vmem:[#allocation2 + $0x188] sm:$0xff] }
 0xbcc   : > { %6183 = vrot.lane.b32.xlu0 %v11801_v31, %s12597_s20  ;;  %6309 = vrot.lane.b32.xlu1 %v5421_v48, %s12598_s28 }
 0xbce   : > { %v6042_v63 = vpop.permute.xlu0 %6041  ;;  %v6424_v52 = vpop.permute.xlu1 %6423 }
 0xbcf   : > { %v6726_v49 = vsel %vm4409_vm15, %v6694_v19, %v6424_v52  ;;  %v6631_v24 = vsel %vm4310_vm12, %v6599_v16, %v6042_v63 }
 0xbd0   : > { %5803 = vrot.lane.b32.xlu0 %v11801_v31, %s8078_s23  ;;  %5929 = vrot.lane.b32.xlu1 %v5421_v48, %s12594_s14 }
 0xbd1   : > { %7925 = vmatmul.mubr.msk.f32.gmra.mrb[32].mxu0 %vm4458_vm1, %v6726_v49 }
 0xbd2   : > { %v11814_v41 = vpop.permute.xlu0 %5535  ;;  %v11816_v51 = vpop.permute.xlu1 %5661 }
 0xbd4   : > { %6311 = vrot.lane.b32.xlu0 %v5422_v33, %s12598_s28  ;;  %6437 = vrot.lane.b32.xlu1 %v5453_v22, %s12599_s15 }
 0xbd6   : > { %v6044_v21 = vpop.permute.xlu0 %6043  ;;  %v6170_v2 = vpop.permute.xlu1 %6169 }
 0xbd7   : > { %v6663_v53 = vsel %vm4343_vm13, %v6631_v24, %v6170_v2  ;;  %v6632_v8 = vsel %vm4310_vm12, %v6600_v1, %v6044_v21  ;;  %v6505_v2 = vsel %vm441_vm0, %v11522_v40, %v11798_v36 }
 0xbd8   : > { %5549 = vrot.lane.b32.xlu0 %v5421_v48, %s12595_s24  ;;  %5931 = vrot.lane.b32.xlu1 %v5422_v33, %s12594_s14 }
 0xbda   : > { %v11822_v9 = vpop.permute.xlu0 %5663  ;;  %v11824_v3 = vpop.permute.xlu1 %5789 }
 0xbdc   : > { %6057 = vrot.lane.b32.xlu0 %v5453_v22, %s12596_s27  ;;  %6439 = vrot.lane.b32.xlu1 %v5454_v56, %s12599_s15 }
 0xbde   : > { %v6172_v44 = vpop.permute.xlu0 %6171  ;;  %v6298_v27 = vpop.permute.xlu1 %6297 }
 0xbdf   : > { %v6695_v39 = vsel %vm4376_vm14, %v6663_v53, %v6298_v27  ;;  %v6664_v34 = vsel %vm4343_vm13, %v6632_v8, %v6172_v44 }
 0xbe0   : > { %5551 = vrot.lane.b32.xlu0 %v5422_v33, %s12595_s24  ;;  %5677 = vrot.lane.b32.xlu1 %v5453_v22, %s12592_s29  ;;  %v5456_v33 = vld [vmem:[#allocation2 + $0x172] sm:$0xff] }
 0xbe2   : > { %v11837_v43 = vpop.permute.xlu0 %5791  ;;  %v5918_v4 = vpop.permute.xlu1 %5917 }
 0xbe4   : > { %v11843_v10 = vpop.f32.mrb[20].mxu0  ;;  %6059 = vrot.lane.b32.xlu0 %v5454_v56, %s12596_s27  ;;  %6185 = vrot.lane.b32.xlu1 %v11840_v50, %s12597_s20 }
 0xbe5   : > { %v11849_v5 = vpop.f32.mrb[21].mxu0 }
 0xbe6   : > { %v6300_v25 = vpop.permute.xlu0 %6299  ;;  %v6426_v58 = vpop.permute.xlu1 %6425 }
 0xbe7   : > { %v6727_v6 = vsel %vm4409_vm15, %v6695_v39, %v6426_v58  ;;  %v6696_v35 = vsel %vm4376_vm14, %v6664_v34, %v6300_v25 }
 0xbe8   : > { %5679 = vrot.lane.b32.xlu0 %v5454_v56, %s12592_s29  ;;  %5805 = vrot.lane.b32.xlu1 %v11840_v50, %s8078_s23  ;;  %v6537_v56 = vsel %vm1973_vm5, %v6505_v2, %v11816_v51 }
 0xbe9   : > { %7927 = vmatprep.mubr.msk.f32.mxu0 %vm4458_vm1, %v6727_v6  ;;  %v6569_v44 = vsel %vm2039_vm7, %v6537_v56, %v11824_v3 }
 0xbea   : > { %v11864_v46 = vpop.permute.xlu0 %5537  ;;  %v5920_v17 = vpop.permute.xlu1 %5919  ;;  %v6601_v0 = vsel %vm2105_vm9, %v6569_v44, %v5918_v4  ;;  %v6506_v4 = vsel %vm441_vm0, %v11545_v28, %v11814_v41  ;;  %v5425_v28 = vld [vmem:[#allocation2 + $0x181] sm:$0xff]  ;;  %v5427_v44 = vld [vmem:[#allocation2 + $0x199] sm:$0xff] }
 0xbeb   : > { %v6538_v25 = vsel %vm1973_vm5, %v6506_v4, %v11822_v9  ;;  %v6507_v2 = vsel %vm441_vm0, %v11584_v54, %v11864_v46 }
 0xbec   : > { %6187 = vrot.lane.b32.xlu0 %v11867_v11, %s12597_s20  ;;  %6313 = vrot.lane.b32.xlu1 %v5423_v12, %s12598_s28  ;;  %v6570_v58 = vsel %vm2039_vm7, %v6538_v25, %v11837_v43 }
 0xbed   : > { %v6602_v18 = vsel %vm2105_vm9, %v6570_v58, %v5920_v17 }
 0xbee   : > { %v6046_v30 = vpop.permute.xlu0 %6045  ;;  %v6428_v15 = vpop.permute.xlu1 %6427 }
 0xbef   : > { %v6728_v61 = vsel %vm4409_vm15, %v6696_v35, %v6428_v15  ;;  %v6633_v16 = vsel %vm4310_vm12, %v6601_v0, %v6046_v30  ;;  %v5426_v35 = vld [vmem:[#allocation2 + $0x189] sm:$0xff]  ;;  %v5428_v0 = vld [vmem:[#allocation2 + $0x1a1] sm:$0xff] }
 0xbf0   : > { %5807 = vrot.lane.b32.xlu0 %v11867_v11, %s8078_s23  ;;  %5933 = vrot.lane.b32.xlu1 %v5423_v12, %s12594_s14  ;;  %v5457_v30 = vld [vmem:[#allocation2 + $0x182] sm:$0xff] }
 0xbf1   : > { %7928 = vmatmul.mubr.msk.f32.gmra.mrb[34].mxu0 %vm4458_vm1, %v6728_v61 }
 0xbf2   : > { %v11880_v45 = vpop.permute.xlu0 %5539  ;;  %v11882_v48 = vpop.permute.xlu1 %5665 }
 0xbf3   : > { %v6539_v56 = vsel %vm1973_vm5, %v6507_v2, %v11882_v48  ;;  %v6508_v58 = vsel %vm441_vm0, %v11607_v60, %v11880_v45 }
 0xbf4   : > { %6315 = vrot.lane.b32.xlu0 %v5424_v55, %s12598_s28  ;;  %6441 = vrot.lane.b32.xlu1 %v5455_v14, %s12599_s15 }
 0xbf6   : > { %v6048_v19 = vpop.permute.xlu0 %6047  ;;  %v6174_v63 = vpop.permute.xlu1 %6173 }
 0xbf7   : > { %v6665_v36 = vsel %vm4343_vm13, %v6633_v16, %v6174_v63  ;;  %v6634_v41 = vsel %vm4310_vm12, %v6602_v18, %v6048_v19  ;;  %v5458_v19 = vld [vmem:[#allocation2 + $0x18a] sm:$0xff]  ;;  %v5395_v63 = vld [vmem:[#allocation2 + $0x198] sm:$0xff] }
 0xbf8   : > { %5553 = vrot.lane.b32.xlu0 %v5423_v12, %s12595_s24  ;;  %5935 = vrot.lane.b32.xlu1 %v5424_v55, %s12594_s14 }
 0xbfa   : > { %v11888_v52 = vpop.permute.xlu0 %5667  ;;  %v11890_v49 = vpop.permute.xlu1 %5793 }
 0xbfb   : > { %v6540_v18 = vsel %vm1973_vm5, %v6508_v58, %v11888_v52 }
 0xbfc   : > { %6061 = vrot.lane.b32.xlu0 %v5455_v14, %s12596_s27  ;;  %6443 = vrot.lane.b32.xlu1 %v5456_v33, %s12599_s15 }
 0xbfe   : > { %v6176_v22 = vpop.permute.xlu0 %6175  ;;  %v6302_v21 = vpop.permute.xlu1 %6301 }
 0xbff   : > { %v6697_v3 = vsel %vm4376_vm14, %v6665_v36, %v6302_v21  ;;  %v6666_v9 = vsel %vm4343_vm13, %v6634_v41, %v6176_v22 }
 0xc00   : > { %5555 = vrot.lane.b32.xlu0 %v5424_v55, %s12595_s24  ;;  %5681 = vrot.lane.b32.xlu1 %v5455_v14, %s12592_s29 }
 0xc02   : > { %v11903_v27 = vpop.permute.xlu0 %5795  ;;  %v11905_v20 = vpop.permute.xlu1 %5921 }
 0xc04   : > { %v11909_v40 = vpop.f32.mrb[22].mxu0  ;;  %6063 = vrot.lane.b32.xlu0 %v5456_v33, %s12596_s27  ;;  %6189 = vrot.lane.b32.xlu1 %v5393_v7, %s12597_s20 }
 0xc05   : > { %v11914_v51 = vpop.f32.mrb[23].mxu0 }
 0xc06   : > { %v6304_v24 = vpop.permute.xlu0 %6303  ;;  %v6430_v53 = vpop.permute.xlu1 %6429 }
 0xc07   : > { %v6729_v39 = vsel %vm4409_vm15, %v6697_v3, %v6430_v53  ;;  %v6698_v1 = vsel %vm4376_vm14, %v6666_v9, %v6304_v24  ;;  %v5459_v53 = vld [vmem:[#allocation2 + $0x19a] sm:$0xff] }
 0xc08   : > { %5683 = vrot.lane.b32.xlu0 %v5456_v33, %s12592_s29  ;;  %5809 = vrot.lane.b32.xlu1 %v5393_v7, %s8078_s23  ;;  %v5396_v33 = vld [vmem:[#allocation2 + $0x1a0] sm:$0xff]  ;;  %v6571_v7 = vsel %vm2039_vm7, %v6539_v56, %v11890_v49 }
 0xc09   : > { %7930 = vmatprep.mubr.msk.f32.mxu0 %vm4458_vm1, %v6729_v39  ;;  %v6603_v3 = vsel %vm2105_vm9, %v6571_v7, %v11905_v20  ;;  %v5460_v39 = vld [vmem:[#allocation2 + $0x1a2] sm:$0xff] }
 0xc0a   : > { %v11928_v6 = vpop.permute.xlu0 %5541  ;;  %v11930_v42 = vpop.permute.xlu1 %5923 }
 0xc0c   : > { %6191 = vrot.lane.b32.xlu0 %v5394_v62, %s12597_s20  ;;  %6317 = vrot.lane.b32.xlu1 %v5425_v28, %s12598_s28 }
 0xc0e   : > { %v6050_v12 = vpop.permute.xlu0 %6049  ;;  %v6432_v43 = vpop.permute.xlu1 %6431 }
 0xc0f   : > { %v6730_v8 = vsel %vm4409_vm15, %v6698_v1, %v6432_v43  ;;  %v6635_v24 = vsel %vm4310_vm12, %v6603_v3, %v6050_v12 }
 0xc10   : > { %5811 = vrot.lane.b32.xlu0 %v5394_v62, %s8078_s23  ;;  %5937 = vrot.lane.b32.xlu1 %v5425_v28, %s12594_s14  ;;  %v6572_v62 = vsel %vm2039_vm7, %v6540_v18, %v11903_v27 }
 0xc11   : > { %7931 = vmatmul.mubr.msk.f32.gmra.mrb[36].mxu0 %vm4458_vm1, %v6730_v8  ;;  %v6604_v9 = vsel %vm2105_vm9, %v6572_v62, %v11930_v42 }
 0xc12   : > { %v11942_v17 = vpop.permute.xlu0 %5543  ;;  %v11944_v34 = vpop.permute.xlu1 %5669 }
 0xc14   : > { %6319 = vrot.lane.b32.xlu0 %v5426_v35, %s12598_s28  ;;  %6445 = vrot.lane.b32.xlu1 %v5457_v30, %s12599_s15 }
 0xc16   : > { %v6052_v15 = vpop.permute.xlu0 %6051  ;;  %v6178_v61 = vpop.permute.xlu1 %6177 }
 0xc17   : > { %v6667_v46 = vsel %vm4343_vm13, %v6635_v24, %v6178_v61  ;;  %v6636_v1 = vsel %vm4310_vm12, %v6604_v9, %v6052_v15  ;;  %v6509_v15 = vsel %vm441_vm0, %v11646_v13, %v11928_v6 }
 0xc18   : > { %5939 = vrot.lane.b32.xlu0 %v5426_v35, %s12594_s14  ;;  %6065 = vrot.lane.b32.xlu1 %v5457_v30, %s12596_s27 }
 0xc1a   : > { %v11950_v55 = vpop.permute.xlu0 %5671  ;;  %v5798_v14 = vpop.permute.xlu1 %5797 }
 0xc1c   : > { %6447 = vrot.lane.b32.xlu0 %v5458_v19, %s12599_s15  ;;  %6067 = vrot.lane.b32.xlu1 %v5458_v19, %s12596_s27 }
 0xc1e   : > { %v6180_v22 = vpop.permute.xlu0 %6179  ;;  %v6306_v21 = vpop.permute.xlu1 %6305 }
 0xc1f   : > { %v6699_v49 = vsel %vm4376_vm14, %v6667_v46, %v6306_v21  ;;  %v6668_v60 = vsel %vm4343_vm13, %v6636_v1, %v6180_v22 }
 0xc20   : > { %6193 = vrot.lane.b32.xlu0 %v5395_v63, %s12597_s20  ;;  %6195 = vrot.lane.b32.xlu1 %v5396_v33, %s12597_s20  ;;  %v6541_v33 = vsel %vm1973_vm5, %v6509_v15, %v11944_v34 }
 0xc21   : > { %v6573_v22 = vsel %vm2039_vm7, %v6541_v33, %v5798_v14  ;;  %v6510_v14 = vsel %vm441_vm0, %v11669_v26, %v11942_v17 }
 0xc22   : > { %v5800_v16 = vpop.permute.xlu0 %5799  ;;  %v5926_v36 = vpop.permute.xlu1 %5925 }
 0xc23   : > { %v6605_v56 = vsel %vm2105_vm9, %v6573_v22, %v5926_v36  ;;  %v6542_v36 = vsel %vm1973_vm5, %v6510_v14, %v11950_v55 }
 0xc24   : > { %v11966_v54 = vpop.f32.mrb[24].mxu0  ;;  %6321 = vrot.lane.b32.xlu0 %v5427_v44, %s12598_s28  ;;  %6323 = vrot.lane.b32.xlu1 %v5428_v0, %s12598_s28  ;;  %v6574_v46 = vsel %vm2039_vm7, %v6542_v36, %v5800_v16 }
 0xc25   : > { %v11971_v48 = vpop.f32.mrb[25].mxu0 }
 0xc26   : > { %v6308_v4 = vpop.permute.xlu0 %6307  ;;  %v6434_v25 = vpop.permute.xlu1 %6433 }
 0xc27   : > { %v6731_v20 = vsel %vm4409_vm15, %v6699_v49, %v6434_v25  ;;  %v6700_v45 = vsel %vm4376_vm14, %v6668_v60, %v6308_v4 }
 0xc28   : > { %6449 = vrot.lane.b32.xlu0 %v5459_v53, %s12599_s15  ;;  %6451 = vrot.lane.b32.xlu1 %v5460_v39, %s12599_s15 }
 0xc29   : > { %7933 = vmatprep.mubr.msk.f32.mxu0 %vm4458_vm1, %v6731_v20 }
 0xc2a   : > { %v5546_v28 = vpop.permute.xlu0 %5545  ;;  %v5928_v41 = vpop.permute.xlu1 %5927 }
 0xc2b   : > { %v6606_v49 = vsel %vm2105_vm9, %v6574_v46, %v5928_v41 }
 0xc2e   : > { %v6054_v12 = vpop.permute.xlu0 %6053  ;;  %v6436_v43 = vpop.permute.xlu1 %6435 }
 0xc2f   : > { %v6732_v52 = vsel %vm4409_vm15, %v6700_v45, %v6436_v43  ;;  %v6637_v44 = vsel %vm4310_vm12, %v6605_v56, %v6054_v12  ;;  %v6511_v45 = vsel %vm441_vm0, %v11708_v32, %v5546_v28 }
 0xc30   : > { %7934 = vmatmul.mubr.msk.f32.gmra.mrb[38].mxu0 %vm4458_vm1, %v6732_v52 }
 0xc32   : > { %v5548_v8 = vpop.permute.xlu0 %5547  ;;  %v5674_v35 = vpop.permute.xlu1 %5673 }
 0xc33   : > { %v6543_v12 = vsel %vm1973_vm5, %v6511_v45, %v5674_v35  ;;  %v6512_v35 = vsel %vm441_vm0, %v11735_v23, %v5548_v8 }
 0xc36   : > { %v6056_v27 = vpop.permute.xlu0 %6055  ;;  %v6182_v30 = vpop.permute.xlu1 %6181 }
 0xc37   : > { %v6669_v7 = vsel %vm4343_vm13, %v6637_v44, %v6182_v30  ;;  %v6638_v4 = vsel %vm4310_vm12, %v6606_v49, %v6056_v27 }
 0xc3a   : > { %v5676_v61 = vpop.permute.xlu0 %5675  ;;  %v5802_v19 = vpop.permute.xlu1 %5801 }
 0xc3b   : > { %v6575_v43 = vsel %vm2039_vm7, %v6543_v12, %v5802_v19  ;;  %v6544_v19 = vsel %vm1973_vm5, %v6512_v35, %v5676_v61 }
 0xc3e   : > { %v6184_v63 = vpop.permute.xlu0 %6183  ;;  %v6310_v42 = vpop.permute.xlu1 %6309 }
 0xc3f   : > { %v6701_v24 = vsel %vm4376_vm14, %v6669_v7, %v6310_v42  ;;  %v6670_v25 = vsel %vm4343_vm13, %v6638_v4, %v6184_v63 }
 0xc42   : > { %v5804_v21 = vpop.permute.xlu0 %5803  ;;  %v5930_v2 = vpop.permute.xlu1 %5929 }
 0xc43   : > { %v6607_v30 = vsel %vm2105_vm9, %v6575_v43, %v5930_v2  ;;  %v6576_v2 = vsel %vm2039_vm7, %v6544_v19, %v5804_v21 }
 0xc44   : > { %v12000_v0 = vpop.f32.mrb[26].mxu0 }
 0xc45   : > { %v12003_v3 = vpop.f32.mrb[27].mxu0 }
 0xc46   : > { %v6312_v13 = vpop.permute.xlu0 %6311  ;;  %v6438_v6 = vpop.permute.xlu1 %6437 }
 0xc47   : > { %v6733_v34 = vsel %vm4409_vm15, %v6701_v24, %v6438_v6  ;;  %v6702_v20 = vsel %vm4376_vm14, %v6670_v25, %v6312_v13 }
 0xc48   : > { %7936 = vmatprep.mubr.msk.f32.mxu0 %vm4458_vm1, %v6733_v34 }
 0xc4a   : > { %v5550_v53 = vpop.permute.xlu0 %5549  ;;  %v5932_v39 = vpop.permute.xlu1 %5931 }
 0xc4b   : > { %v6608_v24 = vsel %vm2105_vm9, %v6576_v2, %v5932_v39 }
 0xc4e   : > { %v6058_v58 = vpop.permute.xlu0 %6057  ;;  %v6440_v18 = vpop.permute.xlu1 %6439 }
 0xc4f   : > { %v6734_v26 = vsel %vm4409_vm15, %v6702_v20, %v6440_v18  ;;  %v6639_v63 = vsel %vm4310_vm12, %v6607_v30, %v6058_v58  ;;  %v6513_v20 = vsel %vm441_vm0, %v11774_v47, %v5550_v53 }
 0xc50   : > { %7937 = vmatmul.mubr.msk.f32.gmra.mrb[40].mxu0 %vm4458_vm1, %v6734_v26 }
 0xc52   : > { %v5552_v17 = vpop.permute.xlu0 %5551  ;;  %v5678_v55 = vpop.permute.xlu1 %5677 }
 0xc53   : > { %v6545_v58 = vsel %vm1973_vm5, %v6513_v20, %v5678_v55  ;;  %v6514_v55 = vsel %vm441_vm0, %v11801_v31, %v5552_v17 }
 0xc56   : > { %v6060_v62 = vpop.permute.xlu0 %6059  ;;  %v6186_v16 = vpop.permute.xlu1 %6185 }
 0xc57   : > { %v6671_v15 = vsel %vm4343_vm13, %v6639_v63, %v6186_v16  ;;  %v6640_v13 = vsel %vm4310_vm12, %v6608_v24, %v6060_v62 }
 0xc5a   : > { %v5680_v9 = vpop.permute.xlu0 %5679  ;;  %v5806_v1 = vpop.permute.xlu1 %5805 }
 0xc5b   : > { %v6577_v18 = vsel %vm2039_vm7, %v6545_v58, %v5806_v1  ;;  %v6546_v1 = vsel %vm1973_vm5, %v6514_v55, %v5680_v9 }
 0xc5e   : > { %v6188_v60 = vpop.permute.xlu0 %6187  ;;  %v6314_v41 = vpop.permute.xlu1 %6313 }
 0xc5f   : > { %v6703_v22 = vsel %vm4376_vm14, %v6671_v15, %v6314_v41  ;;  %v6672_v6 = vsel %vm4343_vm13, %v6640_v13, %v6188_v60 }
 0xc62   : > { %v5808_v52 = vpop.permute.xlu0 %5807  ;;  %v5934_v27 = vpop.permute.xlu1 %5933 }
 0xc63   : > { %v6609_v16 = vsel %vm2105_vm9, %v6577_v18, %v5934_v27  ;;  %v6578_v27 = vsel %vm2039_vm7, %v6546_v1, %v5808_v52 }
 0xc64   : > { %v12026_v42 = vpop.f32.mrb[28].mxu0 }
 0xc65   : > { %v12029_v33 = vpop.f32.mrb[29].mxu0 }
 0xc66   : > { %v6316_v56 = vpop.permute.xlu0 %6315  ;;  %v6442_v32 = vpop.permute.xlu1 %6441 }
 0xc67   : > { %v6735_v28 = vsel %vm4409_vm15, %v6703_v22, %v6442_v32  ;;  %v6704_v34 = vsel %vm4376_vm14, %v6672_v6, %v6316_v56 }
 0xc68   : > { %7939 = vmatprep.mubr.msk.f32.mxu0 %vm4458_vm1, %v6735_v28 }
 0xc6a   : > { %v5554_v44 = vpop.permute.xlu0 %5553  ;;  %v5936_v7 = vpop.permute.xlu1 %5935 }
 0xc6b   : > { %v6610_v22 = vsel %vm2105_vm9, %v6578_v27, %v5936_v7  ;;  %v6515_v52 = vsel %vm441_vm0, %v11840_v50, %v5554_v44 }
 0xc6e   : > { %v6062_v14 = vpop.permute.xlu0 %6061  ;;  %v6444_v36 = vpop.permute.xlu1 %6443 }
 0xc6f   : > { %v6736_v23 = vsel %vm4409_vm15, %v6704_v34, %v6444_v36  ;;  %v6641_v60 = vsel %vm4310_vm12, %v6609_v16, %v6062_v14 }
 0xc70   : > { %7940 = vmatmul.mubr.msk.f32.gmra.mrb[42].mxu0 %vm4458_vm1, %v6736_v23 }
 0xc72   : > { %v5556_v8 = vpop.permute.xlu0 %5555  ;;  %v5682_v61 = vpop.permute.xlu1 %5681 }
 0xc73   : > { %v6516_v2 = vsel %vm441_vm0, %v11867_v11, %v5556_v8  ;;  %v6547_v7 = vsel %vm1973_vm5, %v6515_v52, %v5682_v61 }
 0xc76   : > { %v6064_v46 = vpop.permute.xlu0 %6063  ;;  %v6190_v21 = vpop.permute.xlu1 %6189 }
 0xc77   : > { %v6673_v45 = vsel %vm4343_vm13, %v6641_v60, %v6190_v21  ;;  %v6642_v56 = vsel %vm4310_vm12, %v6610_v22, %v6064_v46 }
 0xc7a   : > { %v5684_v49 = vpop.permute.xlu0 %5683  ;;  %v5810_v4 = vpop.permute.xlu1 %5809 }
 0xc7b   : > { %v6548_v24 = vsel %vm1973_vm5, %v6516_v2, %v5684_v49  ;;  %v6579_v13 = vsel %vm2039_vm7, %v6547_v7, %v5810_v4 }
 0xc7e   : > { %v6192_v25 = vpop.permute.xlu0 %6191  ;;  %v6318_v39 = vpop.permute.xlu1 %6317 }
 0xc7f   : > { %v6705_v43 = vsel %vm4376_vm14, %v6673_v45, %v6318_v39  ;;  %v6674_v32 = vsel %vm4343_vm13, %v6642_v56, %v6192_v25  ;;  %v12107_v45 = vld [vmem:[%s12571_s10] ss:$0 sm:$0xff] }
 0xc80   : > { %v12141_v22 = vadd.f32 %v12107_v45, %v11849_v5  ;;  %v12154_v5 = vadd.f32 %v11843_v10, %v12107_v45  ;;  %v12160_v2 = vadd.f32 %v12107_v45, %v11914_v51 }
 0xc82   : > { %v5812_v26 = vpop.permute.xlu0 %5811  ;;  %v5938_v62 = vpop.permute.xlu1 %5937  ;;  %v7085_v52 = vsel %vm441_vm0, %v12141_v22, 0.0  ;;  %v7152_v10 = vmul.f32 %v12154_v5, %v12154_v5  ;;  %v7087_v51 = vsel %vm441_vm0, %v12154_v5, 0.0 }
 0xc83   : > { %v6580_v6 = vsel %vm2039_vm7, %v6548_v24, %v5812_v26  ;;  %v6611_v36 = vsel %vm2105_vm9, %v6579_v13, %v5938_v62 }
 0xc84   : > { %v12050_v41 = vpop.f32.mrb[30].mxu0 }
 0xc85   : > { %v12053_v12 = vpop.f32.mrb[31].mxu0 }
 0xc86   : > { %v6320_v30 = vpop.permute.xlu0 %6319  ;;  %v6446_v47 = vpop.permute.xlu1 %6445 }
 0xc87   : > { %v6737_v53 = vsel %vm4409_vm15, %v6705_v43, %v6446_v47  ;;  %v6706_v28 = vsel %vm4376_vm14, %v6674_v32, %v6320_v30  ;;  %v12111_v43 = vadd.f32 %v11711_v38, %v12107_v45  ;;  %v12115_v30 = vadd.f32 %v12107_v45, %v11717_v57 }
 0xc88   : > { %7942 = vmatprep.mubr.msk.f32.mxu0 %vm4458_vm1, %v6737_v53  ;;  %v12119_v47 = vadd.f32 %v12107_v45, %v11783_v29 }
 0xc89   : > { %v7148_v53 = vmul.f32 %v12111_v43, %v12111_v43  ;;  %v7147_v55 = vmul.f32 %v12115_v30, %v12115_v30  ;;  %v7079_v1 = vsel %vm441_vm0, %v12111_v43, 0.0  ;;  %v7078_v38 = vsel %vm441_vm0, %v12115_v30, 0.0 }
 0xc8a   : > { %v5940_v63 = vpop.permute.xlu0 %5939  ;;  %v6066_v15 = vpop.permute.xlu1 %6065  ;;  %v7149_v57 = vmul.f32 %v12119_v47, %v12119_v47  ;;  %v7080_v56 = vadd.f32 %v7079_v1, %v7078_v38  ;;  %v12198_v1 = vadd.f32 %v12107_v45, %v12003_v3  ;;  %v12210_v3 = vadd.f32 %v12000_v0, %v12107_v45 }
 0xc8b   : > { %v6612_v23 = vsel %vm2105_vm9, %v6580_v6, %v5940_v63  ;;  %v6643_v46 = vsel %vm4310_vm12, %v6611_v36, %v6066_v15  ;;  %v7180_v27 = vsel %vm441_vm0, %v7148_v53, 0.0  ;;  %v7179_v29 = vsel %vm441_vm0, %v7147_v55, 0.0 }
 0xc8c   : > { %v12135_v63 = vadd.f32 %v11777_v59, %v12107_v45  ;;  %v7081_v15 = vsel %vm441_vm0, %v12119_v47, 0.0  ;;  %v7182_v32 = vsel %vm441_vm0, %v7149_v57, 0.0  ;;  %v7153_v36 = vmul.f32 %v12160_v2, %v12160_v2 }
 0xc8e   : > { %v6448_v35 = vpop.permute.xlu0 %6447  ;;  %v6068_v19 = vpop.permute.xlu1 %6067 }
 0xc8f   : > { %v6738_v31 = vsel %vm4409_vm15, %v6706_v28, %v6448_v35  ;;  %v6644_v50 = vsel %vm4310_vm12, %v6612_v23, %v6068_v19  ;;  %v7181_v28 = vadd.f32 %v7180_v27, %v7179_v29  ;;  %v7082_v35 = vadd.f32 %v7081_v15, %v7080_v56 }
 0xc90   : > { %7943 = vmatmul.mubr.msk.f32.gmra.mrb[44].mxu0 %vm4458_vm1, %v6738_v31  ;;  %v7150_v19 = vmul.f32 %v12135_v63, %v12135_v63  ;;  %v7151_v31 = vmul.f32 %v12141_v22, %v12141_v22 }
 0xc91   : > { %v7183_v59 = vadd.f32 %v7182_v32, %v7181_v28 }
 0xc92   : > { %v6194_v17 = vpop.permute.xlu0 %6193  ;;  %v6196_v9 = vpop.permute.xlu1 %6195  ;;  %v7184_v13 = vsel %vm441_vm0, %v7150_v19, 0.0  ;;  %v7186_v6 = vsel %vm441_vm0, %v7151_v31, 0.0  ;;  %v12216_v19 = vadd.f32 %v12107_v45, %v12029_v33  ;;  %v12228_v33 = vadd.f32 %v12026_v42, %v12107_v45 }
 0xc93   : > { %v6675_v11 = vsel %vm4343_vm13, %v6643_v46, %v6194_v17  ;;  %v6676_v44 = vsel %vm4343_vm13, %v6644_v50, %v6196_v9  ;;  %v7083_v9 = vsel %vm441_vm0, %v12135_v63, 0.0  ;;  %v12174_v46 = vadd.f32 %v11909_v40, %v12107_v45 }
 0xc94   : > { %v7084_v24 = vadd.f32 %v7083_v9, %v7082_v35  ;;  %v7089_v50 = vsel %vm441_vm0, %v12160_v2, 0.0  ;;  %v7097_v35 = vsel %vm441_vm0, %v12198_v1, 0.0  ;;  %v7159_v0 = vmul.f32 %v12216_v19, %v12216_v19 }
 0xc95   : > { %v7091_v53 = vsel %vm441_vm0, %v12174_v46, 0.0 }
 0xc96   : > { %v6322_v34 = vpop.permute.xlu0 %6321  ;;  %v6324_v14 = vpop.permute.xlu1 %6323 }
 0xc97   : > { %v6707_v8 = vsel %vm4376_vm14, %v6675_v11, %v6322_v34  ;;  %v6708_v61 = vsel %vm4376_vm14, %v6676_v44, %v6324_v14  ;;  %v7086_v34 = vadd.f32 %v7085_v52, %v7084_v24  ;;  %v7185_v14 = vadd.f32 %v7184_v13, %v7183_v59 }
 0xc98   : > { %v12180_v11 = vadd.f32 %v12107_v45, %v11971_v48  ;;  %v12192_v48 = vadd.f32 %v11966_v54, %v12107_v45  ;;  %v7157_v54 = vmul.f32 %v12198_v1, %v12198_v1  ;;  %v7158_v13 = vmul.f32 %v12210_v3, %v12210_v3 }
 0xc99   : > { %v7187_v23 = vadd.f32 %v7186_v6, %v7185_v14  ;;  %v7088_v44 = vadd.f32 %v7087_v51, %v7086_v34  ;;  %v7099_v34 = vsel %vm441_vm0, %v12210_v3, 0.0  ;;  %v7101_v14 = vsel %vm441_vm0, %v12216_v19, 0.0 }
 0xc9a   : > { %v6450_v21 = vpop.permute.xlu0 %6449  ;;  %v6452_v49 = vpop.permute.xlu1 %6451  ;;  %v7155_v40 = vmul.f32 %v12180_v11, %v12180_v11  ;;  %v7093_v55 = vsel %vm441_vm0, %v12180_v11, 0.0  ;;  %v7156_v56 = vmul.f32 %v12192_v48, %v12192_v48  ;;  %v7095_v28 = vsel %vm441_vm0, %v12192_v48, 0.0 }
 0xc9b   : > { %v6739_v4 = vsel %vm4409_vm15, %v6707_v8, %v6450_v21  ;;  %v6740_v25 = vsel %vm4409_vm15, %v6708_v61, %v6452_v49  ;;  %v7188_v8 = vsel %vm441_vm0, %v7152_v10, 0.0  ;;  %v7190_v61 = vsel %vm441_vm0, %v7153_v36, 0.0 }
 0xc9c   : > { %7945 = vmatprep.mubr.msk.f32.mxu0 %vm4458_vm1, %v6739_v4  ;;  %v7090_v21 = vadd.f32 %v7089_v50, %v7088_v44  ;;  %v7189_v49 = vadd.f32 %v7188_v8, %v7187_v23  ;;  %v7154_v4 = vmul.f32 %v12174_v46, %v12174_v46  ;;  %v7194_v27 = vsel %vm441_vm0, %v7155_v40, 0.0 }
 0xc9d   : > { %7946 = vmatmul.mubr.msk.f32.gmra.mrb[46].mxu0 %vm4458_vm1, %v6740_v25  ;;  %v7196_v59 = vsel %vm441_vm0, %v7156_v56, 0.0  ;;  %v7198_v9 = vsel %vm441_vm0, %v7157_v54, 0.0  ;;  %v12234_v10 = vadd.f32 %v12107_v45, %v12053_v12  ;;  %v7200_v23 = vsel %vm441_vm0, %v7158_v13, 0.0 }
 0xc9e   : > { %v7191_v25 = vadd.f32 %v7190_v61, %v7189_v49  ;;  %v7092_v38 = vadd.f32 %v7091_v53, %v7090_v21  ;;  %v7192_v57 = vsel %vm441_vm0, %v7154_v4, 0.0  ;;  %v7202_v51 = vsel %vm441_vm0, %v7159_v0, 0.0 }
 0xc9f   : > { %v7160_v8 = vmul.f32 %v12228_v33, %v12228_v33  ;;  %v7161_v42 = vmul.f32 %v12234_v10, %v12234_v10  ;;  %v7103_v21 = vsel %vm441_vm0, %v12228_v33, 0.0  ;;  %v12246_v12 = vadd.f32 %v12050_v41, %v12107_v45 }
 0xca0   : > { %v7094_v29 = vadd.f32 %v7093_v55, %v7092_v38  ;;  %v7193_v15 = vadd.f32 %v7192_v57, %v7191_v25  ;;  %v7105_v49 = vsel %vm441_vm0, %v12234_v10, 0.0 }
 0xca1   : > { %v7204_v53 = vsel %vm441_vm0, %v7160_v8, 0.0  ;;  %v7206_v55 = vsel %vm441_vm0, %v7161_v42, 0.0  ;;  %v7162_v41 = vmul.f32 %v12246_v12, %v12246_v12 }
 0xca2   : > { %v7195_v32 = vadd.f32 %v7194_v27, %v7193_v15  ;;  %v7096_v31 = vadd.f32 %v7095_v28, %v7094_v29 }
 0xca4   : > { %v12088_v39 = vpop.f32.mrb[32].mxu0  ;;  %v7098_v52 = vadd.f32 %v7097_v35, %v7096_v31  ;;  %v7197_v24 = vadd.f32 %v7196_v59, %v7195_v32  ;;  %v7208_v35 = vsel %vm441_vm0, %v7162_v41, 0.0 }
 0xca5   : > { %v12090_v20 = vpop.f32.mrb[33].mxu0  ;;  %v12266_v56 = vadd.f32 %v12088_v39, %v12107_v45 }
 0xca6   : > { %v7199_v6 = vadd.f32 %v7198_v9, %v7197_v24  ;;  %v7100_v36 = vadd.f32 %v7099_v34, %v7098_v52  ;;  %v12252_v4 = vadd.f32 %v12107_v45, %v12090_v20  ;;  %v7107_v20 = vsel %vm441_vm0, %v12246_v12, 0.0 }
 0xca7   : > { %v7164_v52 = vmul.f32 %v12266_v56, %v12266_v56  ;;  %v7111_v13 = vsel %vm441_vm0, %v12266_v56, 0.0 }
 0xca8   : > { %v7102_v50 = vadd.f32 %v7101_v14, %v7100_v36  ;;  %v7201_v44 = vadd.f32 %v7200_v23, %v7199_v6  ;;  %v7163_v29 = vmul.f32 %v12252_v4, %v12252_v4  ;;  %v7109_v54 = vsel %vm441_vm0, %v12252_v4, 0.0 }
 0xca9   : > { %v7212_v14 = vsel %vm441_vm0, %v7164_v52, 0.0 }
 0xcaa   : > { %v7203_v61 = vadd.f32 %v7202_v51, %v7201_v44  ;;  %v7104_v40 = vadd.f32 %v7103_v21, %v7102_v50  ;;  %v7210_v31 = vsel %vm441_vm0, %v7163_v29, 0.0 }
 0xcac   : > { %v7106_v57 = vadd.f32 %v7105_v49, %v7104_v40  ;;  %v7205_v27 = vadd.f32 %v7204_v53, %v7203_v61 }
 0xcae   : > { %v7207_v15 = vadd.f32 %v7206_v55, %v7205_v27  ;;  %v7108_v28 = vadd.f32 %v7107_v20, %v7106_v57 }
 0xcb0   : > { %v7110_v59 = vadd.f32 %v7109_v54, %v7108_v28  ;;  %v7209_v9 = vadd.f32 %v7208_v35, %v7207_v15 }
 0xcb2   : > { %v7211_v24 = vadd.f32 %v7210_v31, %v7209_v9  ;;  %v7112_v34 = vadd.f32 %v7111_v13, %v7110_v59 }
 0xcb4   : > { %v7213_v51 = vadd.f32 %v7212_v14, %v7211_v24 }
 0xcc4   : > { %v12092_v58 = vpop.f32.mrb[34].mxu0 }
 0xcc5   : > { %v12094_v18 = vpop.f32.mrb[35].mxu0 }
 0xcc6   : > { %v12272_v32 = vadd.f32 %v12107_v45, %v12094_v18  ;;  %v12284_v18 = vadd.f32 %v12092_v58, %v12107_v45 }
 0xcc8   : > { %v7165_v39 = vmul.f32 %v12272_v32, %v12272_v32  ;;  %v7113_v0 = vsel %vm441_vm0, %v12272_v32, 0.0  ;;  %v7166_v50 = vmul.f32 %v12284_v18, %v12284_v18  ;;  %v7115_v8 = vsel %vm441_vm0, %v12284_v18, 0.0 }
 0xcc9   : > { %v7114_v23 = vadd.f32 %v7113_v0, %v7112_v34 }
 0xcca   : > { %v7214_v36 = vsel %vm441_vm0, %v7165_v39, 0.0  ;;  %v7216_v49 = vsel %vm441_vm0, %v7166_v50, 0.0 }
 0xccb   : > { %v7215_v44 = vadd.f32 %v7214_v36, %v7213_v51  ;;  %v7116_v21 = vadd.f32 %v7115_v8, %v7114_v23 }
 0xccd   : > { %v7217_v55 = vadd.f32 %v7216_v49, %v7215_v44 }
 0xce4   : > { %v12096_v26 = vpop.f32.mrb[36].mxu0 }
 0xce5   : > { %v12098_v62 = vpop.f32.mrb[37].mxu0 }
 0xce6   : > { %v12290_v6 = vadd.f32 %v12107_v45, %v12098_v62  ;;  %v12302_v62 = vadd.f32 %v12096_v26, %v12107_v45 }
 0xce8   : > { %v7167_v58 = vmul.f32 %v12290_v6, %v12290_v6  ;;  %v7117_v42 = vsel %vm441_vm0, %v12290_v6, 0.0  ;;  %v7168_v57 = vmul.f32 %v12302_v62, %v12302_v62  ;;  %v7119_v41 = vsel %vm441_vm0, %v12302_v62, 0.0 }
 0xce9   : > { %v7118_v53 = vadd.f32 %v7117_v42, %v7116_v21 }
 0xcea   : > { %v7218_v40 = vsel %vm441_vm0, %v7167_v58, 0.0  ;;  %v7220_v54 = vsel %vm441_vm0, %v7168_v57, 0.0 }
 0xceb   : > { %v7219_v27 = vadd.f32 %v7218_v40, %v7217_v55  ;;  %v7120_v20 = vadd.f32 %v7119_v41, %v7118_v53 }
 0xced   : > { %v7221_v31 = vadd.f32 %v7220_v54, %v7219_v27 }
 0xd03   : > { %v12100_v16 = vpop.f32.mrb[38].mxu0 }
 0xd04   : > { %v12102_v60 = vpop.f32.mrb[39].mxu0 }
 0xd05   : > { %v12308_v61 = vadd.f32 %v12107_v45, %v12102_v60  ;;  %v12320_v60 = vadd.f32 %v12100_v16, %v12107_v45 }
 0xd07   : > { %v7169_v26 = vmul.f32 %v12308_v61, %v12308_v61  ;;  %v7121_v29 = vsel %vm441_vm0, %v12308_v61, 0.0  ;;  %v7170_v59 = vmul.f32 %v12320_v60, %v12320_v60  ;;  %v7123_v52 = vsel %vm441_vm0, %v12320_v60, 0.0 }
 0xd08   : > { %v7122_v35 = vadd.f32 %v7121_v29, %v7120_v20 }
 0xd09   : > { %v7222_v28 = vsel %vm441_vm0, %v7169_v26, 0.0  ;;  %v7224_v0 = vsel %vm441_vm0, %v7170_v59, 0.0 }
 0xd0a   : > { %v7223_v9 = vadd.f32 %v7222_v28, %v7221_v31  ;;  %v7124_v13 = vadd.f32 %v7123_v52, %v7122_v35 }
 0xd0c   : > { %v7225_v36 = vadd.f32 %v7224_v0, %v7223_v9 }
 0xd23   : > { %v12148_v17 = vpop.f32.mrb[40].mxu0 }
 0xd24   : > { %v12162_v7 = vpop.f32.mrb[41].mxu0 }
 0xd25   : > { %v12326_v15 = vadd.f32 %v12107_v45, %v12162_v7  ;;  %v12338_v7 = vadd.f32 %v12148_v17, %v12107_v45 }
 0xd27   : > { %v7171_v16 = vmul.f32 %v12326_v15, %v12326_v15  ;;  %v7125_v39 = vsel %vm441_vm0, %v12326_v15, 0.0  ;;  %v7172_v51 = vmul.f32 %v12338_v7, %v12338_v7 }
 0xd28   : > { %v7126_v14 = vadd.f32 %v7125_v39, %v7124_v13 }
 0xd29   : > { %v7226_v34 = vsel %vm441_vm0, %v7171_v16, 0.0  ;;  %v7228_v49 = vsel %vm441_vm0, %v7172_v51, 0.0 }
 0xd2a   : > { %v7227_v58 = vadd.f32 %v7226_v34, %v7225_v36 }
 0xd2c   : > { %v7229_v55 = vadd.f32 %v7228_v49, %v7227_v58 }
 0xd43   : > { %v12254_v25 = vpop.f32.mrb[42].mxu0 }
 0xd44   : > { %v7049_v38 = vpop.f32.mrb[43].mxu0  ;;  %v12355_v44 = vadd.f32 %v12254_v25, %v12107_v45 }
 0xd45   : > { %v12343_v24 = vadd.f32 %v12107_v45, %v7049_v38  ;;  %v7127_v38 = vsel %vm441_vm0, %v12338_v7, 0.0 }
 0xd46   : > { %v7128_v21 = vadd.f32 %v7127_v38, %v7126_v14  ;;  %v7174_v57 = vmul.f32 %v12355_v44, %v12355_v44  ;;  %v7131_v27 = vsel %vm441_vm0, %v12355_v44, 0.0 }
 0xd47   : > { %v7173_v17 = vmul.f32 %v12343_v24, %v12343_v24  ;;  %v7129_v8 = vsel %vm441_vm0, %v12343_v24, 0.0 }
 0xd48   : > { %v7130_v53 = vadd.f32 %v7129_v8, %v7128_v21  ;;  %v7232_v54 = vsel %vm441_vm0, %v7174_v57, 0.0 }
 0xd49   : > { %v7230_v40 = vsel %vm441_vm0, %v7173_v17, 0.0 }
 0xd4a   : > { %v7231_v26 = vadd.f32 %v7230_v40, %v7229_v55  ;;  %v7132_v20 = vadd.f32 %v7131_v27, %v7130_v53 }
 0xd4c   : > { %v7233_v31 = vadd.f32 %v7232_v54, %v7231_v26 }
 0xd63   : > { %v7944_v23 = vpop.f32.mrb[44].mxu0 }
 0xd64   : > { %v7059_v50 = vpop.f32.mrb[45].mxu0  ;;  %v12371_v41 = vadd.f32 %v7944_v23, %v12107_v45 }
 0xd65   : > { %v12360_v42 = vadd.f32 %v12107_v45, %v7059_v50 }
 0xd66   : > { %v7176_v59 = vmul.f32 %v12371_v41, %v12371_v41  ;;  %v7135_v13 = vsel %vm441_vm0, %v12371_v41, 0.0 }
 0xd67   : > { %v7175_v25 = vmul.f32 %v12360_v42, %v12360_v42  ;;  %v7133_v29 = vsel %vm441_vm0, %v12360_v42, 0.0 }
 0xd68   : > { %v7134_v35 = vadd.f32 %v7133_v29, %v7132_v20  ;;  %v7236_v14 = vsel %vm441_vm0, %v7176_v59, 0.0 }
 0xd69   : > { %v7234_v28 = vsel %vm441_vm0, %v7175_v25, 0.0 }
 0xd6a   : > { %v7235_v9 = vadd.f32 %v7234_v28, %v7233_v31  ;;  %v7136_v34 = vadd.f32 %v7135_v13, %v7134_v35 }
 0xd6c   : > { %v7237_v50 = vadd.f32 %v7236_v14, %v7235_v9 }
 0xd70   : > { %v7947_v16 = vpop.f32.mrb[46].mxu0 }
 0xd71   : > { %v12380_v52 = vadd.f32 %v7947_v16, %v12107_v45  ;;  %v7069_v39 = vpop.f32.mrb[47].mxu0 }
 0xd72   : > { %v12385_v0 = vadd.f32 %v12107_v45, %v7069_v39 }
 0xd73   : > { %v7178_v36 = vmul.f32 %v12380_v52, %v12380_v52  ;;  %v7139_v58 = vsel %vm441_vm0, %v12380_v52, 0.0 }
 0xd74   : > { %v7137_v23 = vsel %vm441_vm0, %v12385_v0, 0.0  ;;  %v7177_v51 = vmul.f32 %v12385_v0, %v12385_v0 }
 0xd75   : > { %v7138_v17 = vadd.f32 %v7137_v23, %v7136_v34  ;;  %v7240_v21 = vsel %vm441_vm0, %v7178_v36, 0.0 }
 0xd76   : > { %v7238_v45 = vsel %vm441_vm0, %v7177_v51, 0.0 }
 0xd77   : > { %v7140_v38 = vadd.f32 %v7139_v58, %v7138_v17  ;;  %v7239_v8 = vadd.f32 %v7238_v45, %v7237_v50 }
 0xd79   : > { %v7141_v49 = vrot.slane %v7140_v38, 4  ;;  %v7241_v40 = vadd.f32 %v7240_v21, %v7239_v8 }
 0xd7b   : > { %v7142_v53 = vadd.f32 %v7141_v49, %v7140_v38  ;;  %v7242_v55 = vrot.slane %v7241_v40, 4 }
 0xd7d   : > { %v7143_v57 = vrot.slane %v7142_v53, 2  ;;  %v7243_v25 = vadd.f32 %v7242_v55, %v7241_v40 }
 0xd7f   : > { %v7144_v26 = vadd.f32 %v7143_v57, %v7142_v53  ;;  %v7244_v27 = vrot.slane %v7243_v25, 2 }
 0xd81   : > { %v7145_v29 = vrot.slane %v7144_v26, 1  ;;  %v7245_v20 = vadd.f32 %v7244_v27, %v7243_v25 }
 0xd83   : > { %v7146_v54 = vadd.f32 %v7145_v29, %v7144_v26  ;;  %v7246_v28 = vrot.slane %v7245_v20, 1 }
 0xd85   : > { %v7248_v35 = vsel %vm2646_vm11, %v7146_v54, 0.0  ;;  %v7247_v31 = vadd.f32 %v7246_v28, %v7245_v20 }
 0xd86   : > { %7249 = vadd.xlane.f32.xlu0 %v7248_v35 }
 0xd87   : > { %v7261_v59 = vsel %vm2646_vm11, %v7247_v31, 0.0 }
 0xd88   : > { %7262 = vadd.xlane.f32.xlu1 %v7261_v59 }
 0xd99   : > { %7300 = vrot.lane.b32.xlu1 %v7247_v31, %s12593_s19 }
 0xd9c   : > { %7283 = vrot.lane.b32.xlu0 %v7146_v54, %s12593_s19 }
 0xe13   : > { %v7250_v16 = vpop.xlane.xlu0 %7249 }
 0xe14   : > { %v7251_v9 = vrot.slane %v7250_v16, 4 }
 0xe15   : > { %v7263_v39 = vpop.xlane.xlu1 %7262 }
 0xe16   : > { %v7252_v13 = vadd.f32 %v7251_v9, %v7250_v16  ;;  %v7264_v34 = vrot.slane %v7263_v39, 4 }
 0xe17   : > { %v7284_v14 = vpop.permute.xlu0 %7283 }
 0xe18   : > { %v7253_v36 = vrot.slane %v7252_v13, 2  ;;  %v7265_v23 = vadd.f32 %v7264_v34, %v7263_v39  ;;  %v7286_v51 = vsel %vm2646_vm11, %v7284_v14, 0.0 }
 0xe19   : > { %v7301_v17 = vpop.permute.xlu1 %7300  ;;  %7287 = vadd.xlane.f32.xlu0 %v7286_v51  ;;  %v7326_v51 = vld [vmem:[%s12572_s11] sm:$0x1] }
 0xe1a   : > { %v7266_v50 = vrot.slane %v7265_v23, 2  ;;  %v7303_v58 = vsel %vm2646_vm11, %v7301_v17, 0.0  ;;  %v7254_v45 = vadd.f32 %v7253_v36, %v7252_v13 }
 0xe1b   : > { %7304 = vadd.xlane.f32.xlu1 %v7303_v58 }
 0xe1c   : > { %v7255_v38 = vrot.slane %v7254_v45, 1  ;;  %v7267_v8 = vadd.f32 %v7266_v50, %v7265_v23 }
 0xe1e   : > { %v7256_v21 = vadd.f32 %v7255_v38, %v7254_v45  ;;  %v7268_v49 = vrot.slane %v7267_v8, 1  ;;  %v7328_v38 = vld [vmem:[%s12573_s12] sm:$0x1] }
 0xe20   : > { %8018 = vpush %v7256_v21  ;;  %v7269_v40 = vadd.f32 %v7268_v49, %v7267_v8 }
 0xe22   : > { %8020 = vpush %v7269_v40 }
 0xe51   : > { %s8019_s19 = spop %8018 }
 0xe52   : > { %s12404_s14 = smul.f32 0.0009765625, %s8019_s19 }
 0xe53   : > { %s8021_s24 = spop %8020 }
 0xe54   : > { %s7274_s27 = smul.f32 %s12404_s14, %s12404_s14  ;;  %v7280_v13 = vstv %s12404_s14 }
 0xe55   : > { %s7273_s20 = smul.f32 0.0009765625, %s8021_s24 }
 0xe57   : > { %s7275_s17 = ssub.f32 %s7273_s20, %s7274_s27 }
 0xe59   : > { %s7276_s30 = sadd.f32 1e-05, %s7275_s17  ;;  %s12600_s17 = sshll.u32 %s12602_s26, 8 }
 0xe5b   : > { %v7277_v53 = vstv %s7276_s30 }
 0xe5c   : > { %8060 = vrsqrt.f32 %v7277_v53 }
 0xe66   : > { %v8061_v55 = vpop.eup %8060 }
 0xe67   : > { %8022 = vpush %v8061_v55 }
 0xe98   : > { %s8023_s18 = spop %8022 }
 0xe99   : > { %v7281_v17 = vstv %s8023_s18 }
 0xea6   : > { %v7288_v57 = vpop.xlane.xlu0 %7287 }
 0xea7   : > { %v7289_v25 = vrot.slane %v7288_v57, 4 }
 0xea8   : > { %v7305_v26 = vpop.xlane.xlu1 %7304 }
 0xea9   : > { %v7290_v27 = vadd.f32 %v7289_v25, %v7288_v57  ;;  %v7306_v29 = vrot.slane %v7305_v26, 4 }
 0xeab   : > { %v7291_v20 = vrot.slane %v7290_v27, 2  ;;  %v7307_v54 = vadd.f32 %v7306_v29, %v7305_v26 }
 0xead   : > { %v7292_v28 = vadd.f32 %v7291_v20, %v7290_v27  ;;  %v7308_v35 = vrot.slane %v7307_v54, 2 }
 0xeaf   : > { %v7309_v31 = vadd.f32 %v7308_v35, %v7307_v54  ;;  %v7293_v59 = vrot.slane %v7292_v28, 1 }
 0xeb1   : > { %v7294_v16 = vadd.f32 %v7293_v59, %v7292_v28  ;;  %v7310_v9 = vrot.slane %v7309_v31, 1 }
 0xeb3   : > { %8024 = vpush %v7294_v16  ;;  %v7311_v39 = vadd.f32 %v7310_v9, %v7309_v31 }
 0xeb5   : > { %8026 = vpush %v7311_v39 }
 0xee4   : > { %s8025_s21 = spop %8024 }
 0xee5   : > { %s7298_s28 = smul.f32 0.0009765625, %s8025_s21  ;;  %s12472_s21 = scalar_lea.vmem %s12574_s13, %s12600_s17 }
 0xee6   : > { %s8027_s22 = spop %8026 }
 0xee7   : > { %s7316_s16 = smul.f32 %s7298_s28, %s7298_s28  ;;  %v7322_v34 = vstv %s7298_s28 }
 0xee8   : > { %v7324_v14 = vsel %vm530_vm2, %v7280_v13, %v7322_v34  ;;  %s7315_s15 = smul.f32 0.0009765625, %s8027_s22 }
 0xeea   : > { %s7317_s23 = ssub.f32 %s7315_s15, %s7316_s16 }
 0xeec   : > { %s7318_s29 = sadd.f32 1e-05, %s7317_s23 }
 0xeee   : > { %v7319_v36 = vstv %s7318_s29 }
 0xeef   : > { %8062 = vrsqrt.f32 %v7319_v36 }
 0xef9   : > { %v8063_v23 = vpop.eup %8062 }
 0xefa   : > { %8028 = vpush %v8063_v23 }
 0xf2b   : > { %s8029_s19 = spop %8028 }
 0xf2c   : > { %v7323_v50 = vstv %s8029_s19 }
 0xf2d   : > { %v7325_v58 = vsel %vm530_vm2, %v7281_v17, %v7323_v50 }
 0xf2e   : > { %v7327_v45 = vmul.f32 %v7326_v51, %v7325_v58 }
 0xf30   : > { %v7329_v8 = vmul.f32 %v7327_v45, %v7324_v14  ;;  %v7335_v21 = vrot.slane %v7327_v45, %v9589_v37 }
 0xf32   : > { %v7330_v49 = vsub.f32 %v7328_v38, %v7329_v8  ;;  %v7337_v40 = vmul.f32 %v7335_v21, %v12115_v30  ;;  %v7338_v53 = vmul.f32 %v7335_v21, %v12111_v43  ;;  %v7339_v55 = vmul.f32 %v7335_v21, %v12119_v47 }
 0xf33   : > { %v7340_v57 = vmul.f32 %v7335_v21, %v12135_v63  ;;  %v7341_v25 = vmul.f32 %v7335_v21, %v12141_v22  ;;  %v7342_v26 = vmul.f32 %v7335_v21, %v12154_v5  ;;  %v7343_v27 = vmul.f32 %v7335_v21, %v12160_v2 }
 0xf34   : > { %v7344_v29 = vmul.f32 %v7335_v21, %v12174_v46  ;;  %v7345_v20 = vmul.f32 %v7335_v21, %v12180_v11  ;;  %v7346_v54 = vmul.f32 %v7335_v21, %v12192_v48  ;;  %v7347_v30 = vmul.f32 %v7335_v21, %v12198_v1 }
 0xf35   : > { %v7348_v43 = vmul.f32 %v7335_v21, %v12210_v3  ;;  %v7349_v47 = vmul.f32 %v7335_v21, %v12216_v19  ;;  %v7350_v63 = vmul.f32 %v7335_v21, %v12228_v33  ;;  %v7351_v22 = vmul.f32 %v7335_v21, %v12234_v10 }
 0xf36   : > { %v7352_v5 = vmul.f32 %v7335_v21, %v12246_v12  ;;  %v7353_v2 = vmul.f32 %v7335_v21, %v12252_v4  ;;  %v7354_v46 = vmul.f32 %v7335_v21, %v12266_v56  ;;  %v7355_v11 = vmul.f32 %v7335_v21, %v12272_v32 }
 0xf37   : > { %v7356_v48 = vmul.f32 %v7335_v21, %v12284_v18  ;;  %v7357_v1 = vmul.f32 %v7335_v21, %v12290_v6  ;;  %v7358_v3 = vmul.f32 %v7335_v21, %v12302_v62  ;;  %v7359_v19 = vmul.f32 %v7335_v21, %v12308_v61 }
 0xf38   : > { %v7360_v33 = vmul.f32 %v7335_v21, %v12320_v60  ;;  %v7361_v10 = vmul.f32 %v7335_v21, %v12326_v15  ;;  %v7362_v12 = vmul.f32 %v7335_v21, %v12338_v7  ;;  %v7363_v4 = vmul.f32 %v7335_v21, %v12343_v24 }
 0xf39   : > { %v7364_v56 = vmul.f32 %v7335_v21, %v12355_v44  ;;  %v7373_v32 = vrot.slane %v7330_v49, %v9589_v37  ;;  %v7365_v18 = vmul.f32 %v7335_v21, %v12360_v42  ;;  %v7366_v6 = vmul.f32 %v7335_v21, %v12371_v41 }
 0xf3a   : > { %v7367_v62 = vmul.f32 %v7335_v21, %v12385_v0  ;;  %v7368_v61 = vmul.f32 %v7335_v21, %v12380_v52 }
 0xf3b   : > { %v7375_v28 = vadd.f32 %v7373_v32, %v7337_v40  ;;  %v7376_v60 = vadd.f32 %v7373_v32, %v7338_v53  ;;  %v7377_v35 = vadd.f32 %v7373_v32, %v7339_v55  ;;  %v7378_v15 = vadd.f32 %v7373_v32, %v7340_v57 }
 0xf3c   : > { %v7379_v31 = vadd.f32 %v7373_v32, %v7341_v25  ;;  %v7380_v7 = vadd.f32 %v7373_v32, %v7342_v26  ;;  %v7381_v59 = vadd.f32 %v7373_v32, %v7343_v27  ;;  %v7382_v24 = vadd.f32 %v7373_v32, %v7344_v29 }
 0xf3d   : > { %v7383_v16 = vadd.f32 %v7373_v32, %v7345_v20  ;;  %v7384_v44 = vadd.f32 %v7373_v32, %v7346_v54  ;;  %v7385_v9 = vadd.f32 %v7373_v32, %v7347_v30  ;;  %v7386_v37 = vadd.f32 %v7373_v32, %v7348_v43 }
 0xf3e   : > { %v7387_v39 = vadd.f32 %v7373_v32, %v7349_v47  ;;  %v7388_v42 = vadd.f32 %v7373_v32, %v7350_v63  ;;  %v7389_v41 = vadd.f32 %v7373_v32, %v7351_v22  ;;  %v7390_v13 = vadd.f32 %v7373_v32, %v7352_v5 }
 0xf3f   : > { %v7391_v0 = vadd.f32 %v7373_v32, %v7353_v2  ;;  %v7392_v34 = vadd.f32 %v7373_v32, %v7354_v46  ;;  %v7393_v52 = vadd.f32 %v7373_v32, %v7355_v11  ;;  %v7394_v14 = vadd.f32 %v7373_v32, %v7356_v48 }
 0xf40   : > { %v12451_v36 = vadd.f32 %v7373_v32, %v7357_v1  ;;  %v12453_v23 = vadd.f32 %v7373_v32, %v7358_v3  ;;  %v12455_v51 = vadd.f32 %v7373_v32, %v7359_v19  ;;  %v12457_v17 = vadd.f32 %v7373_v32, %v7360_v33 }
 0xf41   : > { %v12459_v50 = vadd.f32 %v7373_v32, %v7361_v10  ;;  %v12461_v58 = vadd.f32 %v7373_v32, %v7362_v12  ;;  %v12463_v45 = vadd.f32 %v7373_v32, %v7363_v4  ;;  %v12465_v38 = vadd.f32 %v7373_v32, %v7364_v56 }
 0xf42   : > { %v12474_v8 = vadd.f32 %v7373_v32, %v7365_v18  ;;  %v12476_v21 = vadd.f32 %v7373_v32, %v7366_v6  ;;  %v12478_v49 = vadd.f32 %v7373_v32, %v7367_v62  ;;  %v12480_v40 = vadd.f32 %v7373_v32, %v7368_v61 }
 0xf43   : > { %v7407_v53 = vmax.f32 %v7375_v28, 0.0  ;;  %v7408_v55 = vmax.f32 %v7376_v60, 0.0  ;;  %v7409_v57 = vmax.f32 %v7377_v35, 0.0  ;;  %v7410_v25 = vmax.f32 %v7378_v15, 0.0 }
 0xf44   : > { %v7411_v26 = vmax.f32 %v7379_v31, 0.0  ;;  %v7412_v27 = vmax.f32 %v7380_v7, 0.0  ;;  %v7413_v29 = vmax.f32 %v7381_v59, 0.0  ;;  %v7414_v20 = vmax.f32 %v7382_v24, 0.0 }
 0xf45   : > { %v7415_v54 = vmax.f32 %v7383_v16, 0.0  ;;  %v7416_v30 = vmax.f32 %v7384_v44, 0.0  ;;  %v7417_v43 = vmax.f32 %v7385_v9, 0.0  ;;  %v7418_v47 = vmax.f32 %v7386_v37, 0.0  ;;  %7439 = vst.msk [vmem:[%s12472_s21] sm:$0xff] %vm441_vm0, %v7407_v53  ;;  %7440 = vst.msk [vmem:[%s12472_s21 + $0x8] sm:$0xff] %vm441_vm0, %v7408_v55 }
 0xf46   : > { %7441 = vst.msk [vmem:[%s12472_s21 + $0x10] sm:$0xff] %vm441_vm0, %v7409_v57  ;;  %7442 = vst.msk [vmem:[%s12472_s21 + $0x18] sm:$0xff] %vm441_vm0, %v7410_v25  ;;  %v7419_v63 = vmax.f32 %v7387_v39, 0.0  ;;  %v7420_v22 = vmax.f32 %v7388_v42, 0.0  ;;  %v7421_v5 = vmax.f32 %v7389_v41, 0.0  ;;  %v7422_v2 = vmax.f32 %v7390_v13, 0.0 }
 0xf47   : > { %7443 = vst.msk [vmem:[%s12472_s21 + $0x20] sm:$0xff] %vm441_vm0, %v7411_v26  ;;  %7444 = vst.msk [vmem:[%s12472_s21 + $0x28] sm:$0xff] %vm441_vm0, %v7412_v27  ;;  %v7423_v46 = vmax.f32 %v7391_v0, 0.0  ;;  %v7424_v11 = vmax.f32 %v7392_v34, 0.0  ;;  %v7425_v48 = vmax.f32 %v7393_v52, 0.0  ;;  %v7426_v1 = vmax.f32 %v7394_v14, 0.0 }
 0xf48   : > { %7445 = vst.msk [vmem:[%s12472_s21 + $0x30] sm:$0xff] %vm441_vm0, %v7413_v29  ;;  %7446 = vst.msk [vmem:[%s12472_s21 + $0x38] sm:$0xff] %vm441_vm0, %v7414_v20  ;;  %v7427_v3 = vmax.f32 %v12451_v36, 0.0  ;;  %v7428_v19 = vmax.f32 %v12453_v23, 0.0  ;;  %v7429_v33 = vmax.f32 %v12455_v51, 0.0  ;;  %v7430_v10 = vmax.f32 %v12457_v17, 0.0 }
 0xf49   : > { %7447 = vst.msk [vmem:[%s12472_s21 + $0x40] sm:$0xff] %vm441_vm0, %v7415_v54  ;;  %7448 = vst.msk [vmem:[%s12472_s21 + $0x48] sm:$0xff] %vm441_vm0, %v7416_v30  ;;  %v7431_v12 = vmax.f32 %v12459_v50, 0.0  ;;  %v7432_v4 = vmax.f32 %v12461_v58, 0.0  ;;  %v7433_v56 = vmax.f32 %v12463_v45, 0.0  ;;  %v7434_v32 = vmax.f32 %v12465_v38, 0.0 }
 0xf4a   : > { %7449 = vst.msk [vmem:[%s12472_s21 + $0x50] sm:$0xff] %vm441_vm0, %v7417_v43  ;;  %7450 = vst.msk [vmem:[%s12472_s21 + $0x58] sm:$0xff] %vm441_vm0, %v7418_v47  ;;  %v7435_v18 = vmax.f32 %v12474_v8, 0.0  ;;  %v7436_v6 = vmax.f32 %v12476_v21, 0.0  ;;  %v7437_v62 = vmax.f32 %v12478_v49, 0.0  ;;  %v7438_v61 = vmax.f32 %v12480_v40, 0.0 }
 0xf4b   : > { %7451 = vst.msk [vmem:[%s12472_s21 + $0x60] sm:$0xff] %vm441_vm0, %v7419_v63  ;;  %7452 = vst.msk [vmem:[%s12472_s21 + $0x68] sm:$0xff] %vm441_vm0, %v7420_v22 }
 0xf4c   : > { %7453 = vst.msk [vmem:[%s12472_s21 + $0x70] sm:$0xff] %vm441_vm0, %v7421_v5  ;;  %7454 = vst.msk [vmem:[%s12472_s21 + $0x78] sm:$0xff] %vm441_vm0, %v7422_v2 }
 0xf4d   : > { %7455 = vst.msk [vmem:[%s12472_s21 + $0x80] sm:$0xff] %vm441_vm0, %v7423_v46  ;;  %7456 = vst.msk [vmem:[%s12472_s21 + $0x88] sm:$0xff] %vm441_vm0, %v7424_v11 }
 0xf4e   : > { %7457 = vst.msk [vmem:[%s12472_s21 + $0x90] sm:$0xff] %vm441_vm0, %v7425_v48  ;;  %7458 = vst.msk [vmem:[%s12472_s21 + $0x98] sm:$0xff] %vm441_vm0, %v7426_v1 }
 0xf4f   : > { %7459 = vst.msk [vmem:[%s12472_s21 + $0xa0] sm:$0xff] %vm441_vm0, %v7427_v3  ;;  %7460 = vst.msk [vmem:[%s12472_s21 + $0xa8] sm:$0xff] %vm441_vm0, %v7428_v19 }
 0xf50   : > { %7461 = vst.msk [vmem:[%s12472_s21 + $0xb0] sm:$0xff] %vm441_vm0, %v7429_v33  ;;  %7462 = vst.msk [vmem:[%s12472_s21 + $0xb8] sm:$0xff] %vm441_vm0, %v7430_v10 }
 0xf51   : > { %7463 = vst.msk [vmem:[%s12472_s21 + $0xc0] sm:$0xff] %vm441_vm0, %v7431_v12  ;;  %7464 = vst.msk [vmem:[%s12472_s21 + $0xc8] sm:$0xff] %vm441_vm0, %v7432_v4 }
 0xf52   : > { %7465 = vst.msk [vmem:[%s12472_s21 + $0xd0] sm:$0xff] %vm441_vm0, %v7433_v56  ;;  %7466 = vst.msk [vmem:[%s12472_s21 + $0xd8] sm:$0xff] %vm441_vm0, %v7434_v32 }
 0xf53   : > { %7467 = vst.msk [vmem:[%s12472_s21 + $0xe0] sm:$0xff] %vm441_vm0, %v7435_v18  ;;  %7468 = vst.msk [vmem:[%s12472_s21 + $0xe8] sm:$0xff] %vm441_vm0, %v7436_v6 }
 0xf54   : > { %7469 = vst.msk [vmem:[%s12472_s21 + $0xf0] sm:$0xff] %vm441_vm0, %v7437_v62  ;;  %7470 = vst.msk [vmem:[%s12472_s21 + $0xf8] sm:$0xff] %vm441_vm0, %v7438_v61 }
 0xf55 PF: > { %s23_s25 = sadd.s32 1, %s8070_s25  }
 0xf56   : > { %p20_p4 = scmp.ge.s32.totalorder %s23_s25, 4  }
 0xf58   :  { %22 = sbr.rel (!%p20_p4) target bundleno = 1 (0x1), region = 104 }

</bundles_post_ra>
